<compile_context>
chip_gen: v6e
topology: v6e:2x2x1
jax: 0.10.0
libtpu: 0.0.40
codegen_flags: <defaults>
</compile_context>

<pallas_src>
import jax
import jax.numpy as jnp
from jax.experimental import pallas as pl
from jax.experimental.pallas import tpu as pltpu

BN_EPS = 1e-5
EXPANSION = 4                 # BottleBlock.expansion
TM_CAP = 512                  # token rows per grid step (v5e/v6e-friendly)
VMEM_LIMIT = 64 * 1024 * 1024


def _choose_tm(m, cap=TM_CAP):
    """Largest divisor of m that is a multiple of 8 and <= cap."""
    best, t = 8, 8
    top = min(cap, m)
    while t <= top:
        if m % t == 0:
            best = t
        t += 8
    return best


def _cparams(semantics):
    return pltpu.CompilerParams(dimension_semantics=semantics,
                                vmem_limit_bytes=VMEM_LIMIT)


def _partial_colsum(y):
    """(R, C) f32 -> (8, C) partial column sums (VPU-only when R % 8 == 0)."""
    r, c = y.shape
    if r % 8 == 0:
        return y.reshape(r // 8, 8, c).sum(axis=0)
    tot = jnp.sum(y, axis=0, keepdims=True)
    return jnp.concatenate([tot, jnp.zeros((7, c), jnp.float32)], axis=0)


# ----------------------------------------------------------------------------
# K1: 1x1 conv (matmul) + per-channel sum / sum-of-squares accumulation.
# Grid = (ncore "parallel", tiles-per-core "arbitrary"); stats are per-core
# resident (1, 8, C) blocks, summed on the host.
# ----------------------------------------------------------------------------
def _k1_conv_stats(x2d, w1, tm, ncore):
    m, cin = x2d.shape
    cmid = w1.shape[1]
    per = (m // tm) // ncore

    def kernel(x_ref, w_ref, y_ref, sum_ref, sq_ref):
        @pl.when(pl.program_id(1) == 0)
        def _init():
            sum_ref[...] = jnp.zeros_like(sum_ref)
            sq_ref[...] = jnp.zeros_like(sq_ref)

        xb = x_ref[...].astype(jnp.bfloat16)   # f32 -> bf16 in-kernel (free VPU slack)
        y = jnp.dot(xb, w_ref[...], preferred_element_type=jnp.float32)
        y_ref[...] = y.astype(y_ref.dtype)
        sum_ref[0] += _partial_colsum(y)
        sq_ref[0] += _partial_colsum(y * y)

    return pl.pallas_call(
        kernel,
        grid=(ncore, per),
        in_specs=[
            pl.BlockSpec((tm, cin), lambda c, i: (c * per + i, 0)),
            pl.BlockSpec((cin, cmid), lambda c, i: (0, 0)),
        ],
        out_specs=(
            pl.BlockSpec((tm, cmid), lambda c, i: (c * per + i, 0)),
            pl.BlockSpec((1, 8, cmid), lambda c, i: (c, 0, 0)),
            pl.BlockSpec((1, 8, cmid), lambda c, i: (c, 0, 0)),
        ),
        out_shape=(
            jax.ShapeDtypeStruct((m, cmid), jnp.bfloat16),
            jax.ShapeDtypeStruct((ncore, 8, cmid), jnp.float32),
            jax.ShapeDtypeStruct((ncore, 8, cmid), jnp.float32),
        ),
        compiler_params=_cparams(("parallel", "arbitrary")),
    )(x2d, w1)


# ----------------------------------------------------------------------------
# K2: fused bn1+relu + 3x3 conv + stats for bn2.
# Scatter formulation: for each tap (kh,kw) we matmul the *whole* un-padded
# image (contiguous, aligned MXU operand) and add a shifted window of the
# result into an f32 VMEM accumulator.  Out-of-range contributions are simply
# never added, so no halo, no zero padding, no masks.
# ----------------------------------------------------------------------------
def _k2_bn_conv3x3_stats(y1, scale1, shift1, w2, h, w, d, ncore):
    n, hw, cmid = y1.shape
    co = w2.shape[2]
    per = n // ncore

    def kernel(x_ref, sc_ref, sh_ref, w_ref, o_ref, sum_ref, sq_ref, acc_ref):
        @pl.when(pl.program_id(1) == 0)
        def _init():
            sum_ref[...] = jnp.zeros_like(sum_ref)
            sq_ref[...] = jnp.zeros_like(sq_ref)

        # bn1 + relu, one bf16 cast for the whole image
        a = x_ref[0].astype(jnp.float32) * sc_ref[...] + sh_ref[...]
        a = jnp.maximum(a, 0.0).astype(jnp.bfloat16)          # (h*w, cmid)

        # center tap initializes the accumulator (covers every output pixel)
        p = jnp.dot(a, w_ref[4], preferred_element_type=jnp.float32)
        acc_ref[...] = p.reshape(h, w, co)

        for kh in range(3):
            for kw in range(3):
                if kh == 1 and kw == 1:
                    continue
                p = jnp.dot(a, w_ref[kh * 3 + kw],
                            preferred_element_type=jnp.float32).reshape(h, w, co)
                dh, dw = (kh - 1) * d, (kw - 1) * d
                i0, i1 = max(0, -dh), min(h, h - dh)
                j0, j1 = max(0, -dw), min(w, w - dw)
                acc_ref[i0:i1, j0:j1, :] += p[i0 + dh:i1 + dh, j0 + dw:j1 + dw, :]

        out = acc_ref[...].reshape(h * w, co)
        o_ref[0] = out.astype(o_ref.dtype)
        sum_ref[0] += _partial_colsum(out)
        sq_ref[0] += _partial_colsum(out * out)

    return pl.pallas_call(
        kernel,
        grid=(ncore, per),
        in_specs=[
            pl.BlockSpec((1, hw, cmid), lambda c, i: (c * per + i, 0, 0)),
            pl.BlockSpec((1, cmid), lambda c, i: (0, 0)),
            pl.BlockSpec((1, cmid), lambda c, i: (0, 0)),
            pl.BlockSpec((9, cmid, co), lambda c, i: (0, 0, 0)),
        ],
        out_specs=(
            pl.BlockSpec((1, hw, co), lambda c, i: (c * per + i, 0, 0)),
            pl.BlockSpec((1, 8, co), lambda c, i: (c, 0, 0)),
            pl.BlockSpec((1, 8, co), lambda c, i: (c, 0, 0)),
        ),
        out_shape=(
            jax.ShapeDtypeStruct((n, hw, co), jnp.bfloat16),
            jax.ShapeDtypeStruct((ncore, 8, co), jnp.float32),
            jax.ShapeDtypeStruct((ncore, 8, co), jnp.float32),
        ),
        scratch_shapes=[pltpu.VMEM((h, w, co), jnp.float32)],
        compiler_params=_cparams(("parallel", "arbitrary")),
    )(y1, scale1, shift1, w2)


# ----------------------------------------------------------------------------
# K3: fused bn2+relu + 1x1 conv (matmul) + stats for bn3.
# ----------------------------------------------------------------------------
def _k3_bn_conv_stats(y2, scale2, shift2, w3, tm, ncore):
    m, cmid = y2.shape
    cout = w3.shape[1]
    per = (m // tm) // ncore

    def kernel(y_ref, sc_ref, sh_ref, w_ref, o_ref, sum_ref, sq_ref):
        @pl.when(pl.program_id(1) == 0)
        def _init():
            sum_ref[...] = jnp.zeros_like(sum_ref)
            sq_ref[...] = jnp.zeros_like(sq_ref)

        a = y_ref[...].astype(jnp.float32) * sc_ref[...] + sh_ref[...]
        a = jnp.maximum(a, 0.0).astype(jnp.bfloat16)
        y = jnp.dot(a, w_ref[...], preferred_element_type=jnp.float32)
        o_ref[...] = y.astype(o_ref.dtype)
        sum_ref[0] += _partial_colsum(y)
        sq_ref[0] += _partial_colsum(y * y)

    return pl.pallas_call(
        kernel,
        grid=(ncore, per),
        in_specs=[
            pl.BlockSpec((tm, cmid), lambda c, i: (c * per + i, 0)),
            pl.BlockSpec((1, cmid), lambda c, i: (0, 0)),
            pl.BlockSpec((1, cmid), lambda c, i: (0, 0)),
            pl.BlockSpec((cmid, cout), lambda c, i: (0, 0)),
        ],
        out_specs=(
            pl.BlockSpec((tm, cout), lambda c, i: (c * per + i, 0)),
            pl.BlockSpec((1, 8, cout), lambda c, i: (c, 0, 0)),
            pl.BlockSpec((1, 8, cout), lambda c, i: (c, 0, 0)),
        ),
        out_shape=(
            jax.ShapeDtypeStruct((m, cout), jnp.bfloat16),
            jax.ShapeDtypeStruct((ncore, 8, cout), jnp.float32),
            jax.ShapeDtypeStruct((ncore, 8, cout), jnp.float32),
        ),
        compiler_params=_cparams(("parallel", "arbitrary")),
    )(y2, scale2, shift2, w3)


# ----------------------------------------------------------------------------
# K4: fused bn3 + identity residual + relu.  No stats -> fully "parallel".
# ----------------------------------------------------------------------------
def _k4_bn_res_relu(y3, scale3, shift3, res, tm):
    m, cout = y3.shape

    def kernel(y_ref, sc_ref, sh_ref, r_ref, o_ref):
        y = y_ref[...].astype(jnp.float32) * sc_ref[...] + sh_ref[...]
        o_ref[...] = jnp.maximum(y + r_ref[...], 0.0)

    return pl.pallas_call(
        kernel,
        grid=(m // tm,),
        in_specs=[
            pl.BlockSpec((tm, cout), lambda i: (i, 0)),
            pl.BlockSpec((1, cout), lambda i: (0, 0)),
            pl.BlockSpec((1, cout), lambda i: (0, 0)),
            pl.BlockSpec((tm, cout), lambda i: (i, 0)),
        ],
        out_specs=pl.BlockSpec((tm, cout), lambda i: (i, 0)),
        out_shape=jax.ShapeDtypeStruct((m, cout), jnp.float32),
        compiler_params=_cparams(("parallel",)),
    )(y3, scale3, shift3, res)


# ----------------------------------------------------------------------------
# Host glue: fold training-mode BN stats into per-channel scale/shift.
# Stats arrays are (ncore, 8, C) partials -> total = sum over (0, 1).
# ----------------------------------------------------------------------------
def _bn_fold(sum_arr, sq_arr, count, gamma, beta):
    s = jnp.sum(sum_arr, axis=(0, 1))
    q = jnp.sum(sq_arr, axis=(0, 1))
    mean = s / count
    var = jnp.maximum(q / count - mean * mean, 0.0)   # biased variance
    rstd = jax.lax.rsqrt(var + BN_EPS)
    scale = gamma * rstd
    shift = beta - mean * scale
    return scale.reshape(1, -1).astype(jnp.float32), shift.reshape(1, -1).astype(jnp.float32)


# ----------------------------------------------------------------------------
# BottleBlock forward (default args: stride=1, dilation=1, is_botnet_layer=False)
# ----------------------------------------------------------------------------
def bottle_block_forward(x_nchw, params, dilation=1):
    n, cin, h, w = x_nchw.shape
    w1, w2, w3 = params["w1"], params["w2"], params["w3"]
    cmid = w1.shape[1]
    cout = w3.shape[1]
    assert cin == cout, "identity residual needs in_ch == out_ch * expansion"

    m = n * h * w
    assert m % 8 == 0, "N*H*W must be a multiple of 8"
    tm = _choose_tm(m)
    tiles = m // tm
    ncore = 2 if (tiles % 2 == 0 and tiles >= 2) else 1      # v7x dual-TC split
    ncore_img = 2 if (n % 2 == 0 and n >= 2) else 1

    # NCHW -> (tokens, channels); the only host-side layout pass on the input.
    x2d = jnp.transpose(x_nchw, (0, 2, 3, 1)).reshape(m, cin)

    # stage 1: conv1 (1x1) + batch stats
    y1, s1, q1 = _k1_conv_stats(x2d, w1, tm, ncore)
    sc1, sh1 = _bn_fold(s1, q1, m, params["g1"], params["b1"])

    # stage 2: bn1+relu + conv2 (3x3, padding=dilation) + batch stats
    y2, s2, q2 = _k2_bn_conv3x3_stats(y1.reshape(n, h * w, cmid), sc1, sh1,
                                      w2, h, w, dilation, ncore_img)
    sc2, sh2 = _bn_fold(s2, q2, m, params["g2"], params["b2"])

    # stage 3: bn2+relu + conv3 (1x1) + batch stats
    y3, s3, q3 = _k3_bn_conv_stats(y2.reshape(m, cmid), sc2, sh2, w3, tm, ncore)
    sc3, sh3 = _bn_fold(s3, q3, m, params["g3"], params["b3"])

    # stage 4: bn3 + identity residual (downsample=None) + relu
    out2d = _k4_bn_res_relu(y3, sc3, sh3, x2d, tm)

    out = out2d.reshape(n, h, w, cout)
    return jnp.transpose(out, (0, 3, 1, 2))   # back to NCHW (module contract)


# ----------------------------------------------------------------------------
# Deterministic parameter init (shapes per BottleBlock.__init__); conv weights
# stored in MXU-friendly (Cin, Cout) bf16 layouts, 3x3 as (9, Cin, Cout).
# ----------------------------------------------------------------------------
def init_params(key, in_ch, out_ch):
    ks = jax.random.split(key, 9)
    cout = out_ch * EXPANSION

    # PyTorch-layout conv weights (Cout, Cin, kh, kw) -> matmul layouts.
    w1_t = 0.1 * jax.random.normal(ks[0], (out_ch, in_ch, 1, 1), jnp.float32)
    w2_t = 0.1 * jax.random.normal(ks[1], (out_ch, out_ch, 3, 3), jnp.float32)
    w3_t = 0.1 * jax.random.normal(ks[2], (cout, out_ch, 1, 1), jnp.float32)

    w1 = jnp.transpose(w1_t[:, :, 0, 0]).astype(jnp.bfloat16)                  # (Cin, Cmid)
    w2 = jnp.transpose(w2_t, (2, 3, 1, 0)).reshape(9, out_ch, out_ch).astype(jnp.bfloat16)
    w3 = jnp.transpose(w3_t[:, :, 0, 0]).astype(jnp.bfloat16)                  # (Cmid, Cout)

    def affine(kg, kb, c):
        g = 1.0 + 0.1 * jax.random.normal(kg, (c,), jnp.float32)
        b = 0.1 * jax.random.normal(kb, (c,), jnp.float32)
        return g, b

    g1, b1 = affine(ks[3], ks[4], out_ch)
    g2, b2 = affine(ks[5], ks[6], out_ch)
    g3, b3 = affine(ks[7], ks[8], cout)

    return {"w1": w1, "w2": w2, "w3": w3,
            "g1": g1, "b1": b1, "g2": g2, "b2": b2, "g3": g3, "b3": b3}


if __name__ == "__main__":
    key = jax.random.PRNGKey(0)
    kx, kp = jax.random.split(key)

    # in_ch == out_ch * expansion so the identity residual (downsample=None)
    # in the reference module is valid.  Channel counts match a real
    # first-stage BoTNet block while staying small.
    n, in_ch, out_ch, hh, ww = 4, 256, 64, 16, 16
    x = jax.random.normal(kx, (n, in_ch, hh, ww), dtype=jnp.float32)
    params = init_params(kp, in_ch, out_ch)

    fwd = jax.jit(lambda xx: bottle_block_forward(xx, params))
    out = jax.block_until_ready(fwd(x))

    assert out.shape == (n, out_ch * EXPANSION, hh, ww)
    assert bool(jnp.all(out >= 0.0))            # final ReLU
    assert bool(jnp.all(jnp.isfinite(out)))
    print("KERNEL_OK")
</pallas_src>

<mosaic_0001>
module attributes {stable_mosaic.version = 11 : i64} {
  func.func @kernel(%arg0: i32, %arg1: i32, %arg2: memref<1x256x64xbf16, #tpu.memory_space<vmem>>, %arg3: memref<1x64xf32, #tpu.memory_space<vmem>>, %arg4: memref<1x64xf32, #tpu.memory_space<vmem>>, %arg5: memref<9x64x64xbf16, #tpu.memory_space<vmem>>, %arg6: memref<1x256x64xbf16, #tpu.memory_space<vmem>>, %arg7: memref<1x8x64xf32, #tpu.memory_space<vmem>>, %arg8: memref<1x8x64xf32, #tpu.memory_space<vmem>>, %arg9: memref<16x16x64xf32, #tpu.memory_space<vmem>>) attributes {dimension_semantics = [#tpu.dimension_semantics<parallel>, #tpu.dimension_semantics<arbitrary>], iteration_bounds = array<i64: 2, 2>, scalar_prefetch = 0 : i64, scratch_operands = 1 : i64, tpu.core_type = #tpu.core_type<tc>, window_params = [{transform_indices = @transform_0, window_bounds = array<i64: 1, 256, 64>}, {pipeline_mode = #tpu.pipeline_mode<synchronous>, transform_indices = @transform_1, window_bounds = array<i64: 1, 64>}, {pipeline_mode = #tpu.pipeline_mode<synchronous>, transform_indices = @transform_2, window_bounds = array<i64: 1, 64>}, {pipeline_mode = #tpu.pipeline_mode<synchronous>, transform_indices = @transform_3, window_bounds = array<i64: 9, 64, 64>}, {transform_indices = @transform_4, window_bounds = array<i64: 1, 256, 64>}, {transform_indices = @transform_5, window_bounds = array<i64: 1, 8, 64>}, {transform_indices = @transform_6, window_bounds = array<i64: 1, 8, 64>}]} {
    %c0_i32 = arith.constant 0 : i32
    %0 = arith.cmpi eq, %arg1, %c0_i32 : i32
    %1 = arith.extui %0 : i1 to i32
    %c0_i32_0 = arith.constant 0 : i32
    %2 = arith.cmpi ne, %1, %c0_i32_0 : i32
    scf.if %2 {
      %cst_106 = arith.constant 0.000000e+00 : f32
      %107 = vector.broadcast %cst_106 : f32 to vector<1x8x64xf32>
      %c0_107 = arith.constant 0 : index
      %c0_108 = arith.constant 0 : index
      %c0_109 = arith.constant 0 : index
      %108 = vector.load %arg7[%c0_107, %c0_108, %c0_109] : memref<1x8x64xf32, #tpu.memory_space<vmem>>, vector<1x8x64xf32>
      tpu.vector_store %arg7[%c0_107, %c0_108, %c0_109], %107 {strides = array<i32>} : memref<1x8x64xf32, #tpu.memory_space<vmem>>, vector<1x8x64xf32>,
      %cst_110 = arith.constant 0.000000e+00 : f32
      %109 = vector.broadcast %cst_110 : f32 to vector<1x8x64xf32>
      %c0_111 = arith.constant 0 : index
      %c0_112 = arith.constant 0 : index
      %c0_113 = arith.constant 0 : index
      %110 = vector.load %arg8[%c0_111, %c0_112, %c0_113] : memref<1x8x64xf32, #tpu.memory_space<vmem>>, vector<1x8x64xf32>
      tpu.vector_store %arg8[%c0_111, %c0_112, %c0_113], %109 {strides = array<i32>} : memref<1x8x64xf32, #tpu.memory_space<vmem>>, vector<1x8x64xf32>,
    } else {
    }
    %c0 = arith.constant 0 : index
    %c0_1 = arith.constant 0 : index
    %c0_2 = arith.constant 0 : index
    %3 = vector.load %arg2[%c0, %c0_1, %c0_2] : memref<1x256x64xbf16, #tpu.memory_space<vmem>>, vector<1x256x64xbf16>
    %4 = vector.shape_cast %3 : vector<1x256x64xbf16> to vector<256x64xbf16>
    %5 = arith.extf %4 : vector<256x64xbf16> to vector<256x64xf32>
    %c0_3 = arith.constant 0 : index
    %c0_4 = arith.constant 0 : index
    %6 = vector.load %arg3[%c0_3, %c0_4] : memref<1x64xf32, #tpu.memory_space<vmem>>, vector<1x64xf32>
    %7 = vector.broadcast %6 : vector<1x64xf32> to vector<256x64xf32>
    %8 = arith.mulf %5, %7 : vector<256x64xf32>
    %c0_5 = arith.constant 0 : index
    %c0_6 = arith.constant 0 : index
    %9 = vector.load %arg4[%c0_5, %c0_6] : memref<1x64xf32, #tpu.memory_space<vmem>>, vector<1x64xf32>
    %10 = vector.broadcast %9 : vector<1x64xf32> to vector<256x64xf32>
    %11 = arith.addf %8, %10 : vector<256x64xf32>
    %cst = arith.constant 0.000000e+00 : f32
    %12 = vector.broadcast %cst : f32 to vector<256x64xf32>
    %13 = arith.maximumf %11, %12 : vector<256x64xf32>
    %14 = arith.truncf %13 : vector<256x64xf32> to vector<256x64xbf16>
    %c4 = arith.constant 4 : index
    %c0_7 = arith.constant 0 : index
    %c0_8 = arith.constant 0 : index
    %15 = vector.load %arg5[%c4, %c0_7, %c0_8] : memref<9x64x64xbf16, #tpu.memory_space<vmem>>, vector<1x64x64xbf16>
    %16 = vector.shape_cast %15 : vector<1x64x64xbf16> to vector<64x64xbf16>
    %cst_9 = arith.constant dense<0.000000e+00> : vector<256x64xf32>
    %17 = tpu.matmul %14, %16, %cst_9 {dimension_numbers = #tpu.dot_dimension_numbers<[1], [0], [0], [1], [0, 0, 1, 1], [], []>} : vector<256x64xbf16>, vector<64x64xbf16>, vector<256x64xf32> -> vector<256x64xf32>
    %18 = vector.shape_cast %17 : vector<256x64xf32> to vector<16x16x64xf32>
    %c0_10 = arith.constant 0 : index
    %c0_11 = arith.constant 0 : index
    %c0_12 = arith.constant 0 : index
    %19 = vector.load %arg9[%c0_10, %c0_11, %c0_12] : memref<16x16x64xf32, #tpu.memory_space<vmem>>, vector<16x16x64xf32>
    tpu.vector_store %arg9[%c0_10, %c0_11, %c0_12], %18 {strides = array<i32>} : memref<16x16x64xf32, #tpu.memory_space<vmem>>, vector<16x16x64xf32>,
    %c0_13 = arith.constant 0 : index
    %c0_14 = arith.constant 0 : index
    %c0_15 = arith.constant 0 : index
    %20 = vector.load %arg5[%c0_13, %c0_14, %c0_15] : memref<9x64x64xbf16, #tpu.memory_space<vmem>>, vector<1x64x64xbf16>
    %21 = vector.shape_cast %20 : vector<1x64x64xbf16> to vector<64x64xbf16>
    %cst_16 = arith.constant dense<0.000000e+00> : vector<256x64xf32>
    %22 = tpu.matmul %14, %21, %cst_16 {dimension_numbers = #tpu.dot_dimension_numbers<[1], [0], [0], [1], [0, 0, 1, 1], [], []>} : vector<256x64xbf16>, vector<64x64xbf16>, vector<256x64xf32> -> vector<256x64xf32>
    %23 = vector.shape_cast %22 : vector<256x64xf32> to vector<16x16x64xf32>
    %c1 = arith.constant 1 : index
    %c1_17 = arith.constant 1 : index
    %c0_18 = arith.constant 0 : index
    %24 = vector.load %arg9[%c1, %c1_17, %c0_18] : memref<16x16x64xf32, #tpu.memory_space<vmem>>, vector<15x15x64xf32>
    %25 = vector.extract_strided_slice %23 {offsets = [0, 0, 0], sizes = [15, 15, 64], strides = [1, 1, 1]} : vector<16x16x64xf32> to vector<15x15x64xf32>
    %26 = arith.addf %24, %25 : vector<15x15x64xf32>
    %c1_19 = arith.constant 1 : index
    %c1_20 = arith.constant 1 : index
    %c0_21 = arith.constant 0 : index
    %27 = vector.load %arg9[%c1_19, %c1_20, %c0_21] : memref<16x16x64xf32, #tpu.memory_space<vmem>>, vector<15x15x64xf32>
    tpu.vector_store %arg9[%c1_19, %c1_20, %c0_21], %26 {strides = array<i32>} : memref<16x16x64xf32, #tpu.memory_space<vmem>>, vector<15x15x64xf32>,
    %c1_22 = arith.constant 1 : index
    %c0_23 = arith.constant 0 : index
    %c0_24 = arith.constant 0 : index
    %28 = vector.load %arg5[%c1_22, %c0_23, %c0_24] : memref<9x64x64xbf16, #tpu.memory_space<vmem>>, vector<1x64x64xbf16>
    %29 = vector.shape_cast %28 : vector<1x64x64xbf16> to vector<64x64xbf16>
    %cst_25 = arith.constant dense<0.000000e+00> : vector<256x64xf32>
    %30 = tpu.matmul %14, %29, %cst_25 {dimension_numbers = #tpu.dot_dimension_numbers<[1], [0], [0], [1], [0, 0, 1, 1], [], []>} : vector<256x64xbf16>, vector<64x64xbf16>, vector<256x64xf32> -> vector<256x64xf32>
    %31 = vector.shape_cast %30 : vector<256x64xf32> to vector<16x16x64xf32>
    %c1_26 = arith.constant 1 : index
    %c0_27 = arith.constant 0 : index
    %c0_28 = arith.constant 0 : index
    %32 = vector.load %arg9[%c1_26, %c0_27, %c0_28] : memref<16x16x64xf32, #tpu.memory_space<vmem>>, vector<15x16x64xf32>
    %33 = vector.extract_strided_slice %31 {offsets = [0, 0, 0], sizes = [15, 16, 64], strides = [1, 1, 1]} : vector<16x16x64xf32> to vector<15x16x64xf32>
    %34 = arith.addf %32, %33 : vector<15x16x64xf32>
    %c1_29 = arith.constant 1 : index
    %c0_30 = arith.constant 0 : index
    %c0_31 = arith.constant 0 : index
    %35 = vector.load %arg9[%c1_29, %c0_30, %c0_31] : memref<16x16x64xf32, #tpu.memory_space<vmem>>, vector<15x16x64xf32>
    tpu.vector_store %arg9[%c1_29, %c0_30, %c0_31], %34 {strides = array<i32>} : memref<16x16x64xf32, #tpu.memory_space<vmem>>, vector<15x16x64xf32>,
    %c2 = arith.constant 2 : index
    %c0_32 = arith.constant 0 : index
    %c0_33 = arith.constant 0 : index
    %36 = vector.load %arg5[%c2, %c0_32, %c0_33] : memref<9x64x64xbf16, #tpu.memory_space<vmem>>, vector<1x64x64xbf16>
    %37 = vector.shape_cast %36 : vector<1x64x64xbf16> to vector<64x64xbf16>
    %cst_34 = arith.constant dense<0.000000e+00> : vector<256x64xf32>
    %38 = tpu.matmul %14, %37, %cst_34 {dimension_numbers = #tpu.dot_dimension_numbers<[1], [0], [0], [1], [0, 0, 1, 1], [], []>} : vector<256x64xbf16>, vector<64x64xbf16>, vector<256x64xf32> -> vector<256x64xf32>
    %39 = vector.shape_cast %38 : vector<256x64xf32> to vector<16x16x64xf32>
    %c1_35 = arith.constant 1 : index
    %c0_36 = arith.constant 0 : index
    %c0_37 = arith.constant 0 : index
    %40 = vector.load %arg9[%c1_35, %c0_36, %c0_37] : memref<16x16x64xf32, #tpu.memory_space<vmem>>, vector<15x15x64xf32>
    %41 = vector.extract_strided_slice %39 {offsets = [0, 1, 0], sizes = [15, 15, 64], strides = [1, 1, 1]} : vector<16x16x64xf32> to vector<15x15x64xf32>
    %42 = arith.addf %40, %41 : vector<15x15x64xf32>
    %c1_38 = arith.constant 1 : index
    %c0_39 = arith.constant 0 : index
    %c0_40 = arith.constant 0 : index
    %43 = vector.load %arg9[%c1_38, %c0_39, %c0_40] : memref<16x16x64xf32, #tpu.memory_space<vmem>>, vector<15x15x64xf32>
    tpu.vector_store %arg9[%c1_38, %c0_39, %c0_40], %42 {strides = array<i32>} : memref<16x16x64xf32, #tpu.memory_space<vmem>>, vector<15x15x64xf32>,
    %c3 = arith.constant 3 : index
    %c0_41 = arith.constant 0 : index
    %c0_42 = arith.constant 0 : index
    %44 = vector.load %arg5[%c3, %c0_41, %c0_42] : memref<9x64x64xbf16, #tpu.memory_space<vmem>>, vector<1x64x64xbf16>
    %45 = vector.shape_cast %44 : vector<1x64x64xbf16> to vector<64x64xbf16>
    %cst_43 = arith.constant dense<0.000000e+00> : vector<256x64xf32>
    %46 = tpu.matmul %14, %45, %cst_43 {dimension_numbers = #tpu.dot_dimension_numbers<[1], [0], [0], [1], [0, 0, 1, 1], [], []>} : vector<256x64xbf16>, vector<64x64xbf16>, vector<256x64xf32> -> vector<256x64xf32>
    %47 = vector.shape_cast %46 : vector<256x64xf32> to vector<16x16x64xf32>
    %c0_44 = arith.constant 0 : index
    %c1_45 = arith.constant 1 : index
    %c0_46 = arith.constant 0 : index
    %48 = vector.load %arg9[%c0_44, %c1_45, %c0_46] : memref<16x16x64xf32, #tpu.memory_space<vmem>>, vector<16x15x64xf32>
    %49 = vector.extract_strided_slice %47 {offsets = [0, 0, 0], sizes = [16, 15, 64], strides = [1, 1, 1]} : vector<16x16x64xf32> to vector<16x15x64xf32>
    %50 = arith.addf %48, %49 : vector<16x15x64xf32>
    %c0_47 = arith.constant 0 : index
    %c1_48 = arith.constant 1 : index
    %c0_49 = arith.constant 0 : index
    %51 = vector.load %arg9[%c0_47, %c1_48, %c0_49] : memref<16x16x64xf32, #tpu.memory_space<vmem>>, vector<16x15x64xf32>
    tpu.vector_store %arg9[%c0_47, %c1_48, %c0_49], %50 {strides = array<i32>} : memref<16x16x64xf32, #tpu.memory_space<vmem>>, vector<16x15x64xf32>,
    %c5 = arith.constant 5 : index
    %c0_50 = arith.constant 0 : index
    %c0_51 = arith.constant 0 : index
    %52 = vector.load %arg5[%c5, %c0_50, %c0_51] : memref<9x64x64xbf16, #tpu.memory_space<vmem>>, vector<1x64x64xbf16>
    %53 = vector.shape_cast %52 : vector<1x64x64xbf16> to vector<64x64xbf16>
    %cst_52 = arith.constant dense<0.000000e+00> : vector<256x64xf32>
    %54 = tpu.matmul %14, %53, %cst_52 {dimension_numbers = #tpu.dot_dimension_numbers<[1], [0], [0], [1], [0, 0, 1, 1], [], []>} : vector<256x64xbf16>, vector<64x64xbf16>, vector<256x64xf32> -> vector<256x64xf32>
    %55 = vector.shape_cast %54 : vector<256x64xf32> to vector<16x16x64xf32>
    %c0_53 = arith.constant 0 : index
    %c0_54 = arith.constant 0 : index
    %c0_55 = arith.constant 0 : index
    %56 = vector.load %arg9[%c0_53, %c0_54, %c0_55] : memref<16x16x64xf32, #tpu.memory_space<vmem>>, vector<16x15x64xf32>
    %57 = vector.extract_strided_slice %55 {offsets = [0, 1, 0], sizes = [16, 15, 64], strides = [1, 1, 1]} : vector<16x16x64xf32> to vector<16x15x64xf32>
    %58 = arith.addf %56, %57 : vector<16x15x64xf32>
    %c0_56 = arith.constant 0 : index
    %c0_57 = arith.constant 0 : index
    %c0_58 = arith.constant 0 : index
    %59 = vector.load %arg9[%c0_56, %c0_57, %c0_58] : memref<16x16x64xf32, #tpu.memory_space<vmem>>, vector<16x15x64xf32>
    tpu.vector_store %arg9[%c0_56, %c0_57, %c0_58], %58 {strides = array<i32>} : memref<16x16x64xf32, #tpu.memory_space<vmem>>, vector<16x15x64xf32>,
    %c6 = arith.constant 6 : index
    %c0_59 = arith.constant 0 : index
    %c0_60 = arith.constant 0 : index
    %60 = vector.load %arg5[%c6, %c0_59, %c0_60] : memref<9x64x64xbf16, #tpu.memory_space<vmem>>, vector<1x64x64xbf16>
    %61 = vector.shape_cast %60 : vector<1x64x64xbf16> to vector<64x64xbf16>
    %cst_61 = arith.constant dense<0.000000e+00> : vector<256x64xf32>
    %62 = tpu.matmul %14, %61, %cst_61 {dimension_numbers = #tpu.dot_dimension_numbers<[1], [0], [0], [1], [0, 0, 1, 1], [], []>} : vector<256x64xbf16>, vector<64x64xbf16>, vector<256x64xf32> -> vector<256x64xf32>
    %63 = vector.shape_cast %62 : vector<256x64xf32> to vector<16x16x64xf32>
    %c0_62 = arith.constant 0 : index
    %c1_63 = arith.constant 1 : index
    %c0_64 = arith.constant 0 : index
    %64 = vector.load %arg9[%c0_62, %c1_63, %c0_64] : memref<16x16x64xf32, #tpu.memory_space<vmem>>, vector<15x15x64xf32>
    %65 = vector.extract_strided_slice %63 {offsets = [1, 0, 0], sizes = [15, 15, 64], strides = [1, 1, 1]} : vector<16x16x64xf32> to vector<15x15x64xf32>
    %66 = arith.addf %64, %65 : vector<15x15x64xf32>
    %c0_65 = arith.constant 0 : index
    %c1_66 = arith.constant 1 : index
    %c0_67 = arith.constant 0 : index
    %67 = vector.load %arg9[%c0_65, %c1_66, %c0_67] : memref<16x16x64xf32, #tpu.memory_space<vmem>>, vector<15x15x64xf32>
    tpu.vector_store %arg9[%c0_65, %c1_66, %c0_67], %66 {strides = array<i32>} : memref<16x16x64xf32, #tpu.memory_space<vmem>>, vector<15x15x64xf32>,
    %c7 = arith.constant 7 : index
    %c0_68 = arith.constant 0 : index
    %c0_69 = arith.constant 0 : index
    %68 = vector.load %arg5[%c7, %c0_68, %c0_69] : memref<9x64x64xbf16, #tpu.memory_space<vmem>>, vector<1x64x64xbf16>
    %69 = vector.shape_cast %68 : vector<1x64x64xbf16> to vector<64x64xbf16>
    %cst_70 = arith.constant dense<0.000000e+00> : vector<256x64xf32>
    %70 = tpu.matmul %14, %69, %cst_70 {dimension_numbers = #tpu.dot_dimension_numbers<[1], [0], [0], [1], [0, 0, 1, 1], [], []>} : vector<256x64xbf16>, vector<64x64xbf16>, vector<256x64xf32> -> vector<256x64xf32>
    %71 = vector.shape_cast %70 : vector<256x64xf32> to vector<16x16x64xf32>
    %c0_71 = arith.constant 0 : index
    %c0_72 = arith.constant 0 : index
    %c0_73 = arith.constant 0 : index
    %72 = vector.load %arg9[%c0_71, %c0_72, %c0_73] : memref<16x16x64xf32, #tpu.memory_space<vmem>>, vector<15x16x64xf32>
    %73 = vector.extract_strided_slice %71 {offsets = [1, 0, 0], sizes = [15, 16, 64], strides = [1, 1, 1]} : vector<16x16x64xf32> to vector<15x16x64xf32>
    %74 = arith.addf %72, %73 : vector<15x16x64xf32>
    %c0_74 = arith.constant 0 : index
    %c0_75 = arith.constant 0 : index
    %c0_76 = arith.constant 0 : index
    %75 = vector.load %arg9[%c0_74, %c0_75, %c0_76] : memref<16x16x64xf32, #tpu.memory_space<vmem>>, vector<15x16x64xf32>
    tpu.vector_store %arg9[%c0_74, %c0_75, %c0_76], %74 {strides = array<i32>} : memref<16x16x64xf32, #tpu.memory_space<vmem>>, vector<15x16x64xf32>,
    %c8 = arith.constant 8 : index
    %c0_77 = arith.constant 0 : index
    %c0_78 = arith.constant 0 : index
    %76 = vector.load %arg5[%c8, %c0_77, %c0_78] : memref<9x64x64xbf16, #tpu.memory_space<vmem>>, vector<1x64x64xbf16>
    %77 = vector.shape_cast %76 : vector<1x64x64xbf16> to vector<64x64xbf16>
    %cst_79 = arith.constant dense<0.000000e+00> : vector<256x64xf32>
    %78 = tpu.matmul %14, %77, %cst_79 {dimension_numbers = #tpu.dot_dimension_numbers<[1], [0], [0], [1], [0, 0, 1, 1], [], []>} : vector<256x64xbf16>, vector<64x64xbf16>, vector<256x64xf32> -> vector<256x64xf32>
    %79 = vector.shape_cast %78 : vector<256x64xf32> to vector<16x16x64xf32>
    %c0_80 = arith.constant 0 : index
    %c0_81 = arith.constant 0 : index
    %c0_82 = arith.constant 0 : index
    %80 = vector.load %arg9[%c0_80, %c0_81, %c0_82] : memref<16x16x64xf32, #tpu.memory_space<vmem>>, vector<15x15x64xf32>
    %81 = vector.extract_strided_slice %79 {offsets = [1, 1, 0], sizes = [15, 15, 64], strides = [1, 1, 1]} : vector<16x16x64xf32> to vector<15x15x64xf32>
    %82 = arith.addf %80, %81 : vector<15x15x64xf32>
    %c0_83 = arith.constant 0 : index
    %c0_84 = arith.constant 0 : index
    %c0_85 = arith.constant 0 : index
    %83 = vector.load %arg9[%c0_83, %c0_84, %c0_85] : memref<16x16x64xf32, #tpu.memory_space<vmem>>, vector<15x15x64xf32>
    tpu.vector_store %arg9[%c0_83, %c0_84, %c0_85], %82 {strides = array<i32>} : memref<16x16x64xf32, #tpu.memory_space<vmem>>, vector<15x15x64xf32>,
    %c0_86 = arith.constant 0 : index
    %c0_87 = arith.constant 0 : index
    %c0_88 = arith.constant 0 : index
    %84 = vector.load %arg9[%c0_86, %c0_87, %c0_88] : memref<16x16x64xf32, #tpu.memory_space<vmem>>, vector<16x16x64xf32>
    %85 = vector.shape_cast %84 : vector<16x16x64xf32> to vector<256x64xf32>
    %86 = arith.truncf %85 : vector<256x64xf32> to vector<256x64xbf16>
    %c0_89 = arith.constant 0 : index
    %c0_90 = arith.constant 0 : index
    %c0_91 = arith.constant 0 : index
    %87 = vector.load %arg6[%c0_89, %c0_90, %c0_91] : memref<1x256x64xbf16, #tpu.memory_space<vmem>>, vector<1x256x64xbf16>
    %88 = vector.shape_cast %87 : vector<1x256x64xbf16> to vector<256x64xbf16>
    %89 = vector.shape_cast %86 : vector<256x64xbf16> to vector<1x256x64xbf16>
    tpu.vector_store %arg6[%c0_89, %c0_90, %c0_91], %89 {strides = array<i32>} : memref<1x256x64xbf16, #tpu.memory_space<vmem>>, vector<1x256x64xbf16>,
    %c0_92 = arith.constant 0 : index
    %c0_93 = arith.constant 0 : index
    %c0_94 = arith.constant 0 : index
    %90 = vector.load %arg7[%c0_92, %c0_93, %c0_94] : memref<1x8x64xf32, #tpu.memory_space<vmem>>, vector<1x8x64xf32>
    %91 = vector.shape_cast %90 : vector<1x8x64xf32> to vector<8x64xf32>
    %92 = vector.shape_cast %85 : vector<256x64xf32> to vector<32x8x64xf32>
    %cst_95 = arith.constant dense<0.000000e+00> : vector<8x64xf32>
    %93 = vector.multi_reduction <add>, %92, %cst_95 [0] : vector<32x8x64xf32> to vector<8x64xf32>
    %94 = arith.addf %91, %93 : vector<8x64xf32>
    %c0_96 = arith.constant 0 : index
    %c0_97 = arith.constant 0 : index
    %c0_98 = arith.constant 0 : index
    %95 = vector.load %arg7[%c0_96, %c0_97, %c0_98] : memref<1x8x64xf32, #tpu.memory_space<vmem>>, vector<1x8x64xf32>
    %96 = vector.shape_cast %95 : vector<1x8x64xf32> to vector<8x64xf32>
    %97 = vector.shape_cast %94 : vector<8x64xf32> to vector<1x8x64xf32>
    tpu.vector_store %arg7[%c0_96, %c0_97, %c0_98], %97 {strides = array<i32>} : memref<1x8x64xf32, #tpu.memory_space<vmem>>, vector<1x8x64xf32>,
    %c0_99 = arith.constant 0 : index
    %c0_100 = arith.constant 0 : index
    %c0_101 = arith.constant 0 : index
    %98 = vector.load %arg8[%c0_99, %c0_100, %c0_101] : memref<1x8x64xf32, #tpu.memory_space<vmem>>, vector<1x8x64xf32>
    %99 = vector.shape_cast %98 : vector<1x8x64xf32> to vector<8x64xf32>
    %100 = arith.mulf %85, %85 : vector<256x64xf32>
    %101 = vector.shape_cast %100 : vector<256x64xf32> to vector<32x8x64xf32>
    %cst_102 = arith.constant dense<0.000000e+00> : vector<8x64xf32>
    %102 = vector.multi_reduction <add>, %101, %cst_102 [0] : vector<32x8x64xf32> to vector<8x64xf32>
    %103 = arith.addf %99, %102 : vector<8x64xf32>
    %c0_103 = arith.constant 0 : index
    %c0_104 = arith.constant 0 : index
    %c0_105 = arith.constant 0 : index
    %104 = vector.load %arg8[%c0_103, %c0_104, %c0_105] : memref<1x8x64xf32, #tpu.memory_space<vmem>>, vector<1x8x64xf32>
    %105 = vector.shape_cast %104 : vector<1x8x64xf32> to vector<8x64xf32>
    %106 = vector.shape_cast %103 : vector<8x64xf32> to vector<1x8x64xf32>
    tpu.vector_store %arg8[%c0_103, %c0_104, %c0_105], %106 {strides = array<i32>} : memref<1x8x64xf32, #tpu.memory_space<vmem>>, vector<1x8x64xf32>,
    return
  }
  func.func @transform_0(%arg0: i32, %arg1: i32) -> (i32, i32, i32) {
    %c2_i32 = arith.constant 2 : i32
    %0 = arith.muli %arg0, %c2_i32 : i32
    %1 = arith.addi %0, %arg1 : i32
    %c0_i32 = arith.constant 0 : i32
    %c0_i32_0 = arith.constant 0 : i32
    %c0_i32_1 = arith.constant 0 : i32
    return %1, %c0_i32, %c0_i32_0 : i32, i32, i32
  }
  func.func @transform_1(%arg0: i32, %arg1: i32) -> (i32, i32) {
    %c0_i32 = arith.constant 0 : i32
    %c0_i32_0 = arith.constant 0 : i32
    %c0_i32_1 = arith.constant 0 : i32
    return %c0_i32, %c0_i32_0 : i32, i32
  }
  func.func @transform_2(%arg0: i32, %arg1: i32) -> (i32, i32) {
    %c0_i32 = arith.constant 0 : i32
    %c0_i32_0 = arith.constant 0 : i32
    %c0_i32_1 = arith.constant 0 : i32
    return %c0_i32, %c0_i32_0 : i32, i32
  }
  func.func @transform_3(%arg0: i32, %arg1: i32) -> (i32, i32, i32) {
    %c0_i32 = arith.constant 0 : i32
    %c0_i32_0 = arith.constant 0 : i32
    %c0_i32_1 = arith.constant 0 : i32
    %c0_i32_2 = arith.constant 0 : i32
    return %c0_i32, %c0_i32_0, %c0_i32_1 : i32, i32, i32
  }
  func.func @transform_4(%arg0: i32, %arg1: i32) -> (i32, i32, i32) {
    %c2_i32 = arith.constant 2 : i32
    %0 = arith.muli %arg0, %c2_i32 : i32
    %1 = arith.addi %0, %arg1 : i32
    %c0_i32 = arith.constant 0 : i32
    %c0_i32_0 = arith.constant 0 : i32
    %c0_i32_1 = arith.constant 0 : i32
    return %1, %c0_i32, %c0_i32_0 : i32, i32, i32
  }
  func.func @transform_5(%arg0: i32, %arg1: i32) -> (i32, i32, i32) {
    %c0_i32 = arith.constant 0 : i32
    %c0_i32_0 = arith.constant 0 : i32
    %c0_i32_1 = arith.constant 0 : i32
    return %arg0, %c0_i32, %c0_i32_0 : i32, i32, i32
  }
  func.func @transform_6(%arg0: i32, %arg1: i32) -> (i32, i32, i32) {
    %c0_i32 = arith.constant 0 : i32
    %c0_i32_0 = arith.constant 0 : i32
    %c0_i32_1 = arith.constant 0 : i32
    return %arg0, %c0_i32, %c0_i32_0 : i32, i32, i32
  }
}

module attributes {stable_mosaic.version = 11 : i64} {
  func.func @kernel(%arg0: i32, %arg1: i32, %arg2: memref<512x256xf32, #tpu.memory_space<vmem>>, %arg3: memref<256x64xbf16, #tpu.memory_space<vmem>>, %arg4: memref<512x64xbf16, #tpu.memory_space<vmem>>, %arg5: memref<1x8x64xf32, #tpu.memory_space<vmem>>, %arg6: memref<1x8x64xf32, #tpu.memory_space<vmem>>) attributes {dimension_semantics = [#tpu.dimension_semantics<parallel>, #tpu.dimension_semantics<arbitrary>], iteration_bounds = array<i64: 2, 1>, scalar_prefetch = 0 : i64, scratch_operands = 0 : i64, tpu.core_type = #tpu.core_type<tc>, window_params = [{transform_indices = @transform_0, window_bounds = array<i64: 512, 256>}, {pipeline_mode = #tpu.pipeline_mode<synchronous>, transform_indices = @transform_1, window_bounds = array<i64: 256, 64>}, {transform_indices = @transform_2, window_bounds = array<i64: 512, 64>}, {transform_indices = @transform_3, window_bounds = array<i64: 1, 8, 64>}, {transform_indices = @transform_4, window_bounds = array<i64: 1, 8, 64>}]} {
    %c0_i32 = arith.constant 0 : i32
    %0 = arith.cmpi eq, %arg1, %c0_i32 : i32
    %1 = arith.extui %0 : i1 to i32
    %c0_i32_0 = arith.constant 0 : i32
    %2 = arith.cmpi ne, %1, %c0_i32_0 : i32
    scf.if %2 {
      %cst_20 = arith.constant 0.000000e+00 : f32
      %26 = vector.broadcast %cst_20 : f32 to vector<1x8x64xf32>
      %c0_21 = arith.constant 0 : index
      %c0_22 = arith.constant 0 : index
      %c0_23 = arith.constant 0 : index
      %27 = vector.load %arg5[%c0_21, %c0_22, %c0_23] : memref<1x8x64xf32, #tpu.memory_space<vmem>>, vector<1x8x64xf32>
      tpu.vector_store %arg5[%c0_21, %c0_22, %c0_23], %26 {strides = array<i32>} : memref<1x8x64xf32, #tpu.memory_space<vmem>>, vector<1x8x64xf32>,
      %cst_24 = arith.constant 0.000000e+00 : f32
      %28 = vector.broadcast %cst_24 : f32 to vector<1x8x64xf32>
      %c0_25 = arith.constant 0 : index
      %c0_26 = arith.constant 0 : index
      %c0_27 = arith.constant 0 : index
      %29 = vector.load %arg6[%c0_25, %c0_26, %c0_27] : memref<1x8x64xf32, #tpu.memory_space<vmem>>, vector<1x8x64xf32>
      tpu.vector_store %arg6[%c0_25, %c0_26, %c0_27], %28 {strides = array<i32>} : memref<1x8x64xf32, #tpu.memory_space<vmem>>, vector<1x8x64xf32>,
    } else {
    }
    %c0 = arith.constant 0 : index
    %c0_1 = arith.constant 0 : index
    %3 = vector.load %arg2[%c0, %c0_1] : memref<512x256xf32, #tpu.memory_space<vmem>>, vector<512x256xf32>
    %4 = arith.truncf %3 : vector<512x256xf32> to vector<512x256xbf16>
    %c0_2 = arith.constant 0 : index
    %c0_3 = arith.constant 0 : index
    %5 = vector.load %arg3[%c0_2, %c0_3] : memref<256x64xbf16, #tpu.memory_space<vmem>>, vector<256x64xbf16>
    %cst = arith.constant dense<0.000000e+00> : vector<512x64xf32>
    %6 = tpu.matmul %4, %5, %cst {dimension_numbers = #tpu.dot_dimension_numbers<[1], [0], [0], [1], [0, 0, 1, 1], [], []>} : vector<512x256xbf16>, vector<256x64xbf16>, vector<512x64xf32> -> vector<512x64xf32>
    %7 = arith.truncf %6 : vector<512x64xf32> to vector<512x64xbf16>
    %c0_4 = arith.constant 0 : index
    %c0_5 = arith.constant 0 : index
    %8 = vector.load %arg4[%c0_4, %c0_5] : memref<512x64xbf16, #tpu.memory_space<vmem>>, vector<512x64xbf16>
    tpu.vector_store %arg4[%c0_4, %c0_5], %7 {strides = array<i32>} : memref<512x64xbf16, #tpu.memory_space<vmem>>, vector<512x64xbf16>,
    %c0_6 = arith.constant 0 : index
    %c0_7 = arith.constant 0 : index
    %c0_8 = arith.constant 0 : index
    %9 = vector.load %arg5[%c0_6, %c0_7, %c0_8] : memref<1x8x64xf32, #tpu.memory_space<vmem>>, vector<1x8x64xf32>
    %10 = vector.shape_cast %9 : vector<1x8x64xf32> to vector<8x64xf32>
    %11 = vector.shape_cast %6 : vector<512x64xf32> to vector<64x8x64xf32>
    %cst_9 = arith.constant dense<0.000000e+00> : vector<8x64xf32>
    %12 = vector.multi_reduction <add>, %11, %cst_9 [0] : vector<64x8x64xf32> to vector<8x64xf32>
    %13 = arith.addf %10, %12 : vector<8x64xf32>
    %c0_10 = arith.constant 0 : index
    %c0_11 = arith.constant 0 : index
    %c0_12 = arith.constant 0 : index
    %14 = vector.load %arg5[%c0_10, %c0_11, %c0_12] : memref<1x8x64xf32, #tpu.memory_space<vmem>>, vector<1x8x64xf32>
    %15 = vector.shape_cast %14 : vector<1x8x64xf32> to vector<8x64xf32>
    %16 = vector.shape_cast %13 : vector<8x64xf32> to vector<1x8x64xf32>
    tpu.vector_store %arg5[%c0_10, %c0_11, %c0_12], %16 {strides = array<i32>} : memref<1x8x64xf32, #tpu.memory_space<vmem>>, vector<1x8x64xf32>,
    %c0_13 = arith.constant 0 : index
    %c0_14 = arith.constant 0 : index
    %c0_15 = arith.constant 0 : index
    %17 = vector.load %arg6[%c0_13, %c0_14, %c0_15] : memref<1x8x64xf32, #tpu.memory_space<vmem>>, vector<1x8x64xf32>
    %18 = vector.shape_cast %17 : vector<1x8x64xf32> to vector<8x64xf32>
    %19 = arith.mulf %6, %6 : vector<512x64xf32>
    %20 = vector.shape_cast %19 : vector<512x64xf32> to vector<64x8x64xf32>
    %cst_16 = arith.constant dense<0.000000e+00> : vector<8x64xf32>
    %21 = vector.multi_reduction <add>, %20, %cst_16 [0] : vector<64x8x64xf32> to vector<8x64xf32>
    %22 = arith.addf %18, %21 : vector<8x64xf32>
    %c0_17 = arith.constant 0 : index
    %c0_18 = arith.constant 0 : index
    %c0_19 = arith.constant 0 : index
    %23 = vector.load %arg6[%c0_17, %c0_18, %c0_19] : memref<1x8x64xf32, #tpu.memory_space<vmem>>, vector<1x8x64xf32>
    %24 = vector.shape_cast %23 : vector<1x8x64xf32> to vector<8x64xf32>
    %25 = vector.shape_cast %22 : vector<8x64xf32> to vector<1x8x64xf32>
    tpu.vector_store %arg6[%c0_17, %c0_18, %c0_19], %25 {strides = array<i32>} : memref<1x8x64xf32, #tpu.memory_space<vmem>>, vector<1x8x64xf32>,
    return
  }
  func.func @transform_0(%arg0: i32, %arg1: i32) -> (i32, i32) {
    %c1_i32 = arith.constant 1 : i32
    %0 = arith.muli %arg0, %c1_i32 : i32
    %1 = arith.addi %0, %arg1 : i32
    %c0_i32 = arith.constant 0 : i32
    %c0_i32_0 = arith.constant 0 : i32
    return %1, %c0_i32 : i32, i32
  }
  func.func @transform_1(%arg0: i32, %arg1: i32) -> (i32, i32) {
    %c0_i32 = arith.constant 0 : i32
    %c0_i32_0 = arith.constant 0 : i32
    %c0_i32_1 = arith.constant 0 : i32
    return %c0_i32, %c0_i32_0 : i32, i32
  }
  func.func @transform_2(%arg0: i32, %arg1: i32) -> (i32, i32) {
    %c1_i32 = arith.constant 1 : i32
    %0 = arith.muli %arg0, %c1_i32 : i32
    %1 = arith.addi %0, %arg1 : i32
    %c0_i32 = arith.constant 0 : i32
    %c0_i32_0 = arith.constant 0 : i32
    return %1, %c0_i32 : i32, i32
  }
  func.func @transform_3(%arg0: i32, %arg1: i32) -> (i32, i32, i32) {
    %c0_i32 = arith.constant 0 : i32
    %c0_i32_0 = arith.constant 0 : i32
    %c0_i32_1 = arith.constant 0 : i32
    return %arg0, %c0_i32, %c0_i32_0 : i32, i32, i32
  }
  func.func @transform_4(%arg0: i32, %arg1: i32) -> (i32, i32, i32) {
    %c0_i32 = arith.constant 0 : i32
    %c0_i32_0 = arith.constant 0 : i32
    %c0_i32_1 = arith.constant 0 : i32
    return %arg0, %c0_i32, %c0_i32_0 : i32, i32, i32
  }
}

module attributes {stable_mosaic.version = 11 : i64} {
  func.func @kernel(%arg0: i32, %arg1: memref<512x256xbf16, #tpu.memory_space<vmem>>, %arg2: memref<1x256xf32, #tpu.memory_space<vmem>>, %arg3: memref<1x256xf32, #tpu.memory_space<vmem>>, %arg4: memref<512x256xf32, #tpu.memory_space<vmem>>, %arg5: memref<512x256xf32, #tpu.memory_space<vmem>>) attributes {dimension_semantics = [#tpu.dimension_semantics<parallel>], iteration_bounds = array<i64: 2>, scalar_prefetch = 0 : i64, scratch_operands = 0 : i64, tpu.core_type = #tpu.core_type<tc>, window_params = [{transform_indices = @transform_0, window_bounds = array<i64: 512, 256>}, {pipeline_mode = #tpu.pipeline_mode<synchronous>, transform_indices = @transform_1, window_bounds = array<i64: 1, 256>}, {pipeline_mode = #tpu.pipeline_mode<synchronous>, transform_indices = @transform_2, window_bounds = array<i64: 1, 256>}, {transform_indices = @transform_3, window_bounds = array<i64: 512, 256>}, {transform_indices = @transform_4, window_bounds = array<i64: 512, 256>}]} {
    %c0 = arith.constant 0 : index
    %c0_0 = arith.constant 0 : index
    %0 = vector.load %arg1[%c0, %c0_0] : memref<512x256xbf16, #tpu.memory_space<vmem>>, vector<512x256xbf16>
    %1 = arith.extf %0 : vector<512x256xbf16> to vector<512x256xf32>
    %c0_1 = arith.constant 0 : index
    %c0_2 = arith.constant 0 : index
    %2 = vector.load %arg2[%c0_1, %c0_2] : memref<1x256xf32, #tpu.memory_space<vmem>>, vector<1x256xf32>
    %3 = vector.broadcast %2 : vector<1x256xf32> to vector<512x256xf32>
    %4 = arith.mulf %1, %3 : vector<512x256xf32>
    %c0_3 = arith.constant 0 : index
    %c0_4 = arith.constant 0 : index
    %5 = vector.load %arg3[%c0_3, %c0_4] : memref<1x256xf32, #tpu.memory_space<vmem>>, vector<1x256xf32>
    %6 = vector.broadcast %5 : vector<1x256xf32> to vector<512x256xf32>
    %7 = arith.addf %4, %6 : vector<512x256xf32>
    %c0_5 = arith.constant 0 : index
    %c0_6 = arith.constant 0 : index
    %8 = vector.load %arg4[%c0_5, %c0_6] : memref<512x256xf32, #tpu.memory_space<vmem>>, vector<512x256xf32>
    %9 = arith.addf %7, %8 : vector<512x256xf32>
    %cst = arith.constant 0.000000e+00 : f32
    %10 = vector.broadcast %cst : f32 to vector<512x256xf32>
    %11 = arith.maximumf %9, %10 : vector<512x256xf32>
    %c0_7 = arith.constant 0 : index
    %c0_8 = arith.constant 0 : index
    %12 = vector.load %arg5[%c0_7, %c0_8] : memref<512x256xf32, #tpu.memory_space<vmem>>, vector<512x256xf32>
    tpu.vector_store %arg5[%c0_7, %c0_8], %11 {strides = array<i32>} : memref<512x256xf32, #tpu.memory_space<vmem>>, vector<512x256xf32>,
    return
  }
  func.func @transform_0(%arg0: i32) -> (i32, i32) {
    %c0_i32 = arith.constant 0 : i32
    %c0_i32_0 = arith.constant 0 : i32
    return %arg0, %c0_i32 : i32, i32
  }
  func.func @transform_1(%arg0: i32) -> (i32, i32) {
    %c0_i32 = arith.constant 0 : i32
    %c0_i32_0 = arith.constant 0 : i32
    %c0_i32_1 = arith.constant 0 : i32
    return %c0_i32, %c0_i32_0 : i32, i32
  }
  func.func @transform_2(%arg0: i32) -> (i32, i32) {
    %c0_i32 = arith.constant 0 : i32
    %c0_i32_0 = arith.constant 0 : i32
    %c0_i32_1 = arith.constant 0 : i32
    return %c0_i32, %c0_i32_0 : i32, i32
  }
  func.func @transform_3(%arg0: i32) -> (i32, i32) {
    %c0_i32 = arith.constant 0 : i32
    %c0_i32_0 = arith.constant 0 : i32
    return %arg0, %c0_i32 : i32, i32
  }
  func.func @transform_4(%arg0: i32) -> (i32, i32) {
    %c0_i32 = arith.constant 0 : i32
    %c0_i32_0 = arith.constant 0 : i32
    return %arg0, %c0_i32 : i32, i32
  }
}

module attributes {stable_mosaic.version = 11 : i64} {
  func.func @kernel(%arg0: i32, %arg1: i32, %arg2: memref<512x64xbf16, #tpu.memory_space<vmem>>, %arg3: memref<1x64xf32, #tpu.memory_space<vmem>>, %arg4: memref<1x64xf32, #tpu.memory_space<vmem>>, %arg5: memref<64x256xbf16, #tpu.memory_space<vmem>>, %arg6: memref<512x256xbf16, #tpu.memory_space<vmem>>, %arg7: memref<1x8x256xf32, #tpu.memory_space<vmem>>, %arg8: memref<1x8x256xf32, #tpu.memory_space<vmem>>) attributes {dimension_semantics = [#tpu.dimension_semantics<parallel>, #tpu.dimension_semantics<arbitrary>], iteration_bounds = array<i64: 2, 1>, scalar_prefetch = 0 : i64, scratch_operands = 0 : i64, tpu.core_type = #tpu.core_type<tc>, window_params = [{transform_indices = @transform_0, window_bounds = array<i64: 512, 64>}, {pipeline_mode = #tpu.pipeline_mode<synchronous>, transform_indices = @transform_1, window_bounds = array<i64: 1, 64>}, {pipeline_mode = #tpu.pipeline_mode<synchronous>, transform_indices = @transform_2, window_bounds = array<i64: 1, 64>}, {pipeline_mode = #tpu.pipeline_mode<synchronous>, transform_indices = @transform_3, window_bounds = array<i64: 64, 256>}, {transform_indices = @transform_4, window_bounds = array<i64: 512, 256>}, {transform_indices = @transform_5, window_bounds = array<i64: 1, 8, 256>}, {transform_indices = @transform_6, window_bounds = array<i64: 1, 8, 256>}]} {
    %c0_i32 = arith.constant 0 : i32
    %0 = arith.cmpi eq, %arg1, %c0_i32 : i32
    %1 = arith.extui %0 : i1 to i32
    %c0_i32_0 = arith.constant 0 : i32
    %2 = arith.cmpi ne, %1, %c0_i32_0 : i32
    scf.if %2 {
      %cst_25 = arith.constant 0.000000e+00 : f32
      %35 = vector.broadcast %cst_25 : f32 to vector<1x8x256xf32>
      %c0_26 = arith.constant 0 : index
      %c0_27 = arith.constant 0 : index
      %c0_28 = arith.constant 0 : index
      %36 = vector.load %arg7[%c0_26, %c0_27, %c0_28] : memref<1x8x256xf32, #tpu.memory_space<vmem>>, vector<1x8x256xf32>
      tpu.vector_store %arg7[%c0_26, %c0_27, %c0_28], %35 {strides = array<i32>} : memref<1x8x256xf32, #tpu.memory_space<vmem>>, vector<1x8x256xf32>,
      %cst_29 = arith.constant 0.000000e+00 : f32
      %37 = vector.broadcast %cst_29 : f32 to vector<1x8x256xf32>
      %c0_30 = arith.constant 0 : index
      %c0_31 = arith.constant 0 : index
      %c0_32 = arith.constant 0 : index
      %38 = vector.load %arg8[%c0_30, %c0_31, %c0_32] : memref<1x8x256xf32, #tpu.memory_space<vmem>>, vector<1x8x256xf32>
      tpu.vector_store %arg8[%c0_30, %c0_31, %c0_32], %37 {strides = array<i32>} : memref<1x8x256xf32, #tpu.memory_space<vmem>>, vector<1x8x256xf32>,
    } else {
    }
    %c0 = arith.constant 0 : index
    %c0_1 = arith.constant 0 : index
    %3 = vector.load %arg2[%c0, %c0_1] : memref<512x64xbf16, #tpu.memory_space<vmem>>, vector<512x64xbf16>
    %4 = arith.extf %3 : vector<512x64xbf16> to vector<512x64xf32>
    %c0_2 = arith.constant 0 : index
    %c0_3 = arith.constant 0 : index
    %5 = vector.load %arg3[%c0_2, %c0_3] : memref<1x64xf32, #tpu.memory_space<vmem>>, vector<1x64xf32>
    %6 = vector.broadcast %5 : vector<1x64xf32> to vector<512x64xf32>
    %7 = arith.mulf %4, %6 : vector<512x64xf32>
    %c0_4 = arith.constant 0 : index
    %c0_5 = arith.constant 0 : index
    %8 = vector.load %arg4[%c0_4, %c0_5] : memref<1x64xf32, #tpu.memory_space<vmem>>, vector<1x64xf32>
    %9 = vector.broadcast %8 : vector<1x64xf32> to vector<512x64xf32>
    %10 = arith.addf %7, %9 : vector<512x64xf32>
    %cst = arith.constant 0.000000e+00 : f32
    %11 = vector.broadcast %cst : f32 to vector<512x64xf32>
    %12 = arith.maximumf %10, %11 : vector<512x64xf32>
    %13 = arith.truncf %12 : vector<512x64xf32> to vector<512x64xbf16>
    %c0_6 = arith.constant 0 : index
    %c0_7 = arith.constant 0 : index
    %14 = vector.load %arg5[%c0_6, %c0_7] : memref<64x256xbf16, #tpu.memory_space<vmem>>, vector<64x256xbf16>
    %cst_8 = arith.constant dense<0.000000e+00> : vector<512x256xf32>
    %15 = tpu.matmul %13, %14, %cst_8 {dimension_numbers = #tpu.dot_dimension_numbers<[1], [0], [0], [1], [0, 0, 1, 1], [], []>} : vector<512x64xbf16>, vector<64x256xbf16>, vector<512x256xf32> -> vector<512x256xf32>
    %16 = arith.truncf %15 : vector<512x256xf32> to vector<512x256xbf16>
    %c0_9 = arith.constant 0 : index
    %c0_10 = arith.constant 0 : index
    %17 = vector.load %arg6[%c0_9, %c0_10] : memref<512x256xbf16, #tpu.memory_space<vmem>>, vector<512x256xbf16>
    tpu.vector_store %arg6[%c0_9, %c0_10], %16 {strides = array<i32>} : memref<512x256xbf16, #tpu.memory_space<vmem>>, vector<512x256xbf16>,
    %c0_11 = arith.constant 0 : index
    %c0_12 = arith.constant 0 : index
    %c0_13 = arith.constant 0 : index
    %18 = vector.load %arg7[%c0_11, %c0_12, %c0_13] : memref<1x8x256xf32, #tpu.memory_space<vmem>>, vector<1x8x256xf32>
    %19 = vector.shape_cast %18 : vector<1x8x256xf32> to vector<8x256xf32>
    %20 = vector.shape_cast %15 : vector<512x256xf32> to vector<64x8x256xf32>
    %cst_14 = arith.constant dense<0.000000e+00> : vector<8x256xf32>
    %21 = vector.multi_reduction <add>, %20, %cst_14 [0] : vector<64x8x256xf32> to vector<8x256xf32>
    %22 = arith.addf %19, %21 : vector<8x256xf32>
    %c0_15 = arith.constant 0 : index
    %c0_16 = arith.constant 0 : index
    %c0_17 = arith.constant 0 : index
    %23 = vector.load %arg7[%c0_15, %c0_16, %c0_17] : memref<1x8x256xf32, #tpu.memory_space<vmem>>, vector<1x8x256xf32>
    %24 = vector.shape_cast %23 : vector<1x8x256xf32> to vector<8x256xf32>
    %25 = vector.shape_cast %22 : vector<8x256xf32> to vector<1x8x256xf32>
    tpu.vector_store %arg7[%c0_15, %c0_16, %c0_17], %25 {strides = array<i32>} : memref<1x8x256xf32, #tpu.memory_space<vmem>>, vector<1x8x256xf32>,
    %c0_18 = arith.constant 0 : index
    %c0_19 = arith.constant 0 : index
    %c0_20 = arith.constant 0 : index
    %26 = vector.load %arg8[%c0_18, %c0_19, %c0_20] : memref<1x8x256xf32, #tpu.memory_space<vmem>>, vector<1x8x256xf32>
    %27 = vector.shape_cast %26 : vector<1x8x256xf32> to vector<8x256xf32>
    %28 = arith.mulf %15, %15 : vector<512x256xf32>
    %29 = vector.shape_cast %28 : vector<512x256xf32> to vector<64x8x256xf32>
    %cst_21 = arith.constant dense<0.000000e+00> : vector<8x256xf32>
    %30 = vector.multi_reduction <add>, %29, %cst_21 [0] : vector<64x8x256xf32> to vector<8x256xf32>
    %31 = arith.addf %27, %30 : vector<8x256xf32>
    %c0_22 = arith.constant 0 : index
    %c0_23 = arith.constant 0 : index
    %c0_24 = arith.constant 0 : index
    %32 = vector.load %arg8[%c0_22, %c0_23, %c0_24] : memref<1x8x256xf32, #tpu.memory_space<vmem>>, vector<1x8x256xf32>
    %33 = vector.shape_cast %32 : vector<1x8x256xf32> to vector<8x256xf32>
    %34 = vector.shape_cast %31 : vector<8x256xf32> to vector<1x8x256xf32>
    tpu.vector_store %arg8[%c0_22, %c0_23, %c0_24], %34 {strides = array<i32>} : memref<1x8x256xf32, #tpu.memory_space<vmem>>, vector<1x8x256xf32>,
    return
  }
  func.func @transform_0(%arg0: i32, %arg1: i32) -> (i32, i32) {
    %c1_i32 = arith.constant 1 : i32
    %0 = arith.muli %arg0, %c1_i32 : i32
    %1 = arith.addi %0, %arg1 : i32
    %c0_i32 = arith.constant 0 : i32
    %c0_i32_0 = arith.constant 0 : i32
    return %1, %c0_i32 : i32, i32
  }
  func.func @transform_1(%arg0: i32, %arg1: i32) -> (i32, i32) {
    %c0_i32 = arith.constant 0 : i32
    %c0_i32_0 = arith.constant 0 : i32
    %c0_i32_1 = arith.constant 0 : i32
    return %c0_i32, %c0_i32_0 : i32, i32
  }
  func.func @transform_2(%arg0: i32, %arg1: i32) -> (i32, i32) {
    %c0_i32 = arith.constant 0 : i32
    %c0_i32_0 = arith.constant 0 : i32
    %c0_i32_1 = arith.constant 0 : i32
    return %c0_i32, %c0_i32_0 : i32, i32
  }
  func.func @transform_3(%arg0: i32, %arg1: i32) -> (i32, i32) {
    %c0_i32 = arith.constant 0 : i32
    %c0_i32_0 = arith.constant 0 : i32
    %c0_i32_1 = arith.constant 0 : i32
    return %c0_i32, %c0_i32_0 : i32, i32
  }
  func.func @transform_4(%arg0: i32, %arg1: i32) -> (i32, i32) {
    %c1_i32 = arith.constant 1 : i32
    %0 = arith.muli %arg0, %c1_i32 : i32
    %1 = arith.addi %0, %arg1 : i32
    %c0_i32 = arith.constant 0 : i32
    %c0_i32_0 = arith.constant 0 : i32
    return %1, %c0_i32 : i32, i32
  }
  func.func @transform_5(%arg0: i32, %arg1: i32) -> (i32, i32, i32) {
    %c0_i32 = arith.constant 0 : i32
    %c0_i32_0 = arith.constant 0 : i32
    %c0_i32_1 = arith.constant 0 : i32
    return %arg0, %c0_i32, %c0_i32_0 : i32, i32, i32
  }
  func.func @transform_6(%arg0: i32, %arg1: i32) -> (i32, i32, i32) {
    %c0_i32 = arith.constant 0 : i32
    %c0_i32_0 = arith.constant 0 : i32
    %c0_i32_1 = arith.constant 0 : i32
    return %arg0, %c0_i32, %c0_i32_0 : i32, i32, i32
  }
}

</mosaic_0001>

<bundles_post_ra>
// kernel: _lambda_.4
= control target key start
LH: loop header
LB: loop body
LE: loop exit
PB: predicated region body
PF: predicated region fallthrough
CT: control target
= control target key end

     0   :  { %10 = vsyncpa [#allocation3], 0  ;;  %s3074_s0 = inlined_call_operand.hbm [shape: f32[1024,256], index: 0, kind: input, shape index: {}]   ;;  %s3075_s1 = inlined_call_operand.hbm [shape: bf16[256,64], index: 1, kind: input, shape index: {}]   ;;  %s3076_s2 = inlined_call_operand.vmem [shape: bf16[1024,64], index: 2, kind: output, shape index: {0}]   ;;  %s3077_s3 = inlined_call_operand.vmem [shape: f32[2,8,64], index: 3, kind: output, shape index: {1}]   ;;  %s3078_s4 = inlined_call_operand.vmem [shape: f32[2,8,64], index: 4, kind: output, shape index: {2}]  }
   0x1   :  { %12 = vsyncpa [#allocation3 + $0x1], 0 }
   0x2   :  { %13 = vsyncpa [#allocation5], 0  ;;  %s2120_s15 = smov 0   ;;  %s2122_s16 = smov 0  }
   0x3   :  { %s2124_s17 = smov 0   ;;  %s2126_s18 = smov 0  }
   0x4   :  { %s2128_s19 = smov 0   ;;  %s2130_s20 = smov 0  }
   0x5 LB: > { %s1693_s21 = sadd.s32 4294967295, %s2085_s20   ;;  %p53_p0 = scmp.ne.s32.totalorder %s2069_s16, %s2065_s15  ;;  %s2085_s20 = sphi %s2130_s20, %s19_s20   ;;  %s2081_s19 = sphi %s2128_s19, %s3088_s19   ;;  %s2077_s18 = sphi %s2126_s18, %s3087_s18   ;;  %s2073_s17 = sphi %s2124_s17, %s3086_s17   ;;  %s2069_s16 = sphi %s2122_s16, %s3085_s16   ;;  %s2065_s15 = sphi %s2120_s15, %s3084_s15  }
   0x6   : > { %p2150_p1 = scmp.eq.s32.totalorder %s1693_s21, 0  ;;  %p1695_p2 = scmp.ge.s32.totalorder %s2085_s20, 1 }
   0x7   : > { %p165_p3 = scmp.lt.s32.totalorder %s2085_s20, 3  ;;  %s2087_s25 = smov [#allocation4]  }
   0x8   : > { %p2158_p4 = por %p2150_p1, %p53_p0  ;;  %s177_s26 = sshll.u32 %s2087_s25, 4  ;;  %s178_s26 = int_to_ptr.vmem [resolvable:$true] %s177_s26 }
   0x9   : > { %p2162_p5 = pnand %p1695_p2, %p165_p3  ;;  %s31_s28 = sadd.s32 1, %s2081_s19 }
   0xa   : > { %s1988_s29 = scalar_lea.vmem %s178_s26, 2048  ;;  %p1996_p12 = scmp.lt.s32.totalorder %s178_s26, %s178_s26 }
   0xb   : > { %p1895_p6 = pneg %p2162_p5  ;;  %p1989_p9 = scmp.ne.s32.totalorder %s178_s26, %s1988_s29 }
   0xc   : > { %p1997_p13 = scmp.lt.s32.totalorder %s1988_s29, %s1988_s29 }
   0xd   : > { %p2170_p7 = pnand %p1895_p6, %p2150_p1 }
   0xe   : > { %p1998_p0 = por %p1997_p13, %p1996_p12 }
   0xf   : > { %p1979_p8 = pneg %p2170_p7 }
  0x11   : > { %p1991_p10 = pnand %p1989_p9, %p1979_p8 }
  0x13   : > { %p1992_p11 = pneg %p1991_p10 }
  0x15   : > { %p1999_p2 = pnand %p1998_p0, %p1992_p11 }
  0x17   : > { %2002 = shalt.err (!%p1999_p2)
}
  0x18   : > { %s2088_s30 = smov 64   ;;  %s2089_s5 = smov 4  }
  0x19   : > { %1898 = dma.hbm_to_vmem [thread:$0]  (!%p2170_p7), %s3075_s1, 2048, %s178_s26, [#allocation5], %s2088_s30, %s2088_s30, %s2089_s5  }
  0x1a   : > { %p33_p3 = scmp.ge.s32.totalorder %s31_s28, 2  ;;  %s40_s8 = sadd.s32 1, %s2073_s17 }
  0x1b   : > { %p47_p6 = scmp.ne.s32.totalorder %s2073_s17, %s2069_s16  ;;  %p48_p8 = scmp.eq.s32.totalorder %s2085_s20, 0 }
  0x1c   : > { %s3090_s28 = smov (%p33_p3, %s31_s28), 0  ;;  %p1904_p10 = scmp.lt.s32.totalorder %s2085_s20, 2 }
  0x1d   : > { %p49_p9 = por %p48_p8, %p47_p6  ;;  %s37_s9 = ssub.s32 %s2081_s19, %s3090_s28 }
  0x1e   : > { %s191_s10 = sand.u32 1, %s2073_s17   ;;  %p38_p11 = scmp.eq.s32.totalorder %s37_s9, 0 }
  0x1f   : > { %s1698_s11 = sshll.u32 %s191_s10, 10  ;;  %s1792_s12 = sshll.u32 %s2081_s19, 14 }
  0x20   : > { %s2194_s13 = scalar_select %p38_p11, %s2073_s17, %s40_s8  }
  0x21   : > { %s203_s21 = scalar_lea.hbm %s3074_s0, %s1792_s12  ;;  %s195_s25 = scalar_lea.vmem [#allocation2], %s1698_s11 }
  0x22   : > { %s204_s26 = sshll.u32 %s195_s25, 4  ;;  %p2199_p7 = pnand %p1904_p10, %p49_p9  ;;  %s205_s26 = int_to_ptr.vmem [resolvable:$true] %s204_s26 }
  0x23   : > { %s192_s29 = scalar_lea.sflag [#allocation3], %s191_s10  ;;  %s2016_s30 = scalar_lea.vmem %s205_s26, 16384 }
  0x24   : > { %p2005_p12 = pneg %p2199_p7  ;;  %p2017_p13 = scmp.ne.s32.totalorder %s205_s26, %s2016_s30 }
  0x25   : > { %s2090_s5 = smov [#allocation2]  }
  0x26   : > { %p2019_p0 = pnand %p2017_p13, %p2005_p12  ;;  %s2021_s6 = sshll.u32 %s2090_s5, 4  ;;  %s2022_s6 = int_to_ptr.vmem [resolvable:$false] %s2021_s6 }
  0x27   : > { %s2023_s7 = scalar_lea.vmem %s2022_s6, 32768  ;;  %p2024_p3 = scmp.lt.s32.totalorder %s205_s26, %s2022_s6 }
  0x28   : > { %p2020_p2 = pneg %p2019_p0  ;;  %p2025_p6 = scmp.lt.s32.totalorder %s2023_s7, %s2016_s30 }
  0x2a   : > { %p2026_p8 = por %p2025_p6, %p2024_p3 }
  0x2c   : > { %p2027_p9 = pnand %p2026_p8, %p2020_p2 }
  0x2e   : > { %2030 = shalt.err (!%p2027_p9)
}
  0x2f   : > { %s2091_s8 = smov 256   ;;  %s2092_s9 = smov 16  }
  0x30   : > { %1902 = dma.hbm_to_vmem [thread:$0]  (!%p2199_p7), %s203_s21, 16384, %s205_s26, %s192_s29, %s2091_s8, %s2091_s8, %s2092_s9  }
  0x31   : > { %216 = sbr.rel (%p2162_p5) target bundleno = 511 (0x1ff), region = 28  ;;  %s218_s10 = sand.u32 (!%p2162_p5), 1, %s2069_s16  }
  0x32   : > { %s1703_s11 = sshll.u32 (!%p2162_p5), %s218_s10, 10  ;;  %s219_s12 = scalar_lea.sflag (!%p2162_p5), [#allocation3], %s218_s10 }
  0x33   : > { %s2210_s14 = scalar_lea.vmem (!%p2162_p5), [#allocation2], %s1703_s11 }
  0x36   : > { %2056 = dma.done.wait (%p2158_p4), %s219_s12, 16384  }
  0x37   : > { %2058 = vsyncadd (%p2158_p4), %s219_s12, 4294950912 }
  0x38   : > { %2060 = dma.done.wait (%p2150_p1), [#allocation5], 2048  }
  0x39   : > { %2062 = vsyncadd (%p2150_p1), [#allocation5], 4294965248  ;;  %v2093_v0 = vmov 0   ;;  %v1961_v1 = vld [vmem:[#allocation4 + $0x38] sm:$0xff]   ;;  %v1962_v2 = vld [vmem:[#allocation4 + $0x30] sm:$0xff]   ;;  %s1705_s22 = sshll.u32 %s2077_s18, 6 }
  0x3a   : > { %606 = vmatprep.subr.bf16.mxu0 %v2093_v0  ;;  %1857 = vmatprep.subr.bf16.mxu1 %v2093_v0  ;;  %v1963_v3 = vld [vmem:[#allocation4 + $0x28] sm:$0xff]   ;;  %v1964_v4 = vld [vmem:[#allocation4 + $0x20] sm:$0xff]   ;;  %v1965_v5 = vld [vmem:[#allocation4 + $0x18] sm:$0xff]   ;;  %p264_p1 = scmp.lt.s32.totalorder %s1705_s22, 127  ;;  %vm1151_vm0 = vcmask 519168   ;;  %p270_p4 = scmp.lt.s32.totalorder %s2077_s18, 1 }
  0x3b   : > { %607 = vmatpush1.bf16.msra.mxu0 %v1961_v1  ;;  %1873 = vmatpush1.bf16.msra.mxu1 %v1961_v1  ;;  %v287_v6 = vld [vmem:[%s2210_s14 + $0x8] sm:$0xff]  ;;  %v289_v7 = vld [vmem:[%s2210_s14 + $0x18] sm:$0xff]  ;;  %v1966_v9 = vld [vmem:[#allocation4 + $0x10] sm:$0xff]   ;;  %vm283_vm1 = vcmask 523264  }
  0x3c   : > { %608 = vmatprep.subr.bf16.mxu0 %v2093_v0  ;;  %1858 = vmatprep.subr.bf16.mxu1 %v2093_v0  ;;  %v415_v8 = vpack.c.bf16 %v289_v7, %v287_v6  ;;  %v1967_v10 = vld [vmem:[#allocation4 + $0x8] sm:$0xff]   ;;  %v1968_v11 = vld [vmem:[#allocation4] sm:$0xff]   ;;  %v353_v13 = vld [vmem:[%s2210_s14 + $0x218] sm:$0xff]  ;;  %s3092_s22 = smov (!%p264_p1, %s1705_s22), 127  ;;  %s3094_s18 = smov (!%p270_p4, %s2077_s18), 1 }
  0x3d   : > { %v351_v12 = vld [vmem:[%s2210_s14 + $0x208] sm:$0xff]  ;;  %v1969_v15 = vld [vmem:[#allocation4 + $0x78] sm:$0xff]   ;;  %v1970_v16 = vld [vmem:[#allocation4 + $0x70] sm:$0xff]   ;;  %s1706_s23 = sshll.u32 %s3092_s22, 2  ;;  %s1707_s25 = sshll.u32 %s3094_s18, 3 }
  0x3e   : > { %638 = vmatprep.mubr.bf16.mxu0 %v415_v8  ;;  %v447_v14 = vpack.c.bf16 %v353_v13, %v351_v12  ;;  %v1971_v17 = vld [vmem:[#allocation4 + $0x68] sm:$0xff]   ;;  %v1972_v18 = vld [vmem:[#allocation4 + $0x60] sm:$0xff]   ;;  %v1973_v19 = vld [vmem:[#allocation4 + $0x58] sm:$0xff]   ;;  %s2384_s21 = scalar_lea.vmem %s3076_s2, %s1706_s23  ;;  %s2559_s29 = scalar_lea.vmem %s3077_s3, %s1707_s25 }
  0x3f   : > { %609 = vmatpush1.bf16.msra.mxu0 %v1962_v2  ;;  %1874 = vmatpush1.bf16.msra.mxu1 %v1962_v2  ;;  %v1974_v20 = vld [vmem:[#allocation4 + $0x50] sm:$0xff]   ;;  %v1975_v21 = vld [vmem:[#allocation4 + $0x48] sm:$0xff]   ;;  %v1976_v22 = vld [vmem:[#allocation4 + $0x40] sm:$0xff]   ;;  %s2574_s5 = scalar_lea.vmem %s3078_s4, %s1707_s25 }
  0x40   : > { %610 = vmatprep.subr.bf16.mxu0 %v2093_v0  ;;  %1859 = vmatprep.subr.bf16.mxu1 %v2093_v0  ;;  %v286_v23 = vld [vmem:[%s2210_s14] sm:$0xff]  ;;  %v288_v24 = vld [vmem:[%s2210_s14 + $0x10] sm:$0xff]  ;;  %v291_v25 = vld [vmem:[%s2210_s14 + $0x28] sm:$0xff] }
  0x41   : > { %766 = vmatprep.mubr.bf16.mxu1 %v447_v14  ;;  %v350_v26 = vld [vmem:[%s2210_s14 + $0x200] sm:$0xff]  ;;  %v352_v27 = vld [vmem:[%s2210_s14 + $0x210] sm:$0xff]  ;;  %v293_v28 = vld [vmem:[%s2210_s14 + $0x38] sm:$0xff]  ;;  %v414_v31 = vpack.c.bf16 %v288_v24, %v286_v23 }
  0x42   : > { %v355_v29 = vld [vmem:[%s2210_s14 + $0x228] sm:$0xff]  ;;  %v357_v30 = vld [vmem:[%s2210_s14 + $0x238] sm:$0xff]  ;;  %v446_v32 = vpack.c.bf16 %v352_v27, %v350_v26  ;;  %v417_v33 = vpack.c.bf16 %v293_v28, %v291_v25  ;;  %v290_v35 = vld [vmem:[%s2210_s14 + $0x20] sm:$0xff] }
  0x43   : > { %611 = vmatpush1.bf16.msra.mxu0 %v1963_v3  ;;  %1875 = vmatpush1.bf16.msra.mxu1 %v1963_v3  ;;  %v449_v34 = vpack.c.bf16 %v357_v30, %v355_v29  ;;  %v292_v36 = vld [vmem:[%s2210_s14 + $0x30] sm:$0xff]  ;;  %v295_v37 = vld [vmem:[%s2210_s14 + $0x48] sm:$0xff]  ;;  %v354_v38 = vld [vmem:[%s2210_s14 + $0x220] sm:$0xff] }
  0x44   : > { %612 = vmatprep.subr.bf16.mxu0 %v2093_v0  ;;  %1860 = vmatprep.subr.bf16.mxu1 %v2093_v0  ;;  %v356_v39 = vld [vmem:[%s2210_s14 + $0x230] sm:$0xff]  ;;  %v297_v40 = vld [vmem:[%s2210_s14 + $0x58] sm:$0xff]  ;;  %v359_v41 = vld [vmem:[%s2210_s14 + $0x248] sm:$0xff]  ;;  %v416_v43 = vpack.c.bf16 %v292_v36, %v290_v35 }
  0x45   : > { %v361_v42 = vld [vmem:[%s2210_s14 + $0x258] sm:$0xff]  ;;  %v448_v44 = vpack.c.bf16 %v356_v39, %v354_v38  ;;  %v419_v45 = vpack.c.bf16 %v297_v40, %v295_v37  ;;  %v294_v47 = vld [vmem:[%s2210_s14 + $0x40] sm:$0xff]  ;;  %v296_v48 = vld [vmem:[%s2210_s14 + $0x50] sm:$0xff] }
  0x46   : > { %v451_v46 = vpack.c.bf16 %v361_v42, %v359_v41  ;;  %v299_v49 = vld [vmem:[%s2210_s14 + $0x68] sm:$0xff]  ;;  %v358_v50 = vld [vmem:[%s2210_s14 + $0x240] sm:$0xff]  ;;  %v360_v51 = vld [vmem:[%s2210_s14 + $0x250] sm:$0xff]  ;;  %v418_v55 = vpack.c.bf16 %v296_v48, %v294_v47 }
  0x47   : > { %613 = vmatpush1.bf16.msra.mxu0 %v1964_v4  ;;  %1876 = vmatpush1.bf16.msra.mxu1 %v1964_v4  ;;  %v301_v52 = vld [vmem:[%s2210_s14 + $0x78] sm:$0xff]  ;;  %v363_v53 = vld [vmem:[%s2210_s14 + $0x268] sm:$0xff]  ;;  %v450_v56 = vpack.c.bf16 %v360_v51, %v358_v50  ;;  %v298_v59 = vld [vmem:[%s2210_s14 + $0x60] sm:$0xff] }
  0x48   : > { %614 = vmatprep.subr.bf16.mxu0 %v2093_v0  ;;  %1861 = vmatprep.subr.bf16.mxu1 %v2093_v0  ;;  %v365_v54 = vld [vmem:[%s2210_s14 + $0x278] sm:$0xff]  ;;  %v421_v57 = vpack.c.bf16 %v301_v52, %v299_v49  ;;  %v300_v60 = vld [vmem:[%s2210_s14 + $0x70] sm:$0xff]  ;;  %v303_v61 = vld [vmem:[%s2210_s14 + $0x88] sm:$0xff] }
  0x49   : > { %v453_v58 = vpack.c.bf16 %v365_v54, %v363_v53  ;;  %v362_v62 = vld [vmem:[%s2210_s14 + $0x260] sm:$0xff]  ;;  %v364_v63 = vld [vmem:[%s2210_s14 + $0x270] sm:$0xff]  ;;  %v367_v1 = vld [vmem:[%s2210_s14 + $0x288] sm:$0xff]  ;;  %v420_v3 = vpack.c.bf16 %v300_v60, %v298_v59 }
  0x4a   : > { %v369_v2 = vld [vmem:[%s2210_s14 + $0x298] sm:$0xff]  ;;  %v452_v4 = vpack.c.bf16 %v364_v63, %v362_v62  ;;  %v302_v7 = vld [vmem:[%s2210_s14 + $0x80] sm:$0xff]  ;;  %v304_v8 = vld [vmem:[%s2210_s14 + $0x90] sm:$0xff] }
  0x4b   : > { %615 = vmatpush1.bf16.msra.mxu0 %v1965_v5  ;;  %1877 = vmatpush1.bf16.msra.mxu1 %v1965_v5  ;;  %v455_v6 = vpack.c.bf16 %v369_v2, %v367_v1  ;;  %v309_v12 = vld [vmem:[%s2210_s14 + $0xb8] sm:$0xff]  ;;  %v371_v13 = vld [vmem:[%s2210_s14 + $0x2a8] sm:$0xff]  ;;  %v372_v23 = vld [vmem:[%s2210_s14 + $0x2b0] sm:$0xff] }
  0x4c   : > { %616 = vmatprep.subr.bf16.mxu0 %v2093_v0  ;;  %1862 = vmatprep.subr.bf16.mxu1 %v2093_v0  ;;  %v373_v14 = vld [vmem:[%s2210_s14 + $0x2b8] sm:$0xff]  ;;  %v375_v25 = vld [vmem:[%s2210_s14 + $0x2c8] sm:$0xff]  ;;  %v376_v35 = vld [vmem:[%s2210_s14 + $0x2d0] sm:$0xff] }
  0x4d   : > { %v313_v24 = vld [vmem:[%s2210_s14 + $0xd8] sm:$0xff]  ;;  %v379_v37 = vld [vmem:[%s2210_s14 + $0x2e8] sm:$0xff]  ;;  %v380_v47 = vld [vmem:[%s2210_s14 + $0x2f0] sm:$0xff] }
  0x4e   : > { %v377_v26 = vld [vmem:[%s2210_s14 + $0x2d8] sm:$0xff]  ;;  %v383_v49 = vld [vmem:[%s2210_s14 + $0x308] sm:$0xff]  ;;  %v384_v59 = vld [vmem:[%s2210_s14 + $0x310] sm:$0xff] }
  0x4f   : > { %617 = vmatpush1.bf16.msra.mxu0 %v1966_v9  ;;  %1878 = vmatpush1.bf16.msra.mxu1 %v1966_v9  ;;  %v307_v9 = vld [vmem:[%s2210_s14 + $0xa8] sm:$0xff]  ;;  %v459_v30 = vpack.c.bf16 %v377_v26, %v375_v25  ;;  %v317_v36 = vld [vmem:[%s2210_s14 + $0xf8] sm:$0xff] }
  0x50   : > { %618 = vmatprep.subr.bf16.mxu0 %v2093_v0  ;;  %1863 = vmatprep.subr.bf16.mxu1 %v2093_v0  ;;  %v381_v38 = vld [vmem:[%s2210_s14 + $0x2f8] sm:$0xff] }
  0x51   : > { %v461_v42 = vpack.c.bf16 %v381_v38, %v379_v37  ;;  %v321_v48 = vld [vmem:[%s2210_s14 + $0x118] sm:$0xff] }
  0x52   : > { %v385_v50 = vld [vmem:[%s2210_s14 + $0x318] sm:$0xff] }
  0x53   : > { %619 = vmatpush1.bf16.msra.mxu0 %v1967_v10  ;;  %1879 = vmatpush1.bf16.msra.mxu1 %v1967_v10  ;;  %v366_v10 = vld [vmem:[%s2210_s14 + $0x280] sm:$0xff]  ;;  %v463_v54 = vpack.c.bf16 %v385_v50, %v383_v49  ;;  %v325_v60 = vld [vmem:[%s2210_s14 + $0x138] sm:$0xff] }
  0x54   : > { %620 = vmatprep.subr.bf16.mxu0 %v2093_v0  ;;  %1864 = vmatprep.subr.bf16.mxu1 %v2093_v0  ;;  %v389_v62 = vld [vmem:[%s2210_s14 + $0x338] sm:$0xff] }
  0x57   : > { %621 = vmatpush1.bf16.msra.mxu0 %v1968_v11  ;;  %1880 = vmatpush1.bf16.msra.mxu1 %v1968_v11  ;;  %v368_v11 = vld [vmem:[%s2210_s14 + $0x290] sm:$0xff] }
  0x58   : > { %622 = vmatprep.subr.bf16.mxu0 %v2093_v0  ;;  %1865 = vmatprep.subr.bf16.mxu1 %v2093_v0 }
  0x5b   : > { %623 = vmatpush2.bf16.msra.mxu0 %v1969_v15  ;;  %1881 = vmatpush2.bf16.msra.mxu1 %v1969_v15  ;;  %v422_v15 = vpack.c.bf16 %v304_v8, %v302_v7  ;;  %v388_v7 = vld [vmem:[%s2210_s14 + $0x330] sm:$0xff]  ;;  %v329_v8 = vld [vmem:[%s2210_s14 + $0x158] sm:$0xff] }
  0x5c   : > { %624 = vmatprep.subr.bf16.mxu0 %v2093_v0  ;;  %1866 = vmatprep.subr.bf16.mxu1 %v2093_v0 }
  0x5f   : > { %625 = vmatpush2.bf16.msra.mxu0 %v1970_v16  ;;  %1882 = vmatpush2.bf16.msra.mxu1 %v1970_v16  ;;  %v454_v16 = vpack.c.bf16 %v368_v11, %v366_v10  ;;  %v393_v10 = vld [vmem:[%s2210_s14 + $0x358] sm:$0xff] }
  0x60   : > { %626 = vmatprep.subr.bf16.mxu0 %v2093_v0  ;;  %1867 = vmatprep.subr.bf16.mxu1 %v2093_v0 }
  0x63   : > { %627 = vmatpush2.bf16.msra.mxu0 %v1971_v17  ;;  %1883 = vmatpush2.bf16.msra.mxu1 %v1971_v17  ;;  %v425_v17 = vpack.c.bf16 %v309_v12, %v307_v9  ;;  %v391_v9 = vld [vmem:[%s2210_s14 + $0x348] sm:$0xff] }
  0x64   : > { %628 = vmatprep.subr.bf16.mxu0 %v2093_v0  ;;  %1868 = vmatprep.subr.bf16.mxu1 %v2093_v0 }
  0x67   : > { %629 = vmatpush2.bf16.msra.mxu0 %v1972_v18  ;;  %1884 = vmatpush2.bf16.msra.mxu1 %v1972_v18  ;;  %v457_v18 = vpack.c.bf16 %v373_v14, %v371_v13  ;;  %v467_v14 = vpack.c.bf16 %v393_v10, %v391_v9 }
  0x68   : > { %630 = vmatprep.subr.bf16.mxu0 %v2093_v0  ;;  %1869 = vmatprep.subr.bf16.mxu1 %v2093_v0 }
  0x6b   : > { %631 = vmatpush2.bf16.msra.mxu0 %v1973_v19  ;;  %1885 = vmatpush2.bf16.msra.mxu1 %v1973_v19  ;;  %v306_v19 = vld [vmem:[%s2210_s14 + $0xa0] sm:$0xff] }
  0x6c   : > { %632 = vmatprep.subr.bf16.mxu0 %v2093_v0  ;;  %1870 = vmatprep.subr.bf16.mxu1 %v2093_v0 }
  0x6f   : > { %633 = vmatpush2.bf16.msra.mxu0 %v1974_v20  ;;  %1886 = vmatpush2.bf16.msra.mxu1 %v1974_v20  ;;  %v308_v20 = vld [vmem:[%s2210_s14 + $0xb0] sm:$0xff] }
  0x70   : > { %634 = vmatprep.subr.bf16.mxu0 %v2093_v0  ;;  %1871 = vmatprep.subr.bf16.mxu1 %v2093_v0  ;;  %v424_v27 = vpack.c.bf16 %v308_v20, %v306_v19  ;;  %v392_v19 = vld [vmem:[%s2210_s14 + $0x350] sm:$0xff]  ;;  %v333_v20 = vld [vmem:[%s2210_s14 + $0x178] sm:$0xff] }
  0x73   : > { %635 = vmatpush2.bf16.msra.mxu0 %v1975_v21  ;;  %1887 = vmatpush2.bf16.msra.mxu1 %v1975_v21  ;;  %v311_v21 = vld [vmem:[%s2210_s14 + $0xc8] sm:$0xff] }
  0x74   : > { %636 = vmatprep.subr.bf16.mxu0 %v2093_v0  ;;  %1872 = vmatprep.subr.bf16.mxu1 %v2093_v0  ;;  %v305_v0 = vld [vmem:[%s2210_s14 + $0x98] sm:$0xff]  ;;  %v427_v29 = vpack.c.bf16 %v313_v24, %v311_v21  ;;  %v395_v21 = vld [vmem:[%s2210_s14 + $0x368] sm:$0xff] }
  0x75   : > { %v423_v5 = vpack.c.bf16 %v305_v0, %v303_v61  ;;  %v387_v61 = vld [vmem:[%s2210_s14 + $0x328] sm:$0xff] }
  0x76   : > { %v465_v2 = vpack.c.bf16 %v389_v62, %v387_v61 }
  0x77   : > { %637 = vmatpush2.bf16.msra.mxu0 %v1976_v22  ;;  %1888 = vmatpush2.bf16.msra.mxu1 %v1976_v22  ;;  %v370_v22 = vld [vmem:[%s2210_s14 + $0x2a0] sm:$0xff] }
  0x78   : > { %v456_v28 = vpack.c.bf16 %v372_v23, %v370_v22  ;;  %v397_v22 = vld [vmem:[%s2210_s14 + $0x378] sm:$0xff] }
  0x79   : > { %v469_v26 = vpack.c.bf16 %v397_v22, %v395_v21 }
  0x7a   : > { %639 = vmatmul.mubr.bf16.vlgmr.msra.gmra.mxu0 %v414_v31  ;;  %767 = vmatmul.mubr.bf16.vlgmr.msra.gmra.mxu1 %v446_v32  ;;  %v310_v31 = vld [vmem:[%s2210_s14 + $0xc0] sm:$0xff]  ;;  %v312_v32 = vld [vmem:[%s2210_s14 + $0xd0] sm:$0xff] }
  0x7b   : > { %646 = vmatprep.mubr.bf16.mxu0 %v417_v33  ;;  %774 = vmatprep.mubr.bf16.mxu1 %v449_v34  ;;  %v315_v33 = vld [vmem:[%s2210_s14 + $0xe8] sm:$0xff]  ;;  %v374_v34 = vld [vmem:[%s2210_s14 + $0x2c0] sm:$0xff]  ;;  %v426_v39 = vpack.c.bf16 %v312_v32, %v310_v31  ;;  %v396_v31 = vld [vmem:[%s2210_s14 + $0x370] sm:$0xff] }
  0x7c   : > { %v458_v40 = vpack.c.bf16 %v376_v35, %v374_v34  ;;  %v429_v41 = vpack.c.bf16 %v317_v36, %v315_v33  ;;  %v337_v32 = vld [vmem:[%s2210_s14 + $0x198] sm:$0xff]  ;;  %v399_v33 = vld [vmem:[%s2210_s14 + $0x388] sm:$0xff] }
  0x7d   : > { %v401_v34 = vld [vmem:[%s2210_s14 + $0x398] sm:$0xff] }
  0x7e   : > { %v471_v38 = vpack.c.bf16 %v401_v34, %v399_v33 }
  0x82   : > { %647 = vmatmul.mubr.bf16.gmra.mxu0 %v416_v43  ;;  %775 = vmatmul.mubr.bf16.gmra.mxu1 %v448_v44  ;;  %v314_v43 = vld [vmem:[%s2210_s14 + $0xe0] sm:$0xff]  ;;  %v316_v44 = vld [vmem:[%s2210_s14 + $0xf0] sm:$0xff] }
  0x83   : > { %654 = vmatprep.mubr.bf16.mxu0 %v419_v45  ;;  %782 = vmatprep.mubr.bf16.mxu1 %v451_v46  ;;  %v319_v45 = vld [vmem:[%s2210_s14 + $0x108] sm:$0xff]  ;;  %v378_v46 = vld [vmem:[%s2210_s14 + $0x2e0] sm:$0xff]  ;;  %v428_v51 = vpack.c.bf16 %v316_v44, %v314_v43  ;;  %v400_v43 = vld [vmem:[%s2210_s14 + $0x390] sm:$0xff] }
  0x84   : > { %v460_v52 = vpack.c.bf16 %v380_v47, %v378_v46  ;;  %v431_v53 = vpack.c.bf16 %v321_v48, %v319_v45  ;;  %v341_v44 = vld [vmem:[%s2210_s14 + $0x1b8] sm:$0xff]  ;;  %v403_v45 = vld [vmem:[%s2210_s14 + $0x3a8] sm:$0xff] }
  0x85   : > { %v405_v46 = vld [vmem:[%s2210_s14 + $0x3b8] sm:$0xff] }
  0x86   : > { %v473_v50 = vpack.c.bf16 %v405_v46, %v403_v45 }
  0x8a   : > { %655 = vmatmul.mubr.bf16.gmra.mxu0 %v418_v55  ;;  %783 = vmatmul.mubr.bf16.gmra.mxu1 %v450_v56  ;;  %v318_v55 = vld [vmem:[%s2210_s14 + $0x100] sm:$0xff]  ;;  %v320_v56 = vld [vmem:[%s2210_s14 + $0x110] sm:$0xff] }
  0x8b   : > { %662 = vmatprep.mubr.bf16.mxu0 %v421_v57  ;;  %790 = vmatprep.mubr.bf16.mxu1 %v453_v58  ;;  %v323_v57 = vld [vmem:[%s2210_s14 + $0x128] sm:$0xff]  ;;  %v382_v58 = vld [vmem:[%s2210_s14 + $0x300] sm:$0xff]  ;;  %v430_v63 = vpack.c.bf16 %v320_v56, %v318_v55  ;;  %v404_v55 = vld [vmem:[%s2210_s14 + $0x3b0] sm:$0xff] }
  0x8c   : > { %v462_v0 = vpack.c.bf16 %v384_v59, %v382_v58  ;;  %v433_v1 = vpack.c.bf16 %v325_v60, %v323_v57  ;;  %v345_v56 = vld [vmem:[%s2210_s14 + $0x1d8] sm:$0xff]  ;;  %v407_v57 = vld [vmem:[%s2210_s14 + $0x3c8] sm:$0xff] }
  0x8d   : > { %v409_v58 = vld [vmem:[%s2210_s14 + $0x3d8] sm:$0xff] }
  0x8e   : > { %v475_v62 = vpack.c.bf16 %v409_v58, %v407_v57 }
  0x92   : > { %663 = vmatmul.mubr.bf16.gmra.mxu0 %v420_v3  ;;  %791 = vmatmul.mubr.bf16.gmra.mxu1 %v452_v4  ;;  %v322_v3 = vld [vmem:[%s2210_s14 + $0x120] sm:$0xff]  ;;  %v324_v4 = vld [vmem:[%s2210_s14 + $0x130] sm:$0xff] }
  0x93   : > { %670 = vmatprep.mubr.bf16.mxu0 %v423_v5  ;;  %798 = vmatprep.mubr.bf16.mxu1 %v455_v6  ;;  %v327_v5 = vld [vmem:[%s2210_s14 + $0x148] sm:$0xff]  ;;  %v386_v6 = vld [vmem:[%s2210_s14 + $0x320] sm:$0xff]  ;;  %v432_v11 = vpack.c.bf16 %v324_v4, %v322_v3  ;;  %v408_v3 = vld [vmem:[%s2210_s14 + $0x3d0] sm:$0xff] }
  0x94   : > { %v464_v12 = vpack.c.bf16 %v388_v7, %v386_v6  ;;  %v435_v13 = vpack.c.bf16 %v329_v8, %v327_v5  ;;  %v349_v4 = vld [vmem:[%s2210_s14 + $0x1f8] sm:$0xff]  ;;  %v411_v5 = vld [vmem:[%s2210_s14 + $0x3e8] sm:$0xff] }
  0x95   : > { %v413_v6 = vld [vmem:[%s2210_s14 + $0x3f8] sm:$0xff] }
  0x96   : > { %v477_v10 = vpack.c.bf16 %v413_v6, %v411_v5 }
  0x9a   : > { %671 = vmatmul.mubr.bf16.gmra.mxu0 %v422_v15  ;;  %799 = vmatmul.mubr.bf16.gmra.mxu1 %v454_v16  ;;  %v326_v15 = vld [vmem:[%s2210_s14 + $0x140] sm:$0xff]  ;;  %v328_v16 = vld [vmem:[%s2210_s14 + $0x150] sm:$0xff] }
  0x9b   : > { %678 = vmatprep.mubr.bf16.mxu0 %v425_v17  ;;  %806 = vmatprep.mubr.bf16.mxu1 %v457_v18  ;;  %v331_v17 = vld [vmem:[%s2210_s14 + $0x168] sm:$0xff]  ;;  %v390_v18 = vld [vmem:[%s2210_s14 + $0x340] sm:$0xff]  ;;  %v434_v23 = vpack.c.bf16 %v328_v16, %v326_v15 }
  0x9c   : > { %v466_v24 = vpack.c.bf16 %v392_v19, %v390_v18  ;;  %v437_v25 = vpack.c.bf16 %v333_v20, %v331_v17 }
  0xa2   : > { %679 = vmatmul.mubr.bf16.gmra.mxu0 %v424_v27  ;;  %807 = vmatmul.mubr.bf16.gmra.mxu1 %v456_v28  ;;  %v330_v27 = vld [vmem:[%s2210_s14 + $0x160] sm:$0xff]  ;;  %v332_v28 = vld [vmem:[%s2210_s14 + $0x170] sm:$0xff] }
  0xa3   : > { %686 = vmatprep.mubr.bf16.mxu0 %v427_v29  ;;  %814 = vmatprep.mubr.bf16.mxu1 %v459_v30  ;;  %v335_v29 = vld [vmem:[%s2210_s14 + $0x188] sm:$0xff]  ;;  %v394_v30 = vld [vmem:[%s2210_s14 + $0x360] sm:$0xff]  ;;  %v436_v35 = vpack.c.bf16 %v332_v28, %v330_v27 }
  0xa4   : > { %v468_v36 = vpack.c.bf16 %v396_v31, %v394_v30  ;;  %v439_v37 = vpack.c.bf16 %v337_v32, %v335_v29 }
  0xaa   : > { %687 = vmatmul.mubr.bf16.gmra.mxu0 %v426_v39  ;;  %815 = vmatmul.mubr.bf16.gmra.mxu1 %v458_v40  ;;  %v334_v39 = vld [vmem:[%s2210_s14 + $0x180] sm:$0xff]  ;;  %v336_v40 = vld [vmem:[%s2210_s14 + $0x190] sm:$0xff] }
  0xab   : > { %694 = vmatprep.mubr.bf16.mxu0 %v429_v41  ;;  %822 = vmatprep.mubr.bf16.mxu1 %v461_v42  ;;  %v339_v41 = vld [vmem:[%s2210_s14 + $0x1a8] sm:$0xff]  ;;  %v398_v42 = vld [vmem:[%s2210_s14 + $0x380] sm:$0xff]  ;;  %v438_v47 = vpack.c.bf16 %v336_v40, %v334_v39 }
  0xac   : > { %v470_v48 = vpack.c.bf16 %v400_v43, %v398_v42  ;;  %v441_v49 = vpack.c.bf16 %v341_v44, %v339_v41 }
  0xb2   : > { %695 = vmatmul.mubr.bf16.gmra.mxu0 %v428_v51  ;;  %823 = vmatmul.mubr.bf16.gmra.mxu1 %v460_v52  ;;  %v338_v51 = vld [vmem:[%s2210_s14 + $0x1a0] sm:$0xff]  ;;  %v340_v52 = vld [vmem:[%s2210_s14 + $0x1b0] sm:$0xff] }
  0xb3   : > { %702 = vmatprep.mubr.bf16.mxu0 %v431_v53  ;;  %830 = vmatprep.mubr.bf16.mxu1 %v463_v54  ;;  %v343_v53 = vld [vmem:[%s2210_s14 + $0x1c8] sm:$0xff]  ;;  %v402_v54 = vld [vmem:[%s2210_s14 + $0x3a0] sm:$0xff]  ;;  %v440_v59 = vpack.c.bf16 %v340_v52, %v338_v51 }
  0xb4   : > { %v472_v60 = vpack.c.bf16 %v404_v55, %v402_v54  ;;  %v443_v61 = vpack.c.bf16 %v345_v56, %v343_v53 }
  0xba   : > { %703 = vmatmul.mubr.bf16.gmra.mxu0 %v430_v63  ;;  %831 = vmatmul.mubr.bf16.gmra.mxu1 %v462_v0  ;;  %v342_v63 = vld [vmem:[%s2210_s14 + $0x1c0] sm:$0xff]  ;;  %v344_v0 = vld [vmem:[%s2210_s14 + $0x1d0] sm:$0xff] }
  0xbb   : > { %710 = vmatprep.mubr.bf16.mxu0 %v433_v1  ;;  %838 = vmatprep.mubr.bf16.mxu1 %v465_v2  ;;  %v347_v1 = vld [vmem:[%s2210_s14 + $0x1e8] sm:$0xff]  ;;  %v406_v2 = vld [vmem:[%s2210_s14 + $0x3c0] sm:$0xff]  ;;  %v442_v7 = vpack.c.bf16 %v344_v0, %v342_v63 }
  0xbc   : > { %v474_v8 = vpack.c.bf16 %v408_v3, %v406_v2  ;;  %v445_v9 = vpack.c.bf16 %v349_v4, %v347_v1 }
  0xc2   : > { %711 = vmatmul.mubr.bf16.gmra.mxu0 %v432_v11  ;;  %839 = vmatmul.mubr.bf16.gmra.mxu1 %v464_v12  ;;  %v346_v11 = vld [vmem:[%s2210_s14 + $0x1e0] sm:$0xff]  ;;  %v348_v12 = vld [vmem:[%s2210_s14 + $0x1f0] sm:$0xff] }
  0xc3   : > { %718 = vmatprep.mubr.bf16.mxu0 %v435_v13  ;;  %846 = vmatprep.mubr.bf16.mxu1 %v467_v14  ;;  %v410_v13 = vld [vmem:[%s2210_s14 + $0x3e0] sm:$0xff]  ;;  %v412_v14 = vld [vmem:[%s2210_s14 + $0x3f0] sm:$0xff]  ;;  %v444_v15 = vpack.c.bf16 %v348_v12, %v346_v11 }
  0xc4   : > { %v476_v16 = vpack.c.bf16 %v412_v14, %v410_v13 }
  0xca   : > { %719 = vmatmul.mubr.bf16.gmra.mxu0 %v434_v23  ;;  %847 = vmatmul.mubr.bf16.gmra.mxu1 %v466_v24 }
  0xcb   : > { %726 = vmatprep.mubr.bf16.mxu0 %v437_v25  ;;  %854 = vmatprep.mubr.bf16.mxu1 %v469_v26 }
  0xd2   : > { %727 = vmatmul.mubr.bf16.gmra.mxu0 %v436_v35  ;;  %855 = vmatmul.mubr.bf16.gmra.mxu1 %v468_v36 }
  0xd3   : > { %734 = vmatprep.mubr.bf16.mxu0 %v439_v37  ;;  %862 = vmatprep.mubr.bf16.mxu1 %v471_v38 }
  0xda   : > { %735 = vmatmul.mubr.bf16.gmra.mxu0 %v438_v47  ;;  %863 = vmatmul.mubr.bf16.gmra.mxu1 %v470_v48 }
  0xdb   : > { %742 = vmatprep.mubr.bf16.mxu0 %v441_v49  ;;  %870 = vmatprep.mubr.bf16.mxu1 %v473_v50 }
  0xe2   : > { %743 = vmatmul.mubr.bf16.gmra.mxu0 %v440_v59  ;;  %871 = vmatmul.mubr.bf16.gmra.mxu1 %v472_v60 }
  0xe3   : > { %750 = vmatprep.mubr.bf16.mxu0 %v443_v61  ;;  %878 = vmatprep.mubr.bf16.mxu1 %v475_v62 }
  0xea   : > { %751 = vmatmul.mubr.bf16.gmra.mxu0 %v442_v7  ;;  %879 = vmatmul.mubr.bf16.gmra.mxu1 %v474_v8 }
  0xeb   : > { %758 = vmatprep.mubr.bf16.mxu0 %v445_v9  ;;  %886 = vmatprep.mubr.bf16.mxu1 %v477_v10 }
  0xf2   : > { %759 = vmatmul.mubr.bf16.gmra.mxu0 %v444_v15  ;;  %887 = vmatmul.mubr.bf16.gmra.mxu1 %v476_v16 }
 0x13a   : > { %v2386_v17 = vpop.f32.mrf.mxu0  ;;  %v2388_v18 = vpop.f32.mrf.mxu1 }
 0x13b   : > { %v1793_v19 = vpack.c.bf16 %v2386_v17, %v2386_v17  ;;  %v1825_v20 = vpack.c.bf16 %v2388_v18, %v2388_v18 }
 0x13c   : > { %v642_v21 = vpop.f32.mrf.mxu0  ;;  %v770_v22 = vpop.f32.mrf.mxu1 }
 0x13d   : > { %1152 = vst.msk [vmem:[%s2384_s21] sm:$0xf] %vm1151_vm0, %v1793_v19  ;;  %1184 = vst.msk [vmem:[%s2384_s21 + $0x80] sm:$0xf] %vm1151_vm0, %v1825_v20 }
 0x13e   : > { %v2398_v23 = vpop.f32.mrf.mxu0  ;;  %v2400_v24 = vpop.f32.mrf.mxu1 }
 0x13f   : > { %v1794_v25 = vpack.c.bf16 %v2398_v23, %v2398_v23  ;;  %v1826_v26 = vpack.c.bf16 %v2400_v24, %v2400_v24 }
 0x140   : > { %v645_v27 = vpop.f32.mrf.mxu0  ;;  %v773_v28 = vpop.f32.mrf.mxu1 }
 0x141   : > { %1153 = vst.msk [vmem:[%s2384_s21 + $0x4] sm:$0xf] %vm1151_vm0, %v1794_v25  ;;  %1185 = vst.msk [vmem:[%s2384_s21 + $0x84] sm:$0xf] %vm1151_vm0, %v1826_v26 }
 0x142   : > { %v2410_v29 = vpop.f32.mrf.mxu0  ;;  %v2412_v30 = vpop.f32.mrf.mxu1 }
 0x143   : > { %v1795_v31 = vpack.c.bf16 %v2410_v29, %v2410_v29  ;;  %v1827_v32 = vpack.c.bf16 %v2412_v30, %v2412_v30 }
 0x144   : > { %v650_v33 = vpop.f32.mrf.mxu0  ;;  %v778_v34 = vpop.f32.mrf.mxu1 }
 0x145   : > { %1154 = vst.msk [vmem:[%s2384_s21 + $0x8] sm:$0xf] %vm1151_vm0, %v1795_v31  ;;  %1186 = vst.msk [vmem:[%s2384_s21 + $0x88] sm:$0xf] %vm1151_vm0, %v1827_v32 }
 0x146   : > { %v2422_v35 = vpop.f32.mrf.mxu0  ;;  %v2424_v36 = vpop.f32.mrf.mxu1 }
 0x147   : > { %v1796_v37 = vpack.c.bf16 %v2422_v35, %v2422_v35  ;;  %v1828_v38 = vpack.c.bf16 %v2424_v36, %v2424_v36 }
 0x148   : > { %v653_v39 = vpop.f32.mrf.mxu0  ;;  %v781_v40 = vpop.f32.mrf.mxu1 }
 0x149   : > { %1155 = vst.msk [vmem:[%s2384_s21 + $0xc] sm:$0xf] %vm1151_vm0, %v1796_v37  ;;  %1187 = vst.msk [vmem:[%s2384_s21 + $0x8c] sm:$0xf] %vm1151_vm0, %v1828_v38 }
 0x14a   : > { %v2434_v41 = vpop.f32.mrf.mxu0  ;;  %v2436_v42 = vpop.f32.mrf.mxu1 }
 0x14b   : > { %v1797_v43 = vpack.c.bf16 %v2434_v41, %v2434_v41  ;;  %v1829_v44 = vpack.c.bf16 %v2436_v42, %v2436_v42 }
 0x14c   : > { %v658_v45 = vpop.f32.mrf.mxu0  ;;  %v786_v46 = vpop.f32.mrf.mxu1 }
 0x14d   : > { %1156 = vst.msk [vmem:[%s2384_s21 + $0x10] sm:$0xf] %vm1151_vm0, %v1797_v43  ;;  %1188 = vst.msk [vmem:[%s2384_s21 + $0x90] sm:$0xf] %vm1151_vm0, %v1829_v44 }
 0x14e   : > { %v2446_v47 = vpop.f32.mrf.mxu0  ;;  %v2448_v48 = vpop.f32.mrf.mxu1 }
 0x14f   : > { %v1798_v49 = vpack.c.bf16 %v2446_v47, %v2446_v47  ;;  %v1830_v50 = vpack.c.bf16 %v2448_v48, %v2448_v48 }
 0x150   : > { %v661_v51 = vpop.f32.mrf.mxu0  ;;  %v789_v52 = vpop.f32.mrf.mxu1 }
 0x151   : > { %1157 = vst.msk [vmem:[%s2384_s21 + $0x14] sm:$0xf] %vm1151_vm0, %v1798_v49  ;;  %1189 = vst.msk [vmem:[%s2384_s21 + $0x94] sm:$0xf] %vm1151_vm0, %v1830_v50  ;;  %v2094_v51 = vmov 0.0  }
 0x152   : > { %v2458_v53 = vpop.f32.mrf.mxu0  ;;  %v2460_v54 = vpop.f32.mrf.mxu1  ;;  %284 = vst.msk [vmem:[%s2559_s29] sm:$0xff] %vm283_vm1, %v2094_v51  ;;  %285 = vst.msk [vmem:[%s2574_s5] sm:$0xff] %vm283_vm1, %v2094_v51 }
 0x153   : > { %v1799_v55 = vpack.c.bf16 %v2458_v53, %v2458_v53  ;;  %v1831_v56 = vpack.c.bf16 %v2460_v54, %v2460_v54 }
 0x154   : > { %v666_v57 = vpop.f32.mrf.mxu0  ;;  %v794_v58 = vpop.f32.mrf.mxu1 }
 0x155   : > { %1158 = vst.msk [vmem:[%s2384_s21 + $0x18] sm:$0xf] %vm1151_vm0, %v1799_v55  ;;  %1190 = vst.msk [vmem:[%s2384_s21 + $0x98] sm:$0xf] %vm1151_vm0, %v1831_v56 }
 0x156   : > { %v2470_v59 = vpop.f32.mrf.mxu0  ;;  %v2472_v60 = vpop.f32.mrf.mxu1 }
 0x157   : > { %v1800_v61 = vpack.c.bf16 %v2470_v59, %v2470_v59  ;;  %v1832_v62 = vpack.c.bf16 %v2472_v60, %v2472_v60 }
 0x158   : > { %v669_v63 = vpop.f32.mrf.mxu0  ;;  %v797_v0 = vpop.f32.mrf.mxu1 }
 0x159   : > { %1159 = vst.msk [vmem:[%s2384_s21 + $0x1c] sm:$0xf] %vm1151_vm0, %v1800_v61  ;;  %1191 = vst.msk [vmem:[%s2384_s21 + $0x9c] sm:$0xf] %vm1151_vm0, %v1832_v62  ;;  %v1349_v62 = vmul.f32 %v2398_v23, %v2398_v23 }
 0x15a   : > { %v2482_v1 = vpop.f32.mrf.mxu0  ;;  %v2484_v2 = vpop.f32.mrf.mxu1 }
 0x15b   : > { %v1801_v3 = vpack.c.bf16 %v2482_v1, %v2482_v1  ;;  %v1833_v4 = vpack.c.bf16 %v2484_v2, %v2484_v2 }
 0x15c   : > { %v674_v5 = vpop.f32.mrf.mxu0  ;;  %v802_v6 = vpop.f32.mrf.mxu1 }
 0x15d   : > { %1160 = vst.msk [vmem:[%s2384_s21 + $0x20] sm:$0xf] %vm1151_vm0, %v1801_v3  ;;  %1192 = vst.msk [vmem:[%s2384_s21 + $0xa0] sm:$0xf] %vm1151_vm0, %v1833_v4  ;;  %v1348_v5 = vmul.f32 %v2386_v17, %v2386_v17  ;;  %v1219_v6 = vsel %vm283_vm1, %v2398_v23, 0.0  ;;  %v1413_v23 = vsel %vm283_vm1, %v1349_v62, 0.0 }
 0x15e   : > { %v2494_v7 = vpop.f32.mrf.mxu0  ;;  %v2496_v8 = vpop.f32.mrf.mxu1 }
 0x15f   : > { %v1802_v9 = vpack.c.bf16 %v2494_v7, %v2494_v7  ;;  %v1834_v10 = vpack.c.bf16 %v2496_v8, %v2496_v8 }
 0x160   : > { %v677_v11 = vpop.f32.mrf.mxu0  ;;  %v805_v12 = vpop.f32.mrf.mxu1 }
 0x161   : > { %1161 = vst.msk [vmem:[%s2384_s21 + $0x24] sm:$0xf] %vm1151_vm0, %v1802_v9  ;;  %1193 = vst.msk [vmem:[%s2384_s21 + $0xa4] sm:$0xf] %vm1151_vm0, %v1834_v10  ;;  %v1350_v9 = vmul.f32 %v2410_v29, %v2410_v29  ;;  %v1218_v10 = vsel %vm283_vm1, %v2386_v17, 0.0  ;;  %v1351_v11 = vmul.f32 %v2422_v35, %v2422_v35 }
 0x162   : > { %v2506_v13 = vpop.f32.mrf.mxu0  ;;  %v2508_v14 = vpop.f32.mrf.mxu1  ;;  %v1220_v17 = vadd.f32 %v1219_v6, %v1218_v10 }
 0x163   : > { %v1803_v15 = vpack.c.bf16 %v2506_v13, %v2506_v13  ;;  %v1835_v16 = vpack.c.bf16 %v2508_v14, %v2508_v14 }
 0x164   : > { %v682_v19 = vpop.f32.mrf.mxu0  ;;  %v810_v20 = vpop.f32.mrf.mxu1 }
 0x165   : > { %1162 = vst.msk [vmem:[%s2384_s21 + $0x28] sm:$0xf] %vm1151_vm0, %v1803_v15  ;;  %1194 = vst.msk [vmem:[%s2384_s21 + $0xa8] sm:$0xf] %vm1151_vm0, %v1835_v16  ;;  %v1221_v16 = vsel %vm283_vm1, %v2410_v29, 0.0 }
 0x166   : > { %v2518_v21 = vpop.f32.mrf.mxu0  ;;  %v2520_v22 = vpop.f32.mrf.mxu1 }
 0x167   : > { %v1804_v25 = vpack.c.bf16 %v2518_v21, %v2518_v21  ;;  %v1836_v26 = vpack.c.bf16 %v2520_v22, %v2520_v22 }
 0x168   : > { %v685_v27 = vpop.f32.mrf.mxu0  ;;  %v813_v28 = vpop.f32.mrf.mxu1 }
 0x169   : > { %1163 = vst.msk [vmem:[%s2384_s21 + $0x2c] sm:$0xf] %vm1151_vm0, %v1804_v25  ;;  %1195 = vst.msk [vmem:[%s2384_s21 + $0xac] sm:$0xf] %vm1151_vm0, %v1836_v26  ;;  %v1412_v27 = vsel %vm283_vm1, %v1348_v5, 0.0  ;;  %v1415_v28 = vsel %vm283_vm1, %v1350_v9, 0.0 }
 0x16a   : > { %v2530_v31 = vpop.f32.mrf.mxu0  ;;  %v2532_v32 = vpop.f32.mrf.mxu1  ;;  %v1414_v29 = vadd.f32 %v1413_v23, %v1412_v27  ;;  %v1229_v9 = vsel %vm283_vm1, %v2458_v53, 0.0 }
 0x16b   : > { %v1805_v33 = vpack.c.bf16 %v2530_v31, %v2530_v31  ;;  %v1837_v34 = vpack.c.bf16 %v2532_v32, %v2532_v32 }
 0x16c   : > { %v690_v37 = vpop.f32.mrf.mxu0  ;;  %v818_v38 = vpop.f32.mrf.mxu1 }
 0x16d   : > { %1164 = vst.msk [vmem:[%s2384_s21 + $0x30] sm:$0xf] %vm1151_vm0, %v1805_v33  ;;  %1196 = vst.msk [vmem:[%s2384_s21 + $0xb0] sm:$0xf] %vm1151_vm0, %v1837_v34  ;;  %v1223_v33 = vsel %vm283_vm1, %v2422_v35, 0.0  ;;  %v1352_v34 = vmul.f32 %v2434_v41, %v2434_v41  ;;  %v1222_v37 = vadd.f32 %v1221_v16, %v1220_v17  ;;  %v1417_v38 = vsel %vm283_vm1, %v1351_v11, 0.0 }
 0x16e   : > { %v2543_v39 = vpop.f32.mrf.mxu0  ;;  %v2545_v40 = vpop.f32.mrf.mxu1  ;;  %v1225_v35 = vsel %vm283_vm1, %v2434_v41, 0.0  ;;  %v1354_v41 = vmul.f32 %v2458_v53, %v2458_v53 }
 0x16f   : > { %v1806_v43 = vpack.c.bf16 %v2543_v39, %v2543_v39  ;;  %v1838_v44 = vpack.c.bf16 %v2545_v40, %v2545_v40  ;;  %v1419_v62 = vsel %vm283_vm1, %v1352_v34, 0.0 }
 0x170   : > { %v693_v45 = vpop.f32.mrf.mxu0  ;;  %v821_v46 = vpop.f32.mrf.mxu1  ;;  %v1423_v17 = vsel %vm283_vm1, %v1354_v41, 0.0 }
 0x171   : > { %1165 = vst.msk [vmem:[%s2384_s21 + $0x34] sm:$0xf] %vm1151_vm0, %v1806_v43  ;;  %1197 = vst.msk [vmem:[%s2384_s21 + $0xb4] sm:$0xf] %vm1151_vm0, %v1838_v44  ;;  %v1353_v45 = vmul.f32 %v2446_v47, %v2446_v47 }
 0x172   : > { %v2561_v49 = vpop.f32.mrf.mxu0  ;;  %v2563_v50 = vpop.f32.mrf.mxu1 }
 0x173   : > { %v1807_v52 = vpack.c.bf16 %v2561_v49, %v2561_v49  ;;  %v1839_v55 = vpack.c.bf16 %v2563_v50, %v2563_v50 }
 0x174   : > { %v698_v56 = vpop.f32.mrf.mxu0  ;;  %v826_v57 = vpop.f32.mrf.mxu1 }
 0x175   : > { %1166 = vst.msk [vmem:[%s2384_s21 + $0x38] sm:$0xf] %vm1151_vm0, %v1807_v52  ;;  %1198 = vst.msk [vmem:[%s2384_s21 + $0xb8] sm:$0xf] %vm1151_vm0, %v1839_v55  ;;  %v1416_v52 = vadd.f32 %v1415_v28, %v1414_v29  ;;  %v1224_v55 = vadd.f32 %v1223_v33, %v1222_v37  ;;  %v1357_v29 = vmul.f32 %v2494_v7, %v2494_v7 }
 0x176   : > { %v2582_v58 = vpop.f32.mrf.mxu0  ;;  %v2584_v61 = vpop.f32.mrf.mxu1 }
 0x177   : > { %v1808_v63 = vpack.c.bf16 %v2582_v58, %v2582_v58  ;;  %v1840_v0 = vpack.c.bf16 %v2584_v61, %v2584_v61 }
 0x178   : > { %v701_v3 = vpop.f32.mrf.mxu0  ;;  %v829_v4 = vpop.f32.mrf.mxu1 }
 0x179   : > { %1167 = vst.msk [vmem:[%s2384_s21 + $0x3c] sm:$0xf] %vm1151_vm0, %v1808_v63  ;;  %1199 = vst.msk [vmem:[%s2384_s21 + $0xbc] sm:$0xf] %vm1151_vm0, %v1840_v0  ;;  %v1227_v63 = vsel %vm283_vm1, %v2446_v47, 0.0  ;;  %v1418_v0 = vadd.f32 %v1417_v38, %v1416_v52  ;;  %v1226_v3 = vadd.f32 %v1225_v35, %v1224_v55  ;;  %v1355_v4 = vmul.f32 %v2470_v59, %v2470_v59 }
 0x17a   : > { %v2606_v12 = vpop.f32.mrf.mxu0  ;;  %v2608_v15 = vpop.f32.mrf.mxu1  ;;  %v1421_v47 = vsel %vm283_vm1, %v1353_v45, 0.0  ;;  %v1235_v55 = vsel %vm283_vm1, %v2494_v7, 0.0  ;;  %v1429_v7 = vsel %vm283_vm1, %v1357_v29, 0.0 }
 0x17b   : > { %v1809_v19 = vpack.c.bf16 %v2606_v12, %v2606_v12  ;;  %v1841_v20 = vpack.c.bf16 %v2608_v15, %v2608_v15  ;;  %v1420_v23 = vadd.f32 %v1419_v62, %v1418_v0  ;;  %v1228_v16 = vadd.f32 %v1227_v63, %v1226_v3 }
 0x17c   : > { %v706_v25 = vpop.f32.mrf.mxu0  ;;  %v834_v26 = vpop.f32.mrf.mxu1  ;;  %v1425_v28 = vsel %vm283_vm1, %v1355_v4, 0.0  ;;  %v1359_v62 = vmul.f32 %v2518_v21, %v2518_v21  ;;  %v1237_v0 = vsel %vm283_vm1, %v2506_v13, 0.0 }
 0x17d   : > { %1168 = vst.msk [vmem:[%s2384_s21 + $0x40] sm:$0xf] %vm1151_vm0, %v1809_v19  ;;  %1200 = vst.msk [vmem:[%s2384_s21 + $0xc0] sm:$0xf] %vm1151_vm0, %v1841_v20  ;;  %v1231_v25 = vsel %vm283_vm1, %v2470_v59, 0.0  ;;  %v1356_v26 = vmul.f32 %v2482_v1, %v2482_v1  ;;  %v1422_v53 = vadd.f32 %v1421_v47, %v1420_v23  ;;  %v1230_v27 = vadd.f32 %v1229_v9, %v1228_v16 }
 0x17e   : > { %v2628_v43 = vpop.f32.mrf.mxu0  ;;  %v2630_v44 = vpop.f32.mrf.mxu1  ;;  %v1233_v59 = vsel %vm283_vm1, %v2482_v1, 0.0  ;;  %v1358_v1 = vmul.f32 %v2506_v13, %v2506_v13  ;;  %v1239_v16 = vsel %vm283_vm1, %v2518_v21, 0.0  ;;  %v1241_v21 = vsel %vm283_vm1, %v2530_v31, 0.0 }
 0x17f   : > { %v1810_v46 = vpack.c.bf16 %v2628_v43, %v2628_v43  ;;  %v1842_v51 = vpack.c.bf16 %v2630_v44, %v2630_v44  ;;  %v1424_v35 = vadd.f32 %v1423_v17, %v1422_v53  ;;  %v1232_v45 = vadd.f32 %v1231_v25, %v1230_v27 }
 0x180   : > { %v709_v56 = vpop.f32.mrf.mxu0  ;;  %v837_v57 = vpop.f32.mrf.mxu1  ;;  %v1427_v52 = vsel %vm283_vm1, %v1356_v26, 0.0  ;;  %v1431_v23 = vsel %vm283_vm1, %v1358_v1, 0.0  ;;  %v1433_v17 = vsel %vm283_vm1, %v1359_v62, 0.0  ;;  %v1361_v53 = vmul.f32 %v2543_v39, %v2543_v39 }
 0x181   : > { %1169 = vst.msk [vmem:[%s2384_s21 + $0x44] sm:$0xf] %vm1151_vm0, %v1810_v46  ;;  %1201 = vst.msk [vmem:[%s2384_s21 + $0xc4] sm:$0xf] %vm1151_vm0, %v1842_v51  ;;  %v1426_v56 = vadd.f32 %v1425_v28, %v1424_v35  ;;  %v1234_v57 = vadd.f32 %v1233_v59, %v1232_v45  ;;  %v1243_v45 = vsel %vm283_vm1, %v2543_v39, 0.0 }
 0x182   : > { %v2651_v5 = vpop.f32.mrf.mxu0  ;;  %v2653_v6 = vpop.f32.mrf.mxu1  ;;  %v1437_v39 = vsel %vm283_vm1, %v1361_v53, 0.0 }
 0x183   : > { %v1811_v10 = vpack.c.bf16 %v2651_v5, %v2651_v5  ;;  %v1843_v11 = vpack.c.bf16 %v2653_v6, %v2653_v6  ;;  %v1428_v47 = vadd.f32 %v1427_v52, %v1426_v56  ;;  %v1236_v9 = vadd.f32 %v1235_v55, %v1234_v57 }
 0x184   : > { %v714_v19 = vpop.f32.mrf.mxu0  ;;  %v842_v20 = vpop.f32.mrf.mxu1  ;;  %v1363_v52 = vmul.f32 %v2582_v58, %v2582_v58  ;;  %v1245_v56 = vsel %vm283_vm1, %v2561_v49, 0.0 }
 0x185   : > { %1170 = vst.msk [vmem:[%s2384_s21 + $0x48] sm:$0xf] %vm1151_vm0, %v1811_v10  ;;  %1202 = vst.msk [vmem:[%s2384_s21 + $0xc8] sm:$0xf] %vm1151_vm0, %v1843_v11  ;;  %v1360_v19 = vmul.f32 %v2530_v31, %v2530_v31  ;;  %v1430_v13 = vadd.f32 %v1429_v7, %v1428_v47  ;;  %v1238_v20 = vadd.f32 %v1237_v0, %v1236_v9  ;;  %v1247_v9 = vsel %vm283_vm1, %v2582_v58, 0.0 }
 0x186   : > { %v2672_v33 = vpop.f32.mrf.mxu0  ;;  %v2674_v34 = vpop.f32.mrf.mxu1  ;;  %v1362_v31 = vmul.f32 %v2561_v49, %v2561_v49  ;;  %v1249_v58 = vsel %vm283_vm1, %v2606_v12, 0.0 }
 0x187   : > { %v1812_v37 = vpack.c.bf16 %v2672_v33, %v2672_v33  ;;  %v1844_v38 = vpack.c.bf16 %v2674_v34, %v2674_v34  ;;  %v1432_v59 = vadd.f32 %v1431_v23, %v1430_v13  ;;  %v1240_v29 = vadd.f32 %v1239_v16, %v1238_v20 }
 0x188   : > { %v717_v46 = vpop.f32.mrf.mxu0  ;;  %v845_v51 = vpop.f32.mrf.mxu1  ;;  %v1435_v35 = vsel %vm283_vm1, %v1360_v19, 0.0  ;;  %v1439_v47 = vsel %vm283_vm1, %v1362_v31, 0.0  ;;  %v1441_v23 = vsel %vm283_vm1, %v1363_v52, 0.0  ;;  %v1365_v13 = vmul.f32 %v2628_v43, %v2628_v43 }
 0x189   : > { %1171 = vst.msk [vmem:[%s2384_s21 + $0x4c] sm:$0xf] %vm1151_vm0, %v1812_v37  ;;  %1203 = vst.msk [vmem:[%s2384_s21 + $0xcc] sm:$0xf] %vm1151_vm0, %v1844_v38  ;;  %v1434_v46 = vadd.f32 %v1433_v17, %v1432_v59  ;;  %v1242_v51 = vadd.f32 %v1241_v21, %v1240_v29  ;;  %v1251_v29 = vsel %vm283_vm1, %v2628_v43, 0.0  ;;  %v1253_v43 = vsel %vm283_vm1, %v2651_v5, 0.0 }
 0x18a   : > { %v2695_v63 = vpop.f32.mrf.mxu0  ;;  %v2697_v41 = vpop.f32.mrf.mxu1 }
 0x18b   : > { %v1813_v3 = vpack.c.bf16 %v2695_v63, %v2695_v63  ;;  %v1845_v4 = vpack.c.bf16 %v2697_v41, %v2697_v41  ;;  %v1436_v7 = vadd.f32 %v1435_v35, %v1434_v46  ;;  %v1244_v0 = vadd.f32 %v1243_v45, %v1242_v51 }
 0x18c   : > { %v722_v10 = vpop.f32.mrf.mxu0  ;;  %v850_v11 = vpop.f32.mrf.mxu1  ;;  %v1367_v35 = vmul.f32 %v2672_v33, %v2672_v33  ;;  %v1445_v46 = vsel %vm283_vm1, %v1365_v13, 0.0 }
 0x18d   : > { %1172 = vst.msk [vmem:[%s2384_s21 + $0x50] sm:$0xf] %vm1151_vm0, %v1813_v3  ;;  %1204 = vst.msk [vmem:[%s2384_s21 + $0xd0] sm:$0xf] %vm1151_vm0, %v1845_v4  ;;  %v1364_v10 = vmul.f32 %v2606_v12, %v2606_v12  ;;  %v1438_v49 = vadd.f32 %v1437_v39, %v1436_v7  ;;  %v1246_v11 = vadd.f32 %v1245_v56, %v1244_v0  ;;  %v1255_v0 = vsel %vm283_vm1, %v2672_v33, 0.0 }
 0x18e   : > { %v2716_v25 = vpop.f32.mrf.mxu0  ;;  %v2718_v26 = vpop.f32.mrf.mxu1  ;;  %v1366_v12 = vmul.f32 %v2651_v5, %v2651_v5 }
 0x18f   : > { %v1814_v27 = vpack.c.bf16 %v2716_v25, %v2716_v25  ;;  %v1846_v28 = vpack.c.bf16 %v2718_v26, %v2718_v26  ;;  %v1440_v21 = vadd.f32 %v1439_v47, %v1438_v49  ;;  %v1248_v53 = vadd.f32 %v1247_v9, %v1246_v11 }
 0x190   : > { %v725_v37 = vpop.f32.mrf.mxu0  ;;  %v853_v38 = vpop.f32.mrf.mxu1  ;;  %v1443_v59 = vsel %vm283_vm1, %v1364_v10, 0.0  ;;  %v1447_v7 = vsel %vm283_vm1, %v1366_v12, 0.0  ;;  %v1449_v47 = vsel %vm283_vm1, %v1367_v35, 0.0  ;;  %v1257_v49 = vsel %vm283_vm1, %v2695_v63, 0.0 }
 0x191   : > { %1173 = vst.msk [vmem:[%s2384_s21 + $0x54] sm:$0xf] %vm1151_vm0, %v1814_v27  ;;  %1205 = vst.msk [vmem:[%s2384_s21 + $0xd4] sm:$0xf] %vm1151_vm0, %v1846_v28  ;;  %v1442_v37 = vadd.f32 %v1441_v23, %v1440_v21  ;;  %v1250_v38 = vadd.f32 %v1249_v58, %v1248_v53  ;;  %v1369_v33 = vmul.f32 %v2716_v25, %v2716_v25  ;;  %v1259_v53 = vsel %vm283_vm1, %v2716_v25, 0.0 }
 0x192   : > { %v2739_v55 = vpop.f32.mrf.mxu0  ;;  %v2741_v1 = vpop.f32.mrf.mxu1 }
 0x193   : > { %v1815_v57 = vpack.c.bf16 %v2739_v55, %v2739_v55  ;;  %v1847_v62 = vpack.c.bf16 %v2741_v1, %v2741_v1  ;;  %v1444_v39 = vadd.f32 %v1443_v59, %v1442_v37  ;;  %v1252_v56 = vadd.f32 %v1251_v29, %v1250_v38 }
 0x194   : > { %v730_v3 = vpop.f32.mrf.mxu0  ;;  %v858_v4 = vpop.f32.mrf.mxu1  ;;  %v1453_v37 = vsel %vm283_vm1, %v1369_v33, 0.0  ;;  %v1261_v25 = vsel %vm283_vm1, %v2739_v55, 0.0 }
 0x195   : > { %1174 = vst.msk [vmem:[%s2384_s21 + $0x58] sm:$0xf] %vm1151_vm0, %v1815_v57  ;;  %1206 = vst.msk [vmem:[%s2384_s21 + $0xd8] sm:$0xf] %vm1151_vm0, %v1847_v62  ;;  %v1368_v3 = vmul.f32 %v2695_v63, %v2695_v63  ;;  %v1446_v5 = vadd.f32 %v1445_v46, %v1444_v39  ;;  %v1254_v4 = vadd.f32 %v1253_v43, %v1252_v56 }
 0x196   : > { %v2760_v16 = vpop.f32.mrf.mxu0  ;;  %v2762_v19 = vpop.f32.mrf.mxu1 }
 0x197   : > { %v1816_v20 = vpack.c.bf16 %v2760_v16, %v2760_v16  ;;  %v1848_v17 = vpack.c.bf16 %v2762_v19, %v2762_v19  ;;  %v1448_v58 = vadd.f32 %v1447_v7, %v1446_v5  ;;  %v1256_v13 = vadd.f32 %v1255_v0, %v1254_v4 }
 0x198   : > { %v733_v27 = vpop.f32.mrf.mxu0  ;;  %v861_v28 = vpop.f32.mrf.mxu1  ;;  %v1451_v21 = vsel %vm283_vm1, %v1368_v3, 0.0  ;;  %v1371_v59 = vmul.f32 %v2760_v16, %v2760_v16  ;;  %v1263_v56 = vsel %vm283_vm1, %v2760_v16, 0.0 }
 0x199   : > { %1175 = vst.msk [vmem:[%s2384_s21 + $0x5c] sm:$0xf] %vm1151_vm0, %v1816_v20  ;;  %1207 = vst.msk [vmem:[%s2384_s21 + $0xdc] sm:$0xf] %vm1151_vm0, %v1848_v17  ;;  %v1370_v27 = vmul.f32 %v2739_v55, %v2739_v55  ;;  %v1450_v63 = vadd.f32 %v1449_v47, %v1448_v58  ;;  %v1258_v28 = vadd.f32 %v1257_v49, %v1256_v13 }
 0x19a   : > { %v736_v45 = vpop.f32.mrf.mxu0  ;;  %v2783_v31 = vpop.f32.mrf.mxu1  ;;  %v1457_v7 = vsel %vm283_vm1, %v1371_v59, 0.0 }
 0x19b   : > { %v1817_v51 = vpack.c.bf16 %v736_v45, %v736_v45  ;;  %v1849_v52 = vpack.c.bf16 %v2783_v31, %v2783_v31  ;;  %v1452_v46 = vadd.f32 %v1451_v21, %v1450_v63  ;;  %v1260_v43 = vadd.f32 %v1259_v53, %v1258_v28 }
 0x19c   : > { %v738_v57 = vpop.f32.mrf.mxu0  ;;  %v866_v62 = vpop.f32.mrf.mxu1  ;;  %v1455_v39 = vsel %vm283_vm1, %v1370_v27, 0.0  ;;  %v1265_v5 = vsel %vm283_vm1, %v736_v45, 0.0 }
 0x19d   : > { %1176 = vst.msk [vmem:[%s2384_s21 + $0x60] sm:$0xf] %vm1151_vm0, %v1817_v51  ;;  %1208 = vst.msk [vmem:[%s2384_s21 + $0xe0] sm:$0xf] %vm1151_vm0, %v1849_v52  ;;  %v1372_v57 = vmul.f32 %v736_v45, %v736_v45  ;;  %v1454_v62 = vadd.f32 %v1453_v37, %v1452_v46  ;;  %v1262_v55 = vadd.f32 %v1261_v25, %v1260_v43 }
 0x19e   : > { %v739_v9 = vpop.f32.mrf.mxu0  ;;  %v2800_v10 = vpop.f32.mrf.mxu1 }
 0x19f   : > { %v1818_v11 = vpack.c.bf16 %v739_v9, %v739_v9  ;;  %v1850_v23 = vpack.c.bf16 %v2800_v10, %v2800_v10  ;;  %v1373_v4 = vmul.f32 %v739_v9, %v739_v9  ;;  %v1456_v49 = vadd.f32 %v1455_v39, %v1454_v62 }
 0x1a0   : > { %v741_v20 = vpop.f32.mrf.mxu0  ;;  %v869_v17 = vpop.f32.mrf.mxu1  ;;  %v1264_v33 = vadd.f32 %v1263_v56, %v1262_v55  ;;  %v1459_v58 = vsel %vm283_vm1, %v1372_v57, 0.0  ;;  %v1267_v13 = vsel %vm283_vm1, %v739_v9, 0.0 }
 0x1a1   : > { %1177 = vst.msk [vmem:[%s2384_s21 + $0x64] sm:$0xf] %vm1151_vm0, %v1818_v11  ;;  %1209 = vst.msk [vmem:[%s2384_s21 + $0xe4] sm:$0xf] %vm1151_vm0, %v1850_v23  ;;  %v1458_v45 = vadd.f32 %v1457_v7, %v1456_v49  ;;  %v1461_v63 = vsel %vm283_vm1, %v1373_v4, 0.0 }
 0x1a2   : > { %v744_v29 = vpop.f32.mrf.mxu0  ;;  %v2819_v12 = vpop.f32.mrf.mxu1  ;;  %v1266_v17 = vadd.f32 %v1265_v5, %v1264_v33 }
 0x1a3   : > { %v1819_v38 = vpack.c.bf16 %v744_v29, %v744_v29  ;;  %v1851_v35 = vpack.c.bf16 %v2819_v12, %v2819_v12  ;;  %v1374_v20 = vmul.f32 %v744_v29, %v744_v29  ;;  %v1269_v28 = vsel %vm283_vm1, %v744_v29, 0.0 }
 0x1a4   : > { %v746_v51 = vpop.f32.mrf.mxu0  ;;  %v874_v52 = vpop.f32.mrf.mxu1  ;;  %v1460_v37 = vadd.f32 %v1459_v58, %v1458_v45  ;;  %v1268_v25 = vadd.f32 %v1267_v13, %v1266_v17 }
 0x1a5   : > { %1178 = vst.msk [vmem:[%s2384_s21 + $0x68] sm:$0xf] %vm1151_vm0, %v1819_v38  ;;  %1210 = vst.msk [vmem:[%s2384_s21 + $0xe8] sm:$0xf] %vm1151_vm0, %v1851_v35  ;;  %v1463_v46 = vsel %vm283_vm1, %v1374_v20, 0.0 }
 0x1a6   : > { %v747_v0 = vpop.f32.mrf.mxu0  ;;  %v2834_v3 = vpop.f32.mrf.mxu1  ;;  %v1462_v52 = vadd.f32 %v1461_v63, %v1460_v37  ;;  %v1270_v29 = vadd.f32 %v1269_v28, %v1268_v25  ;;  %v1380_v25 = vmul.f32 %v2388_v18, %v2388_v18 }
 0x1a7   : > { %v1820_v47 = vpack.c.bf16 %v747_v0, %v747_v0  ;;  %v1852_v16 = vpack.c.bf16 %v2834_v3, %v2834_v3  ;;  %v1375_v21 = vmul.f32 %v747_v0, %v747_v0  ;;  %v1271_v43 = vsel %vm283_vm1, %v747_v0, 0.0 }
 0x1a8   : > { %v749_v11 = vpop.f32.mrf.mxu0  ;;  %v877_v23 = vpop.f32.mrf.mxu1  ;;  %v1464_v5 = vadd.f32 %v1463_v46, %v1462_v52  ;;  %v1272_v4 = vadd.f32 %v1271_v43, %v1270_v29 }
 0x1a9   : > { %1179 = vst.msk [vmem:[%s2384_s21 + $0x6c] sm:$0xf] %vm1151_vm0, %v1820_v47  ;;  %1211 = vst.msk [vmem:[%s2384_s21 + $0xec] sm:$0xf] %vm1151_vm0, %v1852_v16  ;;  %v1465_v39 = vsel %vm283_vm1, %v1375_v21, 0.0 }
 0x1aa   : > { %v752_v53 = vpop.f32.mrf.mxu0  ;;  %v2845_v27 = vpop.f32.mrf.mxu1  ;;  %v1466_v11 = vadd.f32 %v1465_v39, %v1464_v5  ;;  %v1381_v5 = vmul.f32 %v2400_v24, %v2400_v24 }
 0x1ab   : > { %v1821_v59 = vpack.c.bf16 %v752_v53, %v752_v53  ;;  %v1853_v9 = vpack.c.bf16 %v2845_v27, %v2845_v27  ;;  %v1376_v51 = vmul.f32 %v752_v53, %v752_v53  ;;  %v1273_v62 = vsel %vm283_vm1, %v752_v53, 0.0 }
 0x1ac   : > { %v754_v38 = vpop.f32.mrf.mxu0  ;;  %v882_v35 = vpop.f32.mrf.mxu1  ;;  %v1274_v23 = vadd.f32 %v1273_v62, %v1272_v4 }
 0x1ad   : > { %1180 = vst.msk [vmem:[%s2384_s21 + $0x70] sm:$0xf] %vm1151_vm0, %v1821_v59  ;;  %1212 = vst.msk [vmem:[%s2384_s21 + $0xf0] sm:$0xf] %vm1151_vm0, %v1853_v9  ;;  %v1467_v49 = vsel %vm283_vm1, %v1376_v51, 0.0 }
 0x1ae   : > { %v755_v56 = vpop.f32.mrf.mxu0  ;;  %v2858_v57 = vpop.f32.mrf.mxu1  ;;  %v1468_v63 = vadd.f32 %v1467_v49, %v1466_v11  ;;  %v1475_v49 = vsel %vm283_vm1, %v1380_v25, 0.0  ;;  %v1382_v11 = vmul.f32 %v2412_v30, %v2412_v30 }
 0x1af   : > { %v1822_v55 = vpack.c.bf16 %v755_v56, %v755_v56  ;;  %v1377_v7 = vmul.f32 %v755_v56, %v755_v56  ;;  %v1854_v0 = vpack.c.bf16 %v2858_v57, %v2858_v57  ;;  %v1275_v33 = vsel %vm283_vm1, %v755_v56, 0.0 }
 0x1b0   : > { %v757_v47 = vpop.f32.mrf.mxu0  ;;  %v885_v16 = vpop.f32.mrf.mxu1  ;;  %v1276_v28 = vadd.f32 %v1275_v33, %v1274_v23  ;;  %v1283_v33 = vsel %vm283_vm1, %v2400_v24, 0.0  ;;  %v1287_v24 = vsel %vm283_vm1, %v2424_v36, 0.0 }
 0x1b1   : > { %1181 = vst.msk [vmem:[%s2384_s21 + $0x74] sm:$0xf] %vm1151_vm0, %v1822_v55  ;;  %1213 = vst.msk [vmem:[%s2384_s21 + $0xf4] sm:$0xf] %vm1151_vm0, %v1854_v0  ;;  %v1469_v58 = vsel %vm283_vm1, %v1377_v7, 0.0  ;;  %v1281_v0 = vsel %vm283_vm1, %v2388_v18, 0.0 }
 0x1b2   : > { %v760_v13 = vpop.f32.mrf.mxu0  ;;  %v2870_v20 = vpop.f32.mrf.mxu1  ;;  %v1470_v38 = vadd.f32 %v1469_v58, %v1468_v63  ;;  %v1477_v58 = vsel %vm283_vm1, %v1381_v5, 0.0  ;;  %v1384_v63 = vmul.f32 %v2436_v42, %v2436_v42 }
 0x1b3   : > { %v1823_v45 = vpack.c.bf16 %v760_v13, %v760_v13  ;;  %v1277_v17 = vsel %vm283_vm1, %v760_v13, 0.0  ;;  %v1378_v21 = vmul.f32 %v760_v13, %v760_v13  ;;  %v1855_v53 = vpack.c.bf16 %v2870_v20, %v2870_v20 }
 0x1b4   : > { %v762_v59 = vpop.f32.mrf.mxu0  ;;  %v890_v9 = vpop.f32.mrf.mxu1  ;;  %v1278_v35 = vadd.f32 %v1277_v17, %v1276_v28  ;;  %v1285_v13 = vsel %vm283_vm1, %v2412_v30, 0.0  ;;  %v1289_v30 = vsel %vm283_vm1, %v2436_v42, 0.0  ;;  %v1293_v42 = vsel %vm283_vm1, %v2460_v54, 0.0 }
 0x1b5   : > { %1182 = vst.msk [vmem:[%s2384_s21 + $0x78] sm:$0xf] %vm1151_vm0, %v1823_v45  ;;  %v1471_v37 = vsel %vm283_vm1, %v1378_v21, 0.0  ;;  %1214 = vst.msk [vmem:[%s2384_s21 + $0xf8] sm:$0xf] %vm1151_vm0, %v1855_v53  ;;  %v1383_v45 = vmul.f32 %v2424_v36, %v2424_v36  ;;  %v1479_v53 = vsel %vm283_vm1, %v1382_v11, 0.0  ;;  %v1390_v11 = vmul.f32 %v2508_v14, %v2508_v14 }
 0x1b6   : > { %v763_v46 = vpop.f32.mrf.mxu0  ;;  %v2882_v43 = vpop.f32.mrf.mxu1  ;;  %v1472_v56 = vadd.f32 %v1471_v37, %v1470_v38  ;;  %v1385_v37 = vmul.f32 %v2448_v48, %v2448_v48  ;;  %v1291_v36 = vsel %vm283_vm1, %v2448_v48, 0.0  ;;  %v1295_v48 = vsel %vm283_vm1, %v2472_v60, 0.0 }
 0x1b7   : > { %v1824_v51 = vpack.c.bf16 %v763_v46, %v763_v46  ;;  %v1279_v52 = vsel %vm283_vm1, %v763_v46, 0.0  ;;  %v1379_v29 = vmul.f32 %v763_v46, %v763_v46  ;;  %v1856_v39 = vpack.c.bf16 %v2882_v43, %v2882_v43 }
 0x1b8   : > { %v1280_v62 = vadd.f32 %v1279_v52, %v1278_v35  ;;  %v765_v55 = vpop.f32.mrf.mxu0  ;;  %v893_v7 = vpop.f32.mrf.mxu1  ;;  %v1481_v9 = vsel %vm283_vm1, %v1383_v45, 0.0  ;;  %v1483_v35 = vsel %vm283_vm1, %v1384_v63, 0.0  ;;  %v1386_v46 = vmul.f32 %v2460_v54, %v2460_v54 }
 0x1b9   : > { %1183 = vst.msk [vmem:[%s2384_s21 + $0x7c] sm:$0xf] %vm1151_vm0, %v1824_v51  ;;  %v1473_v4 = vsel %vm283_vm1, %v1379_v29, 0.0  ;;  %1215 = vst.msk [vmem:[%s2384_s21 + $0xfc] sm:$0xf] %vm1151_vm0, %v1856_v39  ;;  %v1485_v29 = vsel %vm283_vm1, %v1385_v37, 0.0  ;;  %v1387_v39 = vmul.f32 %v2472_v60, %v2472_v60  ;;  %v1388_v7 = vmul.f32 %v2484_v2, %v2484_v2 }
 0x1ba   : > { %v1282_v47 = vadd.f32 %v1281_v0, %v1280_v62  ;;  %v1474_v16 = vadd.f32 %v1473_v4, %v1472_v56  ;;  %v1487_v55 = vsel %vm283_vm1, %v1386_v46, 0.0  ;;  %v1297_v54 = vsel %vm283_vm1, %v2484_v2, 0.0 }
 0x1bb   : > { %v1489_v4 = vsel %vm283_vm1, %v1387_v39, 0.0  ;;  %v1299_v60 = vsel %vm283_vm1, %v2496_v8, 0.0  ;;  %v1301_v2 = vsel %vm283_vm1, %v2508_v14, 0.0  ;;  %v1305_v14 = vsel %vm283_vm1, %v2532_v32, 0.0 }
 0x1bc   : > { %v1284_v18 = vadd.f32 %v1283_v33, %v1282_v47  ;;  %v1476_v23 = vadd.f32 %v1475_v49, %v1474_v16  ;;  %v1389_v47 = vmul.f32 %v2496_v8, %v2496_v8  ;;  %v1491_v33 = vsel %vm283_vm1, %v1388_v7, 0.0 }
 0x1bd   : > { %v1303_v8 = vsel %vm283_vm1, %v2520_v22, 0.0  ;;  %v1395_v46 = vmul.f32 %v2584_v61, %v2584_v61 }
 0x1be   : > { %v1286_v17 = vadd.f32 %v1285_v13, %v1284_v18  ;;  %v1478_v21 = vadd.f32 %v1477_v58, %v1476_v23  ;;  %v1493_v58 = vsel %vm283_vm1, %v1389_v47, 0.0  ;;  %v1391_v13 = vmul.f32 %v2520_v22, %v2520_v22 }
 0x1bf   : > { %v1307_v22 = vsel %vm283_vm1, %v2545_v40, 0.0 }
 0x1c0   : > { %v1288_v28 = vadd.f32 %v1287_v24, %v1286_v17  ;;  %v1480_v59 = vadd.f32 %v1479_v53, %v1478_v21  ;;  %v1495_v21 = vsel %vm283_vm1, %v1390_v11, 0.0  ;;  %v1392_v53 = vmul.f32 %v2532_v32, %v2532_v32 }
 0x1c1   : > { %v1309_v32 = vsel %vm283_vm1, %v2563_v50, 0.0  ;;  %v1400_v11 = vmul.f32 %v2697_v41, %v2697_v41 }
 0x1c2   : > { %v1290_v25 = vadd.f32 %v1289_v30, %v1288_v28  ;;  %v1482_v38 = vadd.f32 %v1481_v9, %v1480_v59  ;;  %v1497_v28 = vsel %vm283_vm1, %v1391_v13, 0.0  ;;  %v1393_v59 = vmul.f32 %v2545_v40, %v2545_v40 }
 0x1c3   : > { %v1499_v37 = vsel %vm283_vm1, %v1392_v53, 0.0  ;;  %v1311_v40 = vsel %vm283_vm1, %v2584_v61, 0.0  ;;  %v1315_v61 = vsel %vm283_vm1, %v2630_v44, 0.0 }
 0x1c4   : > { %v1292_v51 = vadd.f32 %v1291_v36, %v1290_v25  ;;  %v1484_v52 = vadd.f32 %v1483_v35, %v1482_v38  ;;  %v1394_v25 = vmul.f32 %v2563_v50, %v2563_v50  ;;  %v1501_v36 = vsel %vm283_vm1, %v1393_v59, 0.0 }
 0x1c5   : > { %v1313_v50 = vsel %vm283_vm1, %v2608_v15, 0.0 }
 0x1c6   : > { %v1294_v56 = vadd.f32 %v1293_v42, %v1292_v51  ;;  %v1486_v62 = vadd.f32 %v1485_v29, %v1484_v52  ;;  %v1503_v29 = vsel %vm283_vm1, %v1394_v25, 0.0  ;;  %v1396_v42 = vmul.f32 %v2608_v15, %v2608_v15 }
 0x1c7   : > { %v1317_v15 = vsel %vm283_vm1, %v2653_v6, 0.0  ;;  %v1405_v25 = vmul.f32 %v2800_v10, %v2800_v10 }
 0x1c8   : > { %v1296_v0 = vadd.f32 %v1295_v48, %v1294_v56  ;;  %v1488_v5 = vadd.f32 %v1487_v55, %v1486_v62  ;;  %v1505_v62 = vsel %vm283_vm1, %v1395_v46, 0.0  ;;  %v1397_v55 = vmul.f32 %v2630_v44, %v2630_v44 }
 0x1c9   : > { %v1319_v44 = vsel %vm283_vm1, %v2674_v34, 0.0 }
 0x1ca   : > { %v1490_v16 = vadd.f32 %v1489_v4, %v1488_v5  ;;  %v1298_v49 = vadd.f32 %v1297_v54, %v1296_v0  ;;  %v1507_v0 = vsel %vm283_vm1, %v1396_v42, 0.0  ;;  %v1398_v5 = vmul.f32 %v2653_v6, %v2653_v6 }
 0x1cb   : > { %v1509_v47 = vsel %vm283_vm1, %v1397_v55, 0.0  ;;  %v1321_v6 = vsel %vm283_vm1, %v2697_v41, 0.0  ;;  %v1325_v41 = vsel %vm283_vm1, %v2741_v1, 0.0 }
 0x1cc   : > { %v1300_v18 = vadd.f32 %v1299_v60, %v1298_v49  ;;  %v1492_v23 = vadd.f32 %v1491_v33, %v1490_v16  ;;  %v1399_v16 = vmul.f32 %v2674_v34, %v2674_v34  ;;  %v1511_v60 = vsel %vm283_vm1, %v1398_v5, 0.0 }
 0x1cd   : > { %v1323_v34 = vsel %vm283_vm1, %v2718_v26, 0.0  ;;  %v1410_v5 = vmul.f32 %v2870_v20, %v2870_v20 }
 0x1ce   : > { %v1302_v45 = vadd.f32 %v1301_v2, %v1300_v18  ;;  %v1494_v17 = vadd.f32 %v1493_v58, %v1492_v23  ;;  %v1513_v58 = vsel %vm283_vm1, %v1399_v16, 0.0  ;;  %v1401_v2 = vmul.f32 %v2718_v26, %v2718_v26 }
 0x1cf   : > { %v1327_v26 = vsel %vm283_vm1, %v2762_v19, 0.0 }
 0x1d0   : > { %v1304_v24 = vadd.f32 %v1303_v8, %v1302_v45  ;;  %v1496_v63 = vadd.f32 %v1495_v21, %v1494_v17  ;;  %v1515_v17 = vsel %vm283_vm1, %v1400_v11, 0.0  ;;  %v1402_v21 = vmul.f32 %v2741_v1, %v2741_v1 }
 0x1d1   : > { %v1329_v1 = vsel %vm283_vm1, %v2783_v31, 0.0 }
 0x1d2   : > { %v1306_v9 = vadd.f32 %v1305_v14, %v1304_v24  ;;  %v1498_v30 = vadd.f32 %v1497_v28, %v1496_v63  ;;  %v1517_v24 = vsel %vm283_vm1, %v1401_v2, 0.0  ;;  %v1403_v63 = vmul.f32 %v2762_v19, %v2762_v19 }
 0x1d3   : > { %v1519_v59 = vsel %vm283_vm1, %v1402_v21, 0.0  ;;  %v1331_v19 = vsel %vm283_vm1, %v2800_v10, 0.0  ;;  %v1335_v10 = vsel %vm283_vm1, %v2834_v3, 0.0 }
 0x1d4   : > { %v1308_v38 = vadd.f32 %v1307_v22, %v1306_v9  ;;  %v1500_v35 = vadd.f32 %v1499_v37, %v1498_v30  ;;  %v1404_v9 = vmul.f32 %v2783_v31, %v2783_v31  ;;  %v1521_v22 = vsel %vm283_vm1, %v1403_v63, 0.0 }
 0x1d5   : > { %v1333_v31 = vsel %vm283_vm1, %v2819_v12, 0.0 }
 0x1d6   : > { %v1310_v51 = vadd.f32 %v1309_v32, %v1308_v38  ;;  %v1502_v52 = vadd.f32 %v1501_v36, %v1500_v35  ;;  %v1523_v36 = vsel %vm283_vm1, %v1404_v9, 0.0  ;;  %v1406_v32 = vmul.f32 %v2819_v12, %v2819_v12 }
 0x1d7   : > { %v1337_v12 = vsel %vm283_vm1, %v2845_v27, 0.0 }
 0x1d8   : > { %v1312_v39 = vadd.f32 %v1311_v40, %v1310_v51  ;;  %v1504_v56 = vadd.f32 %v1503_v29, %v1502_v52  ;;  %v1525_v52 = vsel %vm283_vm1, %v1405_v25, 0.0  ;;  %v1407_v29 = vmul.f32 %v2834_v3, %v2834_v3 }
 0x1d9   : > { %v1339_v3 = vsel %vm283_vm1, %v2858_v57, 0.0 }
 0x1da   : > { %v1314_v48 = vadd.f32 %v1313_v50, %v1312_v39  ;;  %v1506_v7 = vadd.f32 %v1505_v62, %v1504_v56  ;;  %v1527_v39 = vsel %vm283_vm1, %v1406_v32, 0.0  ;;  %v1408_v56 = vmul.f32 %v2845_v27, %v2845_v27 }
 0x1db   : > { %v1529_v55 = vsel %vm283_vm1, %v1407_v29, 0.0  ;;  %v1341_v27 = vsel %vm283_vm1, %v2870_v20, 0.0 }
 0x1dc   : > { %v1316_v4 = vadd.f32 %v1315_v61, %v1314_v48  ;;  %v1508_v54 = vadd.f32 %v1507_v0, %v1506_v7  ;;  %v1409_v48 = vmul.f32 %v2858_v57, %v2858_v57  ;;  %v1531_v61 = vsel %vm283_vm1, %v1408_v56, 0.0  ;;  %v1216_v57 = vld [vmem:[%s2559_s29] sm:$0xff] }
 0x1de   : > { %v1510_v49 = vadd.f32 %v1509_v47, %v1508_v54  ;;  %v1318_v33 = vadd.f32 %v1317_v15, %v1316_v4  ;;  %v1533_v47 = vsel %vm283_vm1, %v1409_v48, 0.0  ;;  %v1411_v15 = vmul.f32 %v2882_v43, %v2882_v43 }
 0x1e0   : > { %v1512_v18 = vadd.f32 %v1511_v60, %v1510_v49  ;;  %v1320_v23 = vadd.f32 %v1319_v44, %v1318_v33  ;;  %v1535_v33 = vsel %vm283_vm1, %v1410_v5, 0.0  ;;  %v1343_v60 = vsel %vm283_vm1, %v2882_v43, 0.0 }
 0x1e2   : > { %v1514_v13 = vadd.f32 %v1513_v58, %v1512_v18  ;;  %v1322_v45 = vadd.f32 %v1321_v6, %v1320_v23  ;;  %v1347_v18 = vld [vmem:[%s2574_s5] sm:$0xff]  ;;  %v1537_v23 = vsel %vm283_vm1, %v1411_v15, 0.0 }
 0x1e4   : > { %v1516_v8 = vadd.f32 %v1515_v17, %v1514_v13  ;;  %v1324_v53 = vadd.f32 %v1323_v34, %v1322_v45 }
 0x1e6   : > { %v1518_v28 = vadd.f32 %v1517_v24, %v1516_v8  ;;  %v1326_v14 = vadd.f32 %v1325_v41, %v1324_v53 }
 0x1e8   : > { %v1520_v30 = vadd.f32 %v1519_v59, %v1518_v28  ;;  %v1328_v37 = vadd.f32 %v1327_v26, %v1326_v14 }
 0x1ea   : > { %v1522_v38 = vadd.f32 %v1521_v22, %v1520_v30  ;;  %v1330_v35 = vadd.f32 %v1329_v1, %v1328_v37 }
 0x1ec   : > { %v1524_v46 = vadd.f32 %v1523_v36, %v1522_v38  ;;  %v1332_v51 = vadd.f32 %v1331_v19, %v1330_v35 }
 0x1ee   : > { %v1526_v40 = vadd.f32 %v1525_v52, %v1524_v46  ;;  %v1334_v42 = vadd.f32 %v1333_v31, %v1332_v51 }
 0x1f0   : > { %v1528_v62 = vadd.f32 %v1527_v39, %v1526_v40  ;;  %v1336_v50 = vadd.f32 %v1335_v10, %v1334_v42 }
 0x1f2   : > { %v1530_v7 = vadd.f32 %v1529_v55, %v1528_v62  ;;  %v1338_v0 = vadd.f32 %v1337_v12, %v1336_v50 }
 0x1f4   : > { %v1532_v4 = vadd.f32 %v1531_v61, %v1530_v7  ;;  %v1340_v54 = vadd.f32 %v1339_v3, %v1338_v0 }
 0x1f6   : > { %v1534_v16 = vadd.f32 %v1533_v47, %v1532_v4  ;;  %v1342_v49 = vadd.f32 %v1341_v27, %v1340_v54 }
 0x1f8   : > { %v1536_v44 = vadd.f32 %v1535_v33, %v1534_v16  ;;  %v1344_v11 = vadd.f32 %v1343_v60, %v1342_v49 }
 0x1fa   : > { %v1345_v58 = vadd.f32 %v1344_v11, %v1216_v57  ;;  %v1538_v6 = vadd.f32 %v1537_v23, %v1536_v44 }
 0x1fc   : > { %1346 = vst.msk [vmem:[%s2559_s29] sm:$0xff] %vm283_vm1, %v1345_v58  ;;  %v1539_v20 = vadd.f32 %v1538_v6, %v1347_v18 }
 0x1fe   : > { %1540 = vst.msk [vmem:[%s2574_s5] sm:$0xff] %vm283_vm1, %v1539_v20 }
 0x1ff PF: > { %s19_s20 = sadd.s32 1, %s2085_s20   ;;  %s3084_s15 = smov %s2069_s16 }
 0x200   : > { %p16_p5 = scmp.ge.s32.totalorder %s19_s20, 4   ;;  %s3085_s16 = smov %s2073_s17 }
 0x201   : > { %s3086_s17 = smov %s2194_s13  ;;  %s3087_s18 = smov %s2081_s19 }
 0x202   : > { %s3088_s19 = smov %s3090_s28  ;;  %18 = sbr.rel (!%p16_p5) target bundleno = 5 (0x5), region = 100 }
 0x207   :  { %1594 = vsyncpa [#allocation3], 1 }
 0x208   :  { %1596 = vsyncpa [#allocation3 + $0x1], 1 }
 0x209   :  { %1597 = vsyncpa [#allocation5], 1 }

// kernel: _lambda_.7
= control target key start
LH: loop header
LB: loop body
LE: loop exit
PB: predicated region body
PF: predicated region fallthrough
CT: control target
= control target key end

     0   :  { %9 = vsyncpa [#allocation3], 0  ;;  %s2160_s0 = inlined_call_operand.vmem [shape: bf16[1024,256], index: 0, kind: input, shape index: {}]   ;;  %s2161_s1 = inlined_call_operand.vmem [shape: f32[1,256], index: 1, kind: input, shape index: {}]   ;;  %s2162_s2 = inlined_call_operand.vmem [shape: f32[1,256], index: 2, kind: input, shape index: {}]   ;;  %s2163_s3 = inlined_call_operand.vmem [shape: f32[1024,256], index: 3, kind: input, shape index: {}]   ;;  %s2164_s4 = inlined_call_operand.hbm [shape: f32[1024,256], index: 4, kind: output, shape index: {}]  }
   0x1   :  { %11 = vsyncpa [#allocation3 + $0x1], 0  ;;  %s1452_s15 = smov 0   ;;  %s1454_s16 = smov 0  }
   0x2   :  { %s1456_s17 = smov 0   ;;  %s1458_s18 = smov 0  }
   0x3 LB: > { %s1473_s19 = sadd.s32 4294967295, %s1422_s18   ;;  %s1300_s20 = sadd.s32 4294967294, %s1422_s18   ;;  %s1422_s18 = sphi %s1458_s18, %s2170_s18   ;;  %s1418_s17 = sphi %s1456_s17, %s2169_s17   ;;  %s1414_s16 = sphi %s1454_s16, %s2168_s16   ;;  %s1410_s15 = sphi %s1452_s15, %s2167_s15  }
   0x4   : > { %s1477_s21 = sadd.s32 1, %s1422_s18   ;;  %s118_s22 = sadd.s32 1, %s1418_s17 }
   0x5   : > { %s115_s23 = ssub.s32 %s1422_s18, %s1477_s21  ;;  %p128_p0 = scmp.ne.s32.totalorder %s1418_s17, %s1414_s16 }
   0x6   : > { %p116_p1 = scmp.eq.s32.totalorder %s115_s23, 0  ;;  %p129_p2 = scmp.eq.s32.totalorder %s1473_s19, 1 }
   0x7   : > { %p134_p3 = scmp.ne.s32.totalorder %s1414_s16, %s1410_s15  ;;  %p135_p4 = scmp.eq.s32.totalorder %s1300_s20, 1 }
   0x8   : > { %s1488_s24 = scalar_select %p116_p1, %s1418_s17, %s118_s22  }
   0x9   : > { %p1490_p5 = por %p129_p2, %p128_p0  ;;  %p1494_p6 = por %p135_p4, %p134_p3 }
   0xa   : > { %p1303_p7 = scmp.ge.s32.totalorder %s1422_s18, 1  ;;  %p179_p8 = scmp.lt.s32.totalorder %s1422_s18, 3 }
   0xc   : > { %p180_p9 = pnand %p1303_p7, %p179_p8 }
   0xd   : > { %s1305_s27 = sshll.u32 (!%p180_p9), %s1473_s19, 6  ;;  %s209_s14 = sand.u32 (!%p180_p9), 1, %s1414_s16  }
   0xe   : > { %183 = sbr.rel (%p180_p9) target bundleno = 201 (0xc9), region = 36  ;;  %p213_p10 = scmp.lt.s32.totalorder (!%p180_p9), %s1305_s27, 127 }
   0xf   : > { %s1538_s20 = sshll.u32 (!%p180_p9), %s209_s14, 10  ;;  %s1320_s23 = sshll.u32 (!%p180_p9), %s1473_s19, 14 }
  0x10   : > { %s1562_s22 = scalar_lea.vmem (!%p180_p9), [#allocation2], %s1538_s20  ;;  %s2108_s29 = scalar_lea.hbm (!%p180_p9), %s2164_s4, %s1320_s23 }
  0x11   : > { %s1424_s6 = smov (!%p180_p9), [#allocation2]  }
  0x12   : > { %s1366_s7 = sshll.u32 (!%p180_p9), %s1424_s6, 4  ;;  %s1367_s7 = int_to_ptr.vmem [resolvable:$false] %s1366_s7 }
  0x13   : > { %v421_v0 = vlaneseq  ;;  %s2172_s27 = smov (!%p213_p10, %s1305_s27), 127  ;;  %v419_v2 = vld [vmem:[%s2161_s1] sm:$0x3]  ;;  %s1368_s8 = scalar_lea.vmem %s1367_s7, 32768 }
  0x14   : > { %s1317_s30 = sshll.u32 %s2172_s27, 3  ;;  %s1318_s5 = sshll.u32 %s2172_s27, 4  ;;  %v559_v5 = vld [vmem:[%s2162_s2] sm:$0x3] }
  0x15   : > { %v422_v1 = vshrl.u32 %v421_v0, 7  ;;  %s1510_s10 = scalar_lea.vmem %s2160_s0, %s1317_s30  ;;  %s1520_s13 = scalar_lea.vmem %s2163_s3, %s1318_s5 }
  0x16   : > { %v227_v8 = vld [vmem:[%s1510_s10] sm:$0xff]  ;;  %v228_v13 = vld [vmem:[%s1510_s10 + $0x8] sm:$0xff]  ;;  %v229_v16 = vld [vmem:[%s1510_s10 + $0x10] sm:$0xff]  ;;  %s1226_s27 = sshll.u32 %s1562_s22, 4  ;;  %s2120_s30 = scalar_lea.sflag [#allocation3], %s209_s14  ;;  %s2110_s27 = int_to_ptr.vmem [resolvable:$true] %s1226_s27 }
  0x17   : > { %v423_v3 = vsub.s32 0, %v422_v1  ;;  %v427_v4 = vsub.s32 1, %v422_v1  ;;  %v291_v9 = vunpack.c.l.bf16 %v227_v8  ;;  %v292_v11 = vunpack.c.h.bf16 %v227_v8  ;;  %v230_v21 = vld [vmem:[%s1510_s10 + $0x18] sm:$0xff]  ;;  %v699_v22 = vld [vmem:[%s1520_s13] sm:$0xff]  ;;  %v700_v23 = vld [vmem:[%s1520_s13 + $0x8] sm:$0xff]  ;;  %s1362_s5 = scalar_lea.vmem %s2110_s27, 16384  ;;  %p1369_p0 = scmp.lt.s32.totalorder %s2110_s27, %s1367_s7 }
  0x18   : > { %v293_v14 = vunpack.c.l.bf16 %v228_v13  ;;  %v294_v15 = vunpack.c.h.bf16 %v228_v13  ;;  %v295_v19 = vunpack.c.l.bf16 %v229_v16  ;;  %v296_v20 = vunpack.c.h.bf16 %v229_v16  ;;  %v701_v30 = vld [vmem:[%s1520_s13 + $0x10] sm:$0xff]  ;;  %v702_v31 = vld [vmem:[%s1520_s13 + $0x18] sm:$0xff]  ;;  %v703_v36 = vld [vmem:[%s1520_s13 + $0x20] sm:$0xff]  ;;  %p1363_p11 = scmp.ne.s32.totalorder %s2110_s27, %s1362_s5  ;;  %p1370_p1 = scmp.lt.s32.totalorder %s1368_s8, %s1362_s5 }
  0x19   : > { %v1512_v6 = vrot.slane %v419_v2, %v423_v3  ;;  %v1514_v7 = vrot.slane %v419_v2, %v427_v4  ;;  %v1522_v10 = vrot.slane %v559_v5, %v423_v3  ;;  %v1524_v12 = vrot.slane %v559_v5, %v427_v4  ;;  %v704_v37 = vld [vmem:[%s1520_s13 + $0x28] sm:$0xff]  ;;  %v705_v44 = vld [vmem:[%s1520_s13 + $0x30] sm:$0xff]  ;;  %v706_v45 = vld [vmem:[%s1520_s13 + $0x38] sm:$0xff] }
  0x1a   : > { %v297_v26 = vunpack.c.l.bf16 %v230_v21  ;;  %v298_v27 = vunpack.c.h.bf16 %v230_v21  ;;  %v231_v50 = vld [vmem:[%s1510_s10 + $0x20] sm:$0xff]  ;;  %v232_v55 = vld [vmem:[%s1510_s10 + $0x28] sm:$0xff]  ;;  %v233_v60 = vld [vmem:[%s1510_s10 + $0x30] sm:$0xff]  ;;  %p1364_p12 = pnand %p1363_p11, %p1490_p5  ;;  %p1371_p2 = por %p1370_p1, %p1369_p0 }
  0x1b   : > { %v431_v17 = vmul.f32 %v1512_v6, %v291_v9  ;;  %v432_v18 = vmul.f32 %v1514_v7, %v292_v11  ;;  %v433_v24 = vmul.f32 %v1512_v6, %v293_v14  ;;  %v434_v25 = vmul.f32 %v1514_v7, %v294_v15  ;;  %v234_v1 = vld [vmem:[%s1510_s10 + $0x38] sm:$0xff]  ;;  %v707_v14 = vld [vmem:[%s1520_s13 + $0x40] sm:$0xff]  ;;  %v708_v15 = vld [vmem:[%s1520_s13 + $0x48] sm:$0xff] }
  0x1c   : > { %v435_v32 = vmul.f32 %v1512_v6, %v295_v19  ;;  %v436_v33 = vmul.f32 %v1514_v7, %v296_v20  ;;  %v437_v38 = vmul.f32 %v1512_v6, %v297_v26  ;;  %v438_v39 = vmul.f32 %v1514_v7, %v298_v27  ;;  %p1365_p13 = pneg %p1364_p12 }
  0x1d   : > { %v571_v28 = vadd.f32 %v1522_v10, %v431_v17  ;;  %v572_v29 = vadd.f32 %v1524_v12, %v432_v18  ;;  %v573_v34 = vadd.f32 %v1522_v10, %v433_v24  ;;  %v574_v35 = vadd.f32 %v1524_v12, %v434_v25 }
  0x1e   : > { %v575_v42 = vadd.f32 %v1522_v10, %v435_v32  ;;  %v576_v43 = vadd.f32 %v1524_v12, %v436_v33  ;;  %v577_v48 = vadd.f32 %v1522_v10, %v437_v38  ;;  %v578_v49 = vadd.f32 %v1524_v12, %v438_v39  ;;  %p1372_p3 = pnand %p1371_p2, %p1365_p13 }
  0x1f   : > { %v827_v40 = vadd.f32 %v699_v22, %v571_v28  ;;  %v828_v41 = vadd.f32 %v700_v23, %v572_v29  ;;  %v829_v46 = vadd.f32 %v701_v30, %v573_v34  ;;  %v830_v47 = vadd.f32 %v702_v31, %v574_v35  ;;  %v709_v22 = vld [vmem:[%s1520_s13 + $0x50] sm:$0xff]  ;;  %v710_v23 = vld [vmem:[%s1520_s13 + $0x58] sm:$0xff]  ;;  %v711_v28 = vld [vmem:[%s1520_s13 + $0x60] sm:$0xff] }
  0x20   : > { %v831_v53 = vadd.f32 %v703_v36, %v575_v42  ;;  %v832_v54 = vadd.f32 %v704_v37, %v576_v43  ;;  %v833_v58 = vadd.f32 %v705_v44, %v577_v48  ;;  %v834_v59 = vadd.f32 %v706_v45, %v578_v49  ;;  %v712_v29 = vld [vmem:[%s1520_s13 + $0x68] sm:$0xff]  ;;  %v713_v36 = vld [vmem:[%s1520_s13 + $0x70] sm:$0xff]  ;;  %v714_v37 = vld [vmem:[%s1520_s13 + $0x78] sm:$0xff] }
  0x21   : > { %v955_v51 = vmax.f32 %v827_v40, 0.0  ;;  %v956_v52 = vmax.f32 %v828_v41, 0.0  ;;  %v957_v56 = vmax.f32 %v829_v46, 0.0  ;;  %v958_v57 = vmax.f32 %v830_v47, 0.0  ;;  %v235_v42 = vld [vmem:[%s1510_s10 + $0x40] sm:$0xff]  ;;  %v236_v47 = vld [vmem:[%s1510_s10 + $0x48] sm:$0xff] }
  0x22   : > { %v959_v61 = vmax.f32 %v831_v53, 0.0  ;;  %v960_v62 = vmax.f32 %v832_v54, 0.0  ;;  %v299_v63 = vunpack.c.l.bf16 %v231_v50  ;;  %v300_v0 = vunpack.c.h.bf16 %v231_v50 }
  0x23   : > { %1083 = vst [vmem:[%s1562_s22] sm:$0xff] %v955_v51  ;;  %1084 = vst [vmem:[%s1562_s22 + $0x8] sm:$0xff] %v956_v52  ;;  %v961_v2 = vmax.f32 %v833_v58, 0.0  ;;  %v962_v3 = vmax.f32 %v834_v59, 0.0  ;;  %v301_v4 = vunpack.c.l.bf16 %v232_v55  ;;  %v302_v5 = vunpack.c.h.bf16 %v232_v55  ;;  %v237_v52 = vld [vmem:[%s1510_s10 + $0x50] sm:$0xff] }
  0x24   : > { %1085 = vst [vmem:[%s1562_s22 + $0x10] sm:$0xff] %v957_v56  ;;  %1086 = vst [vmem:[%s1562_s22 + $0x18] sm:$0xff] %v958_v57  ;;  %v439_v8 = vmul.f32 %v1512_v6, %v299_v63  ;;  %v440_v9 = vmul.f32 %v1514_v7, %v300_v0  ;;  %v303_v11 = vunpack.c.l.bf16 %v233_v60  ;;  %v304_v13 = vunpack.c.h.bf16 %v233_v60  ;;  %v238_v57 = vld [vmem:[%s1510_s10 + $0x58] sm:$0xff] }
  0x25   : > { %1087 = vst [vmem:[%s1562_s22 + $0x20] sm:$0xff] %v959_v61  ;;  %1088 = vst [vmem:[%s1562_s22 + $0x28] sm:$0xff] %v960_v62  ;;  %v441_v16 = vmul.f32 %v1512_v6, %v301_v4  ;;  %v442_v17 = vmul.f32 %v1514_v7, %v302_v5  ;;  %v305_v18 = vunpack.c.l.bf16 %v234_v1  ;;  %v306_v19 = vunpack.c.h.bf16 %v234_v1 }
  0x26   : > { %1089 = vst [vmem:[%s1562_s22 + $0x30] sm:$0xff] %v961_v2  ;;  %1090 = vst [vmem:[%s1562_s22 + $0x38] sm:$0xff] %v962_v3  ;;  %v579_v20 = vadd.f32 %v1522_v10, %v439_v8  ;;  %v580_v21 = vadd.f32 %v1524_v12, %v440_v9  ;;  %v443_v24 = vmul.f32 %v1512_v6, %v303_v11  ;;  %v307_v55 = vunpack.c.l.bf16 %v235_v42  ;;  %v715_v2 = vld [vmem:[%s1520_s13 + $0x80] sm:$0xff]  ;;  %v716_v3 = vld [vmem:[%s1520_s13 + $0x88] sm:$0xff] }
  0x27   : > { %v444_v25 = vmul.f32 %v1514_v7, %v304_v13  ;;  %v581_v26 = vadd.f32 %v1522_v10, %v441_v16  ;;  %v582_v27 = vadd.f32 %v1524_v12, %v442_v17  ;;  %v445_v30 = vmul.f32 %v1512_v6, %v305_v18 }
  0x28   : > { %v446_v31 = vmul.f32 %v1514_v7, %v306_v19  ;;  %v835_v32 = vadd.f32 %v707_v14, %v579_v20  ;;  %v836_v33 = vadd.f32 %v708_v15, %v580_v21  ;;  %v583_v34 = vadd.f32 %v1522_v10, %v443_v24  ;;  %v717_v14 = vld [vmem:[%s1520_s13 + $0x90] sm:$0xff]  ;;  %v718_v15 = vld [vmem:[%s1520_s13 + $0x98] sm:$0xff]  ;;  %v719_v20 = vld [vmem:[%s1520_s13 + $0xa0] sm:$0xff] }
  0x29   : > { %v584_v35 = vadd.f32 %v1524_v12, %v444_v25  ;;  %v837_v38 = vadd.f32 %v709_v22, %v581_v26  ;;  %v838_v39 = vadd.f32 %v710_v23, %v582_v27  ;;  %v585_v40 = vadd.f32 %v1522_v10, %v445_v30  ;;  %v720_v21 = vld [vmem:[%s1520_s13 + $0xa8] sm:$0xff] }
  0x2a   : > { %v586_v41 = vadd.f32 %v1524_v12, %v446_v31  ;;  %v963_v43 = vmax.f32 %v835_v32, 0.0  ;;  %v964_v44 = vmax.f32 %v836_v33, 0.0  ;;  %v839_v45 = vadd.f32 %v711_v28, %v583_v34  ;;  %v721_v28 = vld [vmem:[%s1520_s13 + $0xb0] sm:$0xff]  ;;  %v239_v34 = vld [vmem:[%s1510_s10 + $0x60] sm:$0xff] }
  0x2b   : > { %v840_v46 = vadd.f32 %v712_v29, %v584_v35  ;;  %v965_v48 = vmax.f32 %v837_v38, 0.0  ;;  %v966_v49 = vmax.f32 %v838_v39, 0.0  ;;  %v841_v50 = vadd.f32 %v713_v36, %v585_v40  ;;  %v722_v29 = vld [vmem:[%s1520_s13 + $0xb8] sm:$0xff]  ;;  %v240_v39 = vld [vmem:[%s1510_s10 + $0x68] sm:$0xff] }
  0x2c   : > { %v842_v51 = vadd.f32 %v714_v37, %v586_v41  ;;  %1091 = vst [vmem:[%s1562_s22 + $0x40] sm:$0xff] %v963_v43  ;;  %1092 = vst [vmem:[%s1562_s22 + $0x48] sm:$0xff] %v964_v44  ;;  %v967_v53 = vmax.f32 %v839_v45, 0.0  ;;  %v308_v56 = vunpack.c.h.bf16 %v235_v42  ;;  %v309_v60 = vunpack.c.l.bf16 %v236_v47  ;;  %v241_v44 = vld [vmem:[%s1510_s10 + $0x70] sm:$0xff] }
  0x2d   : > { %v968_v54 = vmax.f32 %v840_v46, 0.0  ;;  %1093 = vst [vmem:[%s1562_s22 + $0x50] sm:$0xff] %v965_v48  ;;  %1094 = vst [vmem:[%s1562_s22 + $0x58] sm:$0xff] %v966_v49  ;;  %v969_v58 = vmax.f32 %v841_v50, 0.0  ;;  %v310_v61 = vunpack.c.h.bf16 %v236_v47  ;;  %v447_v62 = vmul.f32 %v1512_v6, %v307_v55  ;;  %v242_v49 = vld [vmem:[%s1510_s10 + $0x78] sm:$0xff] }
  0x2e   : > { %v970_v59 = vmax.f32 %v842_v51, 0.0  ;;  %1095 = vst [vmem:[%s1562_s22 + $0x60] sm:$0xff] %v967_v53  ;;  %v448_v63 = vmul.f32 %v1514_v7, %v308_v56  ;;  %v311_v0 = vunpack.c.l.bf16 %v237_v52  ;;  %v312_v1 = vunpack.c.h.bf16 %v237_v52 }
  0x2f   : > { %1096 = vst [vmem:[%s1562_s22 + $0x68] sm:$0xff] %v968_v54  ;;  %1097 = vst [vmem:[%s1562_s22 + $0x70] sm:$0xff] %v969_v58  ;;  %v449_v4 = vmul.f32 %v1512_v6, %v309_v60  ;;  %v450_v5 = vmul.f32 %v1514_v7, %v310_v61  ;;  %v313_v8 = vunpack.c.l.bf16 %v238_v57  ;;  %v314_v9 = vunpack.c.h.bf16 %v238_v57  ;;  %v723_v58 = vld [vmem:[%s1520_s13 + $0xc0] sm:$0xff] }
  0x30   : > { %1098 = vst [vmem:[%s1562_s22 + $0x78] sm:$0xff] %v970_v59  ;;  %v587_v11 = vadd.f32 %v1522_v10, %v447_v62  ;;  %v588_v13 = vadd.f32 %v1524_v12, %v448_v63  ;;  %v451_v16 = vmul.f32 %v1512_v6, %v311_v0  ;;  %v452_v17 = vmul.f32 %v1514_v7, %v312_v1  ;;  %v724_v59 = vld [vmem:[%s1520_s13 + $0xc8] sm:$0xff] }
  0x31   : > { %v589_v18 = vadd.f32 %v1522_v10, %v449_v4  ;;  %v590_v19 = vadd.f32 %v1524_v12, %v450_v5  ;;  %v453_v22 = vmul.f32 %v1512_v6, %v313_v8  ;;  %v454_v23 = vmul.f32 %v1514_v7, %v314_v9 }
  0x32   : > { %v843_v24 = vadd.f32 %v715_v2, %v587_v11  ;;  %v844_v25 = vadd.f32 %v716_v3, %v588_v13  ;;  %v591_v26 = vadd.f32 %v1522_v10, %v451_v16  ;;  %v592_v27 = vadd.f32 %v1524_v12, %v452_v17  ;;  %v725_v2 = vld [vmem:[%s1520_s13 + $0xd0] sm:$0xff]  ;;  %v726_v3 = vld [vmem:[%s1520_s13 + $0xd8] sm:$0xff]  ;;  %v727_v11 = vld [vmem:[%s1520_s13 + $0xe0] sm:$0xff] }
  0x33   : > { %v845_v30 = vadd.f32 %v717_v14, %v589_v18  ;;  %v846_v31 = vadd.f32 %v718_v15, %v590_v19  ;;  %v593_v32 = vadd.f32 %v1522_v10, %v453_v22  ;;  %v594_v33 = vadd.f32 %v1524_v12, %v454_v23  ;;  %v728_v13 = vld [vmem:[%s1520_s13 + $0xe8] sm:$0xff] }
  0x34   : > { %v971_v35 = vmax.f32 %v843_v24, 0.0  ;;  %v972_v36 = vmax.f32 %v844_v25, 0.0  ;;  %v847_v37 = vadd.f32 %v719_v20, %v591_v26  ;;  %v848_v38 = vadd.f32 %v720_v21, %v592_v27  ;;  %v729_v20 = vld [vmem:[%s1520_s13 + $0xf0] sm:$0xff]  ;;  %v730_v21 = vld [vmem:[%s1520_s13 + $0xf8] sm:$0xff]  ;;  %v243_v26 = vld [vmem:[%s1510_s10 + $0x80] sm:$0xff] }
  0x35   : > { %v973_v40 = vmax.f32 %v845_v30, 0.0  ;;  %v974_v41 = vmax.f32 %v846_v31, 0.0  ;;  %v849_v42 = vadd.f32 %v721_v28, %v593_v32  ;;  %v850_v43 = vadd.f32 %v722_v29, %v594_v33  ;;  %v244_v31 = vld [vmem:[%s1510_s10 + $0x88] sm:$0xff] }
  0x36   : > { %1099 = vst [vmem:[%s1562_s22 + $0x80] sm:$0xff] %v971_v35  ;;  %1100 = vst [vmem:[%s1562_s22 + $0x88] sm:$0xff] %v972_v36  ;;  %v975_v45 = vmax.f32 %v847_v37, 0.0  ;;  %v976_v46 = vmax.f32 %v848_v38, 0.0  ;;  %v315_v47 = vunpack.c.l.bf16 %v239_v34  ;;  %v316_v48 = vunpack.c.h.bf16 %v239_v34  ;;  %v245_v36 = vld [vmem:[%s1510_s10 + $0x90] sm:$0xff] }
  0x37   : > { %1101 = vst [vmem:[%s1562_s22 + $0x90] sm:$0xff] %v973_v40  ;;  %1102 = vst [vmem:[%s1562_s22 + $0x98] sm:$0xff] %v974_v41  ;;  %v977_v50 = vmax.f32 %v849_v42, 0.0  ;;  %v978_v51 = vmax.f32 %v850_v43, 0.0  ;;  %v317_v52 = vunpack.c.l.bf16 %v240_v39  ;;  %v318_v53 = vunpack.c.h.bf16 %v240_v39  ;;  %v246_v41 = vld [vmem:[%s1510_s10 + $0x98] sm:$0xff] }
  0x38   : > { %1103 = vst [vmem:[%s1562_s22 + $0xa0] sm:$0xff] %v975_v45  ;;  %1104 = vst [vmem:[%s1562_s22 + $0xa8] sm:$0xff] %v976_v46  ;;  %v455_v54 = vmul.f32 %v1512_v6, %v315_v47  ;;  %v456_v55 = vmul.f32 %v1514_v7, %v316_v48  ;;  %v319_v56 = vunpack.c.l.bf16 %v241_v44  ;;  %v320_v57 = vunpack.c.h.bf16 %v241_v44 }
  0x39   : > { %1105 = vst [vmem:[%s1562_s22 + $0xb0] sm:$0xff] %v977_v50  ;;  %1106 = vst [vmem:[%s1562_s22 + $0xb8] sm:$0xff] %v978_v51  ;;  %v457_v60 = vmul.f32 %v1512_v6, %v317_v52  ;;  %v458_v61 = vmul.f32 %v1514_v7, %v318_v53  ;;  %v321_v62 = vunpack.c.l.bf16 %v242_v49  ;;  %v322_v63 = vunpack.c.h.bf16 %v242_v49  ;;  %v731_v50 = vld [vmem:[%s1520_s13 + $0x100] sm:$0xff]  ;;  %v732_v51 = vld [vmem:[%s1520_s13 + $0x108] sm:$0xff] }
  0x3a   : > { %v595_v0 = vadd.f32 %v1522_v10, %v455_v54  ;;  %v596_v1 = vadd.f32 %v1524_v12, %v456_v55  ;;  %v459_v4 = vmul.f32 %v1512_v6, %v319_v56  ;;  %v460_v5 = vmul.f32 %v1514_v7, %v320_v57 }
  0x3b   : > { %v597_v8 = vadd.f32 %v1522_v10, %v457_v60  ;;  %v598_v9 = vadd.f32 %v1524_v12, %v458_v61  ;;  %v461_v14 = vmul.f32 %v1512_v6, %v321_v62  ;;  %v462_v15 = vmul.f32 %v1514_v7, %v322_v63 }
  0x3c   : > { %v851_v16 = vadd.f32 %v723_v58, %v595_v0  ;;  %v852_v17 = vadd.f32 %v724_v59, %v596_v1  ;;  %v599_v18 = vadd.f32 %v1522_v10, %v459_v4  ;;  %v600_v19 = vadd.f32 %v1524_v12, %v460_v5  ;;  %v733_v58 = vld [vmem:[%s1520_s13 + $0x110] sm:$0xff]  ;;  %v734_v59 = vld [vmem:[%s1520_s13 + $0x118] sm:$0xff]  ;;  %v735_v0 = vld [vmem:[%s1520_s13 + $0x120] sm:$0xff] }
  0x3d   : > { %v853_v22 = vadd.f32 %v725_v2, %v597_v8  ;;  %v854_v23 = vadd.f32 %v726_v3, %v598_v9  ;;  %v601_v24 = vadd.f32 %v1522_v10, %v461_v14  ;;  %v602_v25 = vadd.f32 %v1524_v12, %v462_v15  ;;  %v736_v1 = vld [vmem:[%s1520_s13 + $0x128] sm:$0xff] }
  0x3e   : > { %v979_v27 = vmax.f32 %v851_v16, 0.0  ;;  %v980_v28 = vmax.f32 %v852_v17, 0.0  ;;  %v855_v29 = vadd.f32 %v727_v11, %v599_v18  ;;  %v856_v30 = vadd.f32 %v728_v13, %v600_v19  ;;  %v737_v11 = vld [vmem:[%s1520_s13 + $0x130] sm:$0xff]  ;;  %v738_v13 = vld [vmem:[%s1520_s13 + $0x138] sm:$0xff]  ;;  %v247_v18 = vld [vmem:[%s1510_s10 + $0xa0] sm:$0xff] }
  0x3f   : > { %v981_v32 = vmax.f32 %v853_v22, 0.0  ;;  %v982_v33 = vmax.f32 %v854_v23, 0.0  ;;  %v857_v34 = vadd.f32 %v729_v20, %v601_v24  ;;  %v858_v35 = vadd.f32 %v730_v21, %v602_v25  ;;  %v248_v23 = vld [vmem:[%s1510_s10 + $0xa8] sm:$0xff] }
  0x40   : > { %1107 = vst [vmem:[%s1562_s22 + $0xc0] sm:$0xff] %v979_v27  ;;  %1108 = vst [vmem:[%s1562_s22 + $0xc8] sm:$0xff] %v980_v28  ;;  %v983_v37 = vmax.f32 %v855_v29, 0.0  ;;  %v984_v38 = vmax.f32 %v856_v30, 0.0  ;;  %v323_v39 = vunpack.c.l.bf16 %v243_v26  ;;  %v324_v40 = vunpack.c.h.bf16 %v243_v26  ;;  %v249_v28 = vld [vmem:[%s1510_s10 + $0xb0] sm:$0xff] }
  0x41   : > { %1109 = vst [vmem:[%s1562_s22 + $0xd0] sm:$0xff] %v981_v32  ;;  %1110 = vst [vmem:[%s1562_s22 + $0xd8] sm:$0xff] %v982_v33  ;;  %v985_v42 = vmax.f32 %v857_v34, 0.0  ;;  %v986_v43 = vmax.f32 %v858_v35, 0.0  ;;  %v325_v44 = vunpack.c.l.bf16 %v244_v31  ;;  %v326_v45 = vunpack.c.h.bf16 %v244_v31  ;;  %v250_v33 = vld [vmem:[%s1510_s10 + $0xb8] sm:$0xff] }
  0x42   : > { %1111 = vst [vmem:[%s1562_s22 + $0xe0] sm:$0xff] %v983_v37  ;;  %1112 = vst [vmem:[%s1562_s22 + $0xe8] sm:$0xff] %v984_v38  ;;  %v463_v46 = vmul.f32 %v1512_v6, %v323_v39  ;;  %v464_v47 = vmul.f32 %v1514_v7, %v324_v40  ;;  %v327_v48 = vunpack.c.l.bf16 %v245_v36  ;;  %v328_v49 = vunpack.c.h.bf16 %v245_v36 }
  0x43   : > { %1113 = vst [vmem:[%s1562_s22 + $0xf0] sm:$0xff] %v985_v42  ;;  %1114 = vst [vmem:[%s1562_s22 + $0xf8] sm:$0xff] %v986_v43  ;;  %v465_v52 = vmul.f32 %v1512_v6, %v325_v44  ;;  %v466_v53 = vmul.f32 %v1514_v7, %v326_v45  ;;  %v329_v54 = vunpack.c.l.bf16 %v246_v41  ;;  %v330_v55 = vunpack.c.h.bf16 %v246_v41  ;;  %v739_v42 = vld [vmem:[%s1520_s13 + $0x140] sm:$0xff]  ;;  %v740_v43 = vld [vmem:[%s1520_s13 + $0x148] sm:$0xff] }
  0x44   : > { %v603_v56 = vadd.f32 %v1522_v10, %v463_v46  ;;  %v604_v57 = vadd.f32 %v1524_v12, %v464_v47  ;;  %v467_v60 = vmul.f32 %v1512_v6, %v327_v48  ;;  %v468_v61 = vmul.f32 %v1514_v7, %v328_v49 }
  0x45   : > { %v605_v62 = vadd.f32 %v1522_v10, %v465_v52  ;;  %v606_v63 = vadd.f32 %v1524_v12, %v466_v53  ;;  %v469_v2 = vmul.f32 %v1512_v6, %v329_v54  ;;  %v470_v3 = vmul.f32 %v1514_v7, %v330_v55 }
  0x46   : > { %v859_v4 = vadd.f32 %v731_v50, %v603_v56  ;;  %v860_v5 = vadd.f32 %v732_v51, %v604_v57  ;;  %v607_v8 = vadd.f32 %v1522_v10, %v467_v60  ;;  %v608_v9 = vadd.f32 %v1524_v12, %v468_v61  ;;  %v741_v50 = vld [vmem:[%s1520_s13 + $0x150] sm:$0xff]  ;;  %v742_v51 = vld [vmem:[%s1520_s13 + $0x158] sm:$0xff]  ;;  %v743_v56 = vld [vmem:[%s1520_s13 + $0x160] sm:$0xff] }
  0x47   : > { %v861_v14 = vadd.f32 %v733_v58, %v605_v62  ;;  %v862_v15 = vadd.f32 %v734_v59, %v606_v63  ;;  %v609_v16 = vadd.f32 %v1522_v10, %v469_v2  ;;  %v610_v17 = vadd.f32 %v1524_v12, %v470_v3  ;;  %v744_v57 = vld [vmem:[%s1520_s13 + $0x168] sm:$0xff] }
  0x48   : > { %v987_v19 = vmax.f32 %v859_v4, 0.0  ;;  %v988_v20 = vmax.f32 %v860_v5, 0.0  ;;  %v863_v21 = vadd.f32 %v735_v0, %v607_v8  ;;  %v864_v22 = vadd.f32 %v736_v1, %v608_v9  ;;  %v745_v0 = vld [vmem:[%s1520_s13 + $0x170] sm:$0xff]  ;;  %v746_v1 = vld [vmem:[%s1520_s13 + $0x178] sm:$0xff]  ;;  %v251_v8 = vld [vmem:[%s1510_s10 + $0xc0] sm:$0xff] }
  0x49   : > { %v989_v24 = vmax.f32 %v861_v14, 0.0  ;;  %v990_v25 = vmax.f32 %v862_v15, 0.0  ;;  %v865_v26 = vadd.f32 %v737_v11, %v609_v16  ;;  %v866_v27 = vadd.f32 %v738_v13, %v610_v17  ;;  %v252_v15 = vld [vmem:[%s1510_s10 + $0xc8] sm:$0xff] }
  0x4a   : > { %1115 = vst [vmem:[%s1562_s22 + $0x100] sm:$0xff] %v987_v19  ;;  %1116 = vst [vmem:[%s1562_s22 + $0x108] sm:$0xff] %v988_v20  ;;  %v991_v29 = vmax.f32 %v863_v21, 0.0  ;;  %v992_v30 = vmax.f32 %v864_v22, 0.0  ;;  %v331_v31 = vunpack.c.l.bf16 %v247_v18  ;;  %v332_v32 = vunpack.c.h.bf16 %v247_v18  ;;  %v253_v20 = vld [vmem:[%s1510_s10 + $0xd0] sm:$0xff] }
  0x4b   : > { %1117 = vst [vmem:[%s1562_s22 + $0x110] sm:$0xff] %v989_v24  ;;  %1118 = vst [vmem:[%s1562_s22 + $0x118] sm:$0xff] %v990_v25  ;;  %v993_v34 = vmax.f32 %v865_v26, 0.0  ;;  %v994_v35 = vmax.f32 %v866_v27, 0.0  ;;  %v333_v36 = vunpack.c.l.bf16 %v248_v23  ;;  %v334_v37 = vunpack.c.h.bf16 %v248_v23  ;;  %v254_v25 = vld [vmem:[%s1510_s10 + $0xd8] sm:$0xff] }
  0x4c   : > { %1119 = vst [vmem:[%s1562_s22 + $0x120] sm:$0xff] %v991_v29  ;;  %1120 = vst [vmem:[%s1562_s22 + $0x128] sm:$0xff] %v992_v30  ;;  %v471_v38 = vmul.f32 %v1512_v6, %v331_v31  ;;  %v472_v39 = vmul.f32 %v1514_v7, %v332_v32  ;;  %v335_v40 = vunpack.c.l.bf16 %v249_v28  ;;  %v336_v41 = vunpack.c.h.bf16 %v249_v28 }
  0x4d   : > { %1121 = vst [vmem:[%s1562_s22 + $0x130] sm:$0xff] %v993_v34  ;;  %1122 = vst [vmem:[%s1562_s22 + $0x138] sm:$0xff] %v994_v35  ;;  %v473_v44 = vmul.f32 %v1512_v6, %v333_v36  ;;  %v474_v45 = vmul.f32 %v1514_v7, %v334_v37  ;;  %v337_v46 = vunpack.c.l.bf16 %v250_v33  ;;  %v338_v47 = vunpack.c.h.bf16 %v250_v33  ;;  %v747_v34 = vld [vmem:[%s1520_s13 + $0x180] sm:$0xff]  ;;  %v748_v35 = vld [vmem:[%s1520_s13 + $0x188] sm:$0xff] }
  0x4e   : > { %v611_v48 = vadd.f32 %v1522_v10, %v471_v38  ;;  %v612_v49 = vadd.f32 %v1524_v12, %v472_v39  ;;  %v475_v52 = vmul.f32 %v1512_v6, %v335_v40  ;;  %v476_v53 = vmul.f32 %v1514_v7, %v336_v41 }
  0x4f   : > { %v613_v54 = vadd.f32 %v1522_v10, %v473_v44  ;;  %v614_v55 = vadd.f32 %v1524_v12, %v474_v45  ;;  %v477_v58 = vmul.f32 %v1512_v6, %v337_v46  ;;  %v478_v59 = vmul.f32 %v1514_v7, %v338_v47 }
  0x50   : > { %v867_v60 = vadd.f32 %v739_v42, %v611_v48  ;;  %v868_v61 = vadd.f32 %v740_v43, %v612_v49  ;;  %v615_v62 = vadd.f32 %v1522_v10, %v475_v52  ;;  %v616_v63 = vadd.f32 %v1524_v12, %v476_v53  ;;  %v749_v42 = vld [vmem:[%s1520_s13 + $0x190] sm:$0xff]  ;;  %v750_v43 = vld [vmem:[%s1520_s13 + $0x198] sm:$0xff]  ;;  %v751_v48 = vld [vmem:[%s1520_s13 + $0x1a0] sm:$0xff] }
  0x51   : > { %v869_v2 = vadd.f32 %v741_v50, %v613_v54  ;;  %v870_v3 = vadd.f32 %v742_v51, %v614_v55  ;;  %v617_v4 = vadd.f32 %v1522_v10, %v477_v58  ;;  %v618_v5 = vadd.f32 %v1524_v12, %v478_v59  ;;  %v752_v49 = vld [vmem:[%s1520_s13 + $0x1a8] sm:$0xff] }
  0x52   : > { %v995_v9 = vmax.f32 %v867_v60, 0.0  ;;  %v996_v11 = vmax.f32 %v868_v61, 0.0  ;;  %v871_v13 = vadd.f32 %v743_v56, %v615_v62  ;;  %v872_v14 = vadd.f32 %v744_v57, %v616_v63  ;;  %v753_v56 = vld [vmem:[%s1520_s13 + $0x1b0] sm:$0xff]  ;;  %v754_v57 = vld [vmem:[%s1520_s13 + $0x1b8] sm:$0xff]  ;;  %v255_v62 = vld [vmem:[%s1510_s10 + $0xe0] sm:$0xff] }
  0x53   : > { %v997_v16 = vmax.f32 %v869_v2, 0.0  ;;  %v998_v17 = vmax.f32 %v870_v3, 0.0  ;;  %v873_v18 = vadd.f32 %v745_v0, %v617_v4  ;;  %v874_v19 = vadd.f32 %v746_v1, %v618_v5  ;;  %v256_v3 = vld [vmem:[%s1510_s10 + $0xe8] sm:$0xff] }
  0x54   : > { %1123 = vst [vmem:[%s1562_s22 + $0x140] sm:$0xff] %v995_v9  ;;  %1124 = vst [vmem:[%s1562_s22 + $0x148] sm:$0xff] %v996_v11  ;;  %v999_v21 = vmax.f32 %v871_v13, 0.0  ;;  %v1000_v22 = vmax.f32 %v872_v14, 0.0  ;;  %v339_v23 = vunpack.c.l.bf16 %v251_v8  ;;  %v340_v24 = vunpack.c.h.bf16 %v251_v8  ;;  %v257_v11 = vld [vmem:[%s1510_s10 + $0xf0] sm:$0xff] }
  0x55   : > { %1125 = vst [vmem:[%s1562_s22 + $0x150] sm:$0xff] %v997_v16  ;;  %1126 = vst [vmem:[%s1562_s22 + $0x158] sm:$0xff] %v998_v17  ;;  %v1001_v26 = vmax.f32 %v873_v18, 0.0  ;;  %v1002_v27 = vmax.f32 %v874_v19, 0.0  ;;  %v341_v28 = vunpack.c.l.bf16 %v252_v15  ;;  %v342_v29 = vunpack.c.h.bf16 %v252_v15  ;;  %v258_v17 = vld [vmem:[%s1510_s10 + $0xf8] sm:$0xff] }
  0x56   : > { %1127 = vst [vmem:[%s1562_s22 + $0x160] sm:$0xff] %v999_v21  ;;  %1128 = vst [vmem:[%s1562_s22 + $0x168] sm:$0xff] %v1000_v22  ;;  %v479_v30 = vmul.f32 %v1512_v6, %v339_v23  ;;  %v480_v31 = vmul.f32 %v1514_v7, %v340_v24  ;;  %v343_v32 = vunpack.c.l.bf16 %v253_v20  ;;  %v344_v33 = vunpack.c.h.bf16 %v253_v20 }
  0x57   : > { %1129 = vst [vmem:[%s1562_s22 + $0x170] sm:$0xff] %v1001_v26  ;;  %1130 = vst [vmem:[%s1562_s22 + $0x178] sm:$0xff] %v1002_v27  ;;  %v481_v36 = vmul.f32 %v1512_v6, %v341_v28  ;;  %v482_v37 = vmul.f32 %v1514_v7, %v342_v29  ;;  %v345_v38 = vunpack.c.l.bf16 %v254_v25  ;;  %v346_v39 = vunpack.c.h.bf16 %v254_v25  ;;  %v755_v26 = vld [vmem:[%s1520_s13 + $0x1c0] sm:$0xff]  ;;  %v756_v27 = vld [vmem:[%s1520_s13 + $0x1c8] sm:$0xff] }
  0x58   : > { %v619_v40 = vadd.f32 %v1522_v10, %v479_v30  ;;  %v620_v41 = vadd.f32 %v1524_v12, %v480_v31  ;;  %v483_v44 = vmul.f32 %v1512_v6, %v343_v32  ;;  %v484_v45 = vmul.f32 %v1514_v7, %v344_v33 }
  0x59   : > { %v621_v46 = vadd.f32 %v1522_v10, %v481_v36  ;;  %v622_v47 = vadd.f32 %v1524_v12, %v482_v37  ;;  %v485_v50 = vmul.f32 %v1512_v6, %v345_v38  ;;  %v486_v51 = vmul.f32 %v1514_v7, %v346_v39 }
  0x5a   : > { %v875_v52 = vadd.f32 %v747_v34, %v619_v40  ;;  %v876_v53 = vadd.f32 %v748_v35, %v620_v41  ;;  %v623_v54 = vadd.f32 %v1522_v10, %v483_v44  ;;  %v624_v55 = vadd.f32 %v1524_v12, %v484_v45  ;;  %v757_v34 = vld [vmem:[%s1520_s13 + $0x1d0] sm:$0xff]  ;;  %v758_v35 = vld [vmem:[%s1520_s13 + $0x1d8] sm:$0xff]  ;;  %v759_v40 = vld [vmem:[%s1520_s13 + $0x1e0] sm:$0xff] }
  0x5b   : > { %v877_v58 = vadd.f32 %v749_v42, %v621_v46  ;;  %v878_v59 = vadd.f32 %v750_v43, %v622_v47  ;;  %v625_v60 = vadd.f32 %v1522_v10, %v485_v50  ;;  %v626_v61 = vadd.f32 %v1524_v12, %v486_v51  ;;  %v760_v41 = vld [vmem:[%s1520_s13 + $0x1e8] sm:$0xff] }
  0x5c   : > { %v1003_v63 = vmax.f32 %v875_v52, 0.0  ;;  %v1004_v0 = vmax.f32 %v876_v53, 0.0  ;;  %v879_v1 = vadd.f32 %v751_v48, %v623_v54  ;;  %v880_v2 = vadd.f32 %v752_v49, %v624_v55  ;;  %v761_v48 = vld [vmem:[%s1520_s13 + $0x1f0] sm:$0xff]  ;;  %v762_v49 = vld [vmem:[%s1520_s13 + $0x1f8] sm:$0xff]  ;;  %v259_v54 = vld [vmem:[%s1510_s10 + $0x100] sm:$0xff] }
  0x5d   : > { %v1005_v4 = vmax.f32 %v877_v58, 0.0  ;;  %v1006_v5 = vmax.f32 %v878_v59, 0.0  ;;  %v881_v8 = vadd.f32 %v753_v56, %v625_v60  ;;  %v882_v9 = vadd.f32 %v754_v57, %v626_v61  ;;  %v260_v59 = vld [vmem:[%s1510_s10 + $0x108] sm:$0xff] }
  0x5e   : > { %1131 = vst [vmem:[%s1562_s22 + $0x180] sm:$0xff] %v1003_v63  ;;  %1132 = vst [vmem:[%s1562_s22 + $0x188] sm:$0xff] %v1004_v0  ;;  %v1007_v13 = vmax.f32 %v879_v1, 0.0  ;;  %v1008_v14 = vmax.f32 %v880_v2, 0.0  ;;  %v347_v15 = vunpack.c.l.bf16 %v255_v62  ;;  %v348_v16 = vunpack.c.h.bf16 %v255_v62  ;;  %v261_v0 = vld [vmem:[%s1510_s10 + $0x110] sm:$0xff] }
  0x5f   : > { %1133 = vst [vmem:[%s1562_s22 + $0x190] sm:$0xff] %v1005_v4  ;;  %1134 = vst [vmem:[%s1562_s22 + $0x198] sm:$0xff] %v1006_v5  ;;  %v1009_v18 = vmax.f32 %v881_v8, 0.0  ;;  %v1010_v19 = vmax.f32 %v882_v9, 0.0  ;;  %v349_v20 = vunpack.c.l.bf16 %v256_v3  ;;  %v350_v21 = vunpack.c.h.bf16 %v256_v3  ;;  %v262_v5 = vld [vmem:[%s1510_s10 + $0x118] sm:$0xff] }
  0x60   : > { %1135 = vst [vmem:[%s1562_s22 + $0x1a0] sm:$0xff] %v1007_v13  ;;  %1136 = vst [vmem:[%s1562_s22 + $0x1a8] sm:$0xff] %v1008_v14  ;;  %v487_v22 = vmul.f32 %v1512_v6, %v347_v15  ;;  %v488_v23 = vmul.f32 %v1514_v7, %v348_v16  ;;  %v351_v24 = vunpack.c.l.bf16 %v257_v11  ;;  %v352_v25 = vunpack.c.h.bf16 %v257_v11 }
  0x61   : > { %1137 = vst [vmem:[%s1562_s22 + $0x1b0] sm:$0xff] %v1009_v18  ;;  %1138 = vst [vmem:[%s1562_s22 + $0x1b8] sm:$0xff] %v1010_v19  ;;  %v489_v28 = vmul.f32 %v1512_v6, %v349_v20  ;;  %v490_v29 = vmul.f32 %v1514_v7, %v350_v21  ;;  %v353_v30 = vunpack.c.l.bf16 %v258_v17  ;;  %v354_v31 = vunpack.c.h.bf16 %v258_v17  ;;  %v763_v18 = vld [vmem:[%s1520_s13 + $0x200] sm:$0xff]  ;;  %v764_v19 = vld [vmem:[%s1520_s13 + $0x208] sm:$0xff] }
  0x62   : > { %v627_v32 = vadd.f32 %v1522_v10, %v487_v22  ;;  %v628_v33 = vadd.f32 %v1524_v12, %v488_v23  ;;  %v491_v36 = vmul.f32 %v1512_v6, %v351_v24  ;;  %v492_v37 = vmul.f32 %v1514_v7, %v352_v25 }
  0x63   : > { %v629_v38 = vadd.f32 %v1522_v10, %v489_v28  ;;  %v630_v39 = vadd.f32 %v1524_v12, %v490_v29  ;;  %v493_v42 = vmul.f32 %v1512_v6, %v353_v30  ;;  %v494_v43 = vmul.f32 %v1514_v7, %v354_v31 }
  0x64   : > { %v883_v44 = vadd.f32 %v755_v26, %v627_v32  ;;  %v884_v45 = vadd.f32 %v756_v27, %v628_v33  ;;  %v631_v46 = vadd.f32 %v1522_v10, %v491_v36  ;;  %v632_v47 = vadd.f32 %v1524_v12, %v492_v37  ;;  %v765_v26 = vld [vmem:[%s1520_s13 + $0x210] sm:$0xff]  ;;  %v766_v27 = vld [vmem:[%s1520_s13 + $0x218] sm:$0xff]  ;;  %v767_v32 = vld [vmem:[%s1520_s13 + $0x220] sm:$0xff] }
  0x65   : > { %v885_v50 = vadd.f32 %v757_v34, %v629_v38  ;;  %v886_v51 = vadd.f32 %v758_v35, %v630_v39  ;;  %v633_v52 = vadd.f32 %v1522_v10, %v493_v42  ;;  %v634_v53 = vadd.f32 %v1524_v12, %v494_v43  ;;  %v768_v33 = vld [vmem:[%s1520_s13 + $0x228] sm:$0xff] }
  0x66   : > { %v1011_v55 = vmax.f32 %v883_v44, 0.0  ;;  %v1012_v56 = vmax.f32 %v884_v45, 0.0  ;;  %v887_v57 = vadd.f32 %v759_v40, %v631_v46  ;;  %v888_v58 = vadd.f32 %v760_v41, %v632_v47  ;;  %v769_v40 = vld [vmem:[%s1520_s13 + $0x230] sm:$0xff]  ;;  %v770_v41 = vld [vmem:[%s1520_s13 + $0x238] sm:$0xff]  ;;  %v263_v46 = vld [vmem:[%s1510_s10 + $0x120] sm:$0xff] }
  0x67   : > { %v1013_v60 = vmax.f32 %v885_v50, 0.0  ;;  %v1014_v61 = vmax.f32 %v886_v51, 0.0  ;;  %v889_v62 = vadd.f32 %v761_v48, %v633_v52  ;;  %v890_v63 = vadd.f32 %v762_v49, %v634_v53  ;;  %v264_v51 = vld [vmem:[%s1510_s10 + $0x128] sm:$0xff] }
  0x68   : > { %1139 = vst [vmem:[%s1562_s22 + $0x1c0] sm:$0xff] %v1011_v55  ;;  %1140 = vst [vmem:[%s1562_s22 + $0x1c8] sm:$0xff] %v1012_v56  ;;  %v1015_v1 = vmax.f32 %v887_v57, 0.0  ;;  %v1016_v2 = vmax.f32 %v888_v58, 0.0  ;;  %v355_v3 = vunpack.c.l.bf16 %v259_v54  ;;  %v356_v4 = vunpack.c.h.bf16 %v259_v54  ;;  %v265_v56 = vld [vmem:[%s1510_s10 + $0x130] sm:$0xff] }
  0x69   : > { %1141 = vst [vmem:[%s1562_s22 + $0x1d0] sm:$0xff] %v1013_v60  ;;  %1142 = vst [vmem:[%s1562_s22 + $0x1d8] sm:$0xff] %v1014_v61  ;;  %v1017_v8 = vmax.f32 %v889_v62, 0.0  ;;  %v1018_v9 = vmax.f32 %v890_v63, 0.0  ;;  %v357_v11 = vunpack.c.l.bf16 %v260_v59  ;;  %v358_v13 = vunpack.c.h.bf16 %v260_v59  ;;  %v266_v61 = vld [vmem:[%s1510_s10 + $0x138] sm:$0xff] }
  0x6a   : > { %1143 = vst [vmem:[%s1562_s22 + $0x1e0] sm:$0xff] %v1015_v1  ;;  %1144 = vst [vmem:[%s1562_s22 + $0x1e8] sm:$0xff] %v1016_v2  ;;  %v495_v14 = vmul.f32 %v1512_v6, %v355_v3  ;;  %v496_v15 = vmul.f32 %v1514_v7, %v356_v4  ;;  %v359_v16 = vunpack.c.l.bf16 %v261_v0  ;;  %v360_v17 = vunpack.c.h.bf16 %v261_v0 }
  0x6b   : > { %1145 = vst [vmem:[%s1562_s22 + $0x1f0] sm:$0xff] %v1017_v8  ;;  %1146 = vst [vmem:[%s1562_s22 + $0x1f8] sm:$0xff] %v1018_v9  ;;  %v497_v20 = vmul.f32 %v1512_v6, %v357_v11  ;;  %v498_v21 = vmul.f32 %v1514_v7, %v358_v13  ;;  %v361_v22 = vunpack.c.l.bf16 %v262_v5  ;;  %v362_v23 = vunpack.c.h.bf16 %v262_v5  ;;  %v771_v8 = vld [vmem:[%s1520_s13 + $0x240] sm:$0xff]  ;;  %v772_v9 = vld [vmem:[%s1520_s13 + $0x248] sm:$0xff] }
  0x6c   : > { %v635_v24 = vadd.f32 %v1522_v10, %v495_v14  ;;  %v636_v25 = vadd.f32 %v1524_v12, %v496_v15  ;;  %v499_v28 = vmul.f32 %v1512_v6, %v359_v16  ;;  %v500_v29 = vmul.f32 %v1514_v7, %v360_v17 }
  0x6d   : > { %v637_v30 = vadd.f32 %v1522_v10, %v497_v20  ;;  %v638_v31 = vadd.f32 %v1524_v12, %v498_v21  ;;  %v501_v34 = vmul.f32 %v1512_v6, %v361_v22  ;;  %v502_v35 = vmul.f32 %v1514_v7, %v362_v23 }
  0x6e   : > { %v891_v36 = vadd.f32 %v763_v18, %v635_v24  ;;  %v892_v37 = vadd.f32 %v764_v19, %v636_v25  ;;  %v639_v38 = vadd.f32 %v1522_v10, %v499_v28  ;;  %v640_v39 = vadd.f32 %v1524_v12, %v500_v29  ;;  %v773_v18 = vld [vmem:[%s1520_s13 + $0x250] sm:$0xff]  ;;  %v774_v19 = vld [vmem:[%s1520_s13 + $0x258] sm:$0xff]  ;;  %v775_v24 = vld [vmem:[%s1520_s13 + $0x260] sm:$0xff] }
  0x6f   : > { %v893_v42 = vadd.f32 %v765_v26, %v637_v30  ;;  %v894_v43 = vadd.f32 %v766_v27, %v638_v31  ;;  %v641_v44 = vadd.f32 %v1522_v10, %v501_v34  ;;  %v642_v45 = vadd.f32 %v1524_v12, %v502_v35  ;;  %v776_v25 = vld [vmem:[%s1520_s13 + $0x268] sm:$0xff] }
  0x70   : > { %v1019_v47 = vmax.f32 %v891_v36, 0.0  ;;  %v1020_v48 = vmax.f32 %v892_v37, 0.0  ;;  %v895_v49 = vadd.f32 %v767_v32, %v639_v38  ;;  %v896_v50 = vadd.f32 %v768_v33, %v640_v39  ;;  %v777_v32 = vld [vmem:[%s1520_s13 + $0x270] sm:$0xff]  ;;  %v778_v33 = vld [vmem:[%s1520_s13 + $0x278] sm:$0xff]  ;;  %v267_v38 = vld [vmem:[%s1510_s10 + $0x140] sm:$0xff] }
  0x71   : > { %v1021_v52 = vmax.f32 %v893_v42, 0.0  ;;  %v1022_v53 = vmax.f32 %v894_v43, 0.0  ;;  %v897_v54 = vadd.f32 %v769_v40, %v641_v44  ;;  %v898_v55 = vadd.f32 %v770_v41, %v642_v45  ;;  %v268_v43 = vld [vmem:[%s1510_s10 + $0x148] sm:$0xff] }
  0x72   : > { %1147 = vst [vmem:[%s1562_s22 + $0x200] sm:$0xff] %v1019_v47  ;;  %1148 = vst [vmem:[%s1562_s22 + $0x208] sm:$0xff] %v1020_v48  ;;  %v1023_v57 = vmax.f32 %v895_v49, 0.0  ;;  %v1024_v58 = vmax.f32 %v896_v50, 0.0  ;;  %v363_v59 = vunpack.c.l.bf16 %v263_v46  ;;  %v364_v60 = vunpack.c.h.bf16 %v263_v46  ;;  %v269_v48 = vld [vmem:[%s1510_s10 + $0x150] sm:$0xff] }
  0x73   : > { %1149 = vst [vmem:[%s1562_s22 + $0x210] sm:$0xff] %v1021_v52  ;;  %1150 = vst [vmem:[%s1562_s22 + $0x218] sm:$0xff] %v1022_v53  ;;  %v1025_v62 = vmax.f32 %v897_v54, 0.0  ;;  %v1026_v63 = vmax.f32 %v898_v55, 0.0  ;;  %v365_v0 = vunpack.c.l.bf16 %v264_v51  ;;  %v366_v1 = vunpack.c.h.bf16 %v264_v51  ;;  %v270_v53 = vld [vmem:[%s1510_s10 + $0x158] sm:$0xff] }
  0x74   : > { %1151 = vst [vmem:[%s1562_s22 + $0x220] sm:$0xff] %v1023_v57  ;;  %1152 = vst [vmem:[%s1562_s22 + $0x228] sm:$0xff] %v1024_v58  ;;  %v503_v2 = vmul.f32 %v1512_v6, %v363_v59  ;;  %v504_v3 = vmul.f32 %v1514_v7, %v364_v60  ;;  %v367_v4 = vunpack.c.l.bf16 %v265_v56  ;;  %v368_v5 = vunpack.c.h.bf16 %v265_v56 }
  0x75   : > { %1153 = vst [vmem:[%s1562_s22 + $0x230] sm:$0xff] %v1025_v62  ;;  %1154 = vst [vmem:[%s1562_s22 + $0x238] sm:$0xff] %v1026_v63  ;;  %v505_v11 = vmul.f32 %v1512_v6, %v365_v0  ;;  %v506_v13 = vmul.f32 %v1514_v7, %v366_v1  ;;  %v369_v14 = vunpack.c.l.bf16 %v266_v61  ;;  %v370_v15 = vunpack.c.h.bf16 %v266_v61  ;;  %v779_v62 = vld [vmem:[%s1520_s13 + $0x280] sm:$0xff]  ;;  %v780_v63 = vld [vmem:[%s1520_s13 + $0x288] sm:$0xff] }
  0x76   : > { %v643_v16 = vadd.f32 %v1522_v10, %v503_v2  ;;  %v644_v17 = vadd.f32 %v1524_v12, %v504_v3  ;;  %v507_v20 = vmul.f32 %v1512_v6, %v367_v4  ;;  %v508_v21 = vmul.f32 %v1514_v7, %v368_v5 }
  0x77   : > { %v645_v22 = vadd.f32 %v1522_v10, %v505_v11  ;;  %v646_v23 = vadd.f32 %v1524_v12, %v506_v13  ;;  %v509_v26 = vmul.f32 %v1512_v6, %v369_v14  ;;  %v510_v27 = vmul.f32 %v1514_v7, %v370_v15 }
  0x78   : > { %v899_v28 = vadd.f32 %v771_v8, %v643_v16  ;;  %v900_v29 = vadd.f32 %v772_v9, %v644_v17  ;;  %v647_v30 = vadd.f32 %v1522_v10, %v507_v20  ;;  %v648_v31 = vadd.f32 %v1524_v12, %v508_v21  ;;  %v781_v8 = vld [vmem:[%s1520_s13 + $0x290] sm:$0xff]  ;;  %v782_v9 = vld [vmem:[%s1520_s13 + $0x298] sm:$0xff]  ;;  %v783_v16 = vld [vmem:[%s1520_s13 + $0x2a0] sm:$0xff] }
  0x79   : > { %v901_v34 = vadd.f32 %v773_v18, %v645_v22  ;;  %v902_v35 = vadd.f32 %v774_v19, %v646_v23  ;;  %v649_v36 = vadd.f32 %v1522_v10, %v509_v26  ;;  %v650_v37 = vadd.f32 %v1524_v12, %v510_v27  ;;  %v784_v17 = vld [vmem:[%s1520_s13 + $0x2a8] sm:$0xff] }
  0x7a   : > { %v1027_v39 = vmax.f32 %v899_v28, 0.0  ;;  %v1028_v40 = vmax.f32 %v900_v29, 0.0  ;;  %v903_v41 = vadd.f32 %v775_v24, %v647_v30  ;;  %v904_v42 = vadd.f32 %v776_v25, %v648_v31  ;;  %v785_v24 = vld [vmem:[%s1520_s13 + $0x2b0] sm:$0xff]  ;;  %v786_v25 = vld [vmem:[%s1520_s13 + $0x2b8] sm:$0xff]  ;;  %v271_v30 = vld [vmem:[%s1510_s10 + $0x160] sm:$0xff] }
  0x7b   : > { %v1029_v44 = vmax.f32 %v901_v34, 0.0  ;;  %v1030_v45 = vmax.f32 %v902_v35, 0.0  ;;  %v905_v46 = vadd.f32 %v777_v32, %v649_v36  ;;  %v906_v47 = vadd.f32 %v778_v33, %v650_v37  ;;  %v272_v35 = vld [vmem:[%s1510_s10 + $0x168] sm:$0xff] }
  0x7c   : > { %1155 = vst [vmem:[%s1562_s22 + $0x240] sm:$0xff] %v1027_v39  ;;  %1156 = vst [vmem:[%s1562_s22 + $0x248] sm:$0xff] %v1028_v40  ;;  %v1031_v49 = vmax.f32 %v903_v41, 0.0  ;;  %v1032_v50 = vmax.f32 %v904_v42, 0.0  ;;  %v371_v51 = vunpack.c.l.bf16 %v267_v38  ;;  %v372_v52 = vunpack.c.h.bf16 %v267_v38  ;;  %v273_v40 = vld [vmem:[%s1510_s10 + $0x170] sm:$0xff] }
  0x7d   : > { %1157 = vst [vmem:[%s1562_s22 + $0x250] sm:$0xff] %v1029_v44  ;;  %1158 = vst [vmem:[%s1562_s22 + $0x258] sm:$0xff] %v1030_v45  ;;  %v1033_v54 = vmax.f32 %v905_v46, 0.0  ;;  %v1034_v55 = vmax.f32 %v906_v47, 0.0  ;;  %v373_v56 = vunpack.c.l.bf16 %v268_v43  ;;  %v374_v57 = vunpack.c.h.bf16 %v268_v43  ;;  %v274_v45 = vld [vmem:[%s1510_s10 + $0x178] sm:$0xff] }
  0x7e   : > { %1159 = vst [vmem:[%s1562_s22 + $0x260] sm:$0xff] %v1031_v49  ;;  %1160 = vst [vmem:[%s1562_s22 + $0x268] sm:$0xff] %v1032_v50  ;;  %v511_v58 = vmul.f32 %v1512_v6, %v371_v51  ;;  %v512_v59 = vmul.f32 %v1514_v7, %v372_v52  ;;  %v375_v60 = vunpack.c.l.bf16 %v269_v48  ;;  %v376_v61 = vunpack.c.h.bf16 %v269_v48 }
  0x7f   : > { %1161 = vst [vmem:[%s1562_s22 + $0x270] sm:$0xff] %v1033_v54  ;;  %1162 = vst [vmem:[%s1562_s22 + $0x278] sm:$0xff] %v1034_v55  ;;  %v513_v0 = vmul.f32 %v1512_v6, %v373_v56  ;;  %v514_v1 = vmul.f32 %v1514_v7, %v374_v57  ;;  %v377_v2 = vunpack.c.l.bf16 %v270_v53  ;;  %v378_v3 = vunpack.c.h.bf16 %v270_v53  ;;  %v787_v54 = vld [vmem:[%s1520_s13 + $0x2c0] sm:$0xff]  ;;  %v788_v55 = vld [vmem:[%s1520_s13 + $0x2c8] sm:$0xff] }
  0x80   : > { %v651_v4 = vadd.f32 %v1522_v10, %v511_v58  ;;  %v652_v5 = vadd.f32 %v1524_v12, %v512_v59  ;;  %v515_v11 = vmul.f32 %v1512_v6, %v375_v60  ;;  %v516_v13 = vmul.f32 %v1514_v7, %v376_v61 }
  0x81   : > { %v653_v14 = vadd.f32 %v1522_v10, %v513_v0  ;;  %v654_v15 = vadd.f32 %v1524_v12, %v514_v1  ;;  %v517_v18 = vmul.f32 %v1512_v6, %v377_v2  ;;  %v518_v19 = vmul.f32 %v1514_v7, %v378_v3 }
  0x82   : > { %v907_v20 = vadd.f32 %v779_v62, %v651_v4  ;;  %v908_v21 = vadd.f32 %v780_v63, %v652_v5  ;;  %v655_v22 = vadd.f32 %v1522_v10, %v515_v11  ;;  %v656_v23 = vadd.f32 %v1524_v12, %v516_v13  ;;  %v789_v62 = vld [vmem:[%s1520_s13 + $0x2d0] sm:$0xff]  ;;  %v790_v63 = vld [vmem:[%s1520_s13 + $0x2d8] sm:$0xff]  ;;  %v791_v4 = vld [vmem:[%s1520_s13 + $0x2e0] sm:$0xff] }
  0x83   : > { %v909_v26 = vadd.f32 %v781_v8, %v653_v14  ;;  %v910_v27 = vadd.f32 %v782_v9, %v654_v15  ;;  %v657_v28 = vadd.f32 %v1522_v10, %v517_v18  ;;  %v658_v29 = vadd.f32 %v1524_v12, %v518_v19  ;;  %v792_v5 = vld [vmem:[%s1520_s13 + $0x2e8] sm:$0xff] }
  0x84   : > { %v1035_v31 = vmax.f32 %v907_v20, 0.0  ;;  %v1036_v32 = vmax.f32 %v908_v21, 0.0  ;;  %v911_v33 = vadd.f32 %v783_v16, %v655_v22  ;;  %v912_v34 = vadd.f32 %v784_v17, %v656_v23  ;;  %v793_v16 = vld [vmem:[%s1520_s13 + $0x2f0] sm:$0xff]  ;;  %v794_v17 = vld [vmem:[%s1520_s13 + $0x2f8] sm:$0xff]  ;;  %v275_v22 = vld [vmem:[%s1510_s10 + $0x180] sm:$0xff] }
  0x85   : > { %v1037_v36 = vmax.f32 %v909_v26, 0.0  ;;  %v1038_v37 = vmax.f32 %v910_v27, 0.0  ;;  %v913_v38 = vadd.f32 %v785_v24, %v657_v28  ;;  %v914_v39 = vadd.f32 %v786_v25, %v658_v29  ;;  %v276_v27 = vld [vmem:[%s1510_s10 + $0x188] sm:$0xff] }
  0x86   : > { %1163 = vst [vmem:[%s1562_s22 + $0x280] sm:$0xff] %v1035_v31  ;;  %1164 = vst [vmem:[%s1562_s22 + $0x288] sm:$0xff] %v1036_v32  ;;  %v1039_v41 = vmax.f32 %v911_v33, 0.0  ;;  %v1040_v42 = vmax.f32 %v912_v34, 0.0  ;;  %v379_v43 = vunpack.c.l.bf16 %v271_v30  ;;  %v380_v44 = vunpack.c.h.bf16 %v271_v30  ;;  %v277_v32 = vld [vmem:[%s1510_s10 + $0x190] sm:$0xff] }
  0x87   : > { %1165 = vst [vmem:[%s1562_s22 + $0x290] sm:$0xff] %v1037_v36  ;;  %1166 = vst [vmem:[%s1562_s22 + $0x298] sm:$0xff] %v1038_v37  ;;  %v1041_v46 = vmax.f32 %v913_v38, 0.0  ;;  %v1042_v47 = vmax.f32 %v914_v39, 0.0  ;;  %v381_v48 = vunpack.c.l.bf16 %v272_v35  ;;  %v382_v49 = vunpack.c.h.bf16 %v272_v35  ;;  %v278_v37 = vld [vmem:[%s1510_s10 + $0x198] sm:$0xff] }
  0x88   : > { %1167 = vst [vmem:[%s1562_s22 + $0x2a0] sm:$0xff] %v1039_v41  ;;  %1168 = vst [vmem:[%s1562_s22 + $0x2a8] sm:$0xff] %v1040_v42  ;;  %v519_v50 = vmul.f32 %v1512_v6, %v379_v43  ;;  %v520_v51 = vmul.f32 %v1514_v7, %v380_v44  ;;  %v383_v52 = vunpack.c.l.bf16 %v273_v40  ;;  %v384_v53 = vunpack.c.h.bf16 %v273_v40 }
  0x89   : > { %1169 = vst [vmem:[%s1562_s22 + $0x2b0] sm:$0xff] %v1041_v46  ;;  %1170 = vst [vmem:[%s1562_s22 + $0x2b8] sm:$0xff] %v1042_v47  ;;  %v521_v56 = vmul.f32 %v1512_v6, %v381_v48  ;;  %v522_v57 = vmul.f32 %v1514_v7, %v382_v49  ;;  %v385_v58 = vunpack.c.l.bf16 %v274_v45  ;;  %v386_v59 = vunpack.c.h.bf16 %v274_v45  ;;  %v795_v46 = vld [vmem:[%s1520_s13 + $0x300] sm:$0xff]  ;;  %v796_v47 = vld [vmem:[%s1520_s13 + $0x308] sm:$0xff] }
  0x8a   : > { %v659_v60 = vadd.f32 %v1522_v10, %v519_v50  ;;  %v660_v61 = vadd.f32 %v1524_v12, %v520_v51  ;;  %v523_v0 = vmul.f32 %v1512_v6, %v383_v52  ;;  %v524_v1 = vmul.f32 %v1514_v7, %v384_v53 }
  0x8b   : > { %v661_v2 = vadd.f32 %v1522_v10, %v521_v56  ;;  %v662_v3 = vadd.f32 %v1524_v12, %v522_v57  ;;  %v525_v8 = vmul.f32 %v1512_v6, %v385_v58  ;;  %v526_v9 = vmul.f32 %v1514_v7, %v386_v59 }
  0x8c   : > { %v915_v11 = vadd.f32 %v787_v54, %v659_v60  ;;  %v916_v13 = vadd.f32 %v788_v55, %v660_v61  ;;  %v663_v14 = vadd.f32 %v1522_v10, %v523_v0  ;;  %v664_v15 = vadd.f32 %v1524_v12, %v524_v1  ;;  %v797_v54 = vld [vmem:[%s1520_s13 + $0x310] sm:$0xff]  ;;  %v798_v55 = vld [vmem:[%s1520_s13 + $0x318] sm:$0xff]  ;;  %v799_v60 = vld [vmem:[%s1520_s13 + $0x320] sm:$0xff] }
  0x8d   : > { %v917_v18 = vadd.f32 %v789_v62, %v661_v2  ;;  %v918_v19 = vadd.f32 %v790_v63, %v662_v3  ;;  %v665_v20 = vadd.f32 %v1522_v10, %v525_v8  ;;  %v666_v21 = vadd.f32 %v1524_v12, %v526_v9  ;;  %v800_v61 = vld [vmem:[%s1520_s13 + $0x328] sm:$0xff] }
  0x8e   : > { %v1043_v23 = vmax.f32 %v915_v11, 0.0  ;;  %v1044_v24 = vmax.f32 %v916_v13, 0.0  ;;  %v919_v25 = vadd.f32 %v791_v4, %v663_v14  ;;  %v920_v26 = vadd.f32 %v792_v5, %v664_v15  ;;  %v801_v4 = vld [vmem:[%s1520_s13 + $0x330] sm:$0xff]  ;;  %v802_v5 = vld [vmem:[%s1520_s13 + $0x338] sm:$0xff]  ;;  %v279_v14 = vld [vmem:[%s1510_s10 + $0x1a0] sm:$0xff] }
  0x8f   : > { %v1045_v28 = vmax.f32 %v917_v18, 0.0  ;;  %v1046_v29 = vmax.f32 %v918_v19, 0.0  ;;  %v921_v30 = vadd.f32 %v793_v16, %v665_v20  ;;  %v922_v31 = vadd.f32 %v794_v17, %v666_v21  ;;  %v280_v19 = vld [vmem:[%s1510_s10 + $0x1a8] sm:$0xff] }
  0x90   : > { %1171 = vst [vmem:[%s1562_s22 + $0x2c0] sm:$0xff] %v1043_v23  ;;  %1172 = vst [vmem:[%s1562_s22 + $0x2c8] sm:$0xff] %v1044_v24  ;;  %v1047_v33 = vmax.f32 %v919_v25, 0.0  ;;  %v1048_v34 = vmax.f32 %v920_v26, 0.0  ;;  %v387_v35 = vunpack.c.l.bf16 %v275_v22  ;;  %v388_v36 = vunpack.c.h.bf16 %v275_v22  ;;  %v281_v24 = vld [vmem:[%s1510_s10 + $0x1b0] sm:$0xff] }
  0x91   : > { %1173 = vst [vmem:[%s1562_s22 + $0x2d0] sm:$0xff] %v1045_v28  ;;  %1174 = vst [vmem:[%s1562_s22 + $0x2d8] sm:$0xff] %v1046_v29  ;;  %v1049_v38 = vmax.f32 %v921_v30, 0.0  ;;  %v1050_v39 = vmax.f32 %v922_v31, 0.0  ;;  %v389_v40 = vunpack.c.l.bf16 %v276_v27  ;;  %v390_v41 = vunpack.c.h.bf16 %v276_v27  ;;  %v282_v29 = vld [vmem:[%s1510_s10 + $0x1b8] sm:$0xff] }
  0x92   : > { %1175 = vst [vmem:[%s1562_s22 + $0x2e0] sm:$0xff] %v1047_v33  ;;  %1176 = vst [vmem:[%s1562_s22 + $0x2e8] sm:$0xff] %v1048_v34  ;;  %v527_v42 = vmul.f32 %v1512_v6, %v387_v35  ;;  %v528_v43 = vmul.f32 %v1514_v7, %v388_v36  ;;  %v391_v44 = vunpack.c.l.bf16 %v277_v32  ;;  %v392_v45 = vunpack.c.h.bf16 %v277_v32 }
  0x93   : > { %1177 = vst [vmem:[%s1562_s22 + $0x2f0] sm:$0xff] %v1049_v38  ;;  %1178 = vst [vmem:[%s1562_s22 + $0x2f8] sm:$0xff] %v1050_v39  ;;  %v529_v48 = vmul.f32 %v1512_v6, %v389_v40  ;;  %v530_v49 = vmul.f32 %v1514_v7, %v390_v41  ;;  %v393_v50 = vunpack.c.l.bf16 %v278_v37  ;;  %v394_v51 = vunpack.c.h.bf16 %v278_v37  ;;  %v803_v38 = vld [vmem:[%s1520_s13 + $0x340] sm:$0xff]  ;;  %v804_v39 = vld [vmem:[%s1520_s13 + $0x348] sm:$0xff] }
  0x94   : > { %v667_v52 = vadd.f32 %v1522_v10, %v527_v42  ;;  %v668_v53 = vadd.f32 %v1524_v12, %v528_v43  ;;  %v531_v56 = vmul.f32 %v1512_v6, %v391_v44  ;;  %v532_v57 = vmul.f32 %v1514_v7, %v392_v45 }
  0x95   : > { %v669_v58 = vadd.f32 %v1522_v10, %v529_v48  ;;  %v670_v59 = vadd.f32 %v1524_v12, %v530_v49  ;;  %v533_v62 = vmul.f32 %v1512_v6, %v393_v50  ;;  %v534_v63 = vmul.f32 %v1514_v7, %v394_v51 }
  0x96   : > { %v923_v0 = vadd.f32 %v795_v46, %v667_v52  ;;  %v924_v1 = vadd.f32 %v796_v47, %v668_v53  ;;  %v671_v2 = vadd.f32 %v1522_v10, %v531_v56  ;;  %v672_v3 = vadd.f32 %v1524_v12, %v532_v57  ;;  %v805_v46 = vld [vmem:[%s1520_s13 + $0x350] sm:$0xff]  ;;  %v806_v47 = vld [vmem:[%s1520_s13 + $0x358] sm:$0xff]  ;;  %v807_v52 = vld [vmem:[%s1520_s13 + $0x360] sm:$0xff] }
  0x97   : > { %v925_v8 = vadd.f32 %v797_v54, %v669_v58  ;;  %v926_v9 = vadd.f32 %v798_v55, %v670_v59  ;;  %v673_v11 = vadd.f32 %v1522_v10, %v533_v62  ;;  %v674_v13 = vadd.f32 %v1524_v12, %v534_v63  ;;  %v808_v53 = vld [vmem:[%s1520_s13 + $0x368] sm:$0xff] }
  0x98   : > { %v1051_v15 = vmax.f32 %v923_v0, 0.0  ;;  %v1052_v16 = vmax.f32 %v924_v1, 0.0  ;;  %v927_v17 = vadd.f32 %v799_v60, %v671_v2  ;;  %v928_v18 = vadd.f32 %v800_v61, %v672_v3  ;;  %v809_v60 = vld [vmem:[%s1520_s13 + $0x370] sm:$0xff]  ;;  %v810_v61 = vld [vmem:[%s1520_s13 + $0x378] sm:$0xff]  ;;  %v283_v2 = vld [vmem:[%s1510_s10 + $0x1c0] sm:$0xff] }
  0x99   : > { %v1053_v20 = vmax.f32 %v925_v8, 0.0  ;;  %v1054_v21 = vmax.f32 %v926_v9, 0.0  ;;  %v929_v22 = vadd.f32 %v801_v4, %v673_v11  ;;  %v930_v23 = vadd.f32 %v802_v5, %v674_v13  ;;  %v284_v9 = vld [vmem:[%s1510_s10 + $0x1c8] sm:$0xff] }
  0x9a   : > { %1179 = vst [vmem:[%s1562_s22 + $0x300] sm:$0xff] %v1051_v15  ;;  %1180 = vst [vmem:[%s1562_s22 + $0x308] sm:$0xff] %v1052_v16  ;;  %v1055_v25 = vmax.f32 %v927_v17, 0.0  ;;  %v1056_v26 = vmax.f32 %v928_v18, 0.0  ;;  %v395_v27 = vunpack.c.l.bf16 %v279_v14  ;;  %v396_v28 = vunpack.c.h.bf16 %v279_v14  ;;  %v285_v16 = vld [vmem:[%s1510_s10 + $0x1d0] sm:$0xff] }
  0x9b   : > { %1181 = vst [vmem:[%s1562_s22 + $0x310] sm:$0xff] %v1053_v20  ;;  %1182 = vst [vmem:[%s1562_s22 + $0x318] sm:$0xff] %v1054_v21  ;;  %v1057_v30 = vmax.f32 %v929_v22, 0.0  ;;  %v1058_v31 = vmax.f32 %v930_v23, 0.0  ;;  %v397_v32 = vunpack.c.l.bf16 %v280_v19  ;;  %v398_v33 = vunpack.c.h.bf16 %v280_v19  ;;  %v286_v21 = vld [vmem:[%s1510_s10 + $0x1d8] sm:$0xff] }
  0x9c   : > { %1183 = vst [vmem:[%s1562_s22 + $0x320] sm:$0xff] %v1055_v25  ;;  %1184 = vst [vmem:[%s1562_s22 + $0x328] sm:$0xff] %v1056_v26  ;;  %v535_v34 = vmul.f32 %v1512_v6, %v395_v27  ;;  %v536_v35 = vmul.f32 %v1514_v7, %v396_v28  ;;  %v399_v36 = vunpack.c.l.bf16 %v281_v24  ;;  %v400_v37 = vunpack.c.h.bf16 %v281_v24 }
  0x9d   : > { %1185 = vst [vmem:[%s1562_s22 + $0x330] sm:$0xff] %v1057_v30  ;;  %1186 = vst [vmem:[%s1562_s22 + $0x338] sm:$0xff] %v1058_v31  ;;  %v537_v40 = vmul.f32 %v1512_v6, %v397_v32  ;;  %v538_v41 = vmul.f32 %v1514_v7, %v398_v33  ;;  %v401_v42 = vunpack.c.l.bf16 %v282_v29  ;;  %v402_v43 = vunpack.c.h.bf16 %v282_v29  ;;  %v811_v30 = vld [vmem:[%s1520_s13 + $0x380] sm:$0xff]  ;;  %v812_v31 = vld [vmem:[%s1520_s13 + $0x388] sm:$0xff] }
  0x9e   : > { %v675_v44 = vadd.f32 %v1522_v10, %v535_v34  ;;  %v676_v45 = vadd.f32 %v1524_v12, %v536_v35  ;;  %v539_v48 = vmul.f32 %v1512_v6, %v399_v36  ;;  %v540_v49 = vmul.f32 %v1514_v7, %v400_v37 }
  0x9f   : > { %v677_v50 = vadd.f32 %v1522_v10, %v537_v40  ;;  %v678_v51 = vadd.f32 %v1524_v12, %v538_v41  ;;  %v541_v54 = vmul.f32 %v1512_v6, %v401_v42  ;;  %v542_v55 = vmul.f32 %v1514_v7, %v402_v43 }
  0xa0   : > { %v931_v56 = vadd.f32 %v803_v38, %v675_v44  ;;  %v932_v57 = vadd.f32 %v804_v39, %v676_v45  ;;  %v679_v58 = vadd.f32 %v1522_v10, %v539_v48  ;;  %v680_v59 = vadd.f32 %v1524_v12, %v540_v49  ;;  %v813_v38 = vld [vmem:[%s1520_s13 + $0x390] sm:$0xff]  ;;  %v814_v39 = vld [vmem:[%s1520_s13 + $0x398] sm:$0xff]  ;;  %v815_v44 = vld [vmem:[%s1520_s13 + $0x3a0] sm:$0xff] }
  0xa1   : > { %v933_v62 = vadd.f32 %v805_v46, %v677_v50  ;;  %v934_v63 = vadd.f32 %v806_v47, %v678_v51  ;;  %v681_v0 = vadd.f32 %v1522_v10, %v541_v54  ;;  %v682_v1 = vadd.f32 %v1524_v12, %v542_v55  ;;  %v816_v45 = vld [vmem:[%s1520_s13 + $0x3a8] sm:$0xff] }
  0xa2   : > { %v1059_v3 = vmax.f32 %v931_v56, 0.0  ;;  %v1060_v4 = vmax.f32 %v932_v57, 0.0  ;;  %v935_v5 = vadd.f32 %v807_v52, %v679_v58  ;;  %v936_v8 = vadd.f32 %v808_v53, %v680_v59  ;;  %v817_v52 = vld [vmem:[%s1520_s13 + $0x3b0] sm:$0xff]  ;;  %v818_v53 = vld [vmem:[%s1520_s13 + $0x3b8] sm:$0xff]  ;;  %v287_v58 = vld [vmem:[%s1510_s10 + $0x1e0] sm:$0xff] }
  0xa3   : > { %v1061_v11 = vmax.f32 %v933_v62, 0.0  ;;  %v1062_v13 = vmax.f32 %v934_v63, 0.0  ;;  %v937_v14 = vadd.f32 %v809_v60, %v681_v0  ;;  %v938_v15 = vadd.f32 %v810_v61, %v682_v1  ;;  %v288_v63 = vld [vmem:[%s1510_s10 + $0x1e8] sm:$0xff] }
  0xa4   : > { %1187 = vst [vmem:[%s1562_s22 + $0x340] sm:$0xff] %v1059_v3  ;;  %1188 = vst [vmem:[%s1562_s22 + $0x348] sm:$0xff] %v1060_v4  ;;  %v1063_v17 = vmax.f32 %v935_v5, 0.0  ;;  %v1064_v18 = vmax.f32 %v936_v8, 0.0  ;;  %v403_v19 = vunpack.c.l.bf16 %v283_v2  ;;  %v404_v20 = vunpack.c.h.bf16 %v283_v2  ;;  %v289_v4 = vld [vmem:[%s1510_s10 + $0x1f0] sm:$0xff] }
  0xa5   : > { %1189 = vst [vmem:[%s1562_s22 + $0x350] sm:$0xff] %v1061_v11  ;;  %1190 = vst [vmem:[%s1562_s22 + $0x358] sm:$0xff] %v1062_v13  ;;  %v1065_v22 = vmax.f32 %v937_v14, 0.0  ;;  %v1066_v23 = vmax.f32 %v938_v15, 0.0  ;;  %v405_v24 = vunpack.c.l.bf16 %v284_v9  ;;  %v406_v25 = vunpack.c.h.bf16 %v284_v9  ;;  %v290_v13 = vld [vmem:[%s1510_s10 + $0x1f8] sm:$0xff] }
  0xa6   : > { %1191 = vst [vmem:[%s1562_s22 + $0x360] sm:$0xff] %v1063_v17  ;;  %1192 = vst [vmem:[%s1562_s22 + $0x368] sm:$0xff] %v1064_v18  ;;  %v543_v26 = vmul.f32 %v1512_v6, %v403_v19  ;;  %v544_v27 = vmul.f32 %v1514_v7, %v404_v20  ;;  %v407_v28 = vunpack.c.l.bf16 %v285_v16  ;;  %v408_v29 = vunpack.c.h.bf16 %v285_v16 }
  0xa7   : > { %1193 = vst [vmem:[%s1562_s22 + $0x370] sm:$0xff] %v1065_v22  ;;  %1194 = vst [vmem:[%s1562_s22 + $0x378] sm:$0xff] %v1066_v23  ;;  %v545_v32 = vmul.f32 %v1512_v6, %v405_v24  ;;  %v546_v33 = vmul.f32 %v1514_v7, %v406_v25  ;;  %v409_v34 = vunpack.c.l.bf16 %v286_v21  ;;  %v410_v35 = vunpack.c.h.bf16 %v286_v21  ;;  %v819_v22 = vld [vmem:[%s1520_s13 + $0x3c0] sm:$0xff]  ;;  %v820_v23 = vld [vmem:[%s1520_s13 + $0x3c8] sm:$0xff] }
  0xa8   : > { %v683_v36 = vadd.f32 %v1522_v10, %v543_v26  ;;  %v684_v37 = vadd.f32 %v1524_v12, %v544_v27  ;;  %v547_v40 = vmul.f32 %v1512_v6, %v407_v28  ;;  %v548_v41 = vmul.f32 %v1514_v7, %v408_v29 }
  0xa9   : > { %v685_v42 = vadd.f32 %v1522_v10, %v545_v32  ;;  %v686_v43 = vadd.f32 %v1524_v12, %v546_v33  ;;  %v549_v46 = vmul.f32 %v1512_v6, %v409_v34  ;;  %v550_v47 = vmul.f32 %v1514_v7, %v410_v35 }
  0xaa   : > { %v939_v48 = vadd.f32 %v811_v30, %v683_v36  ;;  %v940_v49 = vadd.f32 %v812_v31, %v684_v37  ;;  %v687_v50 = vadd.f32 %v1522_v10, %v547_v40  ;;  %v688_v51 = vadd.f32 %v1524_v12, %v548_v41  ;;  %v821_v30 = vld [vmem:[%s1520_s13 + $0x3d0] sm:$0xff]  ;;  %v822_v31 = vld [vmem:[%s1520_s13 + $0x3d8] sm:$0xff]  ;;  %v823_v36 = vld [vmem:[%s1520_s13 + $0x3e0] sm:$0xff] }
  0xab   : > { %v941_v54 = vadd.f32 %v813_v38, %v685_v42  ;;  %v942_v55 = vadd.f32 %v814_v39, %v686_v43  ;;  %v689_v56 = vadd.f32 %v1522_v10, %v549_v46  ;;  %v690_v57 = vadd.f32 %v1524_v12, %v550_v47  ;;  %v824_v37 = vld [vmem:[%s1520_s13 + $0x3e8] sm:$0xff] }
  0xac   : > { %v1067_v59 = vmax.f32 %v939_v48, 0.0  ;;  %v1068_v60 = vmax.f32 %v940_v49, 0.0  ;;  %v943_v61 = vadd.f32 %v815_v44, %v687_v50  ;;  %v944_v62 = vadd.f32 %v816_v45, %v688_v51  ;;  %v825_v44 = vld [vmem:[%s1520_s13 + $0x3f0] sm:$0xff]  ;;  %v826_v45 = vld [vmem:[%s1520_s13 + $0x3f8] sm:$0xff] }
  0xad   : > { %v1069_v0 = vmax.f32 %v941_v54, 0.0  ;;  %v1070_v1 = vmax.f32 %v942_v55, 0.0  ;;  %v945_v2 = vadd.f32 %v817_v52, %v689_v56  ;;  %v946_v3 = vadd.f32 %v818_v53, %v690_v57 }
  0xae   : > { %1195 = vst [vmem:[%s1562_s22 + $0x380] sm:$0xff] %v1067_v59  ;;  %1196 = vst [vmem:[%s1562_s22 + $0x388] sm:$0xff] %v1068_v60  ;;  %v1071_v5 = vmax.f32 %v943_v61, 0.0  ;;  %v1072_v8 = vmax.f32 %v944_v62, 0.0  ;;  %v411_v9 = vunpack.c.l.bf16 %v287_v58  ;;  %v412_v11 = vunpack.c.h.bf16 %v287_v58 }
  0xaf   : > { %1197 = vst [vmem:[%s1562_s22 + $0x390] sm:$0xff] %v1069_v0  ;;  %1198 = vst [vmem:[%s1562_s22 + $0x398] sm:$0xff] %v1070_v1  ;;  %v1073_v14 = vmax.f32 %v945_v2, 0.0  ;;  %v1074_v15 = vmax.f32 %v946_v3, 0.0  ;;  %v413_v16 = vunpack.c.l.bf16 %v288_v63  ;;  %v414_v17 = vunpack.c.h.bf16 %v288_v63 }
  0xb0   : > { %1199 = vst [vmem:[%s1562_s22 + $0x3a0] sm:$0xff] %v1071_v5  ;;  %1200 = vst [vmem:[%s1562_s22 + $0x3a8] sm:$0xff] %v1072_v8  ;;  %v551_v18 = vmul.f32 %v1512_v6, %v411_v9  ;;  %v552_v19 = vmul.f32 %v1514_v7, %v412_v11  ;;  %v415_v20 = vunpack.c.l.bf16 %v289_v4  ;;  %v416_v21 = vunpack.c.h.bf16 %v289_v4 }
  0xb1   : > { %1201 = vst [vmem:[%s1562_s22 + $0x3b0] sm:$0xff] %v1073_v14  ;;  %1202 = vst [vmem:[%s1562_s22 + $0x3b8] sm:$0xff] %v1074_v15  ;;  %v553_v24 = vmul.f32 %v1512_v6, %v413_v16  ;;  %v554_v25 = vmul.f32 %v1514_v7, %v414_v17  ;;  %v417_v26 = vunpack.c.l.bf16 %v290_v13  ;;  %v418_v27 = vunpack.c.h.bf16 %v290_v13 }
  0xb2   : > { %v691_v28 = vadd.f32 %v1522_v10, %v551_v18  ;;  %v692_v29 = vadd.f32 %v1524_v12, %v552_v19  ;;  %v555_v32 = vmul.f32 %v1512_v6, %v415_v20  ;;  %v556_v33 = vmul.f32 %v1514_v7, %v416_v21 }
  0xb3   : > { %v693_v34 = vadd.f32 %v1522_v10, %v553_v24  ;;  %v694_v35 = vadd.f32 %v1524_v12, %v554_v25  ;;  %v557_v38 = vmul.f32 %v1512_v6, %v417_v26  ;;  %v558_v39 = vmul.f32 %v1514_v7, %v418_v27 }
  0xb4   : > { %v947_v40 = vadd.f32 %v819_v22, %v691_v28  ;;  %v948_v41 = vadd.f32 %v820_v23, %v692_v29  ;;  %v695_v42 = vadd.f32 %v1522_v10, %v555_v32  ;;  %v696_v43 = vadd.f32 %v1524_v12, %v556_v33 }
  0xb5   : > { %v949_v46 = vadd.f32 %v821_v30, %v693_v34  ;;  %v950_v47 = vadd.f32 %v822_v31, %v694_v35  ;;  %v697_v48 = vadd.f32 %v1522_v10, %v557_v38  ;;  %v698_v49 = vadd.f32 %v1524_v12, %v558_v39 }
  0xb6   : > { %v1075_v6 = vmax.f32 %v947_v40, 0.0  ;;  %v1076_v7 = vmax.f32 %v948_v41, 0.0  ;;  %v951_v50 = vadd.f32 %v823_v36, %v695_v42  ;;  %v952_v51 = vadd.f32 %v824_v37, %v696_v43 }
  0xb7   : > { %v1077_v52 = vmax.f32 %v949_v46, 0.0  ;;  %v1078_v53 = vmax.f32 %v950_v47, 0.0  ;;  %v953_v54 = vadd.f32 %v825_v44, %v697_v48  ;;  %v954_v55 = vadd.f32 %v826_v45, %v698_v49 }
  0xb8   : > { %1203 = vst [vmem:[%s1562_s22 + $0x3c0] sm:$0xff] %v1075_v6  ;;  %1204 = vst [vmem:[%s1562_s22 + $0x3c8] sm:$0xff] %v1076_v7  ;;  %v1079_v10 = vmax.f32 %v951_v50, 0.0  ;;  %v1080_v12 = vmax.f32 %v952_v51, 0.0 }
  0xb9   : > { %1205 = vst [vmem:[%s1562_s22 + $0x3d0] sm:$0xff] %v1077_v52  ;;  %1206 = vst [vmem:[%s1562_s22 + $0x3d8] sm:$0xff] %v1078_v53  ;;  %v1081_v56 = vmax.f32 %v953_v54, 0.0  ;;  %v1082_v57 = vmax.f32 %v954_v55, 0.0 }
  0xba   : > { %1207 = vst [vmem:[%s1562_s22 + $0x3e0] sm:$0xff] %v1079_v10  ;;  %1208 = vst [vmem:[%s1562_s22 + $0x3e8] sm:$0xff] %v1080_v12 }
  0xbb   : > { %1209 = vst [vmem:[%s1562_s22 + $0x3f0] sm:$0xff] %v1081_v56  ;;  %1210 = vst [vmem:[%s1562_s22 + $0x3f8] sm:$0xff] %v1082_v57 }
  0xbc   : > { %1375 = shalt.err (!%p1372_p3)
}
  0xbd   : > { %s1376_s9 = scalar_lea.hbm %s2108_s29, 16384  ;;  %s1380_s12 = scalar_lea.hbm %s2164_s4, 32768 }
  0xbe   : > { %p1377_p4 = scmp.ne.s32.totalorder %s2108_s29, %s1376_s9  ;;  %p1381_p9 = scmp.lt.s32.totalorder %s2108_s29, %s2164_s4 }
  0xbf   : > { %p1382_p10 = scmp.lt.s32.totalorder %s1380_s12, %s1376_s9 }
  0xc0   : > { %p1378_p7 = pnand %p1377_p4, %p1490_p5 }
  0xc1   : > { %p1383_p11 = por %p1382_p10, %p1381_p9 }
  0xc2   : > { %p1379_p8 = pneg %p1378_p7 }
  0xc4   : > { %p1384_p12 = pnand %p1383_p11, %p1379_p8 }
  0xc6   : > { %1387 = shalt.err (!%p1384_p12)
}
  0xc7   : > { %s1425_s20 = smov 256   ;;  %s1426_s22 = smov 16  }
  0xc8   : > { %1321 = dma.vmem_to_hbm [thread:$0]  (%p1490_p5), %s2110_s27, 16384, %s2108_s29, %s2120_s30, %s1425_s20, %s1425_s20, %s1426_s22  }
  0xc9 PF: > { %p1327_p13 = scmp.ge.s32.totalorder %s1422_s18, 2  ;;  %s1241_s23 = sand.u32 1, %s1410_s15  }
  0xca   : > { %s1242_s19 = scalar_lea.sflag [#allocation3], %s1241_s23 }
  0xcb   : > { %p1324_p0 = pnand %p1327_p13, %p1494_p6 }
  0xcd   : > { %p1325_p1 = pneg %p1324_p0 }
  0xcf   : > { %1405 = dma.done.wait (%p1325_p1), %s1242_s19, 16384  }
  0xd0   : > { %1407 = vsyncadd (%p1325_p1), %s1242_s19, 4294950912  ;;  %p14_p2 = scmp.ge.s32.totalorder %s1477_s21, 4   ;;  %s2167_s15 = smov %s1414_s16 }
  0xd1   : > { %s2168_s16 = smov %s1418_s17  ;;  %s2169_s17 = smov %s1488_s24 }
  0xd2   : > { %s2170_s18 = smov %s1477_s21  ;;  %16 = sbr.rel (!%p14_p2) target bundleno = 3 (0x3), region = 74 }
  0xd7   :  { %1247 = vsyncpa [#allocation3], 1 }
  0xd8   :  { %1249 = vsyncpa [#allocation3 + $0x1], 1 }

// kernel: _lambda_.5
= control target key start
LH: loop header
LB: loop body
LE: loop exit
PB: predicated region body
PF: predicated region fallthrough
CT: control target
= control target key end

     0   :  { %s4984_s21 = smov 0   ;;  %s4986_s22 = smov 0   ;;  %s6254_s0 = inlined_call_operand.vmem [shape: bf16[4,256,64], index: 0, kind: input, shape index: {}]   ;;  %s6255_s1 = inlined_call_operand.vmem [shape: f32[1,64], index: 1, kind: input, shape index: {}]   ;;  %s6256_s2 = inlined_call_operand.vmem [shape: f32[1,64], index: 2, kind: input, shape index: {}]   ;;  %s6257_s3 = inlined_call_operand.vmem [shape: bf16[9,64,64], index: 3, kind: input, shape index: {}]   ;;  %s6258_s4 = inlined_call_operand.vmem [shape: bf16[4,256,64], index: 4, kind: output, shape index: {0}]   ;;  %s6259_s5 = inlined_call_operand.vmem [shape: f32[2,8,64], index: 5, kind: output, shape index: {1}]   ;;  %s6260_s6 = inlined_call_operand.vmem [shape: f32[2,8,64], index: 6, kind: output, shape index: {2}]  }
   0x1   :  { %s4988_s23 = smov 0   ;;  %s4990_s24 = smov 0  }
   0x2   :  { %s4992_s25 = smov 0  }
   0x3 LB: > { %s26_s26 = sadd.s32 1, %s4938_s23  ;;  %s29_s27 = sadd.s32 1, %s4942_s24  ;;  %s4946_s25 = sphi %s4992_s25, %s17_s25   ;;  %s4942_s24 = sphi %s4990_s24, %s6264_s24   ;;  %s4938_s23 = sphi %s4988_s23, %s6263_s23   ;;  %s4934_s22 = sphi %s4986_s22, %s6262_s22   ;;  %s4930_s21 = sphi %s4984_s21, %s6261_s21  }
   0x4   : > { %p27_p0 = scmp.ge.s32.totalorder %s26_s26, 2  ;;  %p3878_p1 = scmp.ge.s32.totalorder %s4946_s25, 1 }
   0x5   : > { %p241_p2 = scmp.lt.s32.totalorder %s4946_s25, 5 }
   0x6   : > { %s6266_s26 = smov (%p27_p0, %s26_s26), 0  ;;  %s6268_s27 = smov (!%p27_p0, %s29_s27), %s4942_s24 }
   0x7   : > { %p242_p3 = pnand %p3878_p1, %p241_p2  ;;  %p31_p4 = scmp.ge.s32.totalorder %s6268_s27, 2 }
   0x8   : > { %s3879_s28 = sshll.u32 (!%p242_p3), %s4934_s22, 1  ;;  %p301_p5 = scmp.lt.s32.totalorder (!%p242_p3), %s4934_s22, 1 }
   0x9   : > { %s6270_s27 = smov (%p31_p4, %s6268_s27), 0  ;;  %245 = sbr.rel (%p242_p3) target bundleno = 571 (0x23b), region = 36 }
   0xa   : > { %s284_s29 = sadd.s32 (!%p242_p3), %s4930_s21, %s3879_s28  ;;  %p3887_p7 = scmp.ne.s32.totalorder (!%p242_p3), %s4930_s21, 0 }
   0xb   : > { %p285_p6 = scmp.lt.s32.totalorder (!%p242_p3), %s284_s29, 3 }
   0xe   : > { %s6272_s22 = smov (!%p301_p5, %s4934_s22), 1  ;;  %s6274_s29 = smov (!%p285_p6, %s284_s29), 3 }
   0xf   : > { %s3885_s30 = sshll.u32 %s6272_s22, 3  ;;  %s4168_s7 = sshll.u32 %s6274_s29, 7 }
  0x10   : > { %s5017_s10 = scalar_lea.vmem %s6259_s5, %s3885_s30  ;;  %s5022_s13 = scalar_lea.vmem %s6254_s0, %s4168_s7 }
  0x11   : > { %s5027_s16 = scalar_lea.vmem %s6258_s4, %s4168_s7  ;;  %s5032_s19 = scalar_lea.vmem %s6260_s6, %s3885_s30 }
  0x12   : > { %313 = sbr.rel (%p3887_p7) target bundleno = 25 (0x19), region = 40 }
  0x17   : > { %vm314_vm0 = vcmask 523264   ;;  %v4948_v0 = vmov 0.0  }
  0x18   : > { %315 = vst.msk [vmem:[%s5017_s10] sm:$0xff] %vm314_vm0, %v4948_v0  ;;  %316 = vst.msk [vmem:[%s5032_s19] sm:$0xff] %vm314_vm0, %v4948_v0 }
  0x19 PF: > { %v4870_v1 = vld [vmem:[%s6257_s3 + $0x98] sm:$0xff]   ;;  %v4871_v2 = vld [vmem:[%s6257_s3 + $0x90] sm:$0xff]   ;;  %v4872_v3 = vld [vmem:[%s6257_s3 + $0x88] sm:$0xff]   ;;  %vm540_vm1 = vcmask 523264   ;;  %vm1035_vm2 = vcmask 522240   ;;  %vm1599_vm3 = vcmask 1046528  }
  0x1a   : > { %4461 = vmatprep.subr.bf16.mxu0 %v4870_v1  ;;  %4821 = vmatprep.subr.bf16.mxu1 %v4870_v1  ;;  %v4203_v4 = vld [vmem:[%s5022_s13] sm:$0xff]   ;;  %v4266_v9 = vld [vmem:[%s5022_s13 + $0x8] sm:$0xff]   ;;  %v4267_v32 = vld [vmem:[%s5022_s13 + $0x10] sm:$0xff]   ;;  %vm3538_vm4 = vcmask 519168  }
  0x1b   : > { %4462 = vmatpush3.bf16.msra.mxu0 %v4870_v1  ;;  %4825 = vmatpush3.bf16.msra.mxu1 %v4870_v1  ;;  %v5049_v5 = vld [vmem:[%s6255_s1] ss:$0 sm:$0xff]  ;;  %v4204_v6 = vunpack.c.l.bf16 %v4203_v4  ;;  %v4205_v7 = vunpack.c.h.bf16 %v4203_v4  ;;  %v4274_v10 = vld [vmem:[%s5022_s13 + $0x48] sm:$0xff]   ;;  %v4208_v14 = vunpack.c.l.bf16 %v4266_v9  ;;  %v4209_v15 = vunpack.c.h.bf16 %v4266_v9  ;;  %v4275_v37 = vld [vmem:[%s5022_s13 + $0x50] sm:$0xff]  }
  0x1c   : > { %4463 = vmatprep.subr.bf16.mxu0 %v4871_v2  ;;  %4822 = vmatprep.subr.bf16.mxu1 %v4871_v2  ;;  %v4273_v8 = vld [vmem:[%s5022_s13 + $0x40] sm:$0xff]   ;;  %v4240_v18 = vunpack.c.l.bf16 %v4274_v10  ;;  %v4241_v19 = vunpack.c.h.bf16 %v4274_v10  ;;  %v4874_v42 = vld [vmem:[%s6257_s3 + $0x18] sm:$0xff]   ;;  %v4212_v48 = vunpack.c.l.bf16 %v4267_v32  ;;  %v4213_v51 = vunpack.c.h.bf16 %v4267_v32  ;;  %v4876_v58 = vld [vmem:[%s6257_s3 + $0x10] sm:$0xff]  }
  0x1d   : > { %v5057_v11 = vld [vmem:[%s6256_s2] ss:$0 sm:$0xff]  ;;  %v4236_v12 = vunpack.c.l.bf16 %v4273_v8  ;;  %v4237_v13 = vunpack.c.h.bf16 %v4273_v8  ;;  %v388_v16 = vmul.f32 %v4204_v6, %v5049_v5  ;;  %v389_v17 = vmul.f32 %v4205_v7, %v5049_v5  ;;  %v4875_v43 = vld [vmem:[%s6257_s3 + $0x38] sm:$0xff]   ;;  %v4877_v63 = vld [vmem:[%s6257_s3 + $0x30] sm:$0xff]  }
  0x1e   : > { %v4873_v20 = vld [vmem:[%s6257_s3 + $0x80] sm:$0xff]   ;;  %v390_v23 = vmul.f32 %v4208_v14, %v5049_v5  ;;  %v391_v26 = vmul.f32 %v4209_v15, %v5049_v5  ;;  %v406_v27 = vmul.f32 %v4240_v18, %v5049_v5  ;;  %v407_v31 = vmul.f32 %v4241_v19, %v5049_v5  ;;  %v4268_v44 = vld [vmem:[%s5022_s13 + $0x18] sm:$0xff]  }
  0x1f   : > { %4464 = vmatpush3.bf16.msra.mxu0 %v4871_v2  ;;  %4826 = vmatpush3.bf16.msra.mxu1 %v4871_v2  ;;  %v404_v21 = vmul.f32 %v4236_v12, %v5049_v5  ;;  %v405_v22 = vmul.f32 %v4237_v13, %v5049_v5  ;;  %v427_v24 = vadd.f32 %v5057_v11, %v388_v16  ;;  %v4244_v52 = vunpack.c.l.bf16 %v4275_v37  ;;  %v4276_v53 = vld [vmem:[%s5022_s13 + $0x58] sm:$0xff]   ;;  %v4269_v9 = vld [vmem:[%s5022_s13 + $0x20] sm:$0xff]  }
  0x20   : > { %4465 = vmatprep.subr.bf16.mxu0 %v4872_v3  ;;  %4823 = vmatprep.subr.bf16.mxu1 %v4872_v3  ;;  %v428_v25 = vadd.f32 %v5057_v11, %v389_v17  ;;  %v429_v30 = vadd.f32 %v5057_v11, %v390_v23  ;;  %v430_v35 = vadd.f32 %v5057_v11, %v391_v26  ;;  %v4245_v56 = vunpack.c.h.bf16 %v4275_v37  ;;  %v4277_v15 = vld [vmem:[%s5022_s13 + $0x60] sm:$0xff]  }
  0x21   : > { %v443_v28 = vadd.f32 %v5057_v11, %v404_v21  ;;  %v444_v29 = vadd.f32 %v5057_v11, %v405_v22  ;;  %v459_v33 = vmax.f32 %v427_v24, 0.0  ;;  %v445_v36 = vadd.f32 %v5057_v11, %v406_v27  ;;  %v4879_v21 = vld [vmem:[%s6257_s3 + $0x28] sm:$0xff]  }
  0x22   : > { %v460_v34 = vmax.f32 %v428_v25, 0.0  ;;  %v461_v40 = vmax.f32 %v429_v30, 0.0  ;;  %v446_v41 = vadd.f32 %v5057_v11, %v407_v31  ;;  %v462_v46 = vmax.f32 %v430_v35, 0.0  ;;  %v4270_v30 = vld [vmem:[%s5022_s13 + $0x28] sm:$0xff]  }
  0x23   : > { %4466 = vmatpush3.bf16.msra.mxu0 %v4872_v3  ;;  %4827 = vmatpush3.bf16.msra.mxu1 %v4872_v3  ;;  %v475_v38 = vmax.f32 %v443_v28, 0.0  ;;  %v476_v39 = vmax.f32 %v444_v29, 0.0  ;;  %v477_v47 = vmax.f32 %v445_v36, 0.0  ;;  %v392_v55 = vmul.f32 %v4212_v48, %v5049_v5  ;;  %v4278_v35 = vld [vmem:[%s5022_s13 + $0x68] sm:$0xff]  }
  0x24   : > { %4467 = vmatprep.subr.bf16.mxu0 %v4873_v20  ;;  %4824 = vmatprep.subr.bf16.mxu1 %v4873_v20  ;;  %v5087_v45 = vpack.c.bf16 %v460_v34, %v459_v33  ;;  %v478_v50 = vmax.f32 %v446_v41, 0.0  ;;  %v5092_v54 = vpack.c.bf16 %v462_v46, %v461_v40  ;;  %v4216_v57 = vunpack.c.l.bf16 %v4268_v44  ;;  %v4880_v40 = vld [vmem:[%s6257_s3] sm:$0xff]  }
  0x25   : > { %v5089_v49 = vpack.c.bf16 %v476_v39, %v475_v38  ;;  %v393_v60 = vmul.f32 %v4213_v51, %v5049_v5  ;;  %v408_v61 = vmul.f32 %v4244_v52, %v5049_v5  ;;  %v4217_v62 = vunpack.c.h.bf16 %v4268_v44  ;;  %v4881_v46 = vld [vmem:[%s6257_s3 + $0x20] sm:$0xff]   ;;  %v4271_v52 = vld [vmem:[%s5022_s13 + $0x30] sm:$0xff]  }
  0x26   : > { %4469 = vmatprep.mubr.msk.bf16.mxu0 %vm540_vm1, %v5087_v45  ;;  %v5102_v59 = vpack.c.bf16 %v478_v50, %v477_v47  ;;  %v431_v0 = vadd.f32 %v5057_v11, %v392_v55  ;;  %v409_v1 = vmul.f32 %v4245_v56, %v5049_v5  ;;  %v394_v2 = vmul.f32 %v4216_v57, %v5049_v5 }
  0x27   : > { %4468 = vmatpush3.bf16.msra.mxu0 %v4873_v20  ;;  %4828 = vmatpush3.bf16.msra.mxu1 %v4873_v20  ;;  %v4248_v3 = vunpack.c.l.bf16 %v4276_v53  ;;  %v432_v4 = vadd.f32 %v5057_v11, %v393_v60  ;;  %v447_v6 = vadd.f32 %v5057_v11, %v408_v61  ;;  %v395_v7 = vmul.f32 %v4217_v62, %v5049_v5  ;;  %v4878_v20 = vld [vmem:[%s6257_s3 + $0x8] sm:$0xff]  }
  0x28   : > { %4485 = vmatprep.mubr.msk.bf16.mxu1 %vm540_vm1, %v5089_v49  ;;  %4501 = vmatprep.subr.bf16.mxu1 %v4874_v42  ;;  %v4249_v8 = vunpack.c.h.bf16 %v4276_v53  ;;  %v463_v10 = vmax.f32 %v431_v0, 0.0  ;;  %v448_v12 = vadd.f32 %v5057_v11, %v409_v1  ;;  %v433_v13 = vadd.f32 %v5057_v11, %v394_v2  ;;  %v5174_v0 = vld [vmem:[%s6257_s3 + $0x58] sm:$0xff]  }
  0x29   : > { %4541 = vmatprep.subr.bf16.mxu0 %v4875_v43  ;;  %v410_v14 = vmul.f32 %v4248_v3, %v5049_v5  ;;  %v464_v16 = vmax.f32 %v432_v4, 0.0  ;;  %v479_v17 = vmax.f32 %v447_v6, 0.0  ;;  %v434_v18 = vadd.f32 %v5057_v11, %v395_v7  ;;  %v5181_v6 = vld [vmem:[%s6257_s3 + $0x78] sm:$0xff]  }
  0x2a   : > { %4470 = vmatmul.mubr.msk.bf16.vlgmr.msra.gmra.mxu0 %vm540_vm1, %v5092_v54  ;;  %4486 = vmatmul.mubr.msk.bf16.vlgmr.msra.gmra.mxu1 %vm540_vm1, %v5102_v59  ;;  %v411_v19 = vmul.f32 %v4249_v8, %v5049_v5  ;;  %v480_v22 = vmax.f32 %v448_v12, 0.0  ;;  %v465_v23 = vmax.f32 %v433_v13, 0.0  ;;  %v4220_v25 = vunpack.c.l.bf16 %v4269_v9 }
  0x2b   : > { %4502 = vmatpush3.bf16.msra.mxu1 %v4874_v42  ;;  %4542 = vmatpush3.bf16.msra.mxu0 %v4875_v43  ;;  %v449_v24 = vadd.f32 %v5057_v11, %v410_v14  ;;  %v5133_v26 = vpack.c.bf16 %v464_v16, %v463_v10  ;;  %v466_v27 = vmax.f32 %v434_v18, 0.0  ;;  %v4221_v29 = vunpack.c.h.bf16 %v4269_v9  ;;  %v4272_v16 = vld [vmem:[%s5022_s13 + $0x38] sm:$0xff]  }
  0x2c   : > { %4503 = vmatprep.subr.bf16.mxu1 %v4876_v58  ;;  %4543 = vmatprep.subr.bf16.mxu0 %v4877_v63  ;;  %v450_v28 = vadd.f32 %v5057_v11, %v411_v19  ;;  %v5137_v31 = vpack.c.bf16 %v480_v22, %v479_v17  ;;  %v396_v33 = vmul.f32 %v4220_v25, %v5049_v5  ;;  %v4252_v34 = vunpack.c.l.bf16 %v4277_v15 }
  0x2d   : > { %v481_v32 = vmax.f32 %v449_v24, 0.0  ;;  %4473 = vmatprep.mubr.msk.bf16.mxu0 %vm540_vm1, %v5133_v26  ;;  %v5143_v36 = vpack.c.bf16 %v466_v27, %v465_v23  ;;  %v397_v38 = vmul.f32 %v4221_v29, %v5049_v5  ;;  %v4253_v39 = vunpack.c.h.bf16 %v4277_v15 }
  0x2e   : > { %v482_v37 = vmax.f32 %v450_v28, 0.0  ;;  %4489 = vmatprep.mubr.msk.bf16.mxu1 %vm540_vm1, %v5137_v31  ;;  %v435_v41 = vadd.f32 %v5057_v11, %v396_v33  ;;  %v412_v42 = vmul.f32 %v4252_v34, %v5049_v5  ;;  %v4224_v43 = vunpack.c.l.bf16 %v4270_v30 }
  0x2f   : > { %4504 = vmatpush3.bf16.msra.mxu1 %v4876_v58  ;;  %4544 = vmatpush3.bf16.msra.mxu0 %v4877_v63  ;;  %v4225_v44 = vunpack.c.h.bf16 %v4270_v30  ;;  %v436_v48 = vadd.f32 %v5057_v11, %v397_v38  ;;  %v413_v50 = vmul.f32 %v4253_v39, %v5049_v5  ;;  %v4256_v51 = vunpack.c.l.bf16 %v4278_v35  ;;  %v4279_v58 = vld [vmem:[%s5022_s13 + $0x70] sm:$0xff]  }
  0x30   : > { %4505 = vmatprep.subr.bf16.mxu1 %v4878_v20  ;;  %4545 = vmatprep.subr.bf16.mxu0 %v4879_v21  ;;  %v5158_v47 = vpack.c.bf16 %v482_v37, %v481_v32  ;;  %v467_v53 = vmax.f32 %v435_v41, 0.0  ;;  %v451_v55 = vadd.f32 %v5057_v11, %v412_v42  ;;  %v398_v56 = vmul.f32 %v4224_v43, %v5049_v5 }
  0x31   : > { %v399_v57 = vmul.f32 %v4225_v44, %v5049_v5  ;;  %v468_v60 = vmax.f32 %v436_v48, 0.0  ;;  %v452_v61 = vadd.f32 %v5057_v11, %v413_v50  ;;  %v4257_v62 = vunpack.c.h.bf16 %v4278_v35 }
  0x32   : > { %4474 = vmatmul.mubr.msk.bf16.gmra.mxu0 %vm540_vm1, %v5143_v36  ;;  %4490 = vmatmul.mubr.msk.bf16.gmra.mxu1 %vm540_vm1, %v5158_v47  ;;  %v414_v63 = vmul.f32 %v4256_v51, %v5049_v5  ;;  %v483_v1 = vmax.f32 %v451_v55, 0.0  ;;  %v437_v2 = vadd.f32 %v5057_v11, %v398_v56  ;;  %v4228_v4 = vunpack.c.l.bf16 %v4271_v52 }
  0x33   : > { %4506 = vmatpush3.bf16.msra.mxu1 %v4878_v20  ;;  %4546 = vmatpush3.bf16.msra.mxu0 %v4879_v21  ;;  %v438_v3 = vadd.f32 %v5057_v11, %v399_v57  ;;  %v5183_v7 = vpack.c.bf16 %v468_v60, %v467_v53  ;;  %v484_v8 = vmax.f32 %v452_v61, 0.0  ;;  %v415_v9 = vmul.f32 %v4257_v62, %v5049_v5  ;;  %v4280_v21 = vld [vmem:[%s5022_s13 + $0x78] sm:$0xff]  }
  0x34   : > { %4507 = vmatprep.subr.bf16.mxu1 %v4880_v40  ;;  %4547 = vmatprep.subr.bf16.mxu0 %v4881_v46  ;;  %v453_v10 = vadd.f32 %v5057_v11, %v414_v63  ;;  %v469_v12 = vmax.f32 %v437_v2, 0.0  ;;  %v4229_v14 = vunpack.c.h.bf16 %v4271_v52  ;;  %v400_v15 = vmul.f32 %v4228_v4, %v5049_v5  ;;  %v4887_v2 = vld [vmem:[%s6257_s3 + $0x68] sm:$0xff]   ;;  %v4889_v4 = vld [vmem:[%s6257_s3 + $0x60] sm:$0xff]  }
  0x35   : > { %v470_v13 = vmax.f32 %v438_v3, 0.0  ;;  %4477 = vmatprep.mubr.msk.bf16.mxu0 %vm540_vm1, %v5183_v7  ;;  %v5191_v17 = vpack.c.bf16 %v484_v8, %v483_v1  ;;  %v454_v18 = vadd.f32 %v5057_v11, %v415_v9  ;;  %v4260_v20 = vunpack.c.l.bf16 %v4279_v58  ;;  %v4884_v1 = vld [vmem:[%s6257_s3 + $0x50] sm:$0xff]   ;;  %v4886_v3 = vld [vmem:[%s6257_s3 + $0x48] sm:$0xff]   ;;  %v4890_v8 = vld [vmem:[%s6257_s3 + $0xb8] sm:$0xff]  }
  0x36   : > { %v485_v19 = vmax.f32 %v453_v10, 0.0  ;;  %v401_v23 = vmul.f32 %v4229_v14, %v5049_v5  ;;  %v439_v24 = vadd.f32 %v5057_v11, %v400_v15  ;;  %v4261_v25 = vunpack.c.h.bf16 %v4279_v58  ;;  %v4893_v9 = vld [vmem:[%s6257_s3 + $0xd0] sm:$0xff]   ;;  %v4897_v14 = vld [vmem:[%s6257_s3 + $0xc0] sm:$0xff]  }
  0x37   : > { %4508 = vmatpush3.bf16.msra.mxu1 %v4880_v40  ;;  %4548 = vmatpush3.bf16.msra.mxu0 %v4881_v46  ;;  %v5196_v22 = vpack.c.bf16 %v470_v13, %v469_v12  ;;  %v486_v27 = vmax.f32 %v454_v18, 0.0  ;;  %v416_v28 = vmul.f32 %v4260_v20, %v5049_v5  ;;  %v4232_v29 = vunpack.c.l.bf16 %v4272_v16  ;;  %v4892_v10 = vld [vmem:[%s6257_s3 + $0xb0] sm:$0xff]   ;;  %v4895_v12 = vld [vmem:[%s6257_s3 + $0xc8] sm:$0xff]   ;;  %v4896_v15 = vld [vmem:[%s6257_s3 + $0xa0] sm:$0xff]  }
  0x38   : > { %4581 = vmatprep.subr.bf16.mxu1 %v5174_v0  ;;  %4621 = vmatprep.subr.bf16.mxu0 %v5181_v6  ;;  %v4233_v30 = vunpack.c.h.bf16 %v4272_v16  ;;  %v440_v32 = vadd.f32 %v5057_v11, %v401_v23  ;;  %v471_v33 = vmax.f32 %v439_v24, 0.0  ;;  %v417_v34 = vmul.f32 %v4261_v25, %v5049_v5  ;;  %v4894_v13 = vld [vmem:[%s6257_s3 + $0xa8] sm:$0xff]   ;;  %v4899_v16 = vld [vmem:[%s6257_s3 + $0x118] sm:$0xff]   ;;  %v4900_v20 = vld [vmem:[%s6257_s3 + $0xf0] sm:$0xff]  }
  0x39   : > { %4493 = vmatprep.mubr.msk.bf16.mxu1 %vm540_vm1, %v5191_v17  ;;  %v4264_v35 = vunpack.c.l.bf16 %v4280_v21  ;;  %v5208_v37 = vpack.c.bf16 %v486_v27, %v485_v19  ;;  %v455_v38 = vadd.f32 %v5057_v11, %v416_v28  ;;  %v402_v39 = vmul.f32 %v4232_v29, %v5049_v5  ;;  %v4898_v18 = vld [vmem:[%s6257_s3 + $0xf8] sm:$0xff]   ;;  %v4901_v19 = vld [vmem:[%s6257_s3 + $0x110] sm:$0xff]   ;;  %v4902_v23 = vld [vmem:[%s6257_s3 + $0xe8] sm:$0xff]  }
  0x3a   : > { %4478 = vmatmul.mubr.msk.bf16.gmra.mxu0 %vm540_vm1, %v5196_v22  ;;  %v403_v40 = vmul.f32 %v4233_v30, %v5049_v5  ;;  %v472_v41 = vmax.f32 %v440_v32, 0.0  ;;  %v456_v42 = vadd.f32 %v5057_v11, %v417_v34  ;;  %v4265_v43 = vunpack.c.h.bf16 %v4280_v21  ;;  %v4903_v21 = vld [vmem:[%s6257_s3 + $0x108] sm:$0xff]   ;;  %v4905_v24 = vld [vmem:[%s6257_s3 + $0x100] sm:$0xff]  }
  0x3b   : > { %v418_v44 = vmul.f32 %v4264_v35, %v5049_v5  ;;  %4494 = vmatmul.mubr.msk.bf16.gmra.mxu1 %vm540_vm1, %v5208_v37  ;;  %v487_v46 = vmax.f32 %v455_v38, 0.0  ;;  %v441_v48 = vadd.f32 %v5057_v11, %v402_v39  ;;  %v4904_v25 = vld [vmem:[%s6257_s3 + $0xe0] sm:$0xff]  }
  0x3c   : > { %v442_v50 = vadd.f32 %v5057_v11, %v403_v40  ;;  %v5219_v51 = vpack.c.bf16 %v472_v41, %v471_v33  ;;  %v488_v52 = vmax.f32 %v456_v42, 0.0  ;;  %v419_v53 = vmul.f32 %v4265_v43, %v5049_v5 }
  0x3d   : > { %v457_v55 = vadd.f32 %v5057_v11, %v418_v44  ;;  %v473_v56 = vmax.f32 %v441_v48, 0.0 }
  0x3e   : > { %v474_v57 = vmax.f32 %v442_v50, 0.0  ;;  %4481 = vmatprep.mubr.msk.bf16.mxu0 %vm540_vm1, %v5219_v51  ;;  %v5225_v58 = vpack.c.bf16 %v488_v52, %v487_v46  ;;  %v458_v60 = vadd.f32 %v5057_v11, %v419_v53  ;;  %v4885_v11 = vld [vmem:[%s6257_s3 + $0x70] sm:$0xff]  }
  0x3f   : > { %v489_v61 = vmax.f32 %v457_v55, 0.0 }
  0x40   : > { %v5228_v62 = vpack.c.bf16 %v474_v57, %v473_v56  ;;  %4497 = vmatprep.mubr.msk.bf16.mxu1 %vm540_vm1, %v5225_v58  ;;  %v490_v63 = vmax.f32 %v458_v60, 0.0 }
  0x42   : > { %4482 = vmatmul.mubr.msk.bf16.gmra.mxu0 %vm540_vm1, %v5228_v62  ;;  %v5234_v5 = vpack.c.bf16 %v490_v63, %v489_v61 }
  0x43   : > { %4549 = vmatprep.mubr.msk.bf16.mxu0 %vm540_vm1, %v5087_v45 }
  0x44   : > { %4498 = vmatmul.mubr.msk.bf16.gmra.mxu1 %vm540_vm1, %v5234_v5 }
  0x45   : > { %4509 = vmatprep.mubr.msk.bf16.mxu1 %vm540_vm1, %v5087_v45 }
  0x4a   : > { %4550 = vmatmul.mubr.msk.bf16.vlgmr.msra.gmra.mxu0 %vm540_vm1, %v5092_v54 }
  0x4b   : > { %4622 = vmatpush3.bf16.msra.mxu0 %v5181_v6  ;;  %4553 = vmatprep.mubr.msk.bf16.mxu0 %vm540_vm1, %v5133_v26  ;;  %v4891_v6 = vld [vmem:[%s6257_s3 + $0xd8] sm:$0xff]  }
  0x4c   : > { %4623 = vmatprep.subr.bf16.mxu0 %v4885_v11  ;;  %4510 = vmatmul.mubr.msk.bf16.vlgmr.msra.gmra.mxu1 %vm540_vm1, %v5092_v54 }
  0x4d   : > { %4582 = vmatpush3.bf16.msra.mxu1 %v5174_v0  ;;  %4513 = vmatprep.mubr.msk.bf16.mxu1 %vm540_vm1, %v5133_v26  ;;  %v4888_v0 = vld [vmem:[%s6257_s3 + $0x40] sm:$0xff]  }
  0x4e   : > { %4583 = vmatprep.subr.bf16.mxu1 %v4884_v1 }
  0x4f   : > { %4624 = vmatpush3.bf16.msra.mxu0 %v4885_v11 }
  0x50   : > { %4625 = vmatprep.subr.bf16.mxu0 %v4887_v2 }
  0x51   : > { %4584 = vmatpush3.bf16.msra.mxu1 %v4884_v1 }
  0x52   : > { %4554 = vmatmul.mubr.msk.bf16.gmra.mxu0 %vm540_vm1, %v5143_v36  ;;  %4585 = vmatprep.subr.bf16.mxu1 %v4886_v3 }
  0x53   : > { %4557 = vmatprep.mubr.msk.bf16.mxu0 %vm540_vm1, %v5183_v7  ;;  %4626 = vmatpush3.bf16.msra.mxu0 %v4887_v2 }
  0x54   : > { %4514 = vmatmul.mubr.msk.bf16.gmra.mxu1 %vm540_vm1, %v5143_v36  ;;  %4627 = vmatprep.subr.bf16.mxu0 %v4889_v4 }
  0x55   : > { %4517 = vmatprep.mubr.msk.bf16.mxu1 %vm540_vm1, %v5183_v7  ;;  %4586 = vmatpush3.bf16.msra.mxu1 %v4886_v3 }
  0x56   : > { %4587 = vmatprep.subr.bf16.mxu1 %v4888_v0 }
  0x57   : > { %4628 = vmatpush3.bf16.msra.mxu0 %v4889_v4 }
  0x58   : > { %4701 = vmatprep.subr.bf16.mxu0 %v4891_v6 }
  0x59   : > { %4588 = vmatpush3.bf16.msra.mxu1 %v4888_v0 }
  0x5a   : > { %4558 = vmatmul.mubr.msk.bf16.gmra.mxu0 %vm540_vm1, %v5196_v22  ;;  %4661 = vmatprep.subr.bf16.mxu1 %v4890_v8 }
  0x5b   : > { %4561 = vmatprep.mubr.msk.bf16.mxu0 %vm540_vm1, %v5219_v51 }
  0x5c   : > { %4518 = vmatmul.mubr.msk.bf16.gmra.mxu1 %vm540_vm1, %v5196_v22 }
  0x5d   : > { %4521 = vmatprep.mubr.msk.bf16.mxu1 %vm540_vm1, %v5219_v51 }
  0x62   : > { %4562 = vmatmul.mubr.msk.bf16.gmra.mxu0 %vm540_vm1, %v5228_v62 }
  0x63   : > { %4565 = vmatprep.mubr.msk.bf16.mxu0 %vm540_vm1, %v5089_v49 }
  0x64   : > { %4522 = vmatmul.mubr.msk.bf16.gmra.mxu1 %vm540_vm1, %v5228_v62 }
  0x65   : > { %4525 = vmatprep.mubr.msk.bf16.mxu1 %vm540_vm1, %v5089_v49 }
  0x6a   : > { %4566 = vmatmul.mubr.msk.bf16.gmra.mxu0 %vm540_vm1, %v5102_v59 }
  0x6b   : > { %4569 = vmatprep.mubr.msk.bf16.mxu0 %vm540_vm1, %v5137_v31 }
  0x6c   : > { %4526 = vmatmul.mubr.msk.bf16.gmra.mxu1 %vm540_vm1, %v5102_v59 }
  0x6d   : > { %4529 = vmatprep.mubr.msk.bf16.mxu1 %vm540_vm1, %v5137_v31 }
  0x72   : > { %4570 = vmatmul.mubr.msk.bf16.gmra.mxu0 %vm540_vm1, %v5158_v47 }
  0x73   : > { %4573 = vmatprep.mubr.msk.bf16.mxu0 %vm540_vm1, %v5191_v17 }
  0x74   : > { %4530 = vmatmul.mubr.msk.bf16.gmra.mxu1 %vm540_vm1, %v5158_v47 }
  0x75   : > { %4533 = vmatprep.mubr.msk.bf16.mxu1 %vm540_vm1, %v5191_v17 }
  0x7a   : > { %4574 = vmatmul.mubr.msk.bf16.gmra.mxu0 %vm540_vm1, %v5208_v37 }
  0x7b   : > { %4577 = vmatprep.mubr.msk.bf16.mxu0 %vm540_vm1, %v5225_v58 }
  0x7c   : > { %4534 = vmatmul.mubr.msk.bf16.gmra.mxu1 %vm540_vm1, %v5208_v37 }
  0x7d   : > { %4537 = vmatprep.mubr.msk.bf16.mxu1 %vm540_vm1, %v5225_v58 }
  0x82   : > { %4578 = vmatmul.mubr.msk.bf16.gmra.mxu0 %vm540_vm1, %v5234_v5 }
  0x83   : > { %4629 = vmatprep.mubr.msk.bf16.mxu0 %vm540_vm1, %v5087_v45 }
  0x84   : > { %4538 = vmatmul.mubr.msk.bf16.gmra.mxu1 %vm540_vm1, %v5234_v5 }
  0x85   : > { %4589 = vmatprep.mubr.msk.bf16.mxu1 %vm540_vm1, %v5087_v45 }
  0x8a   : > { %4630 = vmatmul.mubr.msk.bf16.vlgmr.msra.gmra.mxu0 %vm540_vm1, %v5092_v54 }
  0x8b   : > { %4702 = vmatpush3.bf16.msra.mxu0 %v4891_v6  ;;  %4633 = vmatprep.mubr.msk.bf16.mxu0 %vm540_vm1, %v5133_v26 }
  0x8c   : > { %4703 = vmatprep.subr.bf16.mxu0 %v4893_v9  ;;  %4590 = vmatmul.mubr.msk.bf16.vlgmr.msra.gmra.mxu1 %vm540_vm1, %v5092_v54 }
  0x8d   : > { %4662 = vmatpush3.bf16.msra.mxu1 %v4890_v8  ;;  %4593 = vmatprep.mubr.msk.bf16.mxu1 %vm540_vm1, %v5133_v26 }
  0x8e   : > { %4663 = vmatprep.subr.bf16.mxu1 %v4892_v10 }
  0x8f   : > { %4704 = vmatpush3.bf16.msra.mxu0 %v4893_v9 }
  0x90   : > { %4705 = vmatprep.subr.bf16.mxu0 %v4895_v12 }
  0x91   : > { %4664 = vmatpush3.bf16.msra.mxu1 %v4892_v10 }
  0x92   : > { %4634 = vmatmul.mubr.msk.bf16.gmra.mxu0 %vm540_vm1, %v5143_v36  ;;  %4665 = vmatprep.subr.bf16.mxu1 %v4894_v13 }
  0x93   : > { %4637 = vmatprep.mubr.msk.bf16.mxu0 %vm540_vm1, %v5183_v7  ;;  %4706 = vmatpush3.bf16.msra.mxu0 %v4895_v12 }
  0x94   : > { %4594 = vmatmul.mubr.msk.bf16.gmra.mxu1 %vm540_vm1, %v5143_v36  ;;  %4707 = vmatprep.subr.bf16.mxu0 %v4897_v14 }
  0x95   : > { %4597 = vmatprep.mubr.msk.bf16.mxu1 %vm540_vm1, %v5183_v7  ;;  %4666 = vmatpush3.bf16.msra.mxu1 %v4894_v13 }
  0x96   : > { %4667 = vmatprep.subr.bf16.mxu1 %v4896_v15 }
  0x97   : > { %4708 = vmatpush3.bf16.msra.mxu0 %v4897_v14 }
  0x98   : > { %4781 = vmatprep.subr.bf16.mxu0 %v4899_v16 }
  0x99   : > { %4668 = vmatpush3.bf16.msra.mxu1 %v4896_v15 }
  0x9a   : > { %4638 = vmatmul.mubr.msk.bf16.gmra.mxu0 %vm540_vm1, %v5196_v22  ;;  %4741 = vmatprep.subr.bf16.mxu1 %v4898_v18 }
  0x9b   : > { %4641 = vmatprep.mubr.msk.bf16.mxu0 %vm540_vm1, %v5219_v51 }
  0x9c   : > { %4598 = vmatmul.mubr.msk.bf16.gmra.mxu1 %vm540_vm1, %v5196_v22 }
  0x9d   : > { %4601 = vmatprep.mubr.msk.bf16.mxu1 %vm540_vm1, %v5219_v51 }
  0xa2   : > { %4642 = vmatmul.mubr.msk.bf16.gmra.mxu0 %vm540_vm1, %v5228_v62 }
  0xa3   : > { %4645 = vmatprep.mubr.msk.bf16.mxu0 %vm540_vm1, %v5089_v49 }
  0xa4   : > { %4602 = vmatmul.mubr.msk.bf16.gmra.mxu1 %vm540_vm1, %v5228_v62 }
  0xa5   : > { %4605 = vmatprep.mubr.msk.bf16.mxu1 %vm540_vm1, %v5089_v49 }
  0xaa   : > { %4646 = vmatmul.mubr.msk.bf16.gmra.mxu0 %vm540_vm1, %v5102_v59 }
  0xab   : > { %4649 = vmatprep.mubr.msk.bf16.mxu0 %vm540_vm1, %v5137_v31 }
  0xac   : > { %4606 = vmatmul.mubr.msk.bf16.gmra.mxu1 %vm540_vm1, %v5102_v59 }
  0xad   : > { %4609 = vmatprep.mubr.msk.bf16.mxu1 %vm540_vm1, %v5137_v31 }
  0xb2   : > { %4650 = vmatmul.mubr.msk.bf16.gmra.mxu0 %vm540_vm1, %v5158_v47 }
  0xb3   : > { %4653 = vmatprep.mubr.msk.bf16.mxu0 %vm540_vm1, %v5191_v17 }
  0xb4   : > { %4610 = vmatmul.mubr.msk.bf16.gmra.mxu1 %vm540_vm1, %v5158_v47 }
  0xb5   : > { %4613 = vmatprep.mubr.msk.bf16.mxu1 %vm540_vm1, %v5191_v17 }
  0xba   : > { %4654 = vmatmul.mubr.msk.bf16.gmra.mxu0 %vm540_vm1, %v5208_v37 }
  0xbb   : > { %4657 = vmatprep.mubr.msk.bf16.mxu0 %vm540_vm1, %v5225_v58 }
  0xbc   : > { %4614 = vmatmul.mubr.msk.bf16.gmra.mxu1 %vm540_vm1, %v5208_v37 }
  0xbd   : > { %4617 = vmatprep.mubr.msk.bf16.mxu1 %vm540_vm1, %v5225_v58 }
  0xc2   : > { %4658 = vmatmul.mubr.msk.bf16.gmra.mxu0 %vm540_vm1, %v5234_v5 }
  0xc3   : > { %4709 = vmatprep.mubr.msk.bf16.mxu0 %vm540_vm1, %v5087_v45 }
  0xc4   : > { %4618 = vmatmul.mubr.msk.bf16.gmra.mxu1 %vm540_vm1, %v5234_v5 }
  0xc5   : > { %4669 = vmatprep.mubr.msk.bf16.mxu1 %vm540_vm1, %v5087_v45 }
  0xca   : > { %4710 = vmatmul.mubr.msk.bf16.vlgmr.msra.gmra.mxu0 %vm540_vm1, %v5092_v54 }
  0xcb   : > { %4782 = vmatpush3.bf16.msra.mxu0 %v4899_v16  ;;  %4713 = vmatprep.mubr.msk.bf16.mxu0 %vm540_vm1, %v5133_v26 }
  0xcc   : > { %4783 = vmatprep.subr.bf16.mxu0 %v4901_v19  ;;  %4670 = vmatmul.mubr.msk.bf16.vlgmr.msra.gmra.mxu1 %vm540_vm1, %v5092_v54 }
  0xcd   : > { %4742 = vmatpush3.bf16.msra.mxu1 %v4898_v18  ;;  %4673 = vmatprep.mubr.msk.bf16.mxu1 %vm540_vm1, %v5133_v26 }
  0xce   : > { %4743 = vmatprep.subr.bf16.mxu1 %v4900_v20 }
  0xcf   : > { %4784 = vmatpush3.bf16.msra.mxu0 %v4901_v19 }
  0xd0   : > { %4785 = vmatprep.subr.bf16.mxu0 %v4903_v21 }
  0xd1   : > { %4744 = vmatpush3.bf16.msra.mxu1 %v4900_v20 }
  0xd2   : > { %4714 = vmatmul.mubr.msk.bf16.gmra.mxu0 %vm540_vm1, %v5143_v36  ;;  %4745 = vmatprep.subr.bf16.mxu1 %v4902_v23 }
  0xd3   : > { %4717 = vmatprep.mubr.msk.bf16.mxu0 %vm540_vm1, %v5183_v7  ;;  %4786 = vmatpush3.bf16.msra.mxu0 %v4903_v21 }
  0xd4   : > { %4674 = vmatmul.mubr.msk.bf16.gmra.mxu1 %vm540_vm1, %v5143_v36  ;;  %4787 = vmatprep.subr.bf16.mxu0 %v4905_v24 }
  0xd5   : > { %4677 = vmatprep.mubr.msk.bf16.mxu1 %vm540_vm1, %v5183_v7  ;;  %4746 = vmatpush3.bf16.msra.mxu1 %v4902_v23 }
  0xd6   : > { %4747 = vmatprep.subr.bf16.mxu1 %v4904_v25 }
  0xd7   : > { %4788 = vmatpush3.bf16.msra.mxu0 %v4905_v24 }
  0xd9   : > { %4748 = vmatpush3.bf16.msra.mxu1 %v4904_v25 }
  0xda   : > { %4718 = vmatmul.mubr.msk.bf16.gmra.mxu0 %vm540_vm1, %v5196_v22 }
  0xdb   : > { %4721 = vmatprep.mubr.msk.bf16.mxu0 %vm540_vm1, %v5219_v51 }
  0xdc   : > { %4678 = vmatmul.mubr.msk.bf16.gmra.mxu1 %vm540_vm1, %v5196_v22 }
  0xdd   : > { %4681 = vmatprep.mubr.msk.bf16.mxu1 %vm540_vm1, %v5219_v51 }
  0xe2   : > { %4722 = vmatmul.mubr.msk.bf16.gmra.mxu0 %vm540_vm1, %v5228_v62 }
  0xe3   : > { %4725 = vmatprep.mubr.msk.bf16.mxu0 %vm540_vm1, %v5089_v49 }
  0xe4   : > { %4682 = vmatmul.mubr.msk.bf16.gmra.mxu1 %vm540_vm1, %v5228_v62 }
  0xe5   : > { %4685 = vmatprep.mubr.msk.bf16.mxu1 %vm540_vm1, %v5089_v49 }
  0xea   : > { %v4471_v27 = vpop.f32.mrf.mxu0  ;;  %v4487_v28 = vpop.f32.mrf.mxu1  ;;  %4726 = vmatmul.mubr.msk.bf16.gmra.mxu0 %vm540_vm1, %v5102_v59 }
  0xeb   : > { %752 = vst.msk [vmem:[#allocation2 + $0x10] sm:$0xff] %vm540_vm1, %v4471_v27  ;;  %768 = vst.msk [vmem:[#allocation2 + $0x90] sm:$0xff] %vm540_vm1, %v4487_v28  ;;  %4729 = vmatprep.mubr.msk.bf16.mxu0 %vm540_vm1, %v5137_v31 }
  0xec   : > { %v623_v29 = vpop.f32.mrf.mxu0  ;;  %v687_v30 = vpop.f32.mrf.mxu1  ;;  %4686 = vmatmul.mubr.msk.bf16.gmra.mxu1 %vm540_vm1, %v5102_v59 }
  0xed   : > { %750 = vst.msk [vmem:[#allocation2] sm:$0xff] %vm540_vm1, %v623_v29  ;;  %766 = vst.msk [vmem:[#allocation2 + $0x80] sm:$0xff] %vm540_vm1, %v687_v30  ;;  %4689 = vmatprep.mubr.msk.bf16.mxu1 %vm540_vm1, %v5137_v31 }
  0xee   : > { %v4472_v32 = vpop.f32.mrf.mxu0  ;;  %v4488_v33 = vpop.f32.mrf.mxu1 }
  0xef   : > { %753 = vst.msk [vmem:[#allocation2 + $0x18] sm:$0xff] %vm540_vm1, %v4472_v32  ;;  %769 = vst.msk [vmem:[#allocation2 + $0x98] sm:$0xff] %vm540_vm1, %v4488_v33 }
  0xf0   : > { %v626_v34 = vpop.f32.mrf.mxu0  ;;  %v690_v35 = vpop.f32.mrf.mxu1 }
  0xf1   : > { %751 = vst.msk [vmem:[#allocation2 + $0x8] sm:$0xff] %vm540_vm1, %v626_v34  ;;  %767 = vst.msk [vmem:[#allocation2 + $0x88] sm:$0xff] %vm540_vm1, %v690_v35 }
  0xf2   : > { %v4475_v38 = vpop.f32.mrf.mxu0  ;;  %v4491_v39 = vpop.f32.mrf.mxu1  ;;  %4730 = vmatmul.mubr.msk.bf16.gmra.mxu0 %vm540_vm1, %v5158_v47 }
  0xf3   : > { %756 = vst.msk [vmem:[#allocation2 + $0x30] sm:$0xff] %vm540_vm1, %v4475_v38  ;;  %772 = vst.msk [vmem:[#allocation2 + $0xb0] sm:$0xff] %vm540_vm1, %v4491_v39  ;;  %4733 = vmatprep.mubr.msk.bf16.mxu0 %vm540_vm1, %v5191_v17 }
  0xf4   : > { %v639_v40 = vpop.f32.mrf.mxu0  ;;  %v703_v41 = vpop.f32.mrf.mxu1  ;;  %4690 = vmatmul.mubr.msk.bf16.gmra.mxu1 %vm540_vm1, %v5158_v47 }
  0xf5   : > { %754 = vst.msk [vmem:[#allocation2 + $0x20] sm:$0xff] %vm540_vm1, %v639_v40  ;;  %770 = vst.msk [vmem:[#allocation2 + $0xa0] sm:$0xff] %vm540_vm1, %v703_v41  ;;  %4693 = vmatprep.mubr.msk.bf16.mxu1 %vm540_vm1, %v5191_v17 }
  0xf6   : > { %v4476_v42 = vpop.f32.mrf.mxu0  ;;  %v4492_v43 = vpop.f32.mrf.mxu1  ;;  %v974_v14 = vld [vmem:[#allocation2 + $0x11] sm:$0xff]  ;;  %v975_v23 = vld [vmem:[#allocation2 + $0x19] sm:$0x7f] }
  0xf7   : > { %757 = vst.msk [vmem:[#allocation2 + $0x38] sm:$0xff] %vm540_vm1, %v4476_v42  ;;  %773 = vst.msk [vmem:[#allocation2 + $0xb8] sm:$0xff] %vm540_vm1, %v4492_v43 }
  0xf8   : > { %v642_v44 = vpop.f32.mrf.mxu0  ;;  %v706_v46 = vpop.f32.mrf.mxu1 }
  0xf9   : > { %755 = vst.msk [vmem:[#allocation2 + $0x28] sm:$0xff] %vm540_vm1, %v642_v44  ;;  %771 = vst.msk [vmem:[#allocation2 + $0xa8] sm:$0xff] %vm540_vm1, %v706_v46 }
  0xfa   : > { %v4479_v48 = vpop.f32.mrf.mxu0  ;;  %4734 = vmatmul.mubr.msk.bf16.gmra.mxu0 %vm540_vm1, %v5208_v37 }
  0xfb   : > { %760 = vst.msk [vmem:[#allocation2 + $0x50] sm:$0xff] %vm540_vm1, %v4479_v48  ;;  %4737 = vmatprep.mubr.msk.bf16.mxu0 %vm540_vm1, %v5225_v58  ;;  %v4495_v52 = vpop.f32.mrf.mxu1 }
  0xfc   : > { %v655_v50 = vpop.f32.mrf.mxu0  ;;  %776 = vst.msk [vmem:[#allocation2 + $0xd0] sm:$0xff] %vm540_vm1, %v4495_v52  ;;  %4694 = vmatmul.mubr.msk.bf16.gmra.mxu1 %vm540_vm1, %v5208_v37 }
  0xfd   : > { %758 = vst.msk [vmem:[#allocation2 + $0x40] sm:$0xff] %vm540_vm1, %v655_v50  ;;  %v719_v55 = vpop.f32.mrf.mxu1  ;;  %4697 = vmatprep.mubr.msk.bf16.mxu1 %vm540_vm1, %v5225_v58 }
  0xfe   : > { %v4480_v53 = vpop.f32.mrf.mxu0  ;;  %774 = vst.msk [vmem:[#allocation2 + $0xc0] sm:$0xff] %vm540_vm1, %v719_v55  ;;  %v978_v33 = vld [vmem:[#allocation2 + $0x31] sm:$0xff]  ;;  %v979_v46 = vld [vmem:[#allocation2 + $0x39] sm:$0x7f] }
  0xff   : > { %761 = vst.msk [vmem:[#allocation2 + $0x58] sm:$0xff] %vm540_vm1, %v4480_v53  ;;  %v4496_v57 = vpop.f32.mrf.mxu1 }
 0x100   : > { %v658_v56 = vpop.f32.mrf.mxu0  ;;  %777 = vst.msk [vmem:[#allocation2 + $0xd8] sm:$0xff] %vm540_vm1, %v4496_v57  ;;  %v976_v9 = vld [vmem:[#allocation2 + $0x21] sm:$0xff]  ;;  %v977_v19 = vld [vmem:[#allocation2 + $0x29] sm:$0x7f] }
 0x101   : > { %759 = vst.msk [vmem:[#allocation2 + $0x48] sm:$0xff] %vm540_vm1, %v658_v56  ;;  %v722_v60 = vpop.f32.mrf.mxu1 }
 0x102   : > { %v4483_v61 = vpop.f32.mrf.mxu0  ;;  %4738 = vmatmul.mubr.msk.bf16.gmra.mxu0 %vm540_vm1, %v5234_v5  ;;  %775 = vst.msk [vmem:[#allocation2 + $0xc8] sm:$0xff] %vm540_vm1, %v722_v60 }
 0x103   : > { %764 = vst.msk [vmem:[#allocation2 + $0x70] sm:$0xff] %vm540_vm1, %v4483_v61  ;;  %4789 = vmatprep.mubr.msk.bf16.mxu0 %vm540_vm1, %v5087_v45 }
 0x104   : > { %v671_v63 = vpop.f32.mrf.mxu0  ;;  %v4499_v11 = vpop.f32.mrf.mxu1  ;;  %4698 = vmatmul.mubr.msk.bf16.gmra.mxu1 %vm540_vm1, %v5234_v5 }
 0x105   : > { %762 = vst.msk [vmem:[#allocation2 + $0x60] sm:$0xff] %vm540_vm1, %v671_v63  ;;  %780 = vst.msk [vmem:[#allocation2 + $0xf0] sm:$0xff] %vm540_vm1, %v4499_v11  ;;  %4749 = vmatprep.mubr.msk.bf16.mxu1 %vm540_vm1, %v5087_v45 }
 0x106   : > { %v4484_v1 = vpop.f32.mrf.mxu0  ;;  %v735_v2 = vpop.f32.mrf.mxu1 }
 0x107   : > { %765 = vst.msk [vmem:[#allocation2 + $0x78] sm:$0xff] %vm540_vm1, %v4484_v1  ;;  %778 = vst.msk [vmem:[#allocation2 + $0xe0] sm:$0xff] %vm540_vm1, %v735_v2  ;;  %v982_v1 = vld [vmem:[#allocation2 + $0x51] sm:$0xff] }
 0x108   : > { %v674_v3 = vpop.f32.mrf.mxu0  ;;  %v4500_v4 = vpop.f32.mrf.mxu1  ;;  %v980_v27 = vld [vmem:[#allocation2 + $0x41] sm:$0xff]  ;;  %v981_v41 = vld [vmem:[#allocation2 + $0x49] sm:$0x7f] }
 0x109   : > { %763 = vst.msk [vmem:[#allocation2 + $0x68] sm:$0xff] %vm540_vm1, %v674_v3  ;;  %781 = vst.msk [vmem:[#allocation2 + $0xf8] sm:$0xff] %vm540_vm1, %v4500_v4 }
 0x10a   : > { %v4551_v0 = vpop.f32.mrf.mxu0  ;;  %4790 = vmatmul.mubr.msk.bf16.vlgmr.msra.gmra.mxu0 %vm540_vm1, %v5092_v54  ;;  %v738_v6 = vpop.f32.mrf.mxu1 }
 0x10b   : > { %4793 = vmatprep.mubr.msk.bf16.mxu0 %vm540_vm1, %v5133_v26  ;;  %779 = vst.msk [vmem:[#allocation2 + $0xe8] sm:$0xff] %vm540_vm1, %v738_v6 }
 0x10c   : > { %v1132_v45 = vpop.f32.mrf.mxu0  ;;  %v4511_v8 = vpop.f32.mrf.mxu1  ;;  %4750 = vmatmul.mubr.msk.bf16.vlgmr.msra.gmra.mxu1 %vm540_vm1, %v5092_v54 }
 0x10d   : > { %v1006_v10 = vadd.f32 %v4511_v8, %v976_v9  ;;  %4753 = vmatprep.mubr.msk.bf16.mxu1 %vm540_vm1, %v5133_v26 }
 0x10e   : > { %v4552_v12 = vpop.f32.mrf.mxu0  ;;  %v848_v13 = vpop.f32.mrf.mxu1 }
 0x10f   : > { %1037 = vst.msk [vmem:[#allocation2 + $0x21] sm:$0xff] %vm540_vm1, %v1006_v10  ;;  %v1004_v15 = vadd.f32 %v974_v14, %v848_v13 }
 0x110   : > { %v1135_v16 = vpop.f32.mrf.mxu0  ;;  %v4512_v18 = vpop.f32.mrf.mxu1  ;;  %v984_v56 = vld [vmem:[#allocation2 + $0x61] sm:$0xff]  ;;  %v985_v6 = vld [vmem:[#allocation2 + $0x69] sm:$0x7f] }
 0x111   : > { %1034 = vst.msk [vmem:[#allocation2 + $0x11] sm:$0xff] %vm540_vm1, %v1004_v15  ;;  %v1007_v20 = vadd.f32 %v4512_v18, %v977_v19  ;;  %v988_v19 = vld [vmem:[#allocation2 + $0x81] sm:$0xff] }
 0x112   : > { %v4555_v21 = vpop.f32.mrf.mxu0  ;;  %4794 = vmatmul.mubr.msk.bf16.gmra.mxu0 %vm540_vm1, %v5143_v36  ;;  %v851_v54 = vpop.f32.mrf.mxu1 }
 0x113   : > { %4797 = vmatprep.mubr.msk.bf16.mxu0 %vm540_vm1, %v5183_v7  ;;  %1038 = vst.msk [vmem:[#allocation2 + $0x29] sm:$0x7f] %vm1035_vm2, %v1007_v20  ;;  %v1005_v26 = vadd.f32 %v975_v23, %v851_v54 }
 0x114   : > { %v1148_v24 = vpop.f32.mrf.mxu0  ;;  %v4515_v25 = vpop.f32.mrf.mxu1  ;;  %4754 = vmatmul.mubr.msk.bf16.gmra.mxu1 %vm540_vm1, %v5143_v36 }
 0x115   : > { %1036 = vst.msk [vmem:[#allocation2 + $0x19] sm:$0x7f] %vm1035_vm2, %v1005_v26  ;;  %v1010_v28 = vadd.f32 %v4515_v25, %v980_v27  ;;  %4757 = vmatprep.mubr.msk.bf16.mxu1 %vm540_vm1, %v5183_v7 }
 0x116   : > { %v4556_v29 = vpop.f32.mrf.mxu0  ;;  %v1259_v30 = vld [vmem:[#allocation2 + $0x20] sm:$0xff]  ;;  %v864_v32 = vpop.f32.mrf.mxu1 }
 0x117   : > { %v1289_v34 = vadd.f32 %v4551_v0, %v1259_v30  ;;  %1041 = vst.msk [vmem:[#allocation2 + $0x41] sm:$0xff] %vm540_vm1, %v1010_v28  ;;  %v1008_v35 = vadd.f32 %v978_v33, %v864_v32  ;;  %v989_v30 = vld [vmem:[#allocation2 + $0x89] sm:$0x7f] }
 0x118   : > { %v1151_v38 = vpop.f32.mrf.mxu0  ;;  %v1257_v39 = vld [vmem:[#allocation2 + $0x10] sm:$0xff]  ;;  %v4516_v40 = vpop.f32.mrf.mxu1 }
 0x119   : > { %1319 = vst.msk [vmem:[#allocation2 + $0x20] sm:$0xff] %vm540_vm1, %v1289_v34  ;;  %v1287_v36 = vadd.f32 %v1257_v39, %v1132_v45  ;;  %1039 = vst.msk [vmem:[#allocation2 + $0x31] sm:$0xff] %vm540_vm1, %v1008_v35  ;;  %v1011_v42 = vadd.f32 %v4516_v40, %v981_v41 }
 0x11a   : > { %v4559_v43 = vpop.f32.mrf.mxu0  ;;  %4798 = vmatmul.mubr.msk.bf16.gmra.mxu0 %vm540_vm1, %v5196_v22  ;;  %v1260_v7 = vld [vmem:[#allocation2 + $0x28] sm:$0xff]  ;;  %v867_v44 = vpop.f32.mrf.mxu1 }
 0x11b   : > { %4801 = vmatprep.mubr.msk.bf16.mxu0 %vm540_vm1, %v5219_v51  ;;  %1317 = vst.msk [vmem:[#allocation2 + $0x10] sm:$0xff] %vm540_vm1, %v1287_v36  ;;  %v1290_v48 = vadd.f32 %v4552_v12, %v1260_v7  ;;  %v1009_v50 = vadd.f32 %v979_v46, %v867_v44  ;;  %v983_v12 = vld [vmem:[#allocation2 + $0x59] sm:$0x7f] }
 0x11c   : > { %1042 = vst.msk [vmem:[#allocation2 + $0x49] sm:$0x7f] %vm1035_vm2, %v1011_v42  ;;  %v1164_v52 = vpop.f32.mrf.mxu0  ;;  %v1258_v53 = vld [vmem:[#allocation2 + $0x18] sm:$0xff]  ;;  %v4519_v55 = vpop.f32.mrf.mxu1  ;;  %4758 = vmatmul.mubr.msk.bf16.gmra.mxu1 %vm540_vm1, %v5196_v22 }
 0x11d   : > { %1320 = vst.msk [vmem:[#allocation2 + $0x28] sm:$0xff] %vm540_vm1, %v1290_v48  ;;  %v1288_v57 = vadd.f32 %v1258_v53, %v1135_v16  ;;  %v1014_v60 = vadd.f32 %v4519_v55, %v984_v56  ;;  %4761 = vmatprep.mubr.msk.bf16.mxu1 %vm540_vm1, %v5219_v51 }
 0x11e   : > { %1040 = vst.msk [vmem:[#allocation2 + $0x39] sm:$0x7f] %vm1035_vm2, %v1009_v50  ;;  %v4560_v61 = vpop.f32.mrf.mxu0  ;;  %v1263_v63 = vld [vmem:[#allocation2 + $0x40] sm:$0xff]  ;;  %v880_v11 = vpop.f32.mrf.mxu1 }
 0x11f   : > { %1318 = vst.msk [vmem:[#allocation2 + $0x18] sm:$0xff] %vm540_vm1, %v1288_v57  ;;  %v1293_v2 = vadd.f32 %v4555_v21, %v1263_v63  ;;  %1045 = vst.msk [vmem:[#allocation2 + $0x61] sm:$0xff] %vm540_vm1, %v1014_v60  ;;  %v1012_v3 = vadd.f32 %v982_v1, %v880_v11  ;;  %v993_v60 = vld [vmem:[#allocation2 + $0xa9] sm:$0x7f] }
 0x120   : > { %v1167_v22 = vpop.f32.mrf.mxu0  ;;  %v1261_v4 = vld [vmem:[#allocation2 + $0x30] sm:$0xff]  ;;  %v4520_v0 = vpop.f32.mrf.mxu1 }
 0x121   : > { %1323 = vst.msk [vmem:[#allocation2 + $0x40] sm:$0xff] %vm540_vm1, %v1293_v2  ;;  %v1291_v45 = vadd.f32 %v1261_v4, %v1148_v24  ;;  %1043 = vst.msk [vmem:[#allocation2 + $0x51] sm:$0xff] %vm540_vm1, %v1012_v3  ;;  %v1015_v8 = vadd.f32 %v4520_v0, %v985_v6  ;;  %v986_v24 = vld [vmem:[#allocation2 + $0x71] sm:$0xff]  ;;  %v991_v2 = vld [vmem:[#allocation2 + $0x99] sm:$0x7f] }
 0x122   : > { %v4563_v51 = vpop.f32.mrf.mxu0  ;;  %4802 = vmatmul.mubr.msk.bf16.gmra.mxu0 %vm540_vm1, %v5228_v62  ;;  %v883_v10 = vpop.f32.mrf.mxu1 }
 0x123   : > { %v1264_v9 = vld [vmem:[#allocation2 + $0x48] sm:$0xff]  ;;  %4805 = vmatprep.mubr.msk.bf16.mxu0 %vm540_vm1, %v5089_v49  ;;  %1321 = vst.msk [vmem:[#allocation2 + $0x30] sm:$0xff] %vm540_vm1, %v1291_v45  ;;  %v1013_v14 = vadd.f32 %v983_v12, %v883_v10 }
 0x124   : > { %v1294_v13 = vadd.f32 %v4556_v29, %v1264_v9  ;;  %1046 = vst.msk [vmem:[#allocation2 + $0x69] sm:$0x7f] %vm1035_vm2, %v1015_v8  ;;  %v1180_v15 = vpop.f32.mrf.mxu0  ;;  %v4523_v18 = vpop.f32.mrf.mxu1  ;;  %4762 = vmatmul.mubr.msk.bf16.gmra.mxu1 %vm540_vm1, %v5228_v62  ;;  %v996_v45 = vld [vmem:[#allocation2 + $0xc1] sm:$0xff] }
 0x125   : > { %v1262_v16 = vld [vmem:[#allocation2 + $0x38] sm:$0xff]  ;;  %1044 = vst.msk [vmem:[#allocation2 + $0x59] sm:$0x7f] %vm1035_vm2, %v1013_v14  ;;  %v1018_v21 = vadd.f32 %v4523_v18, %v988_v19  ;;  %4765 = vmatprep.mubr.msk.bf16.mxu1 %vm540_vm1, %v5089_v49  ;;  %v997_v19 = vld [vmem:[#allocation2 + $0xc9] sm:$0x7f] }
 0x126   : > { %1324 = vst.msk [vmem:[#allocation2 + $0x48] sm:$0xff] %vm540_vm1, %v1294_v13  ;;  %v1292_v20 = vadd.f32 %v1262_v16, %v1151_v38  ;;  %v4564_v54 = vpop.f32.mrf.mxu0  ;;  %v1267_v23 = vld [vmem:[#allocation2 + $0x60] sm:$0xff]  ;;  %v896_v26 = vpop.f32.mrf.mxu1  ;;  %v987_v38 = vld [vmem:[#allocation2 + $0x79] sm:$0x7f]  ;;  %v994_v13 = vld [vmem:[#allocation2 + $0xb1] sm:$0xff] }
 0x127   : > { %v1297_v25 = vadd.f32 %v4559_v43, %v1267_v23  ;;  %1049 = vst.msk [vmem:[#allocation2 + $0x81] sm:$0xff] %vm540_vm1, %v1018_v21  ;;  %v1016_v27 = vadd.f32 %v986_v24, %v896_v26  ;;  %v992_v43 = vld [vmem:[#allocation2 + $0xa1] sm:$0xff]  ;;  %v995_v26 = vld [vmem:[#allocation2 + $0xb9] sm:$0x7f] }
 0x128   : > { %1322 = vst.msk [vmem:[#allocation2 + $0x38] sm:$0xff] %vm540_vm1, %v1292_v20  ;;  %v1183_v62 = vpop.f32.mrf.mxu0  ;;  %v1265_v28 = vld [vmem:[#allocation2 + $0x50] sm:$0xff]  ;;  %v4524_v29 = vpop.f32.mrf.mxu1 }
 0x129   : > { %1327 = vst.msk [vmem:[#allocation2 + $0x60] sm:$0xff] %vm540_vm1, %v1297_v25  ;;  %v1295_v32 = vadd.f32 %v1265_v28, %v1164_v52  ;;  %1047 = vst.msk [vmem:[#allocation2 + $0x71] sm:$0xff] %vm540_vm1, %v1016_v27  ;;  %v1019_v33 = vadd.f32 %v4524_v29, %v989_v30  ;;  %v990_v52 = vld [vmem:[#allocation2 + $0x91] sm:$0xff]  ;;  %v1000_v29 = vld [vmem:[#allocation2 + $0xe1] sm:$0xff] }
 0x12a   : > { %v4567_v49 = vpop.f32.mrf.mxu0  ;;  %4806 = vmatmul.mubr.msk.bf16.gmra.mxu0 %vm540_vm1, %v5102_v59  ;;  %v899_v35 = vpop.f32.mrf.mxu1 }
 0x12b   : > { %v1268_v34 = vld [vmem:[#allocation2 + $0x68] sm:$0xff]  ;;  %4809 = vmatprep.mubr.msk.bf16.mxu0 %vm540_vm1, %v5137_v31  ;;  %1325 = vst.msk [vmem:[#allocation2 + $0x50] sm:$0xff] %vm540_vm1, %v1295_v32  ;;  %v1017_v40 = vadd.f32 %v987_v38, %v899_v35  ;;  %v998_v35 = vld [vmem:[#allocation2 + $0xd1] sm:$0xff] }
 0x12c   : > { %v1298_v39 = vadd.f32 %v4560_v61, %v1268_v34  ;;  %1050 = vst.msk [vmem:[#allocation2 + $0x89] sm:$0x7f] %vm1035_vm2, %v1019_v33  ;;  %v1196_v41 = vpop.f32.mrf.mxu0  ;;  %v1266_v36 = vld [vmem:[#allocation2 + $0x58] sm:$0xff]  ;;  %v4527_v42 = vpop.f32.mrf.mxu1  ;;  %4766 = vmatmul.mubr.msk.bf16.gmra.mxu1 %vm540_vm1, %v5102_v59 }
 0x12d   : > { %v1296_v7 = vadd.f32 %v1266_v36, %v1167_v22  ;;  %1048 = vst.msk [vmem:[#allocation2 + $0x79] sm:$0x7f] %vm1035_vm2, %v1017_v40  ;;  %v1022_v44 = vadd.f32 %v4527_v42, %v992_v43  ;;  %4769 = vmatprep.mubr.msk.bf16.mxu1 %vm540_vm1, %v5137_v31  ;;  %v1001_v36 = vld [vmem:[#allocation2 + $0xe9] sm:$0x7f] }
 0x12e   : > { %1328 = vst.msk [vmem:[#allocation2 + $0x68] sm:$0xff] %vm540_vm1, %v1298_v39  ;;  %v4568_v46 = vpop.f32.mrf.mxu0  ;;  %v1271_v48 = vld [vmem:[#allocation2 + $0x80] sm:$0xff]  ;;  %v912_v50 = vpop.f32.mrf.mxu1 }
 0x12f   : > { %1326 = vst.msk [vmem:[#allocation2 + $0x58] sm:$0xff] %vm540_vm1, %v1296_v7  ;;  %v1301_v53 = vadd.f32 %v4563_v51, %v1271_v48  ;;  %1053 = vst.msk [vmem:[#allocation2 + $0xa1] sm:$0xff] %vm540_vm1, %v1022_v44  ;;  %v1020_v55 = vadd.f32 %v990_v52, %v912_v50 }
 0x130   : > { %v1199_v59 = vpop.f32.mrf.mxu0  ;;  %v1269_v56 = vld [vmem:[#allocation2 + $0x70] sm:$0xff]  ;;  %v4528_v57 = vpop.f32.mrf.mxu1 }
 0x131   : > { %1331 = vst.msk [vmem:[#allocation2 + $0x80] sm:$0xff] %vm540_vm1, %v1301_v53  ;;  %v1299_v61 = vadd.f32 %v1269_v56, %v1180_v15  ;;  %1051 = vst.msk [vmem:[#allocation2 + $0x91] sm:$0xff] %vm540_vm1, %v1020_v55  ;;  %v1023_v63 = vadd.f32 %v4528_v57, %v993_v60 }
 0x132   : > { %v4571_v31 = vpop.f32.mrf.mxu0  ;;  %4810 = vmatmul.mubr.msk.bf16.gmra.mxu0 %vm540_vm1, %v5158_v47  ;;  %v915_v1 = vpop.f32.mrf.mxu1 }
 0x133   : > { %v1272_v11 = vld [vmem:[#allocation2 + $0x88] sm:$0xff]  ;;  %4813 = vmatprep.mubr.msk.bf16.mxu0 %vm540_vm1, %v5191_v17  ;;  %1329 = vst.msk [vmem:[#allocation2 + $0x70] sm:$0xff] %vm540_vm1, %v1299_v61  ;;  %v1021_v22 = vadd.f32 %v991_v2, %v915_v1  ;;  %v1002_v61 = vld [vmem:[#allocation2 + $0xf1] sm:$0xff] }
 0x134   : > { %v1302_v3 = vadd.f32 %v4564_v54, %v1272_v11  ;;  %1054 = vst.msk [vmem:[#allocation2 + $0xa9] sm:$0x7f] %vm1035_vm2, %v1023_v63  ;;  %v1212_v4 = vpop.f32.mrf.mxu0  ;;  %v1270_v0 = vld [vmem:[#allocation2 + $0x78] sm:$0xff]  ;;  %v4531_v6 = vpop.f32.mrf.mxu1  ;;  %4770 = vmatmul.mubr.msk.bf16.gmra.mxu1 %vm540_vm1, %v5158_v47 }
 0x135   : > { %v1300_v8 = vadd.f32 %v1270_v0, %v1183_v62  ;;  %1052 = vst.msk [vmem:[#allocation2 + $0x99] sm:$0x7f] %vm1035_vm2, %v1021_v22  ;;  %v1026_v51 = vadd.f32 %v4531_v6, %v996_v45  ;;  %4773 = vmatprep.mubr.msk.bf16.mxu1 %vm540_vm1, %v5191_v17  ;;  %v1003_v0 = vld [vmem:[#allocation2 + $0xf9] sm:$0x7f] }
 0x136   : > { %1332 = vst.msk [vmem:[#allocation2 + $0x88] sm:$0xff] %vm540_vm1, %v1302_v3  ;;  %v4572_v9 = vpop.f32.mrf.mxu0  ;;  %v1275_v10 = vld [vmem:[#allocation2 + $0xa0] sm:$0xff]  ;;  %v928_v12 = vpop.f32.mrf.mxu1 }
 0x137   : > { %1330 = vst.msk [vmem:[#allocation2 + $0x78] sm:$0xff] %vm540_vm1, %v1300_v8  ;;  %v1305_v14 = vadd.f32 %v4567_v49, %v1275_v10  ;;  %1057 = vst.msk [vmem:[#allocation2 + $0xc1] sm:$0xff] %vm540_vm1, %v1026_v51  ;;  %v1024_v15 = vadd.f32 %v994_v13, %v928_v12  ;;  %v1929_v51 = vld [vmem:[#allocation2 + $0x1] sm:$0xff] }
 0x138   : > { %v1215_v47 = vpop.f32.mrf.mxu0  ;;  %v1273_v16 = vld [vmem:[#allocation2 + $0x90] sm:$0xff]  ;;  %v4532_v18 = vpop.f32.mrf.mxu1 }
 0x139   : > { %1335 = vst.msk [vmem:[#allocation2 + $0xa0] sm:$0xff] %vm540_vm1, %v1305_v14  ;;  %v1303_v20 = vadd.f32 %v1273_v16, %v1196_v41  ;;  %1055 = vst.msk [vmem:[#allocation2 + $0xb1] sm:$0xff] %vm540_vm1, %v1024_v15  ;;  %v1027_v21 = vadd.f32 %v4532_v18, %v997_v19  ;;  %v1930_v16 = vld [vmem:[#allocation2 + $0x9] sm:$0x7f] }
 0x13a   : > { %v4575_v17 = vpop.f32.mrf.mxu0  ;;  %4814 = vmatmul.mubr.msk.bf16.gmra.mxu0 %vm540_vm1, %v5208_v37  ;;  %v931_v23 = vpop.f32.mrf.mxu1 }
 0x13b   : > { %v1276_v54 = vld [vmem:[#allocation2 + $0xa8] sm:$0xff]  ;;  %4817 = vmatprep.mubr.msk.bf16.mxu0 %vm540_vm1, %v5225_v58  ;;  %1333 = vst.msk [vmem:[#allocation2 + $0x90] sm:$0xff] %vm540_vm1, %v1303_v20  ;;  %v1025_v25 = vadd.f32 %v995_v26, %v931_v23 }
 0x13c   : > { %v1306_v24 = vadd.f32 %v4568_v46, %v1276_v54  ;;  %1058 = vst.msk [vmem:[#allocation2 + $0xc9] sm:$0x7f] %vm1035_vm2, %v1027_v21  ;;  %v1228_v27 = vpop.f32.mrf.mxu0  ;;  %v1274_v62 = vld [vmem:[#allocation2 + $0x98] sm:$0xff]  ;;  %v4535_v28 = vpop.f32.mrf.mxu1  ;;  %4774 = vmatmul.mubr.msk.bf16.gmra.mxu1 %vm540_vm1, %v5208_v37  ;;  %v1542_v26 = vld [vmem:[#allocation2 + $0x28] sm:$0x7f] }
 0x13d   : > { %v1304_v30 = vadd.f32 %v1274_v62, %v1199_v59  ;;  %1056 = vst.msk [vmem:[#allocation2 + $0xb9] sm:$0x7f] %vm1035_vm2, %v1025_v25  ;;  %v1030_v32 = vadd.f32 %v4535_v28, %v1000_v29  ;;  %4777 = vmatprep.mubr.msk.bf16.mxu1 %vm540_vm1, %v5225_v58  ;;  %v999_v46 = vld [vmem:[#allocation2 + $0xd9] sm:$0x7f] }
 0x13e   : > { %1336 = vst.msk [vmem:[#allocation2 + $0xa8] sm:$0xff] %vm540_vm1, %v1306_v24  ;;  %v4576_v33 = vpop.f32.mrf.mxu0  ;;  %v1279_v49 = vld [vmem:[#allocation2 + $0xc0] sm:$0xff]  ;;  %v944_v34 = vpop.f32.mrf.mxu1 }
 0x13f   : > { %1334 = vst.msk [vmem:[#allocation2 + $0x98] sm:$0xff] %vm540_vm1, %v1304_v30  ;;  %v1309_v38 = vadd.f32 %v4571_v31, %v1279_v49  ;;  %1061 = vst.msk [vmem:[#allocation2 + $0xe1] sm:$0xff] %vm540_vm1, %v1030_v32  ;;  %v1028_v39 = vadd.f32 %v998_v35, %v944_v34  ;;  %v1540_v49 = vld [vmem:[#allocation2 + $0x18] sm:$0x7f] }
 0x140   : > { %v1231_v37 = vpop.f32.mrf.mxu0  ;;  %v1277_v40 = vld [vmem:[#allocation2 + $0xb0] sm:$0xff]  ;;  %v4536_v41 = vpop.f32.mrf.mxu1 }
 0x141   : > { %1339 = vst.msk [vmem:[#allocation2 + $0xc0] sm:$0xff] %vm540_vm1, %v1309_v38  ;;  %v1307_v42 = vadd.f32 %v1277_v40, %v1212_v4  ;;  %1059 = vst.msk [vmem:[#allocation2 + $0xd1] sm:$0xff] %vm540_vm1, %v1028_v39  ;;  %v1031_v43 = vadd.f32 %v4536_v41, %v1001_v36  ;;  %v1539_v38 = vld [vmem:[#allocation2 + $0x10] sm:$0xff] }
 0x142   : > { %v4579_v58 = vpop.f32.mrf.mxu0  ;;  %4818 = vmatmul.mubr.msk.bf16.gmra.mxu0 %vm540_vm1, %v5234_v5  ;;  %v947_v44 = vpop.f32.mrf.mxu1 }
 0x143   : > { %v1280_v7 = vld [vmem:[#allocation2 + $0xc8] sm:$0xff]  ;;  %1337 = vst.msk [vmem:[#allocation2 + $0xb0] sm:$0xff] %vm540_vm1, %v1307_v42  ;;  %v1029_v50 = vadd.f32 %v999_v46, %v947_v44 }
 0x144   : > { %v1310_v48 = vadd.f32 %v4572_v9, %v1280_v7  ;;  %1062 = vst.msk [vmem:[#allocation2 + $0xe9] sm:$0x7f] %vm1035_vm2, %v1031_v43  ;;  %v1244_v52 = vpop.f32.mrf.mxu0  ;;  %v1278_v53 = vld [vmem:[#allocation2 + $0xb8] sm:$0xff]  ;;  %v4539_v55 = vpop.f32.mrf.mxu1  ;;  %4778 = vmatmul.mubr.msk.bf16.gmra.mxu1 %vm540_vm1, %v5234_v5  ;;  %v1546_v46 = vld [vmem:[#allocation2 + $0x48] sm:$0x7f] }
 0x145   : > { %v1308_v59 = vadd.f32 %v1278_v53, %v1215_v47  ;;  %1060 = vst.msk [vmem:[#allocation2 + $0xd9] sm:$0x7f] %vm1035_vm2, %v1029_v50 }
 0x146   : > { %1340 = vst.msk [vmem:[#allocation2 + $0xc8] sm:$0xff] %vm540_vm1, %v1310_v48  ;;  %v4580_v56 = vpop.f32.mrf.mxu0  ;;  %v1283_v57 = vld [vmem:[#allocation2 + $0xe0] sm:$0xff]  ;;  %v960_v60 = vpop.f32.mrf.mxu1 }
 0x147   : > { %1338 = vst.msk [vmem:[#allocation2 + $0xb8] sm:$0xff] %vm540_vm1, %v1308_v59  ;;  %v1313_v63 = vadd.f32 %v4575_v17, %v1283_v57  ;;  %v1032_v31 = vadd.f32 %v1002_v61, %v960_v60  ;;  %v1544_v60 = vld [vmem:[#allocation2 + $0x38] sm:$0x7f] }
 0x148   : > { %v1247_v11 = vpop.f32.mrf.mxu0  ;;  %v1281_v1 = vld [vmem:[#allocation2 + $0xd0] sm:$0xff]  ;;  %v4540_v2 = vpop.f32.mrf.mxu1 }
 0x149   : > { %1343 = vst.msk [vmem:[#allocation2 + $0xe0] sm:$0xff] %vm540_vm1, %v1313_v63  ;;  %v1311_v3 = vadd.f32 %v1281_v1, %v1228_v27  ;;  %1063 = vst.msk [vmem:[#allocation2 + $0xf1] sm:$0xff] %vm540_vm1, %v1032_v31  ;;  %v1541_v27 = vld [vmem:[#allocation2 + $0x20] sm:$0xff] }
 0x14a   : > { %v5648_v5 = vpop.f32.mrf.mxu0  ;;  %v963_v4 = vpop.f32.mrf.mxu1 }
 0x14b   : > { %v1284_v22 = vld [vmem:[#allocation2 + $0xe8] sm:$0xff]  ;;  %1341 = vst.msk [vmem:[#allocation2 + $0xd0] sm:$0xff] %vm540_vm1, %v1311_v3  ;;  %v1033_v45 = vadd.f32 %v1003_v0, %v963_v4 }
 0x14c   : > { %v1314_v6 = vadd.f32 %v4576_v33, %v1284_v22  ;;  %v1802_v8 = vpop.f32.mrf.mxu0  ;;  %v1282_v9 = vld [vmem:[#allocation2 + $0xd8] sm:$0xff]  ;;  %v4591_v10 = vpop.f32.mrf.mxu1 }
 0x14d   : > { %v1961_v12 = vadd.f32 %v1929_v51, %v1802_v8  ;;  %v1312_v13 = vadd.f32 %v1282_v9, %v1231_v37  ;;  %1064 = vst.msk [vmem:[#allocation2 + $0xf9] sm:$0x7f] %vm1035_vm2, %v1033_v45  ;;  %v1603_v17 = vrot.slane %v4591_v10, 1 }
 0x14e   : > { %1344 = vst.msk [vmem:[#allocation2 + $0xe8] sm:$0xff] %vm540_vm1, %v1314_v6  ;;  %v5653_v14 = vpop.f32.mrf.mxu0  ;;  %v1414_v15 = vpop.f32.mrf.mxu1 }
 0x14f   : > { %1993 = vst.msk [vmem:[#allocation2 + $0x1] sm:$0xff] %vm540_vm1, %v1961_v12  ;;  %1342 = vst.msk [vmem:[#allocation2 + $0xd8] sm:$0xff] %vm540_vm1, %v1312_v13  ;;  %v1600_v25 = vrot.slane %v1414_v15, 1 }
 0x150   : > { %v1805_v47 = vpop.f32.mrf.mxu0  ;;  %v1285_v18 = vld [vmem:[#allocation2 + $0xf0] sm:$0xff]  ;;  %v4592_v19 = vpop.f32.mrf.mxu1 }
 0x151   : > { %v1962_v20 = vadd.f32 %v1930_v16, %v1805_v47  ;;  %v1315_v21 = vadd.f32 %v1285_v18, %v1244_v52  ;;  %v1604_v54 = vrot.slane %v4592_v19, 1  ;;  %v1545_v52 = vld [vmem:[#allocation2 + $0x40] sm:$0xff] }
 0x152   : > { %v5657_v23 = vpop.f32.mrf.mxu0  ;;  %v1417_v24 = vpop.f32.mrf.mxu1  ;;  %v1549_v19 = vld [vmem:[#allocation2 + $0x60] sm:$0xff] }
 0x153   : > { %1994 = vst.msk [vmem:[#allocation2 + $0x9] sm:$0x7f] %vm1035_vm2, %v1962_v20  ;;  %v1605_v62 = vsel %vm1599_vm3, %v1603_v17, %v1604_v54  ;;  %v1678_v28 = vadd.f32 %v1604_v54, %v1542_v26  ;;  %v1601_v29 = vrot.slane %v1417_v24, 1  ;;  %v1548_v24 = vld [vmem:[#allocation2 + $0x58] sm:$0x7f] }
 0x154   : > { %1345 = vst.msk [vmem:[#allocation2 + $0xf0] sm:$0xff] %vm540_vm1, %v1315_v21  ;;  %v1818_v30 = vpop.f32.mrf.mxu0  ;;  %v1286_v32 = vld [vmem:[#allocation2 + $0xf8] sm:$0xff]  ;;  %v1677_v33 = vadd.f32 %v1605_v62, %v1541_v27  ;;  %v4595_v34 = vpop.f32.mrf.mxu1  ;;  %v1547_v62 = vld [vmem:[#allocation2 + $0x50] sm:$0xff] }
 0x155   : > { %v1316_v35 = vadd.f32 %v1286_v32, %v1247_v11  ;;  %1708 = vst.msk [vmem:[#allocation2 + $0x28] sm:$0x7f] %vm1035_vm2, %v1678_v28  ;;  %v1602_v39 = vsel %vm1599_vm3, %v1600_v25, %v1601_v29  ;;  %v1676_v37 = vadd.f32 %v1601_v29, %v1540_v49  ;;  %v1609_v58 = vrot.slane %v4595_v34, 1  ;;  %v1543_v11 = vld [vmem:[#allocation2 + $0x30] sm:$0xff] }
 0x156   : > { %v5664_v40 = vpop.f32.mrf.mxu0  ;;  %1707 = vst.msk [vmem:[#allocation2 + $0x20] sm:$0xff] %vm540_vm1, %v1677_v33  ;;  %v1675_v41 = vadd.f32 %v1602_v39, %v1539_v38  ;;  %v1430_v36 = vpop.f32.mrf.mxu1 }
 0x157   : > { %1346 = vst.msk [vmem:[#allocation2 + $0xf8] sm:$0xff] %vm540_vm1, %v1316_v35  ;;  %v1606_v50 = vrot.slane %v1430_v36, 1 }
 0x158   : > { %1706 = vst.msk [vmem:[#allocation2 + $0x18] sm:$0x7f] %vm1035_vm2, %v1676_v37  ;;  %v1821_v42 = vpop.f32.mrf.mxu0  ;;  %v4596_v43 = vpop.f32.mrf.mxu1 }
 0x159   : > { %1705 = vst.msk [vmem:[#allocation2 + $0x10] sm:$0xff] %vm540_vm1, %v1675_v41  ;;  %v1610_v7 = vrot.slane %v4596_v43, 1 }
 0x15a   : > { %v5670_v44 = vpop.f32.mrf.mxu0  ;;  %v1433_v48 = vpop.f32.mrf.mxu1 }
 0x15b   : > { %v1611_v53 = vsel %vm1599_vm3, %v1609_v58, %v1610_v7  ;;  %v1682_v55 = vadd.f32 %v1610_v7, %v1546_v46  ;;  %v1607_v59 = vrot.slane %v1433_v48, 1  ;;  %v1553_v48 = vld [vmem:[#allocation2 + $0x80] sm:$0xff] }
 0x15c   : > { %v1834_v56 = vpop.f32.mrf.mxu0  ;;  %v1681_v57 = vadd.f32 %v1611_v53, %v1545_v52  ;;  %v1934_v61 = vld [vmem:[#allocation2 + $0x29] sm:$0x7f]  ;;  %v4599_v63 = vpop.f32.mrf.mxu1 }
 0x15d   : > { %v1933_v31 = vld [vmem:[#allocation2 + $0x21] sm:$0xff]  ;;  %1712 = vst.msk [vmem:[#allocation2 + $0x48] sm:$0x7f] %vm1035_vm2, %v1682_v55  ;;  %v1608_v1 = vsel %vm1599_vm3, %v1606_v50, %v1607_v59  ;;  %v1680_v2 = vadd.f32 %v1607_v59, %v1544_v60  ;;  %v1966_v3 = vadd.f32 %v1934_v61, %v1821_v42  ;;  %v1615_v13 = vrot.slane %v4599_v63, 1  ;;  %v1551_v61 = vld [vmem:[#allocation2 + $0x70] sm:$0xff] }
 0x15e   : > { %v5675_v22 = vpop.f32.mrf.mxu0  ;;  %v1965_v0 = vadd.f32 %v1933_v31, %v1818_v30  ;;  %1711 = vst.msk [vmem:[#allocation2 + $0x40] sm:$0xff] %vm540_vm1, %v1681_v57  ;;  %v1679_v6 = vadd.f32 %v1608_v1, %v1543_v11  ;;  %v1446_v45 = vpop.f32.mrf.mxu1 }
 0x15f   : > { %v1932_v4 = vld [vmem:[#allocation2 + $0x19] sm:$0x7f]  ;;  %1710 = vst.msk [vmem:[#allocation2 + $0x38] sm:$0x7f] %vm1035_vm2, %v1680_v2  ;;  %1998 = vst.msk [vmem:[#allocation2 + $0x29] sm:$0x7f] %vm1035_vm2, %v1966_v3 }
 0x160   : > { %v1964_v8 = vadd.f32 %v5653_v14, %v1932_v4  ;;  %v1837_v51 = vpop.f32.mrf.mxu0  ;;  %v1931_v9 = vld [vmem:[#allocation2 + $0x11] sm:$0xff]  ;;  %1997 = vst.msk [vmem:[#allocation2 + $0x21] sm:$0xff] %vm540_vm1, %v1965_v0  ;;  %1709 = vst.msk [vmem:[#allocation2 + $0x30] sm:$0xff] %vm540_vm1, %v1679_v6  ;;  %v4600_v10 = vpop.f32.mrf.mxu1  ;;  %v1550_v14 = vld [vmem:[#allocation2 + $0x68] sm:$0x7f]  ;;  %v1612_v18 = vrot.slane %v1446_v45, 1 }
 0x161   : > { %v1963_v12 = vadd.f32 %v5648_v5, %v1931_v9  ;;  %v1616_v15 = vrot.slane %v4600_v10, 1 }
 0x162   : > { %1996 = vst.msk [vmem:[#allocation2 + $0x19] sm:$0x7f] %vm1035_vm2, %v1964_v8  ;;  %v5685_v47 = vpop.f32.mrf.mxu0  ;;  %v1449_v16 = vpop.f32.mrf.mxu1 }
 0x163   : > { %1995 = vst.msk [vmem:[#allocation2 + $0x11] sm:$0xff] %vm540_vm1, %v1963_v12  ;;  %v1617_v20 = vsel %vm1599_vm3, %v1615_v13, %v1616_v15  ;;  %v1686_v21 = vadd.f32 %v1616_v15, %v1550_v14  ;;  %v1613_v17 = vrot.slane %v1449_v16, 1  ;;  %v1557_v16 = vld [vmem:[#allocation2 + $0xa0] sm:$0xff] }
 0x164   : > { %v1850_v54 = vpop.f32.mrf.mxu0  ;;  %v1685_v26 = vadd.f32 %v1617_v20, %v1549_v19  ;;  %v1938_v5 = vld [vmem:[#allocation2 + $0x49] sm:$0x7f]  ;;  %v4603_v25 = vpop.f32.mrf.mxu1 }
 0x165   : > { %v1937_v27 = vld [vmem:[#allocation2 + $0x41] sm:$0xff]  ;;  %1716 = vst.msk [vmem:[#allocation2 + $0x68] sm:$0x7f] %vm1035_vm2, %v1686_v21  ;;  %v1614_v28 = vsel %vm1599_vm3, %v1612_v18, %v1613_v17  ;;  %v1684_v29 = vadd.f32 %v1613_v17, %v1548_v24  ;;  %v1970_v30 = vadd.f32 %v1938_v5, %v1837_v51  ;;  %v1621_v42 = vrot.slane %v4603_v25, 1  ;;  %v1555_v5 = vld [vmem:[#allocation2 + $0x90] sm:$0xff] }
 0x166   : > { %v5691_v32 = vpop.f32.mrf.mxu0  ;;  %v1936_v33 = vld [vmem:[#allocation2 + $0x39] sm:$0x7f]  ;;  %v1969_v49 = vadd.f32 %v1937_v27, %v1834_v56  ;;  %1715 = vst.msk [vmem:[#allocation2 + $0x60] sm:$0xff] %vm540_vm1, %v1685_v26  ;;  %v1683_v34 = vadd.f32 %v1614_v28, %v1547_v62  ;;  %v1462_v35 = vpop.f32.mrf.mxu1 }
 0x167   : > { %v1968_v38 = vadd.f32 %v5664_v40, %v1936_v33  ;;  %1714 = vst.msk [vmem:[#allocation2 + $0x58] sm:$0x7f] %vm1035_vm2, %v1684_v29  ;;  %2002 = vst.msk [vmem:[#allocation2 + $0x49] sm:$0x7f] %vm1035_vm2, %v1970_v30  ;;  %v1935_v37 = vld [vmem:[#allocation2 + $0x31] sm:$0xff]  ;;  %v1618_v46 = vrot.slane %v1462_v35, 1 }
 0x168   : > { %v1853_v39 = vpop.f32.mrf.mxu0  ;;  %2001 = vst.msk [vmem:[#allocation2 + $0x41] sm:$0xff] %vm540_vm1, %v1969_v49  ;;  %1713 = vst.msk [vmem:[#allocation2 + $0x50] sm:$0xff] %vm540_vm1, %v1683_v34  ;;  %v4604_v41 = vpop.f32.mrf.mxu1  ;;  %v1967_v36 = vadd.f32 %v5657_v23, %v1935_v37  ;;  %v1554_v40 = vld [vmem:[#allocation2 + $0x88] sm:$0x7f]  ;;  %v1552_v56 = vld [vmem:[#allocation2 + $0x78] sm:$0x7f] }
 0x169   : > { %2000 = vst.msk [vmem:[#allocation2 + $0x39] sm:$0x7f] %vm1035_vm2, %v1968_v38  ;;  %v1622_v43 = vrot.slane %v4604_v41, 1 }
 0x16a   : > { %v5701_v58 = vpop.f32.mrf.mxu0  ;;  %v1465_v7 = vpop.f32.mrf.mxu1  ;;  %1999 = vst.msk [vmem:[#allocation2 + $0x31] sm:$0xff] %vm540_vm1, %v1967_v36 }
 0x16b   : > { %v1623_v50 = vsel %vm1599_vm3, %v1621_v42, %v1622_v43  ;;  %v1690_v52 = vadd.f32 %v1622_v43, %v1554_v40  ;;  %v1619_v53 = vrot.slane %v1465_v7, 1  ;;  %v1561_v7 = vld [vmem:[#allocation2 + $0xc0] sm:$0xff] }
 0x16c   : > { %v1866_v55 = vpop.f32.mrf.mxu0  ;;  %v1689_v59 = vadd.f32 %v1623_v50, %v1553_v48  ;;  %v1942_v23 = vld [vmem:[#allocation2 + $0x69] sm:$0x7f]  ;;  %v4607_v57 = vpop.f32.mrf.mxu1 }
 0x16d   : > { %v1941_v60 = vld [vmem:[#allocation2 + $0x61] sm:$0xff]  ;;  %1720 = vst.msk [vmem:[#allocation2 + $0x88] sm:$0x7f] %vm1035_vm2, %v1690_v52  ;;  %v1620_v63 = vsel %vm1599_vm3, %v1618_v46, %v1619_v53  ;;  %v1688_v31 = vadd.f32 %v1619_v53, %v1552_v56  ;;  %v1974_v11 = vadd.f32 %v1942_v23, %v1853_v39  ;;  %v1627_v10 = vrot.slane %v4607_v57, 1  ;;  %v1559_v23 = vld [vmem:[#allocation2 + $0xb0] sm:$0xff] }
 0x16e   : > { %v5707_v1 = vpop.f32.mrf.mxu0  ;;  %v1940_v2 = vld [vmem:[#allocation2 + $0x59] sm:$0x7f]  ;;  %v1973_v3 = vadd.f32 %v1941_v60, %v1850_v54  ;;  %1719 = vst.msk [vmem:[#allocation2 + $0x80] sm:$0xff] %vm540_vm1, %v1689_v59  ;;  %v1687_v4 = vadd.f32 %v1620_v63, %v1551_v61  ;;  %v1478_v0 = vpop.f32.mrf.mxu1 }
 0x16f   : > { %v1972_v6 = vadd.f32 %v5675_v22, %v1940_v2  ;;  %1718 = vst.msk [vmem:[#allocation2 + $0x78] sm:$0x7f] %vm1035_vm2, %v1688_v31  ;;  %2006 = vst.msk [vmem:[#allocation2 + $0x69] sm:$0x7f] %vm1035_vm2, %v1974_v11  ;;  %v1939_v8 = vld [vmem:[#allocation2 + $0x51] sm:$0xff]  ;;  %v1624_v14 = vrot.slane %v1478_v0, 1 }
 0x170   : > { %v1869_v45 = vpop.f32.mrf.mxu0  ;;  %2005 = vst.msk [vmem:[#allocation2 + $0x61] sm:$0xff] %vm540_vm1, %v1973_v3  ;;  %1717 = vst.msk [vmem:[#allocation2 + $0x70] sm:$0xff] %vm540_vm1, %v1687_v4  ;;  %v4608_v51 = vpop.f32.mrf.mxu1  ;;  %v1971_v9 = vadd.f32 %v5670_v44, %v1939_v8  ;;  %v1558_v22 = vld [vmem:[#allocation2 + $0xa8] sm:$0x7f]  ;;  %v1556_v54 = vld [vmem:[#allocation2 + $0x98] sm:$0x7f] }
 0x171   : > { %2004 = vst.msk [vmem:[#allocation2 + $0x59] sm:$0x7f] %vm1035_vm2, %v1972_v6  ;;  %v1628_v12 = vrot.slane %v4608_v51, 1 }
 0x172   : > { %v5717_v13 = vpop.f32.mrf.mxu0  ;;  %v1481_v15 = vpop.f32.mrf.mxu1  ;;  %2003 = vst.msk [vmem:[#allocation2 + $0x51] sm:$0xff] %vm540_vm1, %v1971_v9 }
 0x173   : > { %v1629_v18 = vsel %vm1599_vm3, %v1627_v10, %v1628_v12  ;;  %v1694_v19 = vadd.f32 %v1628_v12, %v1558_v22  ;;  %v1625_v20 = vrot.slane %v1481_v15, 1  ;;  %v1565_v15 = vld [vmem:[#allocation2 + $0xe0] sm:$0xff] }
 0x174   : > { %v1882_v21 = vpop.f32.mrf.mxu0  ;;  %v1693_v17 = vadd.f32 %v1629_v18, %v1557_v16  ;;  %v1946_v44 = vld [vmem:[#allocation2 + $0x89] sm:$0x7f]  ;;  %v4611_v26 = vpop.f32.mrf.mxu1 }
 0x175   : > { %v1945_v24 = vld [vmem:[#allocation2 + $0x81] sm:$0xff]  ;;  %1724 = vst.msk [vmem:[#allocation2 + $0xa8] sm:$0x7f] %vm1035_vm2, %v1694_v19  ;;  %v1626_v25 = vsel %vm1599_vm3, %v1624_v14, %v1625_v20  ;;  %v1692_v27 = vadd.f32 %v1625_v20, %v1556_v54  ;;  %v1978_v62 = vadd.f32 %v1946_v44, %v1869_v45  ;;  %v1633_v41 = vrot.slane %v4611_v26, 1  ;;  %v1563_v44 = vld [vmem:[#allocation2 + $0xd0] sm:$0xff] }
 0x176   : > { %v5723_v28 = vpop.f32.mrf.mxu0  ;;  %v1944_v29 = vld [vmem:[#allocation2 + $0x79] sm:$0x7f]  ;;  %v1977_v30 = vadd.f32 %v1945_v24, %v1866_v55  ;;  %1723 = vst.msk [vmem:[#allocation2 + $0xa0] sm:$0xff] %vm540_vm1, %v1693_v17  ;;  %v1691_v33 = vadd.f32 %v1626_v25, %v1555_v5  ;;  %v1494_v49 = vpop.f32.mrf.mxu1 }
 0x177   : > { %v1976_v34 = vadd.f32 %v5691_v32, %v1944_v29  ;;  %1722 = vst.msk [vmem:[#allocation2 + $0x98] sm:$0x7f] %vm1035_vm2, %v1692_v27  ;;  %2010 = vst.msk [vmem:[#allocation2 + $0x89] sm:$0x7f] %vm1035_vm2, %v1978_v62  ;;  %v1943_v38 = vld [vmem:[#allocation2 + $0x71] sm:$0xff]  ;;  %v1630_v40 = vrot.slane %v1494_v49, 1 }
 0x178   : > { %v1885_v35 = vpop.f32.mrf.mxu0  ;;  %2009 = vst.msk [vmem:[#allocation2 + $0x81] sm:$0xff] %vm540_vm1, %v1977_v30  ;;  %1721 = vst.msk [vmem:[#allocation2 + $0x90] sm:$0xff] %vm540_vm1, %v1691_v33  ;;  %v4612_v39 = vpop.f32.mrf.mxu1  ;;  %v1975_v37 = vadd.f32 %v5685_v47, %v1943_v38  ;;  %v1562_v32 = vld [vmem:[#allocation2 + $0xc8] sm:$0x7f]  ;;  %v1560_v55 = vld [vmem:[#allocation2 + $0xb8] sm:$0x7f] }
 0x179   : > { %2008 = vst.msk [vmem:[#allocation2 + $0x79] sm:$0x7f] %vm1035_vm2, %v1976_v34  ;;  %v1634_v36 = vrot.slane %v4612_v39, 1 }
 0x17a   : > { %v5733_v42 = vpop.f32.mrf.mxu0  ;;  %v1497_v43 = vpop.f32.mrf.mxu1  ;;  %2007 = vst.msk [vmem:[#allocation2 + $0x71] sm:$0xff] %vm540_vm1, %v1975_v37 }
 0x17b   : > { %v1635_v46 = vsel %vm1599_vm3, %v1633_v41, %v1634_v36  ;;  %v1698_v48 = vadd.f32 %v1634_v36, %v1562_v32  ;;  %v1631_v50 = vrot.slane %v1497_v43, 1  ;;  %v1568_v32 = vld [vmem:[#allocation2 + $0xf8] sm:$0x7f] }
 0x17c   : > { %v1898_v52 = vpop.f32.mrf.mxu0  ;;  %v1697_v53 = vadd.f32 %v1635_v46, %v1561_v7  ;;  %v1950_v47 = vld [vmem:[#allocation2 + $0xa9] sm:$0x7f]  ;;  %v4615_v59 = vpop.f32.mrf.mxu1  ;;  %v1567_v46 = vld [vmem:[#allocation2 + $0xf0] sm:$0xff] }
 0x17d   : > { %v1949_v56 = vld [vmem:[#allocation2 + $0xa1] sm:$0xff]  ;;  %1728 = vst.msk [vmem:[#allocation2 + $0xc8] sm:$0x7f] %vm1035_vm2, %v1698_v48  ;;  %v1632_v57 = vsel %vm1599_vm3, %v1630_v40, %v1631_v50  ;;  %v1696_v60 = vadd.f32 %v1631_v50, %v1560_v55  ;;  %v1982_v61 = vadd.f32 %v1950_v47, %v1885_v35  ;;  %v1639_v51 = vrot.slane %v4615_v59, 1 }
 0x17e   : > { %v5739_v63 = vpop.f32.mrf.mxu0  ;;  %v1948_v31 = vld [vmem:[#allocation2 + $0x99] sm:$0x7f]  ;;  %v1981_v11 = vadd.f32 %v1949_v56, %v1882_v21  ;;  %1727 = vst.msk [vmem:[#allocation2 + $0xc0] sm:$0xff] %vm540_vm1, %v1697_v53  ;;  %v1695_v2 = vadd.f32 %v1632_v57, %v1559_v23  ;;  %v1510_v3 = vpop.f32.mrf.mxu1 }
 0x17f   : > { %v1980_v4 = vadd.f32 %v5707_v1, %v1948_v31  ;;  %1726 = vst.msk [vmem:[#allocation2 + $0xb8] sm:$0x7f] %vm1035_vm2, %v1696_v60  ;;  %2014 = vst.msk [vmem:[#allocation2 + $0xa9] sm:$0x7f] %vm1035_vm2, %v1982_v61  ;;  %v1947_v6 = vld [vmem:[#allocation2 + $0x91] sm:$0xff]  ;;  %v1636_v22 = vrot.slane %v1510_v3, 1 }
 0x180   : > { %v1901_v0 = vpop.f32.mrf.mxu0  ;;  %2013 = vst.msk [vmem:[#allocation2 + $0xa1] sm:$0xff] %vm540_vm1, %v1981_v11  ;;  %1725 = vst.msk [vmem:[#allocation2 + $0xb0] sm:$0xff] %vm540_vm1, %v1695_v2  ;;  %v4616_v45 = vpop.f32.mrf.mxu1  ;;  %v1979_v8 = vadd.f32 %v5701_v58, %v1947_v6  ;;  %v1566_v1 = vld [vmem:[#allocation2 + $0xe8] sm:$0x7f]  ;;  %v1564_v21 = vld [vmem:[#allocation2 + $0xd8] sm:$0x7f] }
 0x181   : > { %2012 = vst.msk [vmem:[#allocation2 + $0x99] sm:$0x7f] %vm1035_vm2, %v1980_v4  ;;  %v1640_v9 = vrot.slane %v4616_v45, 1 }
 0x182   : > { %v5749_v10 = vpop.f32.mrf.mxu0  ;;  %v1513_v12 = vpop.f32.mrf.mxu1  ;;  %2011 = vst.msk [vmem:[#allocation2 + $0x91] sm:$0xff] %vm540_vm1, %v1979_v8 }
 0x183   : > { %v1641_v14 = vsel %vm1599_vm3, %v1639_v51, %v1640_v9  ;;  %v1702_v16 = vadd.f32 %v1640_v9, %v1566_v1  ;;  %v1637_v18 = vrot.slane %v1513_v12, 1  ;;  %v2220_v1 = vld [vmem:[#allocation2 + $0x8] sm:$0x7f]  ;;  %v2219_v12 = vld [vmem:[#allocation2] sm:$0xff] }
 0x184   : > { %v1914_v19 = vpop.f32.mrf.mxu0  ;;  %v1701_v20 = vadd.f32 %v1641_v14, %v1565_v15  ;;  %v1954_v58 = vld [vmem:[#allocation2 + $0xc9] sm:$0x7f]  ;;  %v4619_v17 = vpop.f32.mrf.mxu1 }
 0x185   : > { %v1953_v54 = vld [vmem:[#allocation2 + $0xc1] sm:$0xff]  ;;  %1732 = vst.msk [vmem:[#allocation2 + $0xe8] sm:$0x7f] %vm1035_vm2, %v1702_v16  ;;  %v1638_v26 = vsel %vm1599_vm3, %v1636_v22, %v1637_v18  ;;  %v1700_v24 = vadd.f32 %v1637_v18, %v1564_v21  ;;  %v1986_v5 = vadd.f32 %v1954_v58, %v1901_v0  ;;  %v2221_v0 = vld [vmem:[#allocation2 + $0x10] sm:$0xff] }
 0x186   : > { %v5755_v25 = vpop.f32.mrf.mxu0  ;;  %v1952_v27 = vld [vmem:[#allocation2 + $0xb9] sm:$0x7f]  ;;  %v1985_v62 = vadd.f32 %v1953_v54, %v1898_v52  ;;  %1731 = vst.msk [vmem:[#allocation2 + $0xe0] sm:$0xff] %vm540_vm1, %v1701_v20  ;;  %v1699_v29 = vadd.f32 %v1638_v26, %v1563_v44  ;;  %v1526_v30 = vpop.f32.mrf.mxu1 }
 0x187   : > { %v1984_v33 = vadd.f32 %v5723_v28, %v1952_v27  ;;  %1730 = vst.msk [vmem:[#allocation2 + $0xd8] sm:$0x7f] %vm1035_vm2, %v1700_v24  ;;  %2018 = vst.msk [vmem:[#allocation2 + $0xc9] sm:$0x7f] %vm1035_vm2, %v1986_v5  ;;  %v1951_v34 = vld [vmem:[#allocation2 + $0xb1] sm:$0xff]  ;;  %v1642_v28 = vrot.slane %v1526_v30, 1 }
 0x188   : > { %v1917_v49 = vpop.f32.mrf.mxu0  ;;  %2017 = vst.msk [vmem:[#allocation2 + $0xc1] sm:$0xff] %vm540_vm1, %v1985_v62  ;;  %1729 = vst.msk [vmem:[#allocation2 + $0xd0] sm:$0xff] %vm540_vm1, %v1699_v29  ;;  %v4620_v35 = vpop.f32.mrf.mxu1  ;;  %v1983_v38 = vadd.f32 %v5717_v13, %v1951_v34  ;;  %v2226_v5 = vld [vmem:[#allocation2 + $0x38] sm:$0x7f]  ;;  %v2224_v34 = vld [vmem:[#allocation2 + $0x28] sm:$0x7f] }
 0x189   : > { %2016 = vst.msk [vmem:[#allocation2 + $0xb9] sm:$0x7f] %vm1035_vm2, %v1984_v33 }
 0x18a   : > { %v5765_v39 = vpop.f32.mrf.mxu0  ;;  %v1529_v37 = vpop.f32.mrf.mxu1  ;;  %2015 = vst.msk [vmem:[#allocation2 + $0xb1] sm:$0xff] %vm540_vm1, %v1983_v38 }
 0x18b   : > { %v1643_v41 = vrot.slane %v1529_v37, 1 }
 0x18c   : > { %v2494_v36 = vpop.f32.mrf.mxu0  ;;  %v1958_v43 = vld [vmem:[#allocation2 + $0xe9] sm:$0x7f]  ;;  %v4671_v40 = vpop.f32.mrf.mxu1 }
 0x18d   : > { %v1957_v7 = vld [vmem:[#allocation2 + $0xe1] sm:$0xff]  ;;  %v1644_v48 = vsel %vm1599_vm3, %v1642_v28, %v1643_v41  ;;  %v1704_v50 = vadd.f32 %v1643_v41, %v1568_v32  ;;  %v1990_v52 = vadd.f32 %v1958_v43, %v1917_v49  ;;  %v2286_v31 = vrot.slane %v4671_v40, 1 }
 0x18e   : > { %v5769_v13 = vpop.f32.mrf.mxu0  ;;  %v1956_v53 = vld [vmem:[#allocation2 + $0xd9] sm:$0x7f]  ;;  %v1989_v55 = vadd.f32 %v1957_v7, %v1914_v19  ;;  %v1703_v47 = vadd.f32 %v1644_v48, %v1567_v46  ;;  %v2092_v59 = vpop.f32.mrf.mxu1  ;;  %v2223_v28 = vld [vmem:[#allocation2 + $0x20] sm:$0xff] }
 0x18f   : > { %v1988_v56 = vadd.f32 %v5739_v63, %v1956_v53  ;;  %1734 = vst.msk [vmem:[#allocation2 + $0xf8] sm:$0x7f] %vm1035_vm2, %v1704_v50  ;;  %2022 = vst.msk [vmem:[#allocation2 + $0xe9] sm:$0x7f] %vm1035_vm2, %v1990_v52  ;;  %v1955_v57 = vld [vmem:[#allocation2 + $0xd1] sm:$0xff]  ;;  %v2283_v4 = vrot.slane %v2092_v59, 1 }
 0x190   : > { %v2496_v23 = vpop.f32.mrf.mxu0  ;;  %2021 = vst.msk [vmem:[#allocation2 + $0xe1] sm:$0xff] %vm540_vm1, %v1989_v55  ;;  %1733 = vst.msk [vmem:[#allocation2 + $0xf0] sm:$0xff] %vm540_vm1, %v1703_v47  ;;  %v4672_v60 = vpop.f32.mrf.mxu1  ;;  %v1987_v61 = vadd.f32 %v5733_v42, %v1955_v57  ;;  %v2222_v63 = vld [vmem:[#allocation2 + $0x18] sm:$0x7f] }
 0x191   : > { %2020 = vst.msk [vmem:[#allocation2 + $0xd9] sm:$0x7f] %vm1035_vm2, %v1988_v56  ;;  %v2287_v11 = vrot.slane %v4672_v60, 1 }
 0x192   : > { %v5778_v2 = vpop.f32.mrf.mxu0  ;;  %v2095_v3 = vpop.f32.mrf.mxu1  ;;  %2019 = vst.msk [vmem:[#allocation2 + $0xd1] sm:$0xff] %vm540_vm1, %v1987_v61  ;;  %v2229_v61 = vld [vmem:[#allocation2 + $0x50] sm:$0xff] }
 0x193   : > { %v2288_v6 = vsel %vm1599_vm3, %v2286_v31, %v2287_v11  ;;  %v2366_v45 = vadd.f32 %v2287_v11, %v2222_v63  ;;  %v2284_v8 = vrot.slane %v2095_v3, 1 }
 0x194   : > { %v2508_v51 = vpop.f32.mrf.mxu0  ;;  %v2365_v9 = vadd.f32 %v2288_v6, %v2221_v0  ;;  %v4675_v42 = vpop.f32.mrf.mxu1  ;;  %v2228_v0 = vld [vmem:[#allocation2 + $0x48] sm:$0x7f] }
 0x195   : > { %2398 = vst.msk [vmem:[#allocation2 + $0x18] sm:$0x7f] %vm1035_vm2, %v2366_v45  ;;  %v2285_v22 = vsel %vm1599_vm3, %v2283_v4, %v2284_v8  ;;  %v2364_v15 = vadd.f32 %v2284_v8, %v2220_v1  ;;  %v2292_v44 = vrot.slane %v4675_v42, 1  ;;  %v2227_v8 = vld [vmem:[#allocation2 + $0x40] sm:$0xff] }
 0x196   : > { %v5784_v14 = vpop.f32.mrf.mxu0  ;;  %v1960_v16 = vld [vmem:[#allocation2 + $0xf9] sm:$0x7f]  ;;  %2397 = vst.msk [vmem:[#allocation2 + $0x10] sm:$0xff] %vm540_vm1, %v2365_v9  ;;  %v2363_v18 = vadd.f32 %v2285_v22, %v2219_v12  ;;  %v2108_v19 = vpop.f32.mrf.mxu1 }
 0x197   : > { %v1959_v20 = vld [vmem:[#allocation2 + $0xf1] sm:$0xff]  ;;  %v1992_v21 = vadd.f32 %v5755_v25, %v1960_v16  ;;  %2396 = vst.msk [vmem:[#allocation2 + $0x8] sm:$0x7f] %vm1035_vm2, %v2364_v15  ;;  %v2289_v62 = vrot.slane %v2108_v19, 1 }
 0x198   : > { %v2511_v58 = vpop.f32.mrf.mxu0  ;;  %v1991_v17 = vadd.f32 %v5749_v10, %v1959_v20  ;;  %2395 = vst.msk [vmem:[#allocation2] sm:$0xff] %vm540_vm1, %v2363_v18  ;;  %v4676_v54 = vpop.f32.mrf.mxu1  ;;  %v2225_v25 = vld [vmem:[#allocation2 + $0x30] sm:$0xff] }
 0x199   : > { %2024 = vst.msk [vmem:[#allocation2 + $0xf9] sm:$0x7f] %vm1035_vm2, %v1992_v21  ;;  %v2293_v26 = vrot.slane %v4676_v54, 1 }
 0x19a   : > { %v5792_v24 = vpop.f32.mrf.mxu0  ;;  %2023 = vst.msk [vmem:[#allocation2 + $0xf1] sm:$0xff] %vm540_vm1, %v1991_v17  ;;  %v2111_v27 = vpop.f32.mrf.mxu1 }
 0x19b   : > { %v2294_v29 = vsel %vm1599_vm3, %v2292_v44, %v2293_v26  ;;  %v2370_v30 = vadd.f32 %v2293_v26, %v2226_v5  ;;  %v2290_v33 = vrot.slane %v2111_v27, 1  ;;  %v2233_v27 = vld [vmem:[#allocation2 + $0x70] sm:$0xff] }
 0x19c   : > { %v2524_v10 = vpop.f32.mrf.mxu0  ;;  %v2369_v49 = vadd.f32 %v2294_v29, %v2225_v25  ;;  %v2622_v35 = vld [vmem:[#allocation2 + $0x19] sm:$0x7f]  ;;  %v4679_v38 = vpop.f32.mrf.mxu1 }
 0x19d   : > { %v2621_v37 = vld [vmem:[#allocation2 + $0x11] sm:$0xff]  ;;  %2402 = vst.msk [vmem:[#allocation2 + $0x38] sm:$0x7f] %vm1035_vm2, %v2370_v30  ;;  %v2291_v41 = vsel %vm1599_vm3, %v2289_v62, %v2290_v33  ;;  %v2368_v36 = vadd.f32 %v2290_v33, %v2224_v34  ;;  %v2652_v32 = vadd.f32 %v2622_v35, %v2511_v58  ;;  %v2298_v59 = vrot.slane %v4679_v38, 1  ;;  %v2231_v35 = vld [vmem:[#allocation2 + $0x60] sm:$0xff] }
 0x19e   : > { %v5798_v43 = vpop.f32.mrf.mxu0  ;;  %v2620_v40 = vld [vmem:[#allocation2 + $0x9] sm:$0x7f]  ;;  %v2651_v7 = vadd.f32 %v2621_v37, %v2508_v51  ;;  %2401 = vst.msk [vmem:[#allocation2 + $0x30] sm:$0xff] %vm540_vm1, %v2369_v49  ;;  %v2367_v46 = vadd.f32 %v2291_v41, %v2223_v28  ;;  %v2124_v48 = vpop.f32.mrf.mxu1 }
 0x19f   : > { %v2650_v50 = vadd.f32 %v5769_v13, %v2620_v40  ;;  %2400 = vst.msk [vmem:[#allocation2 + $0x28] sm:$0x7f] %vm1035_vm2, %v2368_v36  ;;  %2682 = vst.msk [vmem:[#allocation2 + $0x19] sm:$0x7f] %vm1035_vm2, %v2652_v32  ;;  %v2619_v53 = vld [vmem:[#allocation2 + $0x1] sm:$0xff]  ;;  %v2295_v60 = vrot.slane %v2124_v48, 1 }
 0x1a0   : > { %v2527_v52 = vpop.f32.mrf.mxu0  ;;  %2681 = vst.msk [vmem:[#allocation2 + $0x11] sm:$0xff] %vm540_vm1, %v2651_v7  ;;  %2399 = vst.msk [vmem:[#allocation2 + $0x20] sm:$0xff] %vm540_vm1, %v2367_v46  ;;  %v4680_v55 = vpop.f32.mrf.mxu1  ;;  %v2649_v47 = vadd.f32 %v5765_v39, %v2619_v53  ;;  %v2230_v13 = vld [vmem:[#allocation2 + $0x58] sm:$0x7f] }
 0x1a1   : > { %2680 = vst.msk [vmem:[#allocation2 + $0x9] sm:$0x7f] %vm1035_vm2, %v2650_v50  ;;  %v2299_v56 = vrot.slane %v4680_v55, 1 }
 0x1a2   : > { %v5808_v23 = vpop.f32.mrf.mxu0  ;;  %v2127_v57 = vpop.f32.mrf.mxu1  ;;  %2679 = vst.msk [vmem:[#allocation2 + $0x1] sm:$0xff] %vm540_vm1, %v2649_v47 }
 0x1a3   : > { %v2300_v31 = vsel %vm1599_vm3, %v2298_v59, %v2299_v56  ;;  %v2374_v11 = vadd.f32 %v2299_v56, %v2230_v13  ;;  %v2296_v63 = vrot.slane %v2127_v57, 1  ;;  %v2237_v57 = vld [vmem:[#allocation2 + $0x90] sm:$0xff] }
 0x1a4   : > { %v2540_v3 = vpop.f32.mrf.mxu0  ;;  %v2373_v4 = vadd.f32 %v2300_v31, %v2229_v61  ;;  %v2626_v39 = vld [vmem:[#allocation2 + $0x39] sm:$0x7f]  ;;  %v4683_v6 = vpop.f32.mrf.mxu1 }
 0x1a5   : > { %v2625_v45 = vld [vmem:[#allocation2 + $0x31] sm:$0xff]  ;;  %2406 = vst.msk [vmem:[#allocation2 + $0x58] sm:$0x7f] %vm1035_vm2, %v2374_v11  ;;  %v2297_v51 = vsel %vm1599_vm3, %v2295_v60, %v2296_v63  ;;  %v2372_v9 = vadd.f32 %v2296_v63, %v2228_v0  ;;  %v2656_v1 = vadd.f32 %v2626_v39, %v2527_v52  ;;  %v2304_v17 = vrot.slane %v4683_v6, 1  ;;  %v2235_v39 = vld [vmem:[#allocation2 + $0x80] sm:$0xff] }
 0x1a6   : > { %v5814_v42 = vpop.f32.mrf.mxu0  ;;  %v2624_v12 = vld [vmem:[#allocation2 + $0x29] sm:$0x7f]  ;;  %v2655_v22 = vadd.f32 %v2625_v45, %v2524_v10  ;;  %2405 = vst.msk [vmem:[#allocation2 + $0x50] sm:$0xff] %vm540_vm1, %v2373_v4  ;;  %v2371_v15 = vadd.f32 %v2297_v51, %v2227_v8  ;;  %v2140_v16 = vpop.f32.mrf.mxu1 }
 0x1a7   : > { %v2654_v18 = vadd.f32 %v5784_v14, %v2624_v12  ;;  %2404 = vst.msk [vmem:[#allocation2 + $0x48] sm:$0x7f] %vm1035_vm2, %v2372_v9  ;;  %2686 = vst.msk [vmem:[#allocation2 + $0x39] sm:$0x7f] %vm1035_vm2, %v2656_v1  ;;  %v2623_v20 = vld [vmem:[#allocation2 + $0x21] sm:$0xff]  ;;  %v2301_v5 = vrot.slane %v2140_v16, 1 }
 0x1a8   : > { %v2543_v19 = vpop.f32.mrf.mxu0  ;;  %2685 = vst.msk [vmem:[#allocation2 + $0x31] sm:$0xff] %vm540_vm1, %v2655_v22  ;;  %2403 = vst.msk [vmem:[#allocation2 + $0x40] sm:$0xff] %vm540_vm1, %v2371_v15  ;;  %v4684_v21 = vpop.f32.mrf.mxu1  ;;  %v2653_v58 = vadd.f32 %v5778_v2, %v2623_v20  ;;  %v2234_v14 = vld [vmem:[#allocation2 + $0x78] sm:$0x7f]  ;;  %v2232_v10 = vld [vmem:[#allocation2 + $0x68] sm:$0x7f] }
 0x1a9   : > { %2684 = vst.msk [vmem:[#allocation2 + $0x29] sm:$0x7f] %vm1035_vm2, %v2654_v18  ;;  %v2305_v54 = vrot.slane %v4684_v21, 1 }
 0x1aa   : > { %v5824_v44 = vpop.f32.mrf.mxu0  ;;  %v2143_v26 = vpop.f32.mrf.mxu1  ;;  %2683 = vst.msk [vmem:[#allocation2 + $0x21] sm:$0xff] %vm540_vm1, %v2653_v58 }
 0x1ab   : > { %v2306_v62 = vsel %vm1599_vm3, %v2304_v17, %v2305_v54  ;;  %v2378_v25 = vadd.f32 %v2305_v54, %v2234_v14  ;;  %v2302_v29 = vrot.slane %v2143_v26, 1  ;;  %v2241_v26 = vld [vmem:[#allocation2 + $0xb0] sm:$0xff] }
 0x1ac   : > { %v2556_v30 = vpop.f32.mrf.mxu0  ;;  %v2377_v33 = vadd.f32 %v2306_v62, %v2233_v27  ;;  %v2630_v2 = vld [vmem:[#allocation2 + $0x59] sm:$0x7f]  ;;  %v4687_v49 = vpop.f32.mrf.mxu1 }
 0x1ad   : > { %v2629_v34 = vld [vmem:[#allocation2 + $0x51] sm:$0xff]  ;;  %2410 = vst.msk [vmem:[#allocation2 + $0x78] sm:$0x7f] %vm1035_vm2, %v2378_v25  ;;  %v2303_v38 = vsel %vm1599_vm3, %v2301_v5, %v2302_v29  ;;  %v2376_v37 = vadd.f32 %v2302_v29, %v2232_v10  ;;  %v2660_v28 = vadd.f32 %v2630_v2, %v2543_v19  ;;  %v2310_v55 = vrot.slane %v4687_v49, 1  ;;  %v2239_v2 = vld [vmem:[#allocation2 + $0xa0] sm:$0xff] }
 0x1ae   : > { %v5830_v41 = vpop.f32.mrf.mxu0  ;;  %v2628_v36 = vld [vmem:[#allocation2 + $0x49] sm:$0x7f]  ;;  %v2659_v32 = vadd.f32 %v2629_v34, %v2540_v3  ;;  %2409 = vst.msk [vmem:[#allocation2 + $0x70] sm:$0xff] %vm540_vm1, %v2377_v33  ;;  %v2375_v40 = vadd.f32 %v2303_v38, %v2231_v35  ;;  %v2156_v7 = vpop.f32.mrf.mxu1 }
 0x1af   : > { %v2658_v46 = vadd.f32 %v5798_v43, %v2628_v36  ;;  %2408 = vst.msk [vmem:[#allocation2 + $0x68] sm:$0x7f] %vm1035_vm2, %v2376_v37  ;;  %2690 = vst.msk [vmem:[#allocation2 + $0x59] sm:$0x7f] %vm1035_vm2, %v2660_v28  ;;  %v2627_v50 = vld [vmem:[#allocation2 + $0x41] sm:$0xff]  ;;  %v2307_v13 = vrot.slane %v2156_v7, 1 }
 0x1b0   : > { %v2559_v48 = vpop.f32.mrf.mxu0  ;;  %2689 = vst.msk [vmem:[#allocation2 + $0x51] sm:$0xff] %vm540_vm1, %v2659_v32  ;;  %2407 = vst.msk [vmem:[#allocation2 + $0x60] sm:$0xff] %vm540_vm1, %v2375_v40  ;;  %v4688_v52 = vpop.f32.mrf.mxu1  ;;  %v2657_v53 = vadd.f32 %v5792_v24, %v2627_v50  ;;  %v2238_v43 = vld [vmem:[#allocation2 + $0x98] sm:$0x7f]  ;;  %v2236_v3 = vld [vmem:[#allocation2 + $0x88] sm:$0x7f] }
 0x1b1   : > { %2688 = vst.msk [vmem:[#allocation2 + $0x49] sm:$0x7f] %vm1035_vm2, %v2658_v46  ;;  %v2311_v47 = vrot.slane %v4688_v52, 1 }
 0x1b2   : > { %v5840_v59 = vpop.f32.mrf.mxu0  ;;  %v2159_v56 = vpop.f32.mrf.mxu1  ;;  %2687 = vst.msk [vmem:[#allocation2 + $0x41] sm:$0xff] %vm540_vm1, %v2657_v53 }
 0x1b3   : > { %v2312_v60 = vsel %vm1599_vm3, %v2310_v55, %v2311_v47  ;;  %v2382_v61 = vadd.f32 %v2311_v47, %v2238_v43  ;;  %v2308_v31 = vrot.slane %v2159_v56, 1  ;;  %v2245_v56 = vld [vmem:[#allocation2 + $0xd0] sm:$0xff] }
 0x1b4   : > { %v2572_v11 = vpop.f32.mrf.mxu0  ;;  %v2381_v63 = vadd.f32 %v2312_v60, %v2237_v57  ;;  %v2634_v24 = vld [vmem:[#allocation2 + $0x79] sm:$0x7f]  ;;  %v4691_v4 = vpop.f32.mrf.mxu1 }
 0x1b5   : > { %v2633_v0 = vld [vmem:[#allocation2 + $0x71] sm:$0xff]  ;;  %2414 = vst.msk [vmem:[#allocation2 + $0x98] sm:$0x7f] %vm1035_vm2, %v2382_v61  ;;  %v2309_v6 = vsel %vm1599_vm3, %v2307_v13, %v2308_v31  ;;  %v2380_v45 = vadd.f32 %v2308_v31, %v2236_v3  ;;  %v2664_v8 = vadd.f32 %v2634_v24, %v2559_v48  ;;  %v2316_v21 = vrot.slane %v4691_v4, 1  ;;  %v2243_v24 = vld [vmem:[#allocation2 + $0xc0] sm:$0xff] }
 0x1b6   : > { %v5846_v51 = vpop.f32.mrf.mxu0  ;;  %v2632_v9 = vld [vmem:[#allocation2 + $0x69] sm:$0x7f]  ;;  %v2663_v1 = vadd.f32 %v2633_v0, %v2556_v30  ;;  %2413 = vst.msk [vmem:[#allocation2 + $0x90] sm:$0xff] %vm540_vm1, %v2381_v63  ;;  %v2379_v12 = vadd.f32 %v2309_v6, %v2235_v39  ;;  %v2172_v22 = vpop.f32.mrf.mxu1 }
 0x1b7   : > { %v2662_v15 = vadd.f32 %v5814_v42, %v2632_v9  ;;  %2412 = vst.msk [vmem:[#allocation2 + $0x88] sm:$0x7f] %vm1035_vm2, %v2380_v45  ;;  %2694 = vst.msk [vmem:[#allocation2 + $0x79] sm:$0x7f] %vm1035_vm2, %v2664_v8  ;;  %v2631_v18 = vld [vmem:[#allocation2 + $0x61] sm:$0xff]  ;;  %v2313_v14 = vrot.slane %v2172_v22, 1 }
 0x1b8   : > { %v2575_v16 = vpop.f32.mrf.mxu0  ;;  %2693 = vst.msk [vmem:[#allocation2 + $0x71] sm:$0xff] %vm540_vm1, %v2663_v1  ;;  %2411 = vst.msk [vmem:[#allocation2 + $0x80] sm:$0xff] %vm540_vm1, %v2379_v12  ;;  %v4692_v19 = vpop.f32.mrf.mxu1  ;;  %v2661_v20 = vadd.f32 %v5808_v23, %v2631_v18  ;;  %v2242_v42 = vld [vmem:[#allocation2 + $0xb8] sm:$0x7f]  ;;  %v2240_v30 = vld [vmem:[#allocation2 + $0xa8] sm:$0x7f] }
 0x1b9   : > { %2692 = vst.msk [vmem:[#allocation2 + $0x69] sm:$0x7f] %vm1035_vm2, %v2662_v15  ;;  %v2317_v58 = vrot.slane %v4692_v19, 1 }
 0x1ba   : > { %v5856_v17 = vpop.f32.mrf.mxu0  ;;  %v2175_v54 = vpop.f32.mrf.mxu1  ;;  %2691 = vst.msk [vmem:[#allocation2 + $0x61] sm:$0xff] %vm540_vm1, %v2661_v20 }
 0x1bb   : > { %v2318_v5 = vsel %vm1599_vm3, %v2316_v21, %v2317_v58  ;;  %v2386_v27 = vadd.f32 %v2317_v58, %v2242_v42  ;;  %v2314_v62 = vrot.slane %v2175_v54, 1  ;;  %v2250_v58 = vld [vmem:[#allocation2 + $0xf8] sm:$0x7f]  ;;  %v2249_v54 = vld [vmem:[#allocation2 + $0xf0] sm:$0xff] }
 0x1bc   : > { %v2588_v25 = vpop.f32.mrf.mxu0  ;;  %v2385_v29 = vadd.f32 %v2318_v5, %v2241_v26  ;;  %v2638_v23 = vld [vmem:[#allocation2 + $0x99] sm:$0x7f]  ;;  %v4695_v33 = vpop.f32.mrf.mxu1 }
 0x1bd   : > { %v2637_v10 = vld [vmem:[#allocation2 + $0x91] sm:$0xff]  ;;  %2418 = vst.msk [vmem:[#allocation2 + $0xb8] sm:$0x7f] %vm1035_vm2, %v2386_v27  ;;  %v2315_v49 = vsel %vm1599_vm3, %v2313_v14, %v2314_v62  ;;  %v2384_v34 = vadd.f32 %v2314_v62, %v2240_v30  ;;  %v2668_v35 = vadd.f32 %v2638_v23, %v2575_v16  ;;  %v2322_v52 = vrot.slane %v4695_v33, 1  ;;  %v2901_v30 = vld [vmem:[#allocation2] sm:$0xff] }
 0x1be   : > { %v5862_v38 = vpop.f32.mrf.mxu0  ;;  %v2636_v37 = vld [vmem:[#allocation2 + $0x89] sm:$0x7f]  ;;  %v2667_v28 = vadd.f32 %v2637_v10, %v2572_v11  ;;  %2417 = vst.msk [vmem:[#allocation2 + $0xb0] sm:$0xff] %vm540_vm1, %v2385_v29  ;;  %v2383_v36 = vadd.f32 %v2315_v49, %v2239_v2  ;;  %v2188_v32 = vpop.f32.mrf.mxu1  ;;  %v2247_v33 = vld [vmem:[#allocation2 + $0xe0] sm:$0xff] }
 0x1bf   : > { %v2666_v40 = vadd.f32 %v5830_v41, %v2636_v37  ;;  %2416 = vst.msk [vmem:[#allocation2 + $0xa8] sm:$0x7f] %vm1035_vm2, %v2384_v34  ;;  %2698 = vst.msk [vmem:[#allocation2 + $0x99] sm:$0x7f] %vm1035_vm2, %v2668_v35  ;;  %v2635_v46 = vld [vmem:[#allocation2 + $0x81] sm:$0xff]  ;;  %v2319_v43 = vrot.slane %v2188_v32, 1 }
 0x1c0   : > { %v2591_v7 = vpop.f32.mrf.mxu0  ;;  %2697 = vst.msk [vmem:[#allocation2 + $0x91] sm:$0xff] %vm540_vm1, %v2667_v28  ;;  %2415 = vst.msk [vmem:[#allocation2 + $0xa0] sm:$0xff] %vm540_vm1, %v2383_v36  ;;  %v4696_v48 = vpop.f32.mrf.mxu1  ;;  %v2665_v50 = vadd.f32 %v5824_v44, %v2635_v46  ;;  %v2246_v41 = vld [vmem:[#allocation2 + $0xd8] sm:$0x7f]  ;;  %v2244_v11 = vld [vmem:[#allocation2 + $0xc8] sm:$0x7f] }
 0x1c1   : > { %2696 = vst.msk [vmem:[#allocation2 + $0x89] sm:$0x7f] %vm1035_vm2, %v2666_v40  ;;  %v2323_v53 = vrot.slane %v4696_v48, 1 }
 0x1c2   : > { %v5872_v55 = vpop.f32.mrf.mxu0  ;;  %v2191_v47 = vpop.f32.mrf.mxu1  ;;  %2695 = vst.msk [vmem:[#allocation2 + $0x81] sm:$0xff] %vm540_vm1, %v2665_v50  ;;  %v2902_v50 = vld [vmem:[#allocation2 + $0x8] sm:$0xff] }
 0x1c3   : > { %v2324_v13 = vsel %vm1599_vm3, %v2322_v52, %v2323_v53  ;;  %v2390_v57 = vadd.f32 %v2323_v53, %v2246_v41  ;;  %v2320_v60 = vrot.slane %v2191_v47, 1 }
 0x1c4   : > { %v2604_v61 = vpop.f32.mrf.mxu0  ;;  %v2389_v31 = vadd.f32 %v2324_v13, %v2245_v56  ;;  %v2642_v44 = vld [vmem:[#allocation2 + $0xb9] sm:$0x7f]  ;;  %v4699_v63 = vpop.f32.mrf.mxu1 }
 0x1c5   : > { %v2641_v3 = vld [vmem:[#allocation2 + $0xb1] sm:$0xff]  ;;  %2422 = vst.msk [vmem:[#allocation2 + $0xd8] sm:$0x7f] %vm1035_vm2, %v2390_v57  ;;  %v2321_v4 = vsel %vm1599_vm3, %v2319_v43, %v2320_v60  ;;  %v2388_v0 = vadd.f32 %v2320_v60, %v2244_v11  ;;  %v2672_v39 = vadd.f32 %v2642_v44, %v2591_v7  ;;  %v2328_v19 = vrot.slane %v4699_v63, 1  ;;  %v2905_v60 = vld [vmem:[#allocation2 + $0x20] sm:$0xff] }
 0x1c6   : > { %v5878_v6 = vpop.f32.mrf.mxu0  ;;  %v2640_v45 = vld [vmem:[#allocation2 + $0xa9] sm:$0x7f]  ;;  %v2671_v8 = vadd.f32 %v2641_v3, %v2588_v25  ;;  %2421 = vst.msk [vmem:[#allocation2 + $0xd0] sm:$0xff] %vm540_vm1, %v2389_v31  ;;  %v2387_v9 = vadd.f32 %v2321_v4, %v2243_v24  ;;  %v2204_v1 = vpop.f32.mrf.mxu1 }
 0x1c7   : > { %v2670_v12 = vadd.f32 %v5846_v51, %v2640_v45  ;;  %2420 = vst.msk [vmem:[#allocation2 + $0xc8] sm:$0x7f] %vm1035_vm2, %v2388_v0  ;;  %2702 = vst.msk [vmem:[#allocation2 + $0xb9] sm:$0x7f] %vm1035_vm2, %v2672_v39  ;;  %v2639_v15 = vld [vmem:[#allocation2 + $0xa1] sm:$0xff]  ;;  %v2325_v42 = vrot.slane %v2204_v1, 1 }
 0x1c8   : > { %v2607_v22 = vpop.f32.mrf.mxu0  ;;  %2701 = vst.msk [vmem:[#allocation2 + $0xb1] sm:$0xff] %vm540_vm1, %v2671_v8  ;;  %2419 = vst.msk [vmem:[#allocation2 + $0xc0] sm:$0xff] %vm540_vm1, %v2387_v9  ;;  %v4700_v16 = vpop.f32.mrf.mxu1  ;;  %v2669_v18 = vadd.f32 %v5840_v59, %v2639_v15  ;;  %v2248_v25 = vld [vmem:[#allocation2 + $0xe8] sm:$0x7f]  ;;  %v2903_v0 = vld [vmem:[#allocation2 + $0x10] sm:$0xff] }
 0x1c9   : > { %2700 = vst.msk [vmem:[#allocation2 + $0xa9] sm:$0x7f] %vm1035_vm2, %v2670_v12  ;;  %v2329_v20 = vrot.slane %v4700_v16, 1 }
 0x1ca   : > { %v4791_v21 = vpop.f32.mrf.mxu0  ;;  %v2207_v51 = vpop.f32.mrf.mxu1  ;;  %2699 = vst.msk [vmem:[#allocation2 + $0xa1] sm:$0xff] %vm540_vm1, %v2669_v18 }
 0x1cb   : > { %v2330_v14 = vsel %vm1599_vm3, %v2328_v19, %v2329_v20  ;;  %v2394_v26 = vadd.f32 %v2329_v20, %v2250_v58  ;;  %v2326_v5 = vrot.slane %v2207_v51, 1  ;;  %v3243_v41 = vrot.slane %v4791_v21, 1  ;;  %v2904_v58 = vld [vmem:[#allocation2 + $0x18] sm:$0xff] }
 0x1cc   : > { %v3058_v27 = vpop.f32.mrf.mxu0  ;;  %v2393_v62 = vadd.f32 %v2330_v14, %v2249_v54  ;;  %v2646_v29 = vld [vmem:[#allocation2 + $0xd9] sm:$0x7f]  ;;  %v4751_v59 = vpop.f32.mrf.mxu1 }
 0x1cd   : > { %v2645_v23 = vld [vmem:[#allocation2 + $0xd1] sm:$0xff]  ;;  %2426 = vst.msk [vmem:[#allocation2 + $0xf8] sm:$0x7f] %vm1035_vm2, %v2394_v26  ;;  %v2327_v10 = vsel %vm1599_vm3, %v2325_v42, %v2326_v5  ;;  %v2392_v2 = vadd.f32 %v2326_v5, %v2248_v25  ;;  %v2676_v49 = vadd.f32 %v2646_v29, %v2607_v22  ;;  %v2931_v34 = vadd.f32 %v4751_v59, %v2901_v30  ;;  %v2906_v22 = vld [vmem:[#allocation2 + $0x28] sm:$0xff]  ;;  %v2909_v5 = vld [vmem:[#allocation2 + $0x40] sm:$0xff] }
 0x1ce   : > { %v5892_v35 = vpop.f32.mrf.mxu0  ;;  %v2644_v37 = vld [vmem:[#allocation2 + $0xc9] sm:$0x7f]  ;;  %v2675_v28 = vadd.f32 %v2645_v23, %v2604_v61  ;;  %2425 = vst.msk [vmem:[#allocation2 + $0xf0] sm:$0xff] %vm540_vm1, %v2393_v62  ;;  %v2391_v36 = vadd.f32 %v2327_v10, %v2247_v33  ;;  %v2776_v32 = vpop.f32.mrf.mxu1  ;;  %v2907_v30 = vld [vmem:[#allocation2 + $0x30] sm:$0xff] }
 0x1cf   : > { %v2674_v40 = vadd.f32 %v5862_v38, %v2644_v37  ;;  %2424 = vst.msk [vmem:[#allocation2 + $0xe8] sm:$0x7f] %vm1035_vm2, %v2392_v2  ;;  %2706 = vst.msk [vmem:[#allocation2 + $0xd9] sm:$0x7f] %vm1035_vm2, %v2676_v49  ;;  %v2643_v46 = vld [vmem:[#allocation2 + $0xc1] sm:$0xff]  ;;  %v3244_v47 = vrot.slane %v5892_v35, 1 }
 0x1d0   : > { %2961 = vst.msk [vmem:[#allocation2] sm:$0xff] %vm540_vm1, %v2931_v34  ;;  %v3060_v7 = vpop.f32.mrf.mxu0  ;;  %2705 = vst.msk [vmem:[#allocation2 + $0xd1] sm:$0xff] %vm540_vm1, %v2675_v28  ;;  %v4752_v48 = vpop.f32.mrf.mxu1  ;;  %v2673_v52 = vadd.f32 %v5856_v17, %v2643_v46 }
 0x1d1   : > { %2423 = vst.msk [vmem:[#allocation2 + $0xe0] sm:$0xff] %vm540_vm1, %v2391_v36  ;;  %v2932_v53 = vadd.f32 %v4752_v48, %v2902_v50  ;;  %v3245_v24 = vsel %vm1599_vm3, %v3243_v41, %v3244_v47  ;;  %v2910_v36 = vld [vmem:[#allocation2 + $0x48] sm:$0xff] }
 0x1d2   : > { %2704 = vst.msk [vmem:[#allocation2 + $0xc9] sm:$0x7f] %vm1035_vm2, %v2674_v40  ;;  %v4795_v38 = vpop.f32.mrf.mxu0  ;;  %v2778_v43 = vpop.f32.mrf.mxu1 }
 0x1d3   : > { %2703 = vst.msk [vmem:[#allocation2 + $0xc1] sm:$0xff] %vm540_vm1, %v2673_v52  ;;  %2962 = vst.msk [vmem:[#allocation2 + $0x8] sm:$0xff] %vm540_vm1, %v2932_v53  ;;  %v3249_v19 = vrot.slane %v4795_v38, 1  ;;  %v2908_v52 = vld [vmem:[#allocation2 + $0x38] sm:$0xff] }
 0x1d4   : > { %v3072_v56 = vpop.f32.mrf.mxu0  ;;  %v3409_v13 = vld [vmem:[#allocation2 + $0xf8] sm:$0xff]  ;;  %v4755_v57 = vpop.f32.mrf.mxu1 }
 0x1d5   : > { %v3408_v61 = vld [vmem:[#allocation2 + $0xf0] sm:$0xff]  ;;  %v4201_v17 = vpack.c.bf16 %v3409_v13, %v3409_v13  ;;  %v2935_v31 = vadd.f32 %v4755_v57, %v2905_v60  ;;  %v3246_v54 = vrot.slane %v3072_v56, 1 }
 0x1d6   : > { %v5906_v11 = vpop.f32.mrf.mxu0  ;;  %v4200_v44 = vpack.c.bf16 %v3408_v61, %v3408_v61  ;;  %v2648_v63 = vld [vmem:[#allocation2 + $0xe9] sm:$0x7f]  ;;  %v2790_v4 = vpop.f32.mrf.mxu1 }
 0x1d7   : > { %v3183_v3 = vld [vmem:[#allocation2] sm:$0xff]  ;;  %3570 = vst.msk [vmem:[%s5027_s16 + $0x7c] sm:$0xf] %vm3538_vm4, %v4201_v17  ;;  %v2678_v39 = vadd.f32 %v5878_v6, %v2648_v63  ;;  %v2933_v8 = vadd.f32 %v2903_v0, %v2790_v4  ;;  %v3250_v20 = vrot.slane %v5906_v11, 1 }
 0x1d8   : > { %v3318_v45 = vadd.f32 %v3245_v24, %v3183_v3  ;;  %2965 = vst.msk [vmem:[#allocation2 + $0x20] sm:$0xff] %vm540_vm1, %v2935_v31  ;;  %v5913_v9 = vpop.f32.mrf.mxu0  ;;  %v2647_v1 = vld [vmem:[#allocation2 + $0xe1] sm:$0xff]  ;;  %v4756_v12 = vpop.f32.mrf.mxu1 }
 0x1d9   : > { %3569 = vst.msk [vmem:[%s5027_s16 + $0x78] sm:$0xf] %vm3538_vm4, %v4200_v44  ;;  %v2677_v15 = vadd.f32 %v5872_v55, %v2647_v1  ;;  %v2936_v6 = vadd.f32 %v4756_v12, %v2906_v22  ;;  %v3247_v14 = vrot.slane %v5913_v9, 1  ;;  %v3251_v29 = vsel %vm1599_vm3, %v3249_v19, %v3250_v20  ;;  %v2913_v11 = vld [vmem:[#allocation2 + $0x60] sm:$0xff] }
 0x1da   : > { %2708 = vst.msk [vmem:[#allocation2 + $0xe9] sm:$0x7f] %vm1035_vm2, %v2678_v39  ;;  %v5921_v16 = vpop.f32.mrf.mxu0  ;;  %v3184_v18 = vld [vmem:[#allocation2 + $0x8] sm:$0x7f]  ;;  %v2793_v21 = vpop.f32.mrf.mxu1 }
 0x1db   : > { %3348 = vst.msk [vmem:[#allocation2] sm:$0xff] %vm540_vm1, %v3318_v45  ;;  %2963 = vst.msk [vmem:[#allocation2 + $0x10] sm:$0xff] %vm540_vm1, %v2933_v8  ;;  %v3319_v51 = vadd.f32 %v3244_v47, %v3184_v18  ;;  %v2934_v55 = vadd.f32 %v2904_v58, %v2793_v21  ;;  %v3248_v34 = vsel %vm1599_vm3, %v3246_v54, %v3247_v14  ;;  %v3255_v7 = vrot.slane %v5921_v16, 1  ;;  %v2911_v45 = vld [vmem:[#allocation2 + $0x50] sm:$0xff] }
 0x1dc   : > { %2707 = vst.msk [vmem:[#allocation2 + $0xe1] sm:$0xff] %vm540_vm1, %v2677_v15  ;;  %2966 = vst.msk [vmem:[#allocation2 + $0x28] sm:$0xff] %vm540_vm1, %v2936_v6  ;;  %v5926_v42 = vpop.f32.mrf.mxu0  ;;  %v4759_v26 = vpop.f32.mrf.mxu1 }
 0x1dd   : > { %3349 = vst.msk [vmem:[#allocation2 + $0x8] sm:$0x7f] %vm1035_vm2, %v3319_v51  ;;  %v2939_v27 = vadd.f32 %v4759_v26, %v2909_v5  ;;  %v3252_v56 = vrot.slane %v5926_v42, 1  ;;  %v2914_v42 = vld [vmem:[#allocation2 + $0x68] sm:$0xff] }
 0x1de   : > { %2964 = vst.msk [vmem:[#allocation2 + $0x18] sm:$0xff] %vm540_vm1, %v2934_v55  ;;  %v5931_v62 = vpop.f32.mrf.mxu0  ;;  %v2806_v59 = vpop.f32.mrf.mxu1 }
 0x1df   : > { %v3187_v25 = vld [vmem:[#allocation2 + $0x20] sm:$0xff]  ;;  %2969 = vst.msk [vmem:[#allocation2 + $0x40] sm:$0xff] %vm540_vm1, %v2939_v27  ;;  %v2937_v33 = vadd.f32 %v2907_v30, %v2806_v59  ;;  %v3256_v48 = vrot.slane %v5931_v62, 1 }
 0x1e0   : > { %v3322_v23 = vadd.f32 %v3251_v29, %v3187_v25  ;;  %v5935_v10 = vpop.f32.mrf.mxu0  ;;  %v4760_v35 = vpop.f32.mrf.mxu1  ;;  %v2917_v62 = vld [vmem:[#allocation2 + $0x80] sm:$0xff] }
 0x1e1   : > { %2967 = vst.msk [vmem:[#allocation2 + $0x30] sm:$0xff] %vm540_vm1, %v2937_v33  ;;  %v2940_v46 = vadd.f32 %v4760_v35, %v2910_v36  ;;  %v3253_v13 = vrot.slane %v5935_v10, 1  ;;  %v3257_v24 = vsel %vm1599_vm3, %v3255_v7, %v3256_v48 }
 0x1e2   : > { %v3378_v2 = vld [vmem:[#allocation2] sm:$0xff]  ;;  %v3185_v49 = vld [vmem:[#allocation2 + $0x10] sm:$0xff]  ;;  %3352 = vst.msk [vmem:[#allocation2 + $0x20] sm:$0xff] %vm540_vm1, %v3322_v23  ;;  %v5940_v32 = vpop.f32.mrf.mxu0  ;;  %v2809_v50 = vpop.f32.mrf.mxu1 }
 0x1e3   : > { %v4170_v37 = vpack.c.bf16 %v3378_v2, %v3378_v2  ;;  %v3320_v28 = vadd.f32 %v3248_v34, %v3185_v49  ;;  %v3188_v40 = vld [vmem:[#allocation2 + $0x28] sm:$0x7f]  ;;  %v2938_v38 = vadd.f32 %v2908_v52, %v2809_v50  ;;  %2970 = vst.msk [vmem:[#allocation2 + $0x48] sm:$0xff] %vm540_vm1, %v2940_v46  ;;  %v3638_v61 = vmul.f32 %v3378_v2, %v3378_v2  ;;  %v2912_v49 = vld [vmem:[#allocation2 + $0x58] sm:$0xff] }
 0x1e4   : > { %v3323_v53 = vadd.f32 %v3250_v20, %v3188_v40  ;;  %v5947_v41 = vpop.f32.mrf.mxu0  ;;  %v3379_v47 = vld [vmem:[#allocation2 + $0x8] sm:$0xff]  ;;  %v4763_v57 = vpop.f32.mrf.mxu1  ;;  %v3261_v0 = vrot.slane %v5940_v32, 1  ;;  %v3254_v16 = vsel %vm1599_vm3, %v3252_v56, %v3253_v13  ;;  %v3572_v21 = vsel %vm540_vm1, %v3378_v2, 0.0 }
 0x1e5   : > { %3539 = vst.msk [vmem:[%s5027_s16] sm:$0xf] %vm3538_vm4, %v4170_v37  ;;  %v3186_v43 = vld [vmem:[#allocation2 + $0x18] sm:$0x7f]  ;;  %v4171_v60 = vpack.c.bf16 %v3379_v47, %v3379_v47  ;;  %v3639_v17 = vmul.f32 %v3379_v47, %v3379_v47  ;;  %v3573_v63 = vsel %vm540_vm1, %v3379_v47, 0.0  ;;  %v2943_v4 = vadd.f32 %v4763_v57, %v2913_v11 }
 0x1e6   : > { %3350 = vst.msk [vmem:[#allocation2 + $0x10] sm:$0xff] %vm540_vm1, %v3320_v28  ;;  %v3321_v31 = vadd.f32 %v3247_v14, %v3186_v43  ;;  %2968 = vst.msk [vmem:[#allocation2 + $0x38] sm:$0xff] %vm540_vm1, %v2938_v38  ;;  %v5954_v44 = vpop.f32.mrf.mxu0  ;;  %v3191_v3 = vld [vmem:[#allocation2 + $0x40] sm:$0xff]  ;;  %v2822_v39 = vpop.f32.mrf.mxu1  ;;  %v3258_v18 = vrot.slane %v5947_v41, 1  ;;  %v3670_v58 = vsel %vm540_vm1, %v3638_v61, 0.0  ;;  %v3574_v14 = vadd.f32 %v3573_v63, %v3572_v21 }
 0x1e7   : > { %3353 = vst.msk [vmem:[#allocation2 + $0x28] sm:$0x7f] %vm1035_vm2, %v3323_v53  ;;  %v3671_v8 = vsel %vm540_vm1, %v3639_v17, 0.0  ;;  %v3326_v9 = vadd.f32 %v3257_v24, %v3191_v3  ;;  %v2941_v1 = vadd.f32 %v2911_v45, %v2822_v39  ;;  %v3262_v12 = vrot.slane %v5954_v44, 1  ;;  %v2915_v17 = vld [vmem:[#allocation2 + $0x70] sm:$0xff] }
 0x1e8   : > { %3540 = vst.msk [vmem:[%s5027_s16 + $0x4] sm:$0xf] %vm3538_vm4, %v4171_v60  ;;  %v5966_v22 = vpop.f32.mrf.mxu0  ;;  %v3189_v6 = vld [vmem:[#allocation2 + $0x30] sm:$0xff]  ;;  %v4764_v19 = vpop.f32.mrf.mxu1  ;;  %v3672_v26 = vadd.f32 %v3671_v8, %v3670_v58 }
 0x1e9   : > { %3351 = vst.msk [vmem:[#allocation2 + $0x18] sm:$0x7f] %vm1035_vm2, %v3321_v31  ;;  %v3382_v15 = vld [vmem:[#allocation2 + $0x20] sm:$0xff]  ;;  %v3259_v20 = vrot.slane %v5966_v22, 1  ;;  %v3324_v55 = vadd.f32 %v3254_v16, %v3189_v6  ;;  %v2944_v25 = vadd.f32 %v4764_v19, %v2914_v42  ;;  %v3263_v2 = vsel %vm1599_vm3, %v3261_v0, %v3262_v12  ;;  %v2918_v6 = vld [vmem:[#allocation2 + $0x88] sm:$0xff] }
 0x1ea   : > { %2973 = vst.msk [vmem:[#allocation2 + $0x60] sm:$0xff] %vm540_vm1, %v2943_v4  ;;  %v4174_v51 = vpack.c.bf16 %v3382_v15, %v3382_v15  ;;  %3356 = vst.msk [vmem:[#allocation2 + $0x40] sm:$0xff] %vm540_vm1, %v3326_v9  ;;  %v5978_v54 = vpop.f32.mrf.mxu0  ;;  %v3642_v5 = vmul.f32 %v3382_v15, %v3382_v15  ;;  %v2825_v29 = vpop.f32.mrf.mxu1  ;;  %v3192_v33 = vld [vmem:[#allocation2 + $0x48] sm:$0x7f]  ;;  %v3579_v37 = vsel %vm540_vm1, %v3382_v15, 0.0 }
 0x1eb   : > { %2971 = vst.msk [vmem:[#allocation2 + $0x50] sm:$0xff] %vm540_vm1, %v2941_v1  ;;  %3354 = vst.msk [vmem:[#allocation2 + $0x30] sm:$0xff] %vm540_vm1, %v3324_v55  ;;  %v3327_v28 = vadd.f32 %v3256_v48, %v3192_v33  ;;  %v2942_v32 = vadd.f32 %v2912_v49, %v2825_v29  ;;  %v3260_v40 = vsel %vm1599_vm3, %v3258_v18, %v3259_v20  ;;  %v3267_v48 = vrot.slane %v5978_v54, 1 }
 0x1ec   : > { %3543 = vst.msk [vmem:[%s5027_s16 + $0x10] sm:$0xf] %vm3538_vm4, %v4174_v51  ;;  %v5987_v34 = vpop.f32.mrf.mxu0  ;;  %v4767_v7 = vpop.f32.mrf.mxu1  ;;  %v3677_v41 = vsel %vm540_vm1, %v3642_v5, 0.0 }
 0x1ed   : > { %v3380_v27 = vld [vmem:[#allocation2 + $0x10] sm:$0xff]  ;;  %v3190_v36 = vld [vmem:[#allocation2 + $0x38] sm:$0x7f]  ;;  %2974 = vst.msk [vmem:[#allocation2 + $0x68] sm:$0xff] %vm540_vm1, %v2944_v25  ;;  %2972 = vst.msk [vmem:[#allocation2 + $0x58] sm:$0xff] %vm540_vm1, %v2942_v32  ;;  %v2947_v56 = vadd.f32 %v4767_v7, %v2917_v62  ;;  %v3264_v15 = vrot.slane %v5987_v34, 1 }
 0x1ee   : > { %v4172_v59 = vpack.c.bf16 %v3380_v27, %v3380_v27  ;;  %v3575_v30 = vsel %vm540_vm1, %v3380_v27, 0.0  ;;  %v3640_v23 = vmul.f32 %v3380_v27, %v3380_v27  ;;  %v3383_v35 = vld [vmem:[#allocation2 + $0x28] sm:$0xff]  ;;  %v3325_v52 = vadd.f32 %v3253_v13, %v3190_v36  ;;  %v6002_v53 = vpop.f32.mrf.mxu0  ;;  %3357 = vst.msk [vmem:[#allocation2 + $0x48] sm:$0x7f] %vm1035_vm2, %v3327_v28  ;;  %v2838_v57 = vpop.f32.mrf.mxu1  ;;  %v2916_v27 = vld [vmem:[#allocation2 + $0x78] sm:$0xff] }
 0x1ef   : > { %v4175_v46 = vpack.c.bf16 %v3383_v35, %v3383_v35  ;;  %v3643_v38 = vmul.f32 %v3383_v35, %v3383_v35  ;;  %v3576_v43 = vadd.f32 %v3575_v30, %v3574_v14  ;;  %v3268_v31 = vrot.slane %v6002_v53, 1  ;;  %2977 = vst.msk [vmem:[#allocation2 + $0x80] sm:$0xff] %vm540_vm1, %v2947_v56 }
 0x1f0   : > { %3541 = vst.msk [vmem:[%s5027_s16 + $0x8] sm:$0xf] %vm3538_vm4, %v4172_v59  ;;  %v3673_v50 = vsel %vm540_vm1, %v3640_v23, 0.0  ;;  %v3381_v47 = vld [vmem:[#allocation2 + $0x18] sm:$0xff]  ;;  %v6012_v11 = vpop.f32.mrf.mxu0  ;;  %v2945_v39 = vadd.f32 %v2915_v17, %v2838_v57  ;;  %v4768_v45 = vpop.f32.mrf.mxu1  ;;  %v3581_v1 = vsel %vm540_vm1, %v3383_v35, 0.0 }
 0x1f1   : > { %3544 = vst.msk [vmem:[%s5027_s16 + $0x14] sm:$0xf] %vm3538_vm4, %v4175_v46  ;;  %v4173_v10 = vpack.c.bf16 %v3381_v47, %v3381_v47  ;;  %v3577_v13 = vsel %vm540_vm1, %v3381_v47, 0.0  ;;  %v3641_v60 = vmul.f32 %v3381_v47, %v3381_v47  ;;  %v3195_v61 = vld [vmem:[#allocation2 + $0x60] sm:$0xff]  ;;  %v3674_v3 = vadd.f32 %v3673_v50, %v3672_v26 }
 0x1f2   : > { %3355 = vst.msk [vmem:[#allocation2 + $0x38] sm:$0x7f] %vm1035_vm2, %v3325_v52  ;;  %v3578_v63 = vadd.f32 %v3577_v13, %v3576_v43  ;;  %v3386_v24 = vld [vmem:[#allocation2 + $0x40] sm:$0xff]  ;;  %v3330_v4 = vadd.f32 %v3263_v2, %v3195_v61  ;;  %v3193_v0 = vld [vmem:[#allocation2 + $0x50] sm:$0xff]  ;;  %v6020_v16 = vpop.f32.mrf.mxu0  ;;  %v2948_v51 = vadd.f32 %v4768_v45, %v2918_v6  ;;  %v2841_v55 = vpop.f32.mrf.mxu1  ;;  %v3679_v14 = vsel %vm540_vm1, %v3643_v38, 0.0 }
 0x1f3   : > { %3542 = vst.msk [vmem:[%s5027_s16 + $0xc] sm:$0xf] %vm3538_vm4, %v4173_v10  ;;  %v3675_v8 = vsel %vm540_vm1, %v3641_v60, 0.0  ;;  %v4178_v9 = vpack.c.bf16 %v3386_v24, %v3386_v24  ;;  %v3384_v19 = vld [vmem:[#allocation2 + $0x30] sm:$0xff]  ;;  %v3328_v58 = vadd.f32 %v3260_v40, %v3193_v0  ;;  %v3269_v5 = vsel %vm1599_vm3, %v3267_v48, %v3268_v31  ;;  %v2921_v2 = vld [vmem:[#allocation2 + $0xa0] sm:$0xff] }
 0x1f4   : > { %v3676_v18 = vadd.f32 %v3675_v8, %v3674_v3  ;;  %v3580_v21 = vadd.f32 %v3579_v37, %v3578_v63  ;;  %3360 = vst.msk [vmem:[#allocation2 + $0x60] sm:$0xff] %vm540_vm1, %v3330_v4  ;;  %2975 = vst.msk [vmem:[#allocation2 + $0x70] sm:$0xff] %vm540_vm1, %v2945_v39  ;;  %v4176_v42 = vpack.c.bf16 %v3384_v19, %v3384_v19  ;;  %v3196_v26 = vld [vmem:[#allocation2 + $0x68] sm:$0x7f]  ;;  %v6030_v25 = vpop.f32.mrf.mxu0  ;;  %v4771_v33 = vpop.f32.mrf.mxu1  ;;  %v3583_v37 = vsel %vm540_vm1, %v3384_v19, 0.0  ;;  %v2919_v60 = vld [vmem:[#allocation2 + $0x90] sm:$0xff] }
 0x1f5   : > { %3547 = vst.msk [vmem:[%s5027_s16 + $0x20] sm:$0xf] %vm3538_vm4, %v4178_v9  ;;  %v3644_v54 = vmul.f32 %v3384_v19, %v3384_v19  ;;  %v3331_v30 = vadd.f32 %v3262_v12, %v3196_v26  ;;  %v2946_v23 = vadd.f32 %v2916_v27, %v2841_v55  ;;  %v3387_v49 = vld [vmem:[#allocation2 + $0x48] sm:$0xff]  ;;  %v3646_v35 = vmul.f32 %v3386_v24, %v3386_v24  ;;  %v3194_v36 = vld [vmem:[#allocation2 + $0x58] sm:$0x7f] }
 0x1f6   : > { %v3582_v29 = vadd.f32 %v3581_v1, %v3580_v21  ;;  %v3678_v59 = vadd.f32 %v3677_v41, %v3676_v18  ;;  %3358 = vst.msk [vmem:[#allocation2 + $0x50] sm:$0xff] %vm540_vm1, %v3328_v58  ;;  %2978 = vst.msk [vmem:[#allocation2 + $0x88] sm:$0xff] %vm540_vm1, %v2948_v51  ;;  %v2951_v32 = vadd.f32 %v4771_v33, %v2921_v2  ;;  %v6040_v40 = vpop.f32.mrf.mxu0  ;;  %v3265_v50 = vrot.slane %v6012_v11, 1  ;;  %v2854_v52 = vpop.f32.mrf.mxu1  ;;  %v3199_v47 = vld [vmem:[#allocation2 + $0x80] sm:$0xff]  ;;  %v2922_v8 = vld [vmem:[#allocation2 + $0xa8] sm:$0xff] }
 0x1f7   : > { %3545 = vst.msk [vmem:[%s5027_s16 + $0x18] sm:$0xf] %vm3538_vm4, %v4176_v42  ;;  %v3681_v28 = vsel %vm540_vm1, %v3644_v54, 0.0  ;;  %v4179_v44 = vpack.c.bf16 %v3387_v49, %v3387_v49  ;;  %v3329_v41 = vadd.f32 %v3259_v20, %v3194_v36  ;;  %v3587_v56 = vsel %vm540_vm1, %v3386_v24, 0.0  ;;  %v2920_v36 = vld [vmem:[#allocation2 + $0x98] sm:$0xff] }
 0x1f8   : > { %v3584_v7 = vadd.f32 %v3583_v37, %v3582_v29  ;;  %v3680_v46 = vadd.f32 %v3679_v14, %v3678_v59  ;;  %3361 = vst.msk [vmem:[#allocation2 + $0x68] sm:$0x7f] %vm1035_vm2, %v3331_v30  ;;  %v6049_v43 = vpop.f32.mrf.mxu0  ;;  %v3647_v57 = vmul.f32 %v3387_v49, %v3387_v49  ;;  %v4772_v61 = vpop.f32.mrf.mxu1  ;;  %v3685_v17 = vsel %vm540_vm1, %v3646_v35, 0.0 }
 0x1f9   : > { %v3385_v12 = vld [vmem:[#allocation2 + $0x38] sm:$0xff]  ;;  %2976 = vst.msk [vmem:[#allocation2 + $0x78] sm:$0xff] %vm540_vm1, %v2946_v23  ;;  %2981 = vst.msk [vmem:[#allocation2 + $0xa0] sm:$0xff] %vm540_vm1, %v2951_v32  ;;  %v3334_v11 = vadd.f32 %v3269_v5, %v3199_v47  ;;  %v2949_v3 = vadd.f32 %v2919_v60, %v2854_v52  ;;  %v3266_v39 = vsel %vm1599_vm3, %v3264_v15, %v3265_v50  ;;  %v3273_v45 = vrot.slane %v6020_v16, 1 }
 0x1fa   : > { %v4177_v62 = vpack.c.bf16 %v3385_v12, %v3385_v12  ;;  %v3585_v48 = vsel %vm540_vm1, %v3385_v12, 0.0  ;;  %v3645_v38 = vmul.f32 %v3385_v12, %v3385_v12  ;;  %3548 = vst.msk [vmem:[%s5027_s16 + $0x24] sm:$0xf] %vm3538_vm4, %v4179_v44  ;;  %v3682_v13 = vadd.f32 %v3681_v28, %v3680_v46  ;;  %v6061_v4 = vpop.f32.mrf.mxu0  ;;  %v2857_v9 = vpop.f32.mrf.mxu1 }
 0x1fb   : > { %v3586_v10 = vadd.f32 %v3585_v48, %v3584_v7  ;;  %v6058_v20 = vld [vmem:[#allocation2 + $0x60] sm:$0xff]  ;;  %3359 = vst.msk [vmem:[#allocation2 + $0x58] sm:$0x7f] %vm1035_vm2, %v3329_v41  ;;  %v3197_v63 = vld [vmem:[#allocation2 + $0x70] sm:$0xff]  ;;  %v3589_v18 = vsel %vm540_vm1, %v3387_v49, 0.0  ;;  %v2952_v58 = vadd.f32 %v4772_v61, %v2922_v8  ;;  %v3687_v55 = vsel %vm540_vm1, %v3647_v57, 0.0 }
 0x1fc   : > { %3546 = vst.msk [vmem:[%s5027_s16 + $0x1c] sm:$0xf] %vm3538_vm4, %v4177_v62  ;;  %v3683_v22 = vsel %vm540_vm1, %v3645_v38, 0.0  ;;  %v4182_v0 = vpack.c.bf16 %v6058_v20, %v6058_v20  ;;  %v3332_v21 = vadd.f32 %v3266_v39, %v3197_v63  ;;  %v6072_v51 = vpop.f32.mrf.mxu0  ;;  %v3650_v34 = vmul.f32 %v6058_v20, %v6058_v20  ;;  %v4775_v42 = vpop.f32.mrf.mxu1  ;;  %v2925_v48 = vld [vmem:[#allocation2 + $0xc0] sm:$0xff] }
 0x1fd   : > { %v3684_v24 = vadd.f32 %v3683_v22, %v3682_v13  ;;  %v3388_v1 = vld [vmem:[#allocation2 + $0x50] sm:$0xff]  ;;  %v3588_v6 = vadd.f32 %v3587_v56, %v3586_v10  ;;  %v3200_v19 = vld [vmem:[#allocation2 + $0x88] sm:$0x7f]  ;;  %3364 = vst.msk [vmem:[#allocation2 + $0x80] sm:$0xff] %vm540_vm1, %v3334_v11  ;;  %2979 = vst.msk [vmem:[#allocation2 + $0x90] sm:$0xff] %vm540_vm1, %v2949_v3  ;;  %v3274_v29 = vrot.slane %v6040_v40, 1  ;;  %v2950_v12 = vadd.f32 %v2920_v36, %v2857_v9 }
 0x1fe   : > { %3551 = vst.msk [vmem:[%s5027_s16 + $0x30] sm:$0xf] %vm3538_vm4, %v4182_v0  ;;  %v4180_v15 = vpack.c.bf16 %v3388_v1, %v3388_v1  ;;  %v3648_v16 = vmul.f32 %v3388_v1, %v3388_v1  ;;  %v3335_v5 = vadd.f32 %v3268_v31, %v3200_v19  ;;  %v6084_v59 = vpop.f32.mrf.mxu0  ;;  %v3591_v23 = vsel %vm540_vm1, %v3388_v1, 0.0  ;;  %v2870_v31 = vpop.f32.mrf.mxu1 }
 0x1ff   : > { %v3391_v54 = vld [vmem:[#allocation2 + $0x68] sm:$0xff]  ;;  %v3590_v14 = vadd.f32 %v3589_v18, %v3588_v6  ;;  %v3686_v26 = vadd.f32 %v3685_v17, %v3684_v24  ;;  %3362 = vst.msk [vmem:[#allocation2 + $0x70] sm:$0xff] %vm540_vm1, %v3332_v21  ;;  %2982 = vst.msk [vmem:[#allocation2 + $0xa8] sm:$0xff] %vm540_vm1, %v2952_v58  ;;  %v3270_v2 = vrot.slane %v6030_v25, 1  ;;  %v3275_v28 = vsel %vm1599_vm3, %v3273_v45, %v3274_v29 }
 0x200   : > { %v3198_v27 = vld [vmem:[#allocation2 + $0x78] sm:$0x7f]  ;;  %v4183_v30 = vpack.c.bf16 %v3391_v54, %v3391_v54  ;;  %3549 = vst.msk [vmem:[%s5027_s16 + $0x28] sm:$0xf] %vm3538_vm4, %v4180_v15  ;;  %v3203_v53 = vld [vmem:[#allocation2 + $0xa0] sm:$0xff]  ;;  %v3651_v49 = vmul.f32 %v3391_v54, %v3391_v54  ;;  %v3689_v40 = vsel %vm540_vm1, %v3648_v16, 0.0  ;;  %v4776_v7 = vpop.f32.mrf.mxu1  ;;  %v6098_v38 = vpop.f32.mrf.mxu0  ;;  %v2955_v10 = vadd.f32 %v4775_v42, %v2925_v48 }
 0x201   : > { %v3333_v33 = vadd.f32 %v3265_v50, %v3198_v27  ;;  %v3592_v35 = vadd.f32 %v3591_v23, %v3590_v14  ;;  %v3688_v37 = vadd.f32 %v3687_v55, %v3686_v26  ;;  %3365 = vst.msk [vmem:[#allocation2 + $0x88] sm:$0x7f] %vm1035_vm2, %v3335_v5  ;;  %v3338_v44 = vadd.f32 %v3275_v28, %v3203_v53 }
 0x202   : > { %3552 = vst.msk [vmem:[%s5027_s16 + $0x34] sm:$0xf] %vm3538_vm4, %v4183_v30  ;;  %v3389_v32 = vld [vmem:[#allocation2 + $0x58] sm:$0xff]  ;;  %v3271_v25 = vrot.slane %v6049_v43, 1  ;;  %v3595_v41 = vsel %vm540_vm1, %v6058_v20, 0.0  ;;  %v6104_v13 = vpop.f32.mrf.mxu1  ;;  %v3693_v60 = vsel %vm540_vm1, %v3650_v34, 0.0  ;;  %v6119_v18 = vpop.f32.mrf.mxu0 }
 0x203   : > { %3363 = vst.msk [vmem:[#allocation2 + $0x78] sm:$0x7f] %vm1035_vm2, %v3333_v33  ;;  %v4181_v46 = vpack.c.bf16 %v3389_v32, %v3389_v32  ;;  %v3593_v50 = vsel %vm540_vm1, %v3389_v32, 0.0  ;;  %v3649_v52 = vmul.f32 %v3389_v32, %v3389_v32  ;;  %v3690_v62 = vadd.f32 %v3689_v40, %v3688_v37  ;;  %v2923_v20 = vld [vmem:[#allocation2 + $0xb0] sm:$0xff]  ;;  %v2926_v30 = vld [vmem:[#allocation2 + $0xc8] sm:$0xff] }
 0x204   : > { %v3594_v47 = vadd.f32 %v3593_v50, %v3592_v35  ;;  %v3394_v56 = vld [vmem:[#allocation2 + $0x80] sm:$0xff]  ;;  %3368 = vst.msk [vmem:[#allocation2 + $0xa0] sm:$0xff] %vm540_vm1, %v3338_v44  ;;  %2980 = vst.msk [vmem:[#allocation2 + $0x98] sm:$0xff] %vm540_vm1, %v2950_v12  ;;  %v3201_v57 = vld [vmem:[#allocation2 + $0x90] sm:$0xff]  ;;  %v3272_v22 = vsel %vm1599_vm3, %v3270_v2, %v3271_v25  ;;  %v2953_v39 = vadd.f32 %v2923_v20, %v2870_v31  ;;  %v4779_v45 = vpop.f32.mrf.mxu1  ;;  %v3597_v9 = vsel %vm540_vm1, %v3391_v54, 0.0  ;;  %v6135_v35 = vpop.f32.mrf.mxu0 }
 0x205   : > { %3550 = vst.msk [vmem:[%s5027_s16 + $0x2c] sm:$0xf] %vm3538_vm4, %v4181_v46  ;;  %v3691_v61 = vsel %vm540_vm1, %v3649_v52, 0.0  ;;  %v4186_v17 = vpack.c.bf16 %v3394_v56, %v3394_v56  ;;  %v3336_v0 = vadd.f32 %v3272_v22, %v3201_v57  ;;  %v3695_v1 = vsel %vm540_vm1, %v3651_v49, 0.0 }
 0x206   : > { %v3692_v11 = vadd.f32 %v3691_v61, %v3690_v62  ;;  %v3392_v63 = vld [vmem:[#allocation2 + $0x70] sm:$0xff]  ;;  %v3596_v3 = vadd.f32 %v3595_v41, %v3594_v47  ;;  %v3204_v24 = vld [vmem:[#allocation2 + $0xa8] sm:$0x7f]  ;;  %2985 = vst.msk [vmem:[#allocation2 + $0xc0] sm:$0xff] %vm540_vm1, %v2955_v10  ;;  %v3279_v6 = vrot.slane %v6061_v4, 1  ;;  %2983 = vst.msk [vmem:[#allocation2 + $0xb0] sm:$0xff] %vm540_vm1, %v2953_v39  ;;  %v3654_v42 = vmul.f32 %v3394_v56, %v3394_v56  ;;  %v2886_v14 = vpop.f32.mrf.mxu1  ;;  %v6153_v57 = vpop.f32.mrf.mxu0 }
 0x207   : > { %3555 = vst.msk [vmem:[%s5027_s16 + $0x40] sm:$0xf] %vm3538_vm4, %v4186_v17  ;;  %v4184_v8 = vpack.c.bf16 %v3392_v63, %v3392_v63  ;;  %v3652_v58 = vmul.f32 %v3392_v63, %v3392_v63  ;;  %v3339_v15 = vadd.f32 %v3274_v29, %v3204_v24  ;;  %v3603_v55 = vsel %vm540_vm1, %v3394_v56, 0.0  ;;  %v2929_v41 = vld [vmem:[#allocation2 + $0xe0] sm:$0xff]  ;;  %v2927_v17 = vld [vmem:[#allocation2 + $0xd0] sm:$0xff] }
 0x208   : > { %v3395_v19 = vld [vmem:[#allocation2 + $0x88] sm:$0xff]  ;;  %v3598_v21 = vadd.f32 %v3597_v9, %v3596_v3  ;;  %v3694_v34 = vadd.f32 %v3693_v60, %v3692_v11  ;;  %3366 = vst.msk [vmem:[#allocation2 + $0x90] sm:$0xff] %vm540_vm1, %v3336_v0  ;;  %v3599_v4 = vsel %vm540_vm1, %v3392_v63, 0.0  ;;  %v3276_v53 = vrot.slane %v6072_v51, 1  ;;  %v4780_v46 = vpop.f32.mrf.mxu1 }
 0x209   : > { %v4187_v16 = vpack.c.bf16 %v3395_v19, %v3395_v19  ;;  %3553 = vst.msk [vmem:[%s5027_s16 + $0x38] sm:$0xf] %vm3538_vm4, %v4184_v8  ;;  %v2956_v31 = vadd.f32 %v4776_v7, %v2926_v30  ;;  %v3280_v49 = vrot.slane %v6084_v59, 1  ;;  %v3697_v28 = vsel %vm540_vm1, %v3652_v58, 0.0  ;;  %v2924_v7 = vld [vmem:[#allocation2 + $0xb8] sm:$0xff] }
 0x20a   : > { %v3393_v54 = vld [vmem:[#allocation2 + $0x78] sm:$0xff]  ;;  %v3600_v5 = vadd.f32 %v3599_v4, %v3598_v21  ;;  %3369 = vst.msk [vmem:[#allocation2 + $0xa8] sm:$0x7f] %vm1035_vm2, %v3339_v15  ;;  %v3696_v23 = vadd.f32 %v3695_v1, %v3694_v34  ;;  %v3655_v40 = vmul.f32 %v3395_v19, %v3395_v19  ;;  %v2954_v62 = vadd.f32 %v2924_v7, %v6104_v13  ;;  %v2889_v3 = vpop.f32.mrf.mxu1  ;;  %v3171_v21 = vpop.f32.mrf.mxu0 }
 0x20b   : > { %v4185_v26 = vpack.c.bf16 %v3393_v54, %v3393_v54  ;;  %v3601_v27 = vsel %vm540_vm1, %v3393_v54, 0.0  ;;  %v3653_v29 = vmul.f32 %v3393_v54, %v3393_v54  ;;  %3556 = vst.msk [vmem:[%s5027_s16 + $0x44] sm:$0xf] %vm3538_vm4, %v4187_v16  ;;  %v6131_v33 = vld [vmem:[#allocation2 + $0xa0] sm:$0xff]  ;;  %v3202_v2 = vld [vmem:[#allocation2 + $0x98] sm:$0x7f]  ;;  %v3281_v12 = vsel %vm1599_vm3, %v3279_v6, %v3280_v49 }
 0x20c   : > { %v3602_v37 = vadd.f32 %v3601_v27, %v3600_v5  ;;  %v4190_v32 = vpack.c.bf16 %v6131_v33, %v6131_v33  ;;  %v3698_v44 = vadd.f32 %v3697_v28, %v3696_v23  ;;  %v3337_v51 = vadd.f32 %v3271_v25, %v3202_v2  ;;  %2986 = vst.msk [vmem:[#allocation2 + $0xc8] sm:$0xff] %vm540_vm1, %v2956_v31 }
 0x20d   : > { %3554 = vst.msk [vmem:[%s5027_s16 + $0x3c] sm:$0xf] %vm3538_vm4, %v4185_v26  ;;  %v3699_v36 = vsel %vm540_vm1, %v3653_v29, 0.0  ;;  %v3207_v59 = vld [vmem:[#allocation2 + $0xc0] sm:$0xff]  ;;  %v3277_v48 = vrot.slane %v6098_v38, 1  ;;  %v3605_v25 = vsel %vm540_vm1, %v3395_v19, 0.0  ;;  %v2959_v56 = vadd.f32 %v4779_v45, %v2929_v41 }
 0x20e   : > { %3559 = vst.msk [vmem:[%s5027_s16 + $0x50] sm:$0xf] %vm3538_vm4, %v4190_v32  ;;  %v3604_v50 = vadd.f32 %v3603_v55, %v3602_v37  ;;  %v3342_v52 = vadd.f32 %v3281_v12, %v3207_v59  ;;  %v3700_v47 = vadd.f32 %v3699_v36, %v3698_v44  ;;  %v3701_v10 = vsel %vm540_vm1, %v3654_v42, 0.0  ;;  %v3205_v13 = vld [vmem:[#allocation2 + $0xb0] sm:$0xff]  ;;  %v2930_v45 = vld [vmem:[#allocation2 + $0xe8] sm:$0xff]  ;;  %v2928_v19 = vld [vmem:[#allocation2 + $0xd8] sm:$0xff] }
 0x20f   : > { %3367 = vst.msk [vmem:[#allocation2 + $0x98] sm:$0x7f] %vm1035_vm2, %v3337_v51  ;;  %v3396_v43 = vld [vmem:[#allocation2 + $0x90] sm:$0xff]  ;;  %v2957_v63 = vadd.f32 %v2927_v17, %v2886_v14  ;;  %v3703_v0 = vsel %vm540_vm1, %v3655_v40, 0.0  ;;  %v3278_v39 = vsel %vm1599_vm3, %v3276_v53, %v3277_v48  ;;  %v2960_v6 = vadd.f32 %v4780_v46, %v2930_v45 }
 0x210   : > { %v4188_v60 = vpack.c.bf16 %v3396_v43, %v3396_v43  ;;  %v3606_v61 = vadd.f32 %v3605_v25, %v3604_v50  ;;  %3372 = vst.msk [vmem:[#allocation2 + $0xc0] sm:$0xff] %vm540_vm1, %v3342_v52  ;;  %2984 = vst.msk [vmem:[#allocation2 + $0xb8] sm:$0xff] %vm540_vm1, %v2954_v62  ;;  %v3656_v20 = vmul.f32 %v3396_v43, %v3396_v43  ;;  %v3607_v8 = vsel %vm540_vm1, %v3396_v43, 0.0 }
 0x211   : > { %v3399_v22 = vld [vmem:[#allocation2 + $0xa8] sm:$0xff]  ;;  %v3702_v11 = vadd.f32 %v3701_v10, %v3700_v47  ;;  %2989 = vst.msk [vmem:[#allocation2 + $0xe0] sm:$0xff] %vm540_vm1, %v2959_v56  ;;  %v3340_v1 = vadd.f32 %v3278_v39, %v3205_v13  ;;  %2987 = vst.msk [vmem:[#allocation2 + $0xd0] sm:$0xff] %vm540_vm1, %v2957_v63  ;;  %v3285_v15 = vrot.slane %v6119_v18, 1  ;;  %v3286_v16 = vrot.slane %v6153_v57, 1 }
 0x212   : > { %v4191_v24 = vpack.c.bf16 %v3399_v22, %v3399_v22  ;;  %3557 = vst.msk [vmem:[%s5027_s16 + $0x48] sm:$0xf] %vm3538_vm4, %v4188_v60  ;;  %v3608_v58 = vadd.f32 %v3607_v8, %v3606_v61  ;;  %v2958_v55 = vadd.f32 %v2928_v19, %v2889_v3  ;;  %v3705_v42 = vsel %vm540_vm1, %v3656_v20, 0.0 }
 0x213   : > { %v3704_v9 = vadd.f32 %v3703_v0, %v3702_v11  ;;  %v3208_v34 = vld [vmem:[#allocation2 + $0xc8] sm:$0x7f]  ;;  %3370 = vst.msk [vmem:[#allocation2 + $0xb0] sm:$0xff] %vm540_vm1, %v3340_v1  ;;  %2990 = vst.msk [vmem:[#allocation2 + $0xe8] sm:$0xff] %vm540_vm1, %v2960_v6  ;;  %v3282_v26 = vrot.slane %v6135_v35, 1  ;;  %v3283_v5 = vrot.slane %v3171_v21, 1  ;;  %v3658_v18 = vmul.f32 %v6131_v33, %v6131_v33 }
 0x214   : > { %3560 = vst.msk [vmem:[%s5027_s16 + $0x54] sm:$0xf] %vm3538_vm4, %v4191_v24  ;;  %v3343_v54 = vadd.f32 %v3280_v49, %v3208_v34  ;;  %v3611_v53 = vsel %vm540_vm1, %v6131_v33, 0.0  ;;  %v3287_v37 = vsel %vm1599_vm3, %v3285_v15, %v3286_v16  ;;  %v3659_v28 = vmul.f32 %v3399_v22, %v3399_v22 }
 0x215   : > { %v3706_v14 = vadd.f32 %v3705_v42, %v3704_v9  ;;  %2988 = vst.msk [vmem:[#allocation2 + $0xd8] sm:$0xff] %vm540_vm1, %v2958_v55  ;;  %v3284_v33 = vsel %vm1599_vm3, %v3282_v26, %v3283_v5  ;;  %v3709_v12 = vsel %vm540_vm1, %v3658_v18, 0.0  ;;  %v3613_v7 = vsel %vm540_vm1, %v3399_v22, 0.0 }
 0x216   : > { %v3397_v4 = vld [vmem:[#allocation2 + $0x98] sm:$0xff]  ;;  %3373 = vst.msk [vmem:[#allocation2 + $0xc8] sm:$0x7f] %vm1035_vm2, %v3343_v54  ;;  %v3711_v47 = vsel %vm540_vm1, %v3659_v28, 0.0 }
 0x217   : > { %v4189_v27 = vpack.c.bf16 %v3397_v4, %v3397_v4  ;;  %v3609_v29 = vsel %vm540_vm1, %v3397_v4, 0.0  ;;  %v3657_v30 = vmul.f32 %v3397_v4, %v3397_v4  ;;  %v3402_v23 = vld [vmem:[#allocation2 + $0xc0] sm:$0xff]  ;;  %v3206_v2 = vld [vmem:[#allocation2 + $0xb8] sm:$0x7f] }
 0x218   : > { %v3610_v31 = vadd.f32 %v3609_v29, %v3608_v58  ;;  %v4194_v49 = vpack.c.bf16 %v3402_v23, %v3402_v23  ;;  %v3211_v35 = vld [vmem:[#allocation2 + $0xe0] sm:$0xff]  ;;  %v3341_v32 = vadd.f32 %v3277_v48, %v3206_v2  ;;  %v3209_v59 = vld [vmem:[#allocation2 + $0xd0] sm:$0xff]  ;;  %v3662_v22 = vmul.f32 %v3402_v23, %v3402_v23 }
 0x219   : > { %3558 = vst.msk [vmem:[%s5027_s16 + $0x4c] sm:$0xf] %vm3538_vm4, %v4189_v27  ;;  %v3707_v36 = vsel %vm540_vm1, %v3657_v30, 0.0  ;;  %v3346_v40 = vadd.f32 %v3287_v37, %v3211_v35  ;;  %v3344_v46 = vadd.f32 %v3284_v33, %v3209_v59  ;;  %v3619_v9 = vsel %vm540_vm1, %v3402_v23, 0.0 }
 0x21a   : > { %v3708_v44 = vadd.f32 %v3707_v36, %v3706_v14  ;;  %3563 = vst.msk [vmem:[%s5027_s16 + $0x60] sm:$0xf] %vm3538_vm4, %v4194_v49  ;;  %v3612_v51 = vadd.f32 %v3611_v53, %v3610_v31  ;;  %v3400_v38 = vld [vmem:[#allocation2 + $0xb0] sm:$0xff]  ;;  %v3212_v62 = vld [vmem:[#allocation2 + $0xe8] sm:$0x7f]  ;;  %v3717_v15 = vsel %vm540_vm1, %v3662_v22, 0.0 }
 0x21b   : > { %3371 = vst.msk [vmem:[#allocation2 + $0xb8] sm:$0x7f] %vm1035_vm2, %v3341_v32  ;;  %v4192_v48 = vpack.c.bf16 %v3400_v38, %v3400_v38  ;;  %v3660_v41 = vmul.f32 %v3400_v38, %v3400_v38  ;;  %v3347_v43 = vadd.f32 %v3286_v16, %v3212_v62  ;;  %v3615_v61 = vsel %vm540_vm1, %v3400_v38, 0.0 }
 0x21c   : > { %3376 = vst.msk [vmem:[#allocation2 + $0xe0] sm:$0xff] %vm540_vm1, %v3346_v40  ;;  %v3614_v50 = vadd.f32 %v3613_v7, %v3612_v51  ;;  %v3710_v52 = vadd.f32 %v3709_v12, %v3708_v44  ;;  %v3210_v25 = vld [vmem:[#allocation2 + $0xd8] sm:$0x7f]  ;;  %3374 = vst.msk [vmem:[#allocation2 + $0xd0] sm:$0xff] %vm540_vm1, %v3344_v46  ;;  %v4906_v44 = vld [vmem:[#allocation2 + $0xf0] sm:$0xff] }
 0x21d   : > { %v3403_v56 = vld [vmem:[#allocation2 + $0xc8] sm:$0xff]  ;;  %v3345_v10 = vadd.f32 %v3283_v5, %v3210_v25  ;;  %3561 = vst.msk [vmem:[%s5027_s16 + $0x58] sm:$0xf] %vm3538_vm4, %v4192_v48  ;;  %v3713_v17 = vsel %vm540_vm1, %v3660_v41, 0.0  ;;  %v3668_v51 = vmul.f32 %v4906_v44, %v4906_v44  ;;  %v3631_v12 = vsel %vm540_vm1, %v4906_v44, 0.0  ;;  %v4907_v46 = vld [vmem:[#allocation2 + $0xf8] sm:$0xff] }
 0x21e   : > { %v3712_v57 = vadd.f32 %v3711_v47, %v3710_v52  ;;  %v4195_v60 = vpack.c.bf16 %v3403_v56, %v3403_v56  ;;  %3377 = vst.msk [vmem:[#allocation2 + $0xe8] sm:$0x7f] %vm1035_vm2, %v3347_v43  ;;  %v3616_v13 = vadd.f32 %v3615_v61, %v3614_v50  ;;  %v3663_v19 = vmul.f32 %v3403_v56, %v3403_v56  ;;  %v3571_v48 = vld [vmem:[%s5017_s10] sm:$0xff] }
 0x21f   : > { %3375 = vst.msk [vmem:[#allocation2 + $0xd8] sm:$0x7f] %vm1035_vm2, %v3345_v10  ;;  %v3621_v42 = vsel %vm540_vm1, %v3403_v56, 0.0  ;;  %v3669_v38 = vmul.f32 %v4907_v46, %v4907_v46  ;;  %v3633_v62 = vsel %vm540_vm1, %v4907_v46, 0.0  ;;  %v3729_v47 = vsel %vm540_vm1, %v3668_v51, 0.0  ;;  %v3637_v10 = vld [vmem:[%s5032_s19] sm:$0xff] }
 0x220   : > { %3564 = vst.msk [vmem:[%s5027_s16 + $0x64] sm:$0xf] %vm3538_vm4, %v4195_v60  ;;  %v3714_v11 = vadd.f32 %v3713_v17, %v3712_v57  ;;  %v3719_v30 = vsel %vm540_vm1, %v3663_v19, 0.0 }
 0x221   : > { %v3731_v56 = vsel %vm540_vm1, %v3669_v38, 0.0 }
 0x222   : > { %v3401_v20 = vld [vmem:[#allocation2 + $0xb8] sm:$0xff] }
 0x223   : > { %v3406_v63 = vld [vmem:[#allocation2 + $0xe0] sm:$0xff]  ;;  %v4193_v3 = vpack.c.bf16 %v3401_v20, %v3401_v20  ;;  %v3617_v24 = vsel %vm540_vm1, %v3401_v20, 0.0  ;;  %v3661_v0 = vmul.f32 %v3401_v20, %v3401_v20  ;;  %v3404_v8 = vld [vmem:[#allocation2 + $0xd0] sm:$0xff] }
 0x224   : > { %v4198_v39 = vpack.c.bf16 %v3406_v63, %v3406_v63  ;;  %v3618_v45 = vadd.f32 %v3617_v24, %v3616_v13  ;;  %v4196_v6 = vpack.c.bf16 %v3404_v8, %v3404_v8  ;;  %v3664_v14 = vmul.f32 %v3404_v8, %v3404_v8 }
 0x225   : > { %3562 = vst.msk [vmem:[%s5027_s16 + $0x5c] sm:$0xf] %vm3538_vm4, %v4193_v3  ;;  %v3715_v1 = vsel %vm540_vm1, %v3661_v0, 0.0  ;;  %v3407_v58 = vld [vmem:[#allocation2 + $0xe8] sm:$0xff]  ;;  %v3623_v5 = vsel %vm540_vm1, %v3404_v8, 0.0  ;;  %v3666_v2 = vmul.f32 %v3406_v63, %v3406_v63  ;;  %v3627_v35 = vsel %vm540_vm1, %v3406_v63, 0.0 }
 0x226   : > { %3567 = vst.msk [vmem:[%s5027_s16 + $0x70] sm:$0xf] %vm3538_vm4, %v4198_v39  ;;  %v3716_v21 = vadd.f32 %v3715_v1, %v3714_v11  ;;  %v3620_v34 = vadd.f32 %v3619_v9, %v3618_v45  ;;  %v4199_v16 = vpack.c.bf16 %v3407_v58, %v3407_v58  ;;  %v3405_v55 = vld [vmem:[#allocation2 + $0xd8] sm:$0xff]  ;;  %3565 = vst.msk [vmem:[%s5027_s16 + $0x68] sm:$0xf] %vm3538_vm4, %v4196_v6  ;;  %v3721_v31 = vsel %vm540_vm1, %v3664_v14, 0.0 }
 0x227   : > { %v4197_v54 = vpack.c.bf16 %v3405_v55, %v3405_v55  ;;  %v3665_v26 = vmul.f32 %v3405_v55, %v3405_v55  ;;  %v3625_v18 = vsel %vm540_vm1, %v3405_v55, 0.0  ;;  %v3667_v28 = vmul.f32 %v3407_v58, %v3407_v58 }
 0x228   : > { %v3622_v4 = vadd.f32 %v3621_v42, %v3620_v34  ;;  %3568 = vst.msk [vmem:[%s5027_s16 + $0x74] sm:$0xf] %vm3538_vm4, %v4199_v16  ;;  %v3718_v27 = vadd.f32 %v3717_v15, %v3716_v21  ;;  %v3629_v32 = vsel %vm540_vm1, %v3407_v58, 0.0  ;;  %v3725_v59 = vsel %vm540_vm1, %v3666_v2, 0.0 }
 0x229   : > { %3566 = vst.msk [vmem:[%s5027_s16 + $0x6c] sm:$0xf] %vm3538_vm4, %v4197_v54  ;;  %v3723_v49 = vsel %vm540_vm1, %v3665_v26, 0.0  ;;  %v3727_v50 = vsel %vm540_vm1, %v3667_v28, 0.0 }
 0x22a   : > { %v3624_v29 = vadd.f32 %v3623_v5, %v3622_v4  ;;  %v3720_v23 = vadd.f32 %v3719_v30, %v3718_v27 }
 0x22c   : > { %v3626_v53 = vadd.f32 %v3625_v18, %v3624_v29  ;;  %v3722_v37 = vadd.f32 %v3721_v31, %v3720_v23 }
 0x22e   : > { %v3628_v36 = vadd.f32 %v3627_v35, %v3626_v53  ;;  %v3724_v40 = vadd.f32 %v3723_v49, %v3722_v37 }
 0x230   : > { %v3630_v33 = vadd.f32 %v3629_v32, %v3628_v36  ;;  %v3726_v7 = vadd.f32 %v3725_v59, %v3724_v40 }
 0x232   : > { %v3632_v52 = vadd.f32 %v3631_v12, %v3630_v33  ;;  %v3728_v41 = vadd.f32 %v3727_v50, %v3726_v7 }
 0x234   : > { %v3634_v43 = vadd.f32 %v3633_v62, %v3632_v52  ;;  %v3730_v25 = vadd.f32 %v3729_v47, %v3728_v41 }
 0x236   : > { %v3635_v57 = vadd.f32 %v3634_v43, %v3571_v48  ;;  %v3732_v60 = vadd.f32 %v3731_v56, %v3730_v25 }
 0x238   : > { %3636 = vst.msk [vmem:[%s5017_s10] sm:$0xff] %vm540_vm1, %v3635_v57  ;;  %v3733_v61 = vadd.f32 %v3732_v60, %v3637_v10 }
 0x23a   : > { %3734 = vst.msk [vmem:[%s5032_s19] sm:$0xff] %vm540_vm1, %v3733_v61 }
 0x23b PF: > { %s17_s25 = sadd.s32 1, %s4946_s25   ;;  %s6261_s21 = smov %s4938_s23 }
 0x23c   : > { %p14_p8 = scmp.ge.s32.totalorder %s17_s25, 6   ;;  %s6262_s22 = smov %s4942_s24 }
 0x23d   : > { %s6263_s23 = smov %s6266_s26  ;;  %s6264_s24 = smov %s6270_s27 }
 0x23e   :  { %16 = sbr.rel (!%p14_p8) target bundleno = 3 (0x3), region = 103 }

// kernel: _lambda_.6
= control target key start
LH: loop header
LB: loop body
LE: loop exit
PB: predicated region body
PF: predicated region fallthrough
CT: control target
= control target key end

     0   :  { %s2609_s21 = smov 0   ;;  %s2611_s22 = smov 0   ;;  %s3667_s0 = inlined_call_operand.vmem [shape: bf16[1024,64], index: 0, kind: input, shape index: {}]   ;;  %s3668_s1 = inlined_call_operand.vmem [shape: f32[1,64], index: 1, kind: input, shape index: {}]   ;;  %s3669_s2 = inlined_call_operand.vmem [shape: f32[1,64], index: 2, kind: input, shape index: {}]   ;;  %s3670_s3 = inlined_call_operand.vmem [shape: bf16[64,256], index: 3, kind: input, shape index: {}]   ;;  %s3671_s4 = inlined_call_operand.vmem [shape: bf16[1024,256], index: 4, kind: output, shape index: {0}]   ;;  %s3672_s5 = inlined_call_operand.vmem [shape: f32[2,8,256], index: 5, kind: output, shape index: {1}]   ;;  %s3673_s6 = inlined_call_operand.vmem [shape: f32[2,8,256], index: 6, kind: output, shape index: {2}]  }
   0x1   :  { %s2613_s23 = smov 0  }
   0x2 LB: > { %s29_s24 = sadd.s32 1, %s2567_s22  ;;  %p2159_p0 = scmp.ge.s32.totalorder %s2571_s23, 1  ;;  %s2571_s23 = sphi %s2613_s23, %s17_s23   ;;  %s2567_s22 = sphi %s2611_s22, %s3739_s22   ;;  %s2563_s21 = sphi %s2609_s21, %s3738_s21  }
   0x3   : > { %p31_p1 = scmp.ge.s32.totalorder %s29_s24, 2  ;;  %p236_p2 = scmp.lt.s32.totalorder %s2571_s23, 3 }
   0x5   : > { %s3741_s24 = smov (%p31_p1, %s29_s24), 0  ;;  %p237_p3 = pnand %p2159_p0, %p236_p2 }
   0x7   : > { %240 = sbr.rel (%p237_p3) target bundleno = 419 (0x1a3), region = 36 }
   0xc   : > { %v2537_v0 = vld [vmem:[%s3670_s3 + $0x34] ss:$8 sps:$4 sm:$0xff]   ;;  %s2160_s27 = sshll.u32 %s2563_s21, 6  ;;  %v2539_v1 = vld [vmem:[%s3670_s3 + $0x30] ss:$8 sps:$4 sm:$0xff]   ;;  %v2573_v2 = vmov 0  }
   0xd   : > { %858 = vmatprep.mubr.bf16.mxu0 %v2573_v2  ;;  %p281_p4 = scmp.lt.s32.totalorder %s2160_s27, 127  ;;  %1018 = vmatprep.mubr.bf16.mxu1 %v2573_v2  ;;  %v2540_v3 = vld [vmem:[%s3670_s3 + $0x24] ss:$8 sps:$4 sm:$0xff]   ;;  %v2542_v4 = vld [vmem:[%s3670_s3 + $0x20] ss:$8 sps:$4 sm:$0xff]   ;;  %vm729_vm0 = vcmask 523264  }
   0xe   : > { %834 = vmatprep.subr.bf16.mxu0 %v2537_v0  ;;  %2503 = vmatprep.subr.bf16.mxu1 %v2537_v0  ;;  %v2543_v5 = vld [vmem:[%s3670_s3 + $0x14] ss:$8 sps:$4 sm:$0xff]   ;;  %v2545_v6 = vld [vmem:[%s3670_s3 + $0x10] ss:$8 sps:$4 sm:$0xff]   ;;  %v2662_v8 = vld [vmem:[%s3668_s1] ss:$0 sm:$0xff] }
   0xf   : > { %835 = vmatpush1.bf16.msra.mxu0 %v2539_v1  ;;  %s3743_s27 = smov (!%p281_p4, %s2160_s27), 127  ;;  %2507 = vmatpush1.bf16.msra.mxu1 %v2539_v1  ;;  %v2546_v10 = vld [vmem:[%s3670_s3 + $0x4] ss:$8 sps:$4 sm:$0xff]   ;;  %v2671_v15 = vld [vmem:[%s3669_s2] ss:$0 sm:$0xff]  ;;  %p296_p5 = scmp.lt.s32.totalorder %s2563_s21, 1 }
  0x10   : > { %836 = vmatprep.subr.bf16.mxu0 %v2540_v3  ;;  %2504 = vmatprep.subr.bf16.mxu1 %v2540_v3  ;;  %s2161_s12 = sshll.u32 %s3743_s27, 2  ;;  %v2548_v21 = vld [vmem:[%s3670_s3] ss:$8 sps:$4 sm:$0xff]   ;;  %s2277_s7 = sshll.u32 %s3743_s27, 3 }
  0x11   : > { %s2656_s17 = scalar_lea.vmem %s3667_s0, %s2161_s12  ;;  %s2902_s10 = scalar_lea.vmem %s3671_s4, %s2277_s7 }
  0x12   : > { %v2345_v7 = vld [vmem:[%s2656_s17] sm:$0xff]   ;;  %v2472_v9 = vld [vmem:[%s2656_s17 + $0x8] sm:$0xff]   ;;  %v2473_v20 = vld [vmem:[%s2656_s17 + $0x10] sm:$0xff]   ;;  %s3745_s21 = smov (!%p296_p5, %s2563_s21), 1 }
  0x13   : > { %837 = vmatpush1.bf16.msra.mxu0 %v2542_v4  ;;  %2508 = vmatpush1.bf16.msra.mxu1 %v2542_v4  ;;  %v2346_v11 = vunpack.c.l.bf16 %v2345_v7  ;;  %v2347_v12 = vunpack.c.h.bf16 %v2345_v7  ;;  %v2350_v13 = vunpack.c.l.bf16 %v2472_v9  ;;  %v2351_v14 = vunpack.c.h.bf16 %v2472_v9  ;;  %v2474_v31 = vld [vmem:[%s2656_s17 + $0x18] sm:$0xff]   ;;  %v2487_v38 = vld [vmem:[%s2656_s17 + $0x80] sm:$0xff]   ;;  %v2488_v44 = vld [vmem:[%s2656_s17 + $0x88] sm:$0xff]   ;;  %s2278_s27 = sshll.u32 %s3745_s21, 4 }
  0x14   : > { %838 = vmatprep.subr.bf16.mxu0 %v2543_v5  ;;  %2505 = vmatprep.subr.bf16.mxu1 %v2543_v5  ;;  %v2354_v24 = vunpack.c.l.bf16 %v2473_v20  ;;  %v2355_v25 = vunpack.c.h.bf16 %v2473_v20  ;;  %v2358_v36 = vunpack.c.l.bf16 %v2474_v31  ;;  %v2359_v37 = vunpack.c.h.bf16 %v2474_v31  ;;  %v2475_v50 = vld [vmem:[%s2656_s17 + $0x20] sm:$0xff]   ;;  %v2489_v60 = vld [vmem:[%s2656_s17 + $0x90] sm:$0xff]   ;;  %s300_s21 = scalar_lea.vmem %s3672_s5, %s2278_s27  ;;  %s305_s15 = scalar_lea.vmem %s3673_s6, %s2278_s27 }
  0x15   : > { %v450_v16 = vmul.f32 %v2346_v11, %v2662_v8  ;;  %v451_v17 = vmul.f32 %v2347_v12, %v2662_v8  ;;  %v452_v18 = vmul.f32 %v2350_v13, %v2662_v8  ;;  %v453_v19 = vmul.f32 %v2351_v14, %v2662_v8  ;;  %v2476_v12 = vld [vmem:[%s2656_s17 + $0x28] sm:$0xff]  }
  0x16   : > { %v454_v34 = vmul.f32 %v2354_v24, %v2662_v8  ;;  %v455_v35 = vmul.f32 %v2355_v25, %v2662_v8  ;;  %v456_v42 = vmul.f32 %v2358_v36, %v2662_v8  ;;  %v2410_v43 = vunpack.c.l.bf16 %v2487_v38 }
  0x17   : > { %839 = vmatpush1.bf16.msra.mxu0 %v2545_v6  ;;  %v521_v22 = vadd.f32 %v2671_v15, %v450_v16  ;;  %v522_v23 = vadd.f32 %v2671_v15, %v451_v17  ;;  %2509 = vmatpush1.bf16.msra.mxu1 %v2545_v6  ;;  %v523_v28 = vadd.f32 %v2671_v15, %v452_v18  ;;  %v2411_v46 = vunpack.c.h.bf16 %v2487_v38  ;;  %v2490_v18 = vld [vmem:[%s2656_s17 + $0x98] sm:$0xff]  }
  0x18   : > { %840 = vmatprep.subr.bf16.mxu0 %v2546_v10  ;;  %v524_v29 = vadd.f32 %v2671_v15, %v453_v19  ;;  %2506 = vmatprep.subr.bf16.mxu1 %v2546_v10  ;;  %v525_v40 = vadd.f32 %v2671_v15, %v454_v34  ;;  %v526_v41 = vadd.f32 %v2671_v15, %v455_v35  ;;  %v2414_v52 = vunpack.c.l.bf16 %v2488_v44  ;;  %v2477_v34 = vld [vmem:[%s2656_s17 + $0x30] sm:$0xff]  }
  0x19   : > { %v585_v26 = vmax.f32 %v521_v22, 0.0  ;;  %v586_v27 = vmax.f32 %v522_v23, 0.0  ;;  %v587_v32 = vmax.f32 %v523_v28, 0.0  ;;  %v457_v45 = vmul.f32 %v2359_v37, %v2662_v8 }
  0x1a   : > { %v588_v33 = vmax.f32 %v524_v29, 0.0  ;;  %v589_v47 = vmax.f32 %v525_v40, 0.0  ;;  %v590_v48 = vmax.f32 %v526_v41, 0.0  ;;  %v482_v49 = vmul.f32 %v2410_v43, %v2662_v8 }
  0x1b   : > { %841 = vmatpush1.bf16.msra.mxu0 %v2548_v21  ;;  %v649_v30 = vpack.c.bf16 %v586_v27, %v585_v26  ;;  %2510 = vmatpush1.bf16.msra.mxu1 %v2548_v21  ;;  %v483_v51 = vmul.f32 %v2411_v46, %v2662_v8  ;;  %v2415_v53 = vunpack.c.h.bf16 %v2488_v44  ;;  %v527_v54 = vadd.f32 %v2671_v15, %v456_v42 }
  0x1c   : > { %v650_v39 = vpack.c.bf16 %v588_v33, %v587_v32  ;;  %v553_v55 = vadd.f32 %v2671_v15, %v482_v49  ;;  %v528_v56 = vadd.f32 %v2671_v15, %v457_v45  ;;  %v484_v58 = vmul.f32 %v2414_v52, %v2662_v8 }
  0x1d   : > { %v554_v57 = vadd.f32 %v2671_v15, %v483_v51  ;;  %v485_v59 = vmul.f32 %v2415_v53, %v2662_v8  ;;  %v651_v61 = vpack.c.bf16 %v590_v48, %v589_v47  ;;  %v2362_v62 = vunpack.c.l.bf16 %v2475_v50 }
  0x1e   : > { %2179 = vmatmul.mubr.msk.bf16.vlgmr.msra.gmra.mxu0 %vm729_vm0, %v649_v30  ;;  %v2363_v63 = vunpack.c.h.bf16 %v2475_v50  ;;  %v617_v0 = vmax.f32 %v553_v55, 0.0  ;;  %v555_v3 = vadd.f32 %v2671_v15, %v484_v58  ;;  %v2418_v5 = vunpack.c.l.bf16 %v2489_v60 }
  0x1f   : > { %868 = vmatprep.mubr.bf16.mxu0 %v2573_v2  ;;  %v618_v1 = vmax.f32 %v554_v57, 0.0  ;;  %v556_v4 = vadd.f32 %v2671_v15, %v485_v59  ;;  %v591_v6 = vmax.f32 %v527_v54, 0.0  ;;  %v592_v7 = vmax.f32 %v528_v56, 0.0  ;;  %v2478_v54 = vld [vmem:[%s2656_s17 + $0x38] sm:$0xff]   ;;  %v2492_v59 = vld [vmem:[%s2656_s17 + $0xa8] sm:$0xff]  }
  0x20   : > { %v458_v10 = vmul.f32 %v2362_v62, %v2662_v8  ;;  %v459_v11 = vmul.f32 %v2363_v63, %v2662_v8  ;;  %v2419_v13 = vunpack.c.h.bf16 %v2489_v60  ;;  %v619_v14 = vmax.f32 %v555_v3, 0.0 }
  0x21   : > { %v665_v9 = vpack.c.bf16 %v618_v1, %v617_v0  ;;  %v620_v16 = vmax.f32 %v556_v4, 0.0  ;;  %v486_v17 = vmul.f32 %v2418_v5, %v2662_v8  ;;  %v652_v20 = vpack.c.bf16 %v592_v7, %v591_v6 }
  0x22   : > { %v487_v19 = vmul.f32 %v2419_v13, %v2662_v8  ;;  %v2366_v21 = vunpack.c.l.bf16 %v2476_v12  ;;  %v529_v22 = vadd.f32 %v2671_v15, %v458_v10  ;;  %v530_v23 = vadd.f32 %v2671_v15, %v459_v11  ;;  %v2479_v13 = vld [vmem:[%s2656_s17 + $0x40] sm:$0xff]  }
  0x23   : > { %2195 = vmatmul.mubr.msk.bf16.vlgmr.msra.gmra.mxu1 %vm729_vm0, %v665_v9  ;;  %v2367_v24 = vunpack.c.h.bf16 %v2476_v12  ;;  %v2422_v25 = vunpack.c.l.bf16 %v2490_v18  ;;  %v666_v26 = vpack.c.bf16 %v620_v16, %v619_v14  ;;  %v557_v27 = vadd.f32 %v2671_v15, %v486_v17 }
  0x24   : > { %1028 = vmatprep.mubr.bf16.mxu1 %v2573_v2  ;;  %v558_v28 = vadd.f32 %v2671_v15, %v487_v19  ;;  %v2423_v29 = vunpack.c.h.bf16 %v2490_v18  ;;  %v460_v30 = vmul.f32 %v2366_v21, %v2662_v8  ;;  %v593_v31 = vmax.f32 %v529_v22, 0.0  ;;  %v2493_v18 = vld [vmem:[%s2656_s17 + $0xb0] sm:$0xff]  }
  0x25   : > { %v594_v32 = vmax.f32 %v530_v23, 0.0  ;;  %v461_v33 = vmul.f32 %v2367_v24, %v2662_v8  ;;  %v488_v35 = vmul.f32 %v2422_v25, %v2662_v8  ;;  %v621_v36 = vmax.f32 %v557_v27, 0.0 }
  0x26   : > { %2180 = vmatmul.mubr.msk.bf16.gmra.mxu0 %vm729_vm0, %v650_v39  ;;  %v622_v37 = vmax.f32 %v558_v28, 0.0  ;;  %v489_v38 = vmul.f32 %v2423_v29, %v2662_v8  ;;  %v2491_v39 = vld [vmem:[%s2656_s17 + $0xa0] sm:$0xff]   ;;  %v2370_v40 = vunpack.c.l.bf16 %v2477_v34  ;;  %v2371_v41 = vunpack.c.h.bf16 %v2477_v34 }
  0x27   : > { %878 = vmatprep.mubr.bf16.mxu0 %v2573_v2  ;;  %v653_v42 = vpack.c.bf16 %v594_v32, %v593_v31  ;;  %v531_v43 = vadd.f32 %v2671_v15, %v460_v30  ;;  %v532_v44 = vadd.f32 %v2671_v15, %v461_v33  ;;  %v559_v45 = vadd.f32 %v2671_v15, %v488_v35  ;;  %v2480_v33 = vld [vmem:[%s2656_s17 + $0x48] sm:$0xff]  }
  0x28   : > { %v667_v46 = vpack.c.bf16 %v622_v37, %v621_v36  ;;  %v560_v47 = vadd.f32 %v2671_v15, %v489_v38  ;;  %v2426_v48 = vunpack.c.l.bf16 %v2491_v39  ;;  %v2427_v49 = vunpack.c.h.bf16 %v2491_v39  ;;  %v2494_v38 = vld [vmem:[%s2656_s17 + $0xb8] sm:$0xff]  }
  0x29   : > { %v595_v50 = vmax.f32 %v531_v43, 0.0  ;;  %v596_v51 = vmax.f32 %v532_v44, 0.0  ;;  %v462_v52 = vmul.f32 %v2370_v40, %v2662_v8  ;;  %v463_v53 = vmul.f32 %v2371_v41, %v2662_v8 }
  0x2a   : > { %v623_v55 = vmax.f32 %v559_v45, 0.0  ;;  %v624_v56 = vmax.f32 %v560_v47, 0.0  ;;  %v490_v57 = vmul.f32 %v2426_v48, %v2662_v8  ;;  %v491_v58 = vmul.f32 %v2427_v49, %v2662_v8 }
  0x2b   : > { %2196 = vmatmul.mubr.msk.bf16.gmra.mxu1 %vm729_vm0, %v666_v26  ;;  %v2374_v60 = vunpack.c.l.bf16 %v2478_v54  ;;  %v654_v62 = vpack.c.bf16 %v596_v51, %v595_v50  ;;  %v533_v63 = vadd.f32 %v2671_v15, %v462_v52  ;;  %v534_v0 = vadd.f32 %v2671_v15, %v463_v53  ;;  %v2481_v53 = vld [vmem:[%s2656_s17 + $0x50] sm:$0xff]  }
  0x2c   : > { %1038 = vmatprep.mubr.bf16.mxu1 %v2573_v2  ;;  %v2430_v1 = vunpack.c.l.bf16 %v2492_v59  ;;  %v668_v3 = vpack.c.bf16 %v624_v56, %v623_v55  ;;  %v561_v4 = vadd.f32 %v2671_v15, %v490_v57  ;;  %v562_v5 = vadd.f32 %v2671_v15, %v491_v58  ;;  %v2495_v58 = vld [vmem:[%s2656_s17 + $0xc0] sm:$0xff]  }
  0x2d   : > { %v2431_v6 = vunpack.c.h.bf16 %v2492_v59  ;;  %v464_v7 = vmul.f32 %v2374_v60, %v2662_v8  ;;  %v597_v10 = vmax.f32 %v533_v63, 0.0  ;;  %v598_v11 = vmax.f32 %v534_v0, 0.0 }
  0x2e   : > { %2181 = vmatmul.mubr.msk.bf16.gmra.mxu0 %vm729_vm0, %v651_v61  ;;  %v2375_v61 = vunpack.c.h.bf16 %v2478_v54  ;;  %v492_v12 = vmul.f32 %v2430_v1, %v2662_v8  ;;  %v625_v14 = vmax.f32 %v561_v4, 0.0  ;;  %v626_v16 = vmax.f32 %v562_v5, 0.0 }
  0x2f   : > { %888 = vmatprep.mubr.bf16.mxu0 %v2573_v2  ;;  %v493_v17 = vmul.f32 %v2431_v6, %v2662_v8  ;;  %v535_v19 = vadd.f32 %v2671_v15, %v464_v7  ;;  %v655_v21 = vpack.c.bf16 %v598_v11, %v597_v10  ;;  %v2378_v22 = vunpack.c.l.bf16 %v2479_v13  ;;  %v2482_v11 = vld [vmem:[%s2656_s17 + $0x58] sm:$0xff]  }
  0x30   : > { %v465_v9 = vmul.f32 %v2375_v61, %v2662_v8  ;;  %v2379_v23 = vunpack.c.h.bf16 %v2479_v13  ;;  %v563_v24 = vadd.f32 %v2671_v15, %v492_v12  ;;  %v669_v25 = vpack.c.bf16 %v626_v16, %v625_v14 }
  0x31   : > { %v564_v26 = vadd.f32 %v2671_v15, %v493_v17  ;;  %v2434_v27 = vunpack.c.l.bf16 %v2493_v18  ;;  %v2435_v28 = vunpack.c.h.bf16 %v2493_v18  ;;  %v599_v29 = vmax.f32 %v535_v19, 0.0  ;;  %v2496_v17 = vld [vmem:[%s2656_s17 + $0xc8] sm:$0xff]  }
  0x32   : > { %v466_v31 = vmul.f32 %v2378_v22, %v2662_v8  ;;  %v467_v32 = vmul.f32 %v2379_v23, %v2662_v8  ;;  %v627_v34 = vmax.f32 %v563_v24, 0.0  ;;  %v2382_v40 = vunpack.c.l.bf16 %v2480_v33 }
  0x33   : > { %2197 = vmatmul.mubr.msk.bf16.gmra.mxu1 %vm729_vm0, %v667_v46  ;;  %v628_v35 = vmax.f32 %v564_v26, 0.0  ;;  %v494_v36 = vmul.f32 %v2434_v27, %v2662_v8  ;;  %v495_v37 = vmul.f32 %v2435_v28, %v2662_v8  ;;  %v2383_v43 = vunpack.c.h.bf16 %v2480_v33 }
  0x34   : > { %1048 = vmatprep.mubr.bf16.mxu1 %v2573_v2  ;;  %v537_v41 = vadd.f32 %v2671_v15, %v466_v31  ;;  %v2438_v44 = vunpack.c.l.bf16 %v2494_v38  ;;  %v2439_v48 = vunpack.c.h.bf16 %v2494_v38  ;;  %v468_v49 = vmul.f32 %v2382_v40, %v2662_v8 }
  0x35   : > { %v670_v45 = vpack.c.bf16 %v628_v35, %v627_v34  ;;  %v565_v46 = vadd.f32 %v2671_v15, %v494_v36  ;;  %v566_v47 = vadd.f32 %v2671_v15, %v495_v37  ;;  %v469_v52 = vmul.f32 %v2383_v43, %v2662_v8  ;;  %v2497_v37 = vld [vmem:[%s2656_s17 + $0xd0] sm:$0xff]  }
  0x36   : > { %2182 = vmatmul.mubr.msk.bf16.gmra.mxu0 %vm729_vm0, %v652_v20  ;;  %v536_v20 = vadd.f32 %v2671_v15, %v465_v9  ;;  %v601_v50 = vmax.f32 %v537_v41, 0.0  ;;  %v496_v54 = vmul.f32 %v2438_v44, %v2662_v8  ;;  %v497_v57 = vmul.f32 %v2439_v48, %v2662_v8 }
  0x37   : > { %898 = vmatprep.mubr.bf16.mxu0 %v2573_v2  ;;  %v629_v55 = vmax.f32 %v565_v46, 0.0  ;;  %v630_v56 = vmax.f32 %v566_v47, 0.0  ;;  %v2386_v59 = vunpack.c.l.bf16 %v2481_v53  ;;  %v2387_v60 = vunpack.c.h.bf16 %v2481_v53 }
  0x38   : > { %v600_v30 = vmax.f32 %v536_v20, 0.0  ;;  %v540_v63 = vadd.f32 %v2671_v15, %v469_v52  ;;  %v567_v0 = vadd.f32 %v2671_v15, %v496_v54  ;;  %v2442_v4 = vunpack.c.l.bf16 %v2495_v58  ;;  %v2484_v52 = vld [vmem:[%s2656_s17 + $0x68] sm:$0xff]  }
  0x39   : > { %v671_v1 = vpack.c.bf16 %v630_v56, %v629_v55  ;;  %v2443_v5 = vunpack.c.h.bf16 %v2495_v58  ;;  %v470_v6 = vmul.f32 %v2386_v59, %v2662_v8  ;;  %v471_v7 = vmul.f32 %v2387_v60, %v2662_v8 }
  0x3a   : > { %v656_v39 = vpack.c.bf16 %v600_v30, %v599_v29  ;;  %v604_v10 = vmax.f32 %v540_v63, 0.0  ;;  %v631_v12 = vmax.f32 %v567_v0, 0.0  ;;  %v498_v14 = vmul.f32 %v2442_v4, %v2662_v8 }
  0x3b   : > { %2198 = vmatmul.mubr.msk.bf16.gmra.mxu1 %vm729_vm0, %v668_v3  ;;  %v568_v3 = vadd.f32 %v2671_v15, %v497_v57  ;;  %v499_v16 = vmul.f32 %v2443_v5, %v2662_v8  ;;  %v541_v18 = vadd.f32 %v2671_v15, %v470_v6  ;;  %v542_v19 = vadd.f32 %v2671_v15, %v471_v7  ;;  %v2498_v57 = vld [vmem:[%s2656_s17 + $0xd8] sm:$0xff]  }
  0x3c   : > { %1058 = vmatprep.mubr.bf16.mxu1 %v2573_v2  ;;  %v2390_v20 = vunpack.c.l.bf16 %v2482_v11  ;;  %v2391_v22 = vunpack.c.h.bf16 %v2482_v11  ;;  %v2446_v23 = vunpack.c.l.bf16 %v2496_v17  ;;  %v2447_v27 = vunpack.c.h.bf16 %v2496_v17 }
  0x3d   : > { %v632_v13 = vmax.f32 %v568_v3, 0.0  ;;  %v570_v26 = vadd.f32 %v2671_v15, %v499_v16  ;;  %v605_v28 = vmax.f32 %v541_v18, 0.0  ;;  %v606_v29 = vmax.f32 %v542_v19, 0.0  ;;  %v2499_v16 = vld [vmem:[%s2656_s17 + $0xe0] sm:$0xff]  }
  0x3e   : > { %2183 = vmatmul.mubr.msk.bf16.gmra.mxu0 %vm729_vm0, %v653_v42  ;;  %v538_v42 = vadd.f32 %v2671_v15, %v467_v32  ;;  %v472_v30 = vmul.f32 %v2390_v20, %v2662_v8  ;;  %v473_v31 = vmul.f32 %v2391_v22, %v2662_v8  ;;  %v2483_v32 = vld [vmem:[%s2656_s17 + $0x60] sm:$0xff]   ;;  %v500_v35 = vmul.f32 %v2446_v23, %v2662_v8 }
  0x3f   : > { %908 = vmatprep.mubr.bf16.mxu0 %v2573_v2  ;;  %v672_v24 = vpack.c.bf16 %v632_v13, %v631_v12  ;;  %v634_v34 = vmax.f32 %v570_v26, 0.0  ;;  %v501_v36 = vmul.f32 %v2447_v27, %v2662_v8  ;;  %v659_v38 = vpack.c.bf16 %v606_v29, %v605_v28 }
  0x40   : > { %v602_v51 = vmax.f32 %v538_v42, 0.0  ;;  %v544_v40 = vadd.f32 %v2671_v15, %v473_v31  ;;  %v2394_v41 = vunpack.c.l.bf16 %v2483_v32  ;;  %v2395_v42 = vunpack.c.h.bf16 %v2483_v32  ;;  %v2486_v31 = vld [vmem:[%s2656_s17 + $0x78] sm:$0xff]  }
  0x41   : > { %v2450_v43 = vunpack.c.l.bf16 %v2497_v37  ;;  %v572_v46 = vadd.f32 %v2671_v15, %v501_v36  ;;  %v2451_v47 = vunpack.c.h.bf16 %v2497_v37  ;;  %v2398_v58 = vunpack.c.l.bf16 %v2484_v52  ;;  %v2500_v36 = vld [vmem:[%s2656_s17 + $0xe8] sm:$0xff]  }
  0x42   : > { %v657_v61 = vpack.c.bf16 %v602_v51, %v601_v50  ;;  %v474_v50 = vmul.f32 %v2394_v41, %v2662_v8  ;;  %v475_v51 = vmul.f32 %v2395_v42, %v2662_v8  ;;  %v2399_v59 = vunpack.c.h.bf16 %v2484_v52 }
  0x43   : > { %2199 = vmatmul.mubr.msk.bf16.gmra.mxu1 %vm729_vm0, %v669_v25  ;;  %v569_v25 = vadd.f32 %v2671_v15, %v498_v14  ;;  %v636_v54 = vmax.f32 %v572_v46, 0.0  ;;  %v502_v55 = vmul.f32 %v2450_v43, %v2662_v8  ;;  %v503_v56 = vmul.f32 %v2451_v47, %v2662_v8 }
  0x44   : > { %1068 = vmatprep.mubr.bf16.mxu1 %v2573_v2  ;;  %v2454_v63 = vunpack.c.l.bf16 %v2498_v57  ;;  %v2455_v4 = vunpack.c.h.bf16 %v2498_v57  ;;  %v476_v5 = vmul.f32 %v2398_v58, %v2662_v8  ;;  %v477_v6 = vmul.f32 %v2399_v59, %v2662_v8 }
  0x45   : > { %v633_v33 = vmax.f32 %v569_v25, 0.0  ;;  %v574_v3 = vadd.f32 %v2671_v15, %v503_v56  ;;  %v2458_v22 = vunpack.c.l.bf16 %v2499_v16  ;;  %v2459_v26 = vunpack.c.h.bf16 %v2499_v16 }
  0x46   : > { %2184 = vmatmul.mubr.msk.bf16.gmra.mxu0 %vm729_vm0, %v654_v62  ;;  %v539_v62 = vadd.f32 %v2671_v15, %v468_v49  ;;  %v608_v49 = vmax.f32 %v544_v40, 0.0  ;;  %v504_v13 = vmul.f32 %v2454_v63, %v2662_v8  ;;  %v505_v14 = vmul.f32 %v2455_v4, %v2662_v8 }
  0x47   : > { %918 = vmatprep.mubr.bf16.mxu0 %v2573_v2  ;;  %v673_v44 = vpack.c.bf16 %v634_v34, %v633_v33  ;;  %v638_v12 = vmax.f32 %v574_v3, 0.0  ;;  %v547_v17 = vadd.f32 %v2671_v15, %v476_v5  ;;  %v548_v18 = vadd.f32 %v2671_v15, %v477_v6 }
  0x48   : > { %v603_v9 = vmax.f32 %v539_v62, 0.0  ;;  %v546_v62 = vadd.f32 %v2671_v15, %v475_v51  ;;  %v576_v25 = vadd.f32 %v2671_v15, %v505_v14  ;;  %v506_v34 = vmul.f32 %v2458_v22, %v2662_v8 }
  0x49   : > { %v611_v27 = vmax.f32 %v547_v17, 0.0  ;;  %v612_v28 = vmax.f32 %v548_v18, 0.0  ;;  %v2407_v41 = vunpack.c.h.bf16 %v2486_v31  ;;  %v2462_v42 = vunpack.c.l.bf16 %v2500_v36 }
  0x4a   : > { %v640_v33 = vmax.f32 %v576_v25, 0.0  ;;  %v2463_v46 = vunpack.c.h.bf16 %v2500_v36 }
  0x4b   : > { %2200 = vmatmul.mubr.msk.bf16.gmra.mxu1 %vm729_vm0, %v670_v45  ;;  %v571_v45 = vadd.f32 %v2671_v15, %v500_v35  ;;  %v507_v35 = vmul.f32 %v2459_v26, %v2662_v8  ;;  %v662_v37 = vpack.c.bf16 %v612_v28, %v611_v27 }
  0x4c   : > { %1078 = vmatprep.mubr.bf16.mxu1 %v2573_v2 }
  0x4d   : > { %v635_v53 = vmax.f32 %v571_v45, 0.0  ;;  %v578_v45 = vadd.f32 %v2671_v15, %v507_v35 }
  0x4e   : > { %2185 = vmatmul.mubr.msk.bf16.gmra.mxu0 %vm729_vm0, %v655_v21  ;;  %v658_v21 = vpack.c.bf16 %v604_v10, %v603_v9  ;;  %v610_v9 = vmax.f32 %v546_v62, 0.0  ;;  %v2485_v10 = vld [vmem:[%s2656_s17 + $0x70] sm:$0xff]  }
  0x4f   : > { %928 = vmatprep.mubr.bf16.mxu0 %v2573_v2  ;;  %v674_v0 = vpack.c.bf16 %v636_v54, %v635_v53  ;;  %v2402_v20 = vunpack.c.l.bf16 %v2485_v10  ;;  %v642_v52 = vmax.f32 %v578_v45, 0.0  ;;  %v508_v53 = vmul.f32 %v2462_v42, %v2662_v8 }
  0x50   : > { %v509_v54 = vmul.f32 %v2463_v46, %v2662_v8 }
  0x51   : > { %v478_v29 = vmul.f32 %v2402_v20, %v2662_v8 }
  0x52   : > { %v580_v62 = vadd.f32 %v2671_v15, %v509_v54 }
  0x53   : > { %2201 = vmatmul.mubr.msk.bf16.gmra.mxu1 %vm729_vm0, %v671_v1  ;;  %v573_v1 = vadd.f32 %v2671_v15, %v502_v55  ;;  %v2501_v55 = vld [vmem:[%s2656_s17 + $0xf0] sm:$0xff]  }
  0x54   : > { %1088 = vmatprep.mubr.bf16.mxu1 %v2573_v2  ;;  %v2466_v59 = vunpack.c.l.bf16 %v2501_v55  ;;  %v2467_v63 = vunpack.c.h.bf16 %v2501_v55  ;;  %v644_v4 = vmax.f32 %v580_v62, 0.0 }
  0x55   : > { %v637_v11 = vmax.f32 %v573_v1, 0.0 }
  0x56   : > { %2186 = vmatmul.mubr.msk.bf16.gmra.mxu0 %vm729_vm0, %v656_v39  ;;  %v543_v39 = vadd.f32 %v2671_v15, %v472_v30  ;;  %v510_v5 = vmul.f32 %v2466_v59, %v2662_v8  ;;  %v511_v6 = vmul.f32 %v2467_v63, %v2662_v8 }
  0x57   : > { %938 = vmatprep.mubr.bf16.mxu0 %v2573_v2  ;;  %v675_v23 = vpack.c.bf16 %v638_v12, %v637_v11 }
  0x58   : > { %v607_v48 = vmax.f32 %v543_v39, 0.0  ;;  %v549_v39 = vadd.f32 %v2671_v15, %v478_v29  ;;  %v581_v12 = vadd.f32 %v2671_v15, %v510_v5 }
  0x5a   : > { %v660_v60 = vpack.c.bf16 %v608_v49, %v607_v48  ;;  %v613_v47 = vmax.f32 %v549_v39, 0.0  ;;  %v645_v16 = vmax.f32 %v581_v12, 0.0 }
  0x5b   : > { %2202 = vmatmul.mubr.msk.bf16.gmra.mxu1 %vm729_vm0, %v672_v24  ;;  %v575_v24 = vadd.f32 %v2671_v15, %v504_v13  ;;  %v582_v13 = vadd.f32 %v2671_v15, %v511_v6 }
  0x5c   : > { %1098 = vmatprep.mubr.bf16.mxu1 %v2573_v2 }
  0x5d   : > { %v639_v32 = vmax.f32 %v575_v24, 0.0  ;;  %v646_v17 = vmax.f32 %v582_v13, 0.0 }
  0x5e   : > { %2187 = vmatmul.mubr.msk.bf16.gmra.mxu0 %vm729_vm0, %v657_v61  ;;  %v545_v61 = vadd.f32 %v2671_v15, %v474_v50  ;;  %v481_v50 = vmul.f32 %v2407_v41, %v2662_v8 }
  0x5f   : > { %948 = vmatprep.mubr.bf16.mxu0 %v2573_v2  ;;  %v676_v43 = vpack.c.bf16 %v640_v33, %v639_v32  ;;  %v679_v20 = vpack.c.bf16 %v646_v17, %v645_v16 }
  0x60   : > { %v609_v7 = vmax.f32 %v545_v61, 0.0  ;;  %v552_v58 = vadd.f32 %v2671_v15, %v481_v50  ;;  %v579_v61 = vadd.f32 %v2671_v15, %v508_v53 }
  0x62   : > { %v661_v19 = vpack.c.bf16 %v610_v9, %v609_v7  ;;  %v616_v1 = vmax.f32 %v552_v58, 0.0  ;;  %v643_v3 = vmax.f32 %v579_v61, 0.0  ;;  %v2502_v7 = vld [vmem:[%s2656_s17 + $0xf8] sm:$0xff]  }
  0x63   : > { %2203 = vmatmul.mubr.msk.bf16.gmra.mxu1 %vm729_vm0, %v673_v44  ;;  %v577_v44 = vadd.f32 %v2671_v15, %v506_v34  ;;  %v2471_v14 = vunpack.c.h.bf16 %v2502_v7 }
  0x64   : > { %1108 = vmatprep.mubr.bf16.mxu1 %v2573_v2  ;;  %v678_v11 = vpack.c.bf16 %v644_v4, %v643_v3 }
  0x65   : > { %v641_v51 = vmax.f32 %v577_v44, 0.0 }
  0x66   : > { %2188 = vmatmul.mubr.msk.bf16.gmra.mxu0 %vm729_vm0, %v658_v21  ;;  %v2403_v21 = vunpack.c.h.bf16 %v2485_v10  ;;  %v2470_v10 = vunpack.c.l.bf16 %v2502_v7 }
  0x67   : > { %958 = vmatprep.mubr.bf16.mxu0 %v2573_v2 }
  0x68   : > { %v479_v30 = vmul.f32 %v2403_v21, %v2662_v8  ;;  %v512_v18 = vmul.f32 %v2470_v10, %v2662_v8 }
  0x6a   : > { %v550_v40 = vadd.f32 %v2671_v15, %v479_v30  ;;  %v583_v21 = vadd.f32 %v2671_v15, %v512_v18 }
  0x6b   : > { %2204 = vmatmul.mubr.msk.bf16.gmra.mxu1 %vm729_vm0, %v674_v0 }
  0x6c   : > { %1118 = vmatprep.mubr.bf16.mxu1 %v2573_v2  ;;  %v614_v48 = vmax.f32 %v550_v40, 0.0 }
  0x6e   : > { %2189 = vmatmul.mubr.msk.bf16.gmra.mxu0 %vm729_vm0, %v659_v38  ;;  %v2406_v38 = vunpack.c.l.bf16 %v2486_v31  ;;  %v663_v56 = vpack.c.bf16 %v614_v48, %v613_v47 }
  0x6f   : > { %968 = vmatprep.mubr.bf16.mxu0 %v2573_v2 }
  0x70   : > { %v480_v49 = vmul.f32 %v2406_v38, %v2662_v8 }
  0x72   : > { %v551_v57 = vadd.f32 %v2671_v15, %v480_v49 }
  0x73   : > { %2205 = vmatmul.mubr.msk.bf16.gmra.mxu1 %vm729_vm0, %v675_v23  ;;  %v647_v23 = vmax.f32 %v583_v21, 0.0 }
  0x74   : > { %1128 = vmatprep.mubr.bf16.mxu1 %v2573_v2  ;;  %v615_v0 = vmax.f32 %v551_v57, 0.0 }
  0x76   : > { %2190 = vmatmul.mubr.msk.bf16.gmra.mxu0 %vm729_vm0, %v660_v60  ;;  %v677_v60 = vpack.c.bf16 %v642_v52, %v641_v51  ;;  %v664_v9 = vpack.c.bf16 %v616_v1, %v615_v0 }
  0x77   : > { %978 = vmatprep.mubr.bf16.mxu0 %v2573_v2 }
  0x7b   : > { %2206 = vmatmul.mubr.msk.bf16.gmra.mxu1 %vm729_vm0, %v676_v43 }
  0x7c   : > { %1138 = vmatprep.mubr.bf16.mxu1 %v2573_v2 }
  0x7e   : > { %2191 = vmatmul.mubr.msk.bf16.gmra.mxu0 %vm729_vm0, %v661_v19  ;;  %v513_v19 = vmul.f32 %v2471_v14, %v2662_v8 }
  0x7f   : > { %988 = vmatprep.mubr.bf16.mxu0 %v2573_v2 }
  0x80   : > { %v584_v22 = vadd.f32 %v2671_v15, %v513_v19 }
  0x82   : > { %v648_v24 = vmax.f32 %v584_v22, 0.0 }
  0x83   : > { %2207 = vmatmul.mubr.msk.bf16.gmra.mxu1 %vm729_vm0, %v677_v60 }
  0x84   : > { %1148 = vmatprep.mubr.bf16.mxu1 %v2573_v2  ;;  %v680_v25 = vpack.c.bf16 %v648_v24, %v647_v23 }
  0x86   : > { %2192 = vmatmul.mubr.msk.bf16.gmra.mxu0 %vm729_vm0, %v662_v37 }
  0x87   : > { %998 = vmatprep.mubr.bf16.mxu0 %v2573_v2 }
  0x8b   : > { %2208 = vmatmul.mubr.msk.bf16.gmra.mxu1 %vm729_vm0, %v678_v11 }
  0x8c   : > { %1158 = vmatprep.mubr.bf16.mxu1 %v2573_v2 }
  0x8e   : > { %2193 = vmatmul.mubr.msk.bf16.gmra.mxu0 %vm729_vm0, %v663_v56 }
  0x8f   : > { %1008 = vmatprep.mubr.bf16.mxu0 %v2573_v2 }
  0x93   : > { %2209 = vmatmul.mubr.msk.bf16.gmra.mxu1 %vm729_vm0, %v679_v20 }
  0x94   : > { %1168 = vmatprep.mubr.bf16.mxu1 %v2573_v2 }
  0x96   : > { %2194 = vmatmul.mubr.msk.bf16.gmra.mxu0 %vm729_vm0, %v664_v9 }
  0x9b   : > { %2210 = vmatmul.mubr.msk.bf16.gmra.mxu1 %vm729_vm0, %v680_v25 }
  0xde   : > { %v2897_v26 = vpop.f32.mrf.mxu0 }
  0xe0   : > { %v2904_v8 = vpop.f32.mrf.mxu0 }
  0xe1   : > { %v2280_v2 = vpack.c.bf16 %v2904_v8, %v2897_v26 }
  0xe2   : > { %v2908_v15 = vpop.f32.mrf.mxu0 }
  0xe3   : > { %1563 = vst [vmem:[%s2902_s10] sm:$0xff] %v2280_v2  ;;  %v2932_v36 = vpop.f32.mrf.mxu1 }
  0xe4   : > { %v2911_v27 = vpop.f32.mrf.mxu0 }
  0xe5   : > { %v2281_v28 = vpack.c.bf16 %v2911_v27, %v2908_v15  ;;  %v2938_v39 = vpop.f32.mrf.mxu1 }
  0xe6   : > { %v2915_v29 = vpop.f32.mrf.mxu0  ;;  %v2312_v41 = vpack.c.bf16 %v2938_v39, %v2932_v36 }
  0xe7   : > { %1564 = vst [vmem:[%s2902_s10 + $0x8] sm:$0xff] %v2281_v28  ;;  %v2945_v42 = vpop.f32.mrf.mxu1 }
  0xe8   : > { %v2918_v30 = vpop.f32.mrf.mxu0  ;;  %1595 = vst [vmem:[%s2902_s10 + $0x100] sm:$0xff] %v2312_v41 }
  0xe9   : > { %v2282_v31 = vpack.c.bf16 %v2918_v30, %v2915_v29  ;;  %v2952_v45 = vpop.f32.mrf.mxu1 }
  0xea   : > { %v2922_v32 = vpop.f32.mrf.mxu0  ;;  %v2313_v47 = vpack.c.bf16 %v2952_v45, %v2945_v42 }
  0xeb   : > { %1565 = vst [vmem:[%s2902_s10 + $0x10] sm:$0xff] %v2282_v31  ;;  %v2959_v48 = vpop.f32.mrf.mxu1 }
  0xec   : > { %v2925_v33 = vpop.f32.mrf.mxu0  ;;  %1596 = vst [vmem:[%s2902_s10 + $0x108] sm:$0xff] %v2313_v47 }
  0xed   : > { %v2283_v34 = vpack.c.bf16 %v2925_v33, %v2922_v32  ;;  %v2966_v51 = vpop.f32.mrf.mxu1 }
  0xee   : > { %v2929_v35 = vpop.f32.mrf.mxu0  ;;  %v2314_v53 = vpack.c.bf16 %v2966_v51, %v2959_v48 }
  0xef   : > { %1566 = vst [vmem:[%s2902_s10 + $0x18] sm:$0xff] %v2283_v34  ;;  %v2973_v54 = vpop.f32.mrf.mxu1 }
  0xf0   : > { %v2934_v37 = vpop.f32.mrf.mxu0  ;;  %1597 = vst [vmem:[%s2902_s10 + $0x110] sm:$0xff] %v2314_v53 }
  0xf1   : > { %v2284_v38 = vpack.c.bf16 %v2934_v37, %v2929_v35  ;;  %v2980_v57 = vpop.f32.mrf.mxu1 }
  0xf2   : > { %v2940_v40 = vpop.f32.mrf.mxu0  ;;  %v2315_v59 = vpack.c.bf16 %v2980_v57, %v2973_v54 }
  0xf3   : > { %1567 = vst [vmem:[%s2902_s10 + $0x20] sm:$0xff] %v2284_v38  ;;  %v2987_v60 = vpop.f32.mrf.mxu1 }
  0xf4   : > { %v2947_v43 = vpop.f32.mrf.mxu0  ;;  %1598 = vst [vmem:[%s2902_s10 + $0x118] sm:$0xff] %v2315_v59 }
  0xf5   : > { %v2285_v44 = vpack.c.bf16 %v2947_v43, %v2940_v40  ;;  %v2994_v63 = vpop.f32.mrf.mxu1 }
  0xf6   : > { %v2954_v46 = vpop.f32.mrf.mxu0  ;;  %v2316_v1 = vpack.c.bf16 %v2994_v63, %v2987_v60 }
  0xf7   : > { %1568 = vst [vmem:[%s2902_s10 + $0x28] sm:$0xff] %v2285_v44  ;;  %v3001_v3 = vpop.f32.mrf.mxu1 }
  0xf8   : > { %v2961_v49 = vpop.f32.mrf.mxu0  ;;  %1599 = vst [vmem:[%s2902_s10 + $0x120] sm:$0xff] %v2316_v1 }
  0xf9   : > { %v2286_v50 = vpack.c.bf16 %v2961_v49, %v2954_v46  ;;  %v3008_v6 = vpop.f32.mrf.mxu1 }
  0xfa   : > { %v2968_v52 = vpop.f32.mrf.mxu0  ;;  %v2317_v9 = vpack.c.bf16 %v3008_v6, %v3001_v3 }
  0xfb   : > { %1569 = vst [vmem:[%s2902_s10 + $0x30] sm:$0xff] %v2286_v50  ;;  %v3015_v10 = vpop.f32.mrf.mxu1 }
  0xfc   : > { %v2975_v55 = vpop.f32.mrf.mxu0  ;;  %1600 = vst [vmem:[%s2902_s10 + $0x128] sm:$0xff] %v2317_v9 }
  0xfd   : > { %v2287_v56 = vpack.c.bf16 %v2975_v55, %v2968_v52  ;;  %v3022_v13 = vpop.f32.mrf.mxu1 }
  0xfe   : > { %v2982_v58 = vpop.f32.mrf.mxu0  ;;  %v2318_v16 = vpack.c.bf16 %v3022_v13, %v3015_v10 }
  0xff   : > { %1570 = vst [vmem:[%s2902_s10 + $0x38] sm:$0xff] %v2287_v56  ;;  %v3029_v17 = vpop.f32.mrf.mxu1 }
 0x100   : > { %v2989_v61 = vpop.f32.mrf.mxu0  ;;  %1601 = vst [vmem:[%s2902_s10 + $0x130] sm:$0xff] %v2318_v16 }
 0x101   : > { %v2288_v62 = vpack.c.bf16 %v2989_v61, %v2982_v58  ;;  %v3036_v20 = vpop.f32.mrf.mxu1 }
 0x102   : > { %v2996_v0 = vpop.f32.mrf.mxu0  ;;  %3706 = vst [vmem:[#allocation2_spill] sm:$0xff] %v3036_v20  ;;  %v2319_v22 = vpack.c.bf16 %v3036_v20, %v3029_v17  ;;  %v1767_v20 = vmul.f32 %v2922_v32, %v2922_v32 }
 0x103   : > { %1571 = vst [vmem:[%s2902_s10 + $0x40] sm:$0xff] %v2288_v62  ;;  %v3043_v23 = vpop.f32.mrf.mxu1 }
 0x104   : > { %v3003_v4 = vpop.f32.mrf.mxu0  ;;  %3707 = vst [vmem:[#allocation3_spill] sm:$0xff] %v3043_v23  ;;  %1602 = vst [vmem:[%s2902_s10 + $0x138] sm:$0xff] %v2319_v22 }
 0x105   : > { %v2289_v5 = vpack.c.bf16 %v3003_v4, %v2996_v0  ;;  %v3050_v2 = vpop.f32.mrf.mxu1 }
 0x106   : > { %v3010_v7 = vpop.f32.mrf.mxu0  ;;  %3708 = vst [vmem:[#allocation4_spill] sm:$0xff] %v3050_v2  ;;  %v2320_v31 = vpack.c.bf16 %v3050_v2, %v3043_v23 }
 0x107   : > { %1572 = vst [vmem:[%s2902_s10 + $0x48] sm:$0xff] %v2289_v5  ;;  %v3057_v34 = vpop.f32.mrf.mxu1 }
 0x108   : > { %v3017_v11 = vpop.f32.mrf.mxu0  ;;  %3709 = vst [vmem:[#allocation5_spill] sm:$0xff] %v3057_v34  ;;  %1603 = vst [vmem:[%s2902_s10 + $0x140] sm:$0xff] %v2320_v31  ;;  %v1761_v31 = vmul.f32 %v2897_v26, %v2897_v26 }
 0x109   : > { %v2290_v12 = vpack.c.bf16 %v3017_v11, %v3010_v7  ;;  %v3064_v44 = vpop.f32.mrf.mxu1 }
 0x10a   : > { %v3024_v14 = vpop.f32.mrf.mxu0  ;;  %3710 = vst [vmem:[#allocation6_spill] sm:$0xff] %v3064_v44  ;;  %v2321_v50 = vpack.c.bf16 %v3064_v44, %v3057_v34  ;;  %v1766_v44 = vmul.f32 %v2918_v30, %v2918_v30  ;;  %v1692_v34 = vadd.f32 %v2911_v27, %v2904_v8 }
 0x10b   : > { %1573 = vst [vmem:[%s2902_s10 + $0x50] sm:$0xff] %v2290_v12  ;;  %v3071_v53 = vpop.f32.mrf.mxu1  ;;  %v1763_v12 = vmul.f32 %v2908_v15, %v2908_v15 }
 0x10c   : > { %v3031_v18 = vpop.f32.mrf.mxu0  ;;  %3711 = vst [vmem:[#allocation7_spill] sm:$0xff] %v3071_v53  ;;  %1604 = vst [vmem:[%s2902_s10 + $0x148] sm:$0xff] %v2321_v50 }
 0x10d   : > { %v2291_v19 = vpack.c.bf16 %v3031_v18, %v3024_v14  ;;  %v3078_v62 = vpop.f32.mrf.mxu1  ;;  %v1889_v2 = vadd.f32 %v1763_v12, %v1761_v31  ;;  %v1769_v31 = vmul.f32 %v2929_v35, %v2929_v35 }
 0x10e   : > { %v3038_v21 = vpop.f32.mrf.mxu0  ;;  %3712 = vst [vmem:[#allocation8_spill] sm:$0xff] %v3078_v62  ;;  %v2322_v5 = vpack.c.bf16 %v3078_v62, %v3071_v53  ;;  %v1629_v62 = vadd.f32 %v2908_v15, %v2897_v26  ;;  %v1768_v15 = vmul.f32 %v2925_v33, %v2925_v33 }
 0x10f   : > { %1574 = vst [vmem:[%s2902_s10 + $0x58] sm:$0xff] %v2291_v19  ;;  %v3085_v9 = vpop.f32.mrf.mxu1  ;;  %v1764_v19 = vmul.f32 %v2911_v27, %v2911_v27  ;;  %v1693_v27 = vadd.f32 %v1692_v34, %v2918_v30  ;;  %v1771_v34 = vmul.f32 %v2940_v40, %v2940_v40 }
 0x110   : > { %v3045_v24 = vpop.f32.mrf.mxu0  ;;  %3713 = vst [vmem:[#allocation9_spill] sm:$0xff] %v3085_v9  ;;  %1605 = vst [vmem:[%s2902_s10 + $0x150] sm:$0xff] %v2322_v5  ;;  %v1762_v5 = vmul.f32 %v2904_v8, %v2904_v8  ;;  %v1630_v26 = vadd.f32 %v1629_v62, %v2915_v29 }
 0x111   : > { %v2292_v25 = vpack.c.bf16 %v3045_v24, %v3038_v21  ;;  %v1694_v30 = vadd.f32 %v1693_v27, %v2925_v33 }
 0x112   : > { %v3052_v28 = vpop.f32.mrf.mxu0 }
 0x113   : > { %1575 = vst [vmem:[%s2902_s10 + $0x60] sm:$0xff] %v2292_v25  ;;  %v3096_v25 = vpop.f32.mrf.mxu1 }
 0x114   : > { %v3059_v38 = vpop.f32.mrf.mxu0  ;;  %3714 = vst [vmem:[#allocation10_spill] sm:$0xff] %v3096_v25 }
 0x115   : > { %v2293_v41 = vpack.c.bf16 %v3059_v38, %v3052_v28  ;;  %v3113_v53 = vpop.f32.mrf.mxu1 }
 0x116   : > { %v3066_v47 = vpop.f32.mrf.mxu0 }
 0x117   : > { %1576 = vst [vmem:[%s2902_s10 + $0x68] sm:$0xff] %v2293_v41  ;;  %v1765_v41 = vmul.f32 %v2915_v29, %v2915_v29  ;;  %v3127_v12 = vpop.f32.mrf.mxu1 }
 0x118   : > { %v3073_v56 = vpop.f32.mrf.mxu0  ;;  %3715 = vst [vmem:[#allocation11_spill] sm:$0xff] %v3127_v12  ;;  %v2324_v29 = vpack.c.bf16 %v3127_v12, %v3113_v53 }
 0x119   : > { %v2294_v59 = vpack.c.bf16 %v3073_v56, %v3066_v47  ;;  %v1890_v8 = vadd.f32 %v1889_v2, %v1765_v41 }
 0x11a   : > { %v3080_v1 = vpop.f32.mrf.mxu0  ;;  %1607 = vst [vmem:[%s2902_s10 + $0x160] sm:$0xff] %v2324_v29  ;;  %v1774_v29 = vmul.f32 %v2961_v49, %v2961_v49 }
 0x11b   : > { %1577 = vst [vmem:[%s2902_s10 + $0x70] sm:$0xff] %v2294_v59  ;;  %v2323_v59 = vpack.c.bf16 %v3096_v25, %v3085_v9  ;;  %v1952_v9 = vadd.f32 %v1764_v19, %v1762_v5  ;;  %v1631_v19 = vadd.f32 %v1630_v26, %v2922_v32  ;;  %v3140_v5 = vpop.f32.mrf.mxu1  ;;  %v1891_v2 = vadd.f32 %v1890_v8, %v1767_v20 }
 0x11c   : > { %v3089_v16 = vpop.f32.mrf.mxu0  ;;  %v1772_v32 = vmul.f32 %v2947_v43, %v2947_v43  ;;  %v1695_v26 = vadd.f32 %v1694_v30, %v2934_v37 }
 0x11d   : > { %v2295_v22 = vpack.c.bf16 %v3089_v16, %v3080_v1  ;;  %1606 = vst [vmem:[%s2902_s10 + $0x158] sm:$0xff] %v2323_v59  ;;  %v1953_v62 = vadd.f32 %v1952_v9, %v1766_v44  ;;  %v1770_v59 = vmul.f32 %v2934_v37, %v2934_v37  ;;  %v1632_v44 = vadd.f32 %v1631_v19, %v2929_v35  ;;  %v3153_v20 = vpop.f32.mrf.mxu1 }
 0x11e   : > { %v3102_v50 = vpop.f32.mrf.mxu0  ;;  %v1892_v33 = vadd.f32 %v1891_v2, %v1769_v31  ;;  %v2325_v35 = vpack.c.bf16 %v3153_v20, %v3140_v5  ;;  %v1696_v37 = vadd.f32 %v1695_v26, %v2947_v43  ;;  %v1775_v19 = vmul.f32 %v2968_v52, %v2968_v52 }
 0x11f   : > { %1578 = vst [vmem:[%s2902_s10 + $0x78] sm:$0xff] %v2295_v22  ;;  %v1954_v12 = vadd.f32 %v1953_v62, %v1768_v15  ;;  %v1633_v27 = vadd.f32 %v1632_v44, %v2940_v40  ;;  %v3166_v62 = vpop.f32.mrf.mxu1  ;;  %v1776_v40 = vmul.f32 %v2975_v55, %v2975_v55 }
 0x120   : > { %v3119_v25 = vpop.f32.mrf.mxu0  ;;  %v1893_v31 = vadd.f32 %v1892_v33, %v1771_v34  ;;  %1608 = vst [vmem:[%s2902_s10 + $0x168] sm:$0xff] %v2325_v35  ;;  %v1697_v44 = vadd.f32 %v1696_v37, %v2961_v49  ;;  %v1778_v35 = vmul.f32 %v2989_v61, %v2989_v61 }
 0x121   : > { %v2296_v22 = vpack.c.bf16 %v3119_v25, %v3102_v50  ;;  %v1955_v15 = vadd.f32 %v1954_v12, %v1770_v59  ;;  %v1634_v12 = vadd.f32 %v1633_v27, %v2954_v46  ;;  %v3179_v34 = vpop.f32.mrf.mxu1  ;;  %v1779_v27 = vmul.f32 %v2996_v0, %v2996_v0 }
 0x122   : > { %v3132_v23 = vpop.f32.mrf.mxu0  ;;  %v1698_v49 = vadd.f32 %v1697_v44, %v2975_v55 }
 0x123   : > { %1579 = vst [vmem:[%s2902_s10 + $0x80] sm:$0xff] %v2296_v22  ;;  %v1773_v22 = vmul.f32 %v2954_v46, %v2954_v46  ;;  %v1956_v30 = vadd.f32 %v1955_v15, %v1772_v32  ;;  %v2326_v46 = vpack.c.bf16 %v3179_v34, %v3166_v62  ;;  %v1635_v26 = vadd.f32 %v1634_v12, %v2968_v52  ;;  %v3192_v15 = vpop.f32.mrf.mxu1 }
 0x124   : > { %v3145_v41 = vpop.f32.mrf.mxu0  ;;  %v1780_v52 = vmul.f32 %v3003_v4, %v3003_v4  ;;  %v1699_v12 = vadd.f32 %v1698_v49, %v2989_v61 }
 0x125   : > { %v2297_v9 = vpack.c.bf16 %v3145_v41, %v3132_v23  ;;  %v1894_v43 = vadd.f32 %v1893_v31, %v1773_v22  ;;  %v1957_v32 = vadd.f32 %v1956_v30, %v1774_v29  ;;  %1609 = vst [vmem:[%s2902_s10 + $0x170] sm:$0xff] %v2326_v46  ;;  %v1636_v29 = vadd.f32 %v1635_v26, %v2982_v58 }
 0x126   : > { %v3158_v8 = vpop.f32.mrf.mxu0  ;;  %v1782_v46 = vmul.f32 %v3017_v11, %v3017_v11  ;;  %v1700_v61 = vadd.f32 %v1699_v12, %v3003_v4  ;;  %v1783_v26 = vmul.f32 %v3024_v14, %v3024_v14 }
 0x127   : > { %1580 = vst [vmem:[%s2902_s10 + $0x88] sm:$0xff] %v2297_v9  ;;  %v1777_v9 = vmul.f32 %v2982_v58, %v2982_v58  ;;  %v1895_v22 = vadd.f32 %v1894_v43, %v1775_v19  ;;  %v1958_v37 = vadd.f32 %v1957_v32, %v1776_v40  ;;  %v3205_v19 = vpop.f32.mrf.mxu1  ;;  %v1637_v44 = vadd.f32 %v1636_v29, %v2996_v0 }
 0x128   : > { %v3171_v2 = vpop.f32.mrf.mxu0  ;;  %v2327_v58 = vpack.c.bf16 %v3205_v19, %v3192_v15  ;;  %v1784_v0 = vmul.f32 %v3031_v18, %v3031_v18  ;;  %v1701_v29 = vadd.f32 %v1700_v61, %v3017_v11 }
 0x129   : > { %v2298_v59 = vpack.c.bf16 %v3171_v2, %v3158_v8  ;;  %v1896_v55 = vadd.f32 %v1895_v22, %v1777_v9  ;;  %v1959_v40 = vadd.f32 %v1958_v37, %v1778_v35  ;;  %v3218_v32 = vpop.f32.mrf.mxu1  ;;  %v1638_v35 = vadd.f32 %v1637_v44, %v3010_v7 }
 0x12a   : > { %v3184_v33 = vpop.f32.mrf.mxu0  ;;  %1610 = vst [vmem:[%s2902_s10 + $0x178] sm:$0xff] %v2327_v58  ;;  %v1786_v58 = vmul.f32 %v3045_v24, %v3045_v24  ;;  %v1702_v11 = vadd.f32 %v1701_v29, %v3031_v18  ;;  %v1787_v44 = vmul.f32 %v3052_v28, %v3052_v28 }
 0x12b   : > { %1581 = vst [vmem:[%s2902_s10 + $0x90] sm:$0xff] %v2298_v59  ;;  %v1781_v59 = vmul.f32 %v3010_v7, %v3010_v7  ;;  %v1897_v9 = vadd.f32 %v1896_v55, %v1779_v27  ;;  %v1960_v49 = vadd.f32 %v1959_v40, %v1780_v52  ;;  %v3231_v27 = vpop.f32.mrf.mxu1  ;;  %v1639_v12 = vadd.f32 %v1638_v35, %v3024_v14 }
 0x12c   : > { %v3197_v31 = vpop.f32.mrf.mxu0  ;;  %v2328_v7 = vpack.c.bf16 %v3231_v27, %v3218_v32  ;;  %v1788_v14 = vmul.f32 %v3059_v38, %v3059_v38  ;;  %v1703_v35 = vadd.f32 %v1702_v11, %v3045_v24 }
 0x12d   : > { %v2299_v30 = vpack.c.bf16 %v3197_v31, %v3184_v33  ;;  %v1898_v4 = vadd.f32 %v1897_v9, %v1781_v59  ;;  %v1961_v52 = vadd.f32 %v1960_v49, %v1782_v46  ;;  %v3244_v40 = vpop.f32.mrf.mxu1  ;;  %v1640_v46 = vadd.f32 %v1639_v12, %v3038_v21 }
 0x12e   : > { %v3210_v43 = vpop.f32.mrf.mxu0  ;;  %1611 = vst [vmem:[%s2902_s10 + $0x180] sm:$0xff] %v2328_v7  ;;  %v1790_v7 = vmul.f32 %v3073_v56, %v3073_v56  ;;  %v1704_v24 = vadd.f32 %v1703_v35, %v3059_v38  ;;  %v1791_v12 = vmul.f32 %v3080_v1, %v3080_v1 }
 0x12f   : > { %1582 = vst [vmem:[%s2902_s10 + $0x98] sm:$0xff] %v2299_v30  ;;  %v1785_v30 = vmul.f32 %v3038_v21, %v3038_v21  ;;  %v1899_v59 = vadd.f32 %v1898_v4, %v1783_v26  ;;  %v1962_v61 = vadd.f32 %v1961_v52, %v1784_v0  ;;  %v3257_v26 = vpop.f32.mrf.mxu1  ;;  %v1641_v29 = vadd.f32 %v1640_v46, %v3052_v28 }
 0x130   : > { %v3223_v22 = vpop.f32.mrf.mxu0  ;;  %v2329_v21 = vpack.c.bf16 %v3257_v26, %v3244_v40  ;;  %v1792_v28 = vmul.f32 %v3089_v16, %v3089_v16  ;;  %v1705_v46 = vadd.f32 %v1704_v24, %v3073_v56 }
 0x131   : > { %v2300_v37 = vpack.c.bf16 %v3223_v22, %v3210_v43  ;;  %v1900_v18 = vadd.f32 %v1899_v59, %v1785_v30  ;;  %v1963_v0 = vadd.f32 %v1962_v61, %v1786_v58  ;;  %v3270_v52 = vpop.f32.mrf.mxu1  ;;  %v1642_v58 = vadd.f32 %v1641_v29, %v3066_v47 }
 0x132   : > { %v3236_v55 = vpop.f32.mrf.mxu0  ;;  %1612 = vst [vmem:[%s2902_s10 + $0x188] sm:$0xff] %v2329_v21  ;;  %v1794_v21 = vmul.f32 %v3119_v25, %v3119_v25  ;;  %v1706_v56 = vadd.f32 %v1705_v46, %v3089_v16  ;;  %v1795_v29 = vmul.f32 %v3132_v23, %v3132_v23 }
 0x133   : > { %1583 = vst [vmem:[%s2902_s10 + $0xa0] sm:$0xff] %v2300_v37  ;;  %v1789_v37 = vmul.f32 %v3066_v47, %v3066_v47  ;;  %v1901_v30 = vadd.f32 %v1900_v18, %v1787_v44  ;;  %v1964_v11 = vadd.f32 %v1963_v0, %v1788_v14  ;;  %v3283_v44 = vpop.f32.mrf.mxu1  ;;  %v1643_v35 = vadd.f32 %v1642_v58, %v3080_v1 }
 0x134   : > { %v3249_v9 = vpop.f32.mrf.mxu0  ;;  %v2330_v47 = vpack.c.bf16 %v3283_v44, %v3270_v52  ;;  %v1796_v1 = vmul.f32 %v3145_v41, %v3145_v41  ;;  %v1797_v58 = vmul.f32 %v3158_v8, %v3158_v8 }
 0x135   : > { %v2301_v49 = vpack.c.bf16 %v3249_v9, %v3236_v55  ;;  %v1902_v38 = vadd.f32 %v1901_v30, %v1789_v37  ;;  %v1965_v14 = vadd.f32 %v1964_v11, %v1790_v7  ;;  %v3296_v0 = vpop.f32.mrf.mxu1  ;;  %v1644_v7 = vadd.f32 %v1643_v35, %v3102_v50 }
 0x136   : > { %v3262_v4 = vpop.f32.mrf.mxu0  ;;  %1613 = vst [vmem:[%s2902_s10 + $0x190] sm:$0xff] %v2330_v47  ;;  %v1799_v35 = vmul.f32 %v3184_v33, %v3184_v33 }
 0x137   : > { %1584 = vst [vmem:[%s2902_s10 + $0xa8] sm:$0xff] %v2301_v49  ;;  %v1793_v49 = vmul.f32 %v3102_v50, %v3102_v50  ;;  %v1903_v37 = vadd.f32 %v1902_v38, %v1791_v12  ;;  %v1966_v24 = vadd.f32 %v1965_v14, %v1792_v28  ;;  %v3309_v12 = vpop.f32.mrf.mxu1  ;;  %v1707_v50 = vadd.f32 %v1706_v56, %v3119_v25 }
 0x138   : > { %v3275_v59 = vpop.f32.mrf.mxu0  ;;  %3716 = vst [vmem:[#allocation12_spill] sm:$0xff] %v3309_v12  ;;  %v2331_v28 = vpack.c.bf16 %v3309_v12, %v3296_v0  ;;  %v1645_v46 = vadd.f32 %v1644_v7, %v3132_v23  ;;  %v1801_v7 = vmul.f32 %v3210_v43, %v3210_v43 }
 0x139   : > { %v2302_v61 = vpack.c.bf16 %v3275_v59, %v3262_v4  ;;  %v1904_v16 = vadd.f32 %v1903_v37, %v1793_v49  ;;  %v1967_v38 = vadd.f32 %v1966_v24, %v1794_v21  ;;  %v3320_v47 = vpop.f32.mrf.mxu1  ;;  %v1798_v49 = vmul.f32 %v3171_v2, %v3171_v2 }
 0x13a   : > { %v3288_v18 = vpop.f32.mrf.mxu0  ;;  %1614 = vst [vmem:[%s2902_s10 + $0x198] sm:$0xff] %v2331_v28  ;;  %v1708_v12 = vadd.f32 %v1707_v50, %v3145_v41  ;;  %v1646_v21 = vadd.f32 %v1645_v46, %v3158_v8  ;;  %v1800_v24 = vmul.f32 %v3197_v31, %v3197_v31 }
 0x13b   : > { %1585 = vst [vmem:[%s2902_s10 + $0xb0] sm:$0xff] %v2302_v61  ;;  %v1905_v14 = vadd.f32 %v1904_v16, %v1795_v29  ;;  %v1968_v25 = vadd.f32 %v1967_v38, %v1796_v1  ;;  %v3333_v56 = vpop.f32.mrf.mxu1  ;;  %v1803_v38 = vmul.f32 %v3236_v55, %v3236_v55 }
 0x13c   : > { %v3301_v30 = vpop.f32.mrf.mxu0  ;;  %v2332_v41 = vpack.c.bf16 %v3333_v56, %v3320_v47  ;;  %v1709_v1 = vadd.f32 %v1708_v12, %v3171_v2  ;;  %v1647_v8 = vadd.f32 %v1646_v21, %v3184_v33 }
 0x13d   : > { %v2303_v11 = vpack.c.bf16 %v3301_v30, %v3288_v18  ;;  %v1906_v29 = vadd.f32 %v1905_v14, %v1797_v58  ;;  %v3344_v16 = vpop.f32.mrf.mxu1  ;;  %v1969_v28 = vadd.f32 %v1968_v25, %v1798_v49  ;;  %v1802_v58 = vmul.f32 %v3223_v22, %v3223_v22 }
 0x13e   : > { %v3313_v61 = vpop.f32.mrf.mxu0  ;;  %1615 = vst [vmem:[%s2902_s10 + $0x1a0] sm:$0xff] %v2332_v41  ;;  %v1710_v14 = vadd.f32 %v1709_v1, %v3197_v31  ;;  %v1648_v2 = vadd.f32 %v1647_v8, %v3210_v43  ;;  %v1804_v31 = vmul.f32 %v3249_v9, %v3249_v9 }
 0x13f   : > { %1586 = vst [vmem:[%s2902_s10 + $0xb8] sm:$0xff] %v2303_v11  ;;  %v1907_v50 = vadd.f32 %v1906_v29, %v1799_v35  ;;  %v3353_v33 = vpop.f32.mrf.mxu1  ;;  %v1970_v21 = vadd.f32 %v1969_v28, %v1800_v24  ;;  %v1805_v35 = vmul.f32 %v3262_v4, %v3262_v4 }
 0x140   : > { %v3326_v37 = vpop.f32.mrf.mxu0  ;;  %3717 = vst [vmem:[#allocation13_spill] sm:$0xff] %v3353_v33  ;;  %v1711_v29 = vadd.f32 %v1710_v14, %v3223_v22  ;;  %v1649_v41 = vadd.f32 %v1648_v2, %v3236_v55  ;;  %v1806_v55 = vmul.f32 %v3275_v59, %v3275_v59 }
 0x141   : > { %v2304_v23 = vpack.c.bf16 %v3326_v37, %v3313_v61  ;;  %v1908_v49 = vadd.f32 %v1907_v50, %v1801_v7  ;;  %v3364_v43 = vpop.f32.mrf.mxu1  ;;  %v1971_v1 = vadd.f32 %v1970_v21, %v1802_v58  ;;  %v1807_v7 = vmul.f32 %v3288_v18, %v3288_v18 }
 0x142   : > { %v984_v11 = vpop.f32.mrf.mxu0  ;;  %3718 = vst [vmem:[#allocation14_spill] sm:$0xff] %v3364_v43  ;;  %v1712_v28 = vadd.f32 %v1711_v29, %v3249_v9  ;;  %v1650_v22 = vadd.f32 %v1649_v41, %v3262_v4  ;;  %v1809_v58 = vmul.f32 %v3313_v61, %v3313_v61  ;;  %v1808_v29 = vmul.f32 %v3301_v30, %v3301_v30 }
 0x143   : > { %1587 = vst [vmem:[%s2902_s10 + $0xc0] sm:$0xff] %v2304_v23  ;;  %v2333_v23 = vpack.c.bf16 %v3353_v33, %v3344_v16  ;;  %v1909_v24 = vadd.f32 %v1908_v49, %v1803_v38  ;;  %v3373_v14 = vpop.f32.mrf.mxu1  ;;  %v1972_v21 = vadd.f32 %v1971_v1, %v1804_v31 }
 0x144   : > { %v986_v46 = vpop.f32.mrf.mxu0  ;;  %3719 = vst [vmem:[#allocation15_spill] sm:$0xff] %v3373_v14  ;;  %v1713_v9 = vadd.f32 %v1712_v28, %v3275_v59  ;;  %v1651_v4 = vadd.f32 %v1650_v22, %v3288_v18 }
 0x145   : > { %v2305_v12 = vpack.c.bf16 %v986_v46, %v984_v11  ;;  %1616 = vst [vmem:[%s2902_s10 + $0x1a8] sm:$0xff] %v2333_v23  ;;  %v1910_v2 = vadd.f32 %v1909_v24, %v1805_v35  ;;  %v3382_v49 = vpop.f32.mrf.mxu1  ;;  %v1811_v35 = vmul.f32 %v984_v11, %v984_v11  ;;  %v1973_v24 = vadd.f32 %v1972_v21, %v1806_v55 }
 0x146   : > { %v990_v25 = vpop.f32.mrf.mxu0  ;;  %3720 = vst [vmem:[#allocation16_spill] sm:$0xff] %v3382_v49  ;;  %v1714_v33 = vadd.f32 %v1713_v9, %v3301_v30  ;;  %v1652_v31 = vadd.f32 %v1651_v4, %v3313_v61  ;;  %v1812_v21 = vmul.f32 %v986_v46, %v986_v46 }
 0x147   : > { %1588 = vst [vmem:[%s2902_s10 + $0xc8] sm:$0xff] %v2305_v12  ;;  %v2334_v12 = vpack.c.bf16 %v3373_v14, %v3364_v43  ;;  %v1911_v23 = vadd.f32 %v1910_v2, %v1807_v7  ;;  %v3389_v59 = vpop.f32.mrf.mxu1  ;;  %v1810_v7 = vmul.f32 %v3326_v37, %v3326_v37  ;;  %v1813_v28 = vmul.f32 %v990_v25, %v990_v25 }
 0x148   : > { %v992_v8 = vpop.f32.mrf.mxu0  ;;  %3721 = vst [vmem:[#allocation17_spill] sm:$0xff] %v3389_v59  ;;  %v1715_v2 = vadd.f32 %v1714_v33, %v3326_v37  ;;  %v1653_v55 = vadd.f32 %v1652_v31, %v984_v11  ;;  %v1974_v61 = vadd.f32 %v1973_v24, %v1808_v29 }
 0x149   : > { %v2306_v50 = vpack.c.bf16 %v992_v8, %v990_v25  ;;  %1617 = vst [vmem:[%s2902_s10 + $0x1b0] sm:$0xff] %v2334_v12  ;;  %v1912_v18 = vadd.f32 %v1911_v23, %v1809_v58  ;;  %v3397_v30 = vpop.f32.mrf.mxu1  ;;  %v1814_v37 = vmul.f32 %v992_v8, %v992_v8 }
 0x14a   : > { %v994_v38 = vpop.f32.mrf.mxu0  ;;  %v1716_v4 = vadd.f32 %v1715_v2, %v986_v46  ;;  %v1654_v23 = vadd.f32 %v1653_v55, %v990_v25 }
 0x14b   : > { %1589 = vst [vmem:[%s2902_s10 + $0xd0] sm:$0xff] %v2306_v50  ;;  %v2335_v50 = vpack.c.bf16 %v3389_v59, %v3382_v49  ;;  %v1913_v12 = vadd.f32 %v1912_v18, %v1811_v35  ;;  %v1815_v9 = vmul.f32 %v994_v38, %v994_v38  ;;  %v3400_v43 = vpop.f32.mrf.mxu1  ;;  %v1975_v59 = vadd.f32 %v1974_v61, %v1810_v7 }
 0x14c   : > { %v996_v41 = vpop.f32.mrf.mxu0  ;;  %v2336_v33 = vpack.c.bf16 %v3400_v43, %v3397_v30  ;;  %v1717_v29 = vadd.f32 %v1716_v4, %v992_v8  ;;  %v1655_v35 = vadd.f32 %v1654_v23, %v994_v38 }
 0x14d   : > { %v2307_v1 = vpack.c.bf16 %v996_v41, %v994_v38  ;;  %1618 = vst [vmem:[%s2902_s10 + $0x1b8] sm:$0xff] %v2335_v50  ;;  %v1914_v49 = vadd.f32 %v1913_v12, %v1813_v28  ;;  %v3405_v31 = vpop.f32.mrf.mxu1  ;;  %v1816_v25 = vmul.f32 %v996_v41, %v996_v41 }
 0x14e   : > { %v1000_v22 = vpop.f32.mrf.mxu0  ;;  %1619 = vst [vmem:[%s2902_s10 + $0x1c0] sm:$0xff] %v2336_v33  ;;  %v1718_v50 = vadd.f32 %v1717_v29, %v996_v41 }
 0x14f   : > { %1590 = vst [vmem:[%s2902_s10 + $0xd8] sm:$0xff] %v2307_v1  ;;  %v1817_v24 = vmul.f32 %v1000_v22, %v1000_v22  ;;  %v1976_v1 = vadd.f32 %v1975_v59, %v1812_v21  ;;  %v1915_v46 = vadd.f32 %v1914_v49, %v1815_v9  ;;  %v1656_v7 = vadd.f32 %v1655_v35, %v1000_v22  ;;  %v3408_v55 = vpop.f32.mrf.mxu1 }
 0x150   : > { %v1002_v58 = vpop.f32.mrf.mxu0 }
 0x151   : > { %v2308_v14 = vpack.c.bf16 %v1002_v58, %v1000_v22  ;;  %v1977_v61 = vadd.f32 %v1976_v1, %v1814_v37  ;;  %v1818_v8 = vmul.f32 %v1002_v58, %v1002_v58  ;;  %v1916_v12 = vadd.f32 %v1915_v46, %v1817_v24  ;;  %v3413_v9 = vpop.f32.mrf.mxu1 }
 0x152   : > { %v1004_v11 = vpop.f32.mrf.mxu0  ;;  %v1719_v59 = vadd.f32 %v1718_v50, %v1002_v58 }
 0x153   : > { %1591 = vst [vmem:[%s2902_s10 + $0xe0] sm:$0xff] %v2308_v14  ;;  %v1819_v28 = vmul.f32 %v1004_v11, %v1004_v11  ;;  %v2337_v14 = vpack.c.bf16 %v3408_v55, %v3405_v31  ;;  %v1657_v49 = vadd.f32 %v1656_v7, %v1004_v11  ;;  %v1978_v41 = vadd.f32 %v1977_v61, %v1816_v25  ;;  %v3416_v35 = vpop.f32.mrf.mxu1 }
 0x154   : > { %v1006_v18 = vpop.f32.mrf.mxu0 }
 0x155   : > { %v2309_v2 = vpack.c.bf16 %v1006_v18, %v1004_v11  ;;  %v1820_v22 = vmul.f32 %v1006_v18, %v1006_v18  ;;  %1620 = vst [vmem:[%s2902_s10 + $0x1c8] sm:$0xff] %v2337_v14  ;;  %v1917_v23 = vadd.f32 %v1916_v12, %v1819_v28  ;;  %v1720_v33 = vadd.f32 %v1719_v59, %v1006_v18 }
 0x156   : > { %v1010_v38 = vpop.f32.mrf.mxu0  ;;  %v1979_v1 = vadd.f32 %v1978_v41, %v1818_v8  ;;  %v2338_v11 = vpack.c.bf16 %v3416_v35, %v3413_v9  ;;  %v1825_v18 = vmul.f32 %v2932_v36, %v2932_v36 }
 0x157   : > { %1592 = vst [vmem:[%s2902_s10 + $0xe8] sm:$0xff] %v2309_v2  ;;  %v1821_v21 = vmul.f32 %v1010_v38, %v1010_v38  ;;  %v1658_v37 = vadd.f32 %v1657_v49, %v1010_v38  ;;  %v3421_v2 = vpop.f32.mrf.mxu1 }
 0x158   : > { %v1012_v4 = vpop.f32.mrf.mxu0  ;;  %v1980_v28 = vadd.f32 %v1979_v1, %v1820_v22  ;;  %1621 = vst [vmem:[%s2902_s10 + $0x1d0] sm:$0xff] %v2338_v11  ;;  %v1829_v1 = vmul.f32 %v2959_v48, %v2959_v48 }
 0x159   : > { %v2310_v29 = vpack.c.bf16 %v1012_v4, %v1010_v38  ;;  %v1822_v24 = vmul.f32 %v1012_v4, %v1012_v4  ;;  %v1918_v46 = vadd.f32 %v1917_v23, %v1821_v21  ;;  %v1721_v50 = vadd.f32 %v1720_v33, %v1012_v4  ;;  %v3427_v59 = vpop.f32.mrf.mxu1 }
 0x15a   : > { %v1014_v58 = vpop.f32.mrf.mxu0  ;;  %v2339_v41 = vpack.c.bf16 %v3427_v59, %v3421_v2  ;;  %v1827_v4 = vmul.f32 %v2945_v42, %v2945_v42 }
 0x15b   : > { %1593 = vst [vmem:[%s2902_s10 + $0xf0] sm:$0xff] %v2310_v29  ;;  %v1659_v25 = vadd.f32 %v1658_v37, %v1014_v58  ;;  %v1823_v7 = vmul.f32 %v1014_v58, %v1014_v58  ;;  %v1981_v49 = vadd.f32 %v1980_v28, %v1822_v24  ;;  %v3436_v33 = vpop.f32.mrf.mxu1  ;;  %v1826_v37 = vmul.f32 %v2938_v39, %v2938_v39 }
 0x15c   : > { %v1016_v61 = vpop.f32.mrf.mxu0  ;;  %1622 = vst [vmem:[%s2902_s10 + $0x1d8] sm:$0xff] %v2339_v41  ;;  %v1835_v41 = vmul.f32 %v3001_v3, %v3001_v3 }
 0x15d   : > { %v1660_v8 = vadd.f32 %v1659_v25, %v2932_v36  ;;  %v1919_v38 = vadd.f32 %v1918_v46, %v1823_v7  ;;  %v2311_v14 = vpack.c.bf16 %v1016_v61, %v1014_v58  ;;  %v1722_v12 = vadd.f32 %v1721_v50, %v1016_v61  ;;  %v3445_v11 = vpop.f32.mrf.mxu1 }
 0x15e   : > { %v1824_v21 = vmul.f32 %v1016_v61, %v1016_v61  ;;  %v1828_v46 = vmul.f32 %v2952_v45, %v2952_v45  ;;  %v1831_v25 = vmul.f32 %v2973_v54, %v2973_v54  ;;  %v1830_v61 = vmul.f32 %v2966_v51, %v2966_v51 }
 0x15f   : > { %v1661_v22 = vadd.f32 %v1660_v8, %v2945_v42  ;;  %v1920_v23 = vadd.f32 %v1919_v38, %v1825_v18  ;;  %1594 = vst [vmem:[%s2902_s10 + $0xf8] sm:$0xff] %v2311_v14  ;;  %v1723_v36 = vadd.f32 %v1722_v12, %v2938_v39  ;;  %v2340_v39 = vpack.c.bf16 %v3445_v11, %v3436_v33  ;;  %v3455_v28 = vpop.f32.mrf.mxu1 }
 0x160   : > { %v1982_v29 = vadd.f32 %v1981_v49, %v1824_v21  ;;  %v1832_v49 = vmul.f32 %v2980_v57, %v2980_v57 }
 0x161   : > { %v1662_v24 = vadd.f32 %v1661_v22, %v2959_v48  ;;  %v1921_v58 = vadd.f32 %v1920_v23, %v1827_v4  ;;  %v1724_v42 = vadd.f32 %v1723_v36, %v2952_v45  ;;  %1623 = vst [vmem:[%s2902_s10 + $0x1e0] sm:$0xff] %v2340_v39  ;;  %v1833_v45 = vmul.f32 %v2987_v60, %v2987_v60 }
 0x162   : > { %v1983_v50 = vadd.f32 %v1982_v29, %v1826_v37  ;;  %v1834_v36 = vmul.f32 %v2994_v63, %v2994_v63 }
 0x163   : > { %v1663_v7 = vadd.f32 %v1662_v24, %v2973_v54  ;;  %v1922_v18 = vadd.f32 %v1921_v58, %v1829_v1  ;;  %v1725_v48 = vadd.f32 %v1724_v42, %v2966_v51  ;;  %v3464_v54 = vpop.f32.mrf.mxu1  ;;  %v1836_v58 = vmul.f32 %v3008_v6, %v3008_v6 }
 0x164   : > { %v1984_v8 = vadd.f32 %v1983_v50, %v1828_v46  ;;  %v2341_v51 = vpack.c.bf16 %v3464_v54, %v3455_v28  ;;  %v1839_v46 = vmul.f32 %v3029_v17, %v3029_v17 }
 0x165   : > { %v1664_v38 = vadd.f32 %v1663_v7, %v2987_v60  ;;  %v1923_v14 = vadd.f32 %v1922_v18, %v1831_v25  ;;  %v1726_v12 = vadd.f32 %v1725_v48, %v2980_v57  ;;  %v3474_v23 = vpop.f32.mrf.mxu1  ;;  %v1837_v57 = vmul.f32 %v3015_v10, %v3015_v10 }
 0x166   : > { %v1985_v21 = vadd.f32 %v1984_v8, %v1830_v61  ;;  %1624 = vst [vmem:[%s2902_s10 + $0x1e8] sm:$0xff] %v2341_v51  ;;  %v1838_v7 = vmul.f32 %v3022_v13, %v3022_v13  ;;  %v3723_v8 = vld [vmem:[#allocation2_spill] sm:$0xff]  ;;  %v3725_v51 = vld [vmem:[#allocation4_spill] sm:$0xff] }
 0x167   : > { %v1665_v4 = vadd.f32 %v1664_v38, %v3001_v3  ;;  %v1924_v22 = vadd.f32 %v1923_v14, %v1833_v45  ;;  %v1727_v60 = vadd.f32 %v1726_v12, %v2994_v63  ;;  %v3483_v3 = vpop.f32.mrf.mxu1  ;;  %v1840_v14 = vmul.f32 %v3723_v8, %v3723_v8 }
 0x168   : > { %v1986_v37 = vadd.f32 %v1985_v21, %v1832_v49  ;;  %v2342_v63 = vpack.c.bf16 %v3483_v3, %v3474_v23  ;;  %v3724_v49 = vld [vmem:[#allocation5_spill] sm:$0xff] }
 0x169   : > { %v1666_v29 = vadd.f32 %v1665_v4, %v3015_v10  ;;  %v1925_v1 = vadd.f32 %v1924_v22, %v1835_v41  ;;  %v1728_v24 = vadd.f32 %v1727_v60, %v3008_v6  ;;  %v3493_v25 = vpop.f32.mrf.mxu1  ;;  %v3722_v6 = vld [vmem:[#allocation3_spill] sm:$0xff]  ;;  %v1843_v21 = vmul.f32 %v3724_v49, %v3724_v49 }
 0x16a   : > { %v1987_v42 = vadd.f32 %v1986_v37, %v1834_v36  ;;  %1625 = vst [vmem:[%s2902_s10 + $0x1f0] sm:$0xff] %v2342_v63  ;;  %v1841_v48 = vmul.f32 %v3722_v6, %v3722_v6  ;;  %v1842_v60 = vmul.f32 %v3725_v51, %v3725_v51  ;;  %v3726_v37 = vld [vmem:[#allocation7_spill] sm:$0xff] }
 0x16b   : > { %v1667_v50 = vadd.f32 %v1666_v29, %v3029_v17  ;;  %v1926_v39 = vadd.f32 %v1925_v1, %v1837_v57  ;;  %v1729_v10 = vadd.f32 %v1728_v24, %v3022_v13  ;;  %v3502_v17 = vpop.f32.mrf.mxu1  ;;  %v1845_v57 = vmul.f32 %v3726_v37, %v3726_v37  ;;  %v3727_v24 = vld [vmem:[#allocation6_spill] sm:$0xff] }
 0x16c   : > { %v1988_v18 = vadd.f32 %v1987_v42, %v1836_v58  ;;  %v2343_v13 = vpack.c.bf16 %v3502_v17, %v3493_v25  ;;  %v1844_v42 = vmul.f32 %v3727_v24, %v3727_v24 }
 0x16d   : > { %v1927_v61 = vadd.f32 %v1926_v39, %v1839_v46  ;;  %v1730_v45 = vadd.f32 %v1729_v10, %v3723_v8  ;;  %v1668_v38 = vadd.f32 %v1667_v50, %v3722_v6  ;;  %v3728_v46 = vld [vmem:[#allocation9_spill] sm:$0xff] }
 0x16e   : > { %v1989_v12 = vadd.f32 %v1988_v18, %v1838_v7  ;;  %1626 = vst [vmem:[%s2902_s10 + $0x1f8] sm:$0xff] %v2343_v13  ;;  %v1847_v50 = vmul.f32 %v3728_v46, %v3728_v46  ;;  %v3729_v7 = vld [vmem:[#allocation8_spill] sm:$0xff] }
 0x16f   : > { %v1731_v41 = vadd.f32 %v1730_v45, %v3725_v51  ;;  %v1669_v4 = vadd.f32 %v1668_v38, %v3724_v49  ;;  %v1928_v22 = vadd.f32 %v1927_v61, %v1841_v48  ;;  %v1846_v6 = vmul.f32 %v3729_v7, %v3729_v7  ;;  %v3730_v38 = vld [vmem:[#allocation10_spill] sm:$0xff] }
 0x170   : > { %v1990_v36 = vadd.f32 %v1989_v12, %v1840_v14  ;;  %v1849_v61 = vmul.f32 %v3113_v53, %v3113_v53  ;;  %v1848_v12 = vmul.f32 %v3730_v38, %v3730_v38  ;;  %v1851_v49 = vmul.f32 %v3140_v5, %v3140_v5 }
 0x171   : > { %v1670_v29 = vadd.f32 %v1669_v4, %v3726_v37  ;;  %v1929_v1 = vadd.f32 %v1928_v22, %v1843_v21  ;;  %v1732_v58 = vadd.f32 %v1731_v41, %v3727_v24  ;;  %v3731_v41 = vld [vmem:[#allocation11_spill] sm:$0xff] }
 0x172   : > { %v1991_v63 = vadd.f32 %v1990_v36, %v1842_v60  ;;  %v1850_v22 = vmul.f32 %v3731_v41, %v3731_v41 }
 0x173   : > { %v1671_v39 = vadd.f32 %v1670_v29, %v3728_v46  ;;  %v1930_v10 = vadd.f32 %v1929_v1, %v1845_v57  ;;  %v1733_v18 = vadd.f32 %v1732_v58, %v3729_v7  ;;  %v1852_v29 = vmul.f32 %v3153_v20, %v3153_v20 }
 0x174   : > { %v1992_v48 = vadd.f32 %v1991_v63, %v1844_v42  ;;  %v1854_v63 = vmul.f32 %v3179_v34, %v3179_v34 }
 0x175   : > { %v1672_v8 = vadd.f32 %v1671_v39, %v3113_v53  ;;  %v1931_v45 = vadd.f32 %v1930_v10, %v1847_v50  ;;  %v1734_v14 = vadd.f32 %v1733_v18, %v3730_v38  ;;  %v1853_v53 = vmul.f32 %v3166_v62, %v3166_v62 }
 0x176   : > { %v1993_v13 = vadd.f32 %v1992_v48, %v1846_v6  ;;  %v1856_v10 = vmul.f32 %v3205_v19, %v3205_v19  ;;  %v1859_v18 = vmul.f32 %v3244_v40, %v3244_v40  ;;  %v1858_v48 = vmul.f32 %v3231_v27, %v3231_v27 }
 0x177   : > { %v1673_v21 = vadd.f32 %v1672_v8, %v3140_v5  ;;  %v1932_v51 = vadd.f32 %v1931_v45, %v1849_v61  ;;  %v1735_v4 = vadd.f32 %v1734_v14, %v3731_v41  ;;  %v1855_v5 = vmul.f32 %v3192_v15, %v3192_v15  ;;  %v3732_v41 = vld [vmem:[#allocation12_spill] sm:$0xff] }
 0x178   : > { %v1994_v60 = vadd.f32 %v1993_v13, %v1848_v12  ;;  %v1860_v38 = vmul.f32 %v3257_v26, %v3257_v26 }
 0x179   : > { %v1674_v36 = vadd.f32 %v1673_v21, %v3166_v62  ;;  %v1933_v37 = vadd.f32 %v1932_v51, %v1851_v49  ;;  %v1736_v57 = vadd.f32 %v1735_v4, %v3153_v20  ;;  %v1857_v62 = vmul.f32 %v3218_v32, %v3218_v32 }
 0x17a   : > { %v1995_v1 = vadd.f32 %v1994_v60, %v1850_v22  ;;  %v1862_v21 = vmul.f32 %v3283_v44, %v3283_v44  ;;  %v1864_v60 = vmul.f32 %v3732_v41, %v3732_v41 }
 0x17b   : > { %v1675_v24 = vadd.f32 %v1674_v36, %v3192_v15  ;;  %v1934_v58 = vadd.f32 %v1933_v37, %v1853_v53  ;;  %v1737_v42 = vadd.f32 %v1736_v57, %v3179_v34  ;;  %v1866_v57 = vmul.f32 %v3333_v56, %v3333_v56 }
 0x17c   : > { %v1996_v46 = vadd.f32 %v1995_v1, %v1852_v29  ;;  %v3733_v1 = vld [vmem:[#allocation13_spill] sm:$0xff] }
 0x17d   : > { %v1676_v50 = vadd.f32 %v1675_v24, %v3218_v32  ;;  %v1935_v39 = vadd.f32 %v1934_v58, %v1855_v5  ;;  %v1738_v20 = vadd.f32 %v1737_v42, %v3205_v19  ;;  %v1861_v19 = vmul.f32 %v3270_v52, %v3270_v52 }
 0x17e   : > { %v1997_v7 = vadd.f32 %v1996_v46, %v1854_v63  ;;  %v1868_v63 = vmul.f32 %v3733_v1, %v3733_v1 }
 0x17f   : > { %v1677_v15 = vadd.f32 %v1676_v50, %v3244_v40  ;;  %v1936_v6 = vadd.f32 %v1935_v39, %v1857_v62  ;;  %v1739_v34 = vadd.f32 %v1738_v20, %v3231_v27  ;;  %v1863_v27 = vmul.f32 %v3296_v0, %v3296_v0  ;;  %v3735_v62 = vld [vmem:[#allocation15_spill] sm:$0xff] }
 0x180   : > { %v1998_v61 = vadd.f32 %v1997_v7, %v1856_v10  ;;  %v1870_v10 = vmul.f32 %v3735_v62, %v3735_v62 }
 0x181   : > { %v1937_v32 = vadd.f32 %v1936_v6, %v1859_v18  ;;  %v1740_v8 = vadd.f32 %v1739_v34, %v3257_v26  ;;  %v1678_v45 = vadd.f32 %v1677_v15, %v3270_v52  ;;  %v1865_v26 = vmul.f32 %v3320_v47, %v3320_v47  ;;  %v3737_v15 = vld [vmem:[#allocation17_spill] sm:$0xff] }
 0x182   : > { %v1999_v14 = vadd.f32 %v1998_v61, %v1858_v48  ;;  %v1873_v34 = vmul.f32 %v3397_v30, %v3397_v30  ;;  %v1872_v61 = vmul.f32 %v3737_v15, %v3737_v15 }
 0x183   : > { %v1938_v40 = vadd.f32 %v1937_v32, %v1861_v19  ;;  %v1741_v12 = vadd.f32 %v1740_v8, %v3283_v44  ;;  %v1679_v13 = vadd.f32 %v1678_v45, %v3296_v0  ;;  %v1867_v44 = vmul.f32 %v3344_v16, %v3344_v16 }
 0x184   : > { %v2000_v49 = vadd.f32 %v1999_v14, %v1860_v38  ;;  %v1875_v19 = vmul.f32 %v3405_v31, %v3405_v31  ;;  %v1874_v14 = vmul.f32 %v3400_v43, %v3400_v43 }
 0x185   : > { %v1939_v51 = vadd.f32 %v1938_v40, %v1863_v27  ;;  %v1742_v4 = vadd.f32 %v1741_v12, %v3732_v41  ;;  %v1680_v52 = vadd.f32 %v1679_v13, %v3320_v47  ;;  %v3734_v47 = vld [vmem:[#allocation14_spill] sm:$0xff]  ;;  %v1877_v13 = vmul.f32 %v3413_v9, %v3413_v9 }
 0x186   : > { %v2001_v22 = vadd.f32 %v2000_v49, %v1862_v21  ;;  %v1869_v58 = vmul.f32 %v3734_v47, %v3734_v47  ;;  %v1876_v49 = vmul.f32 %v3408_v55, %v3408_v55 }
 0x187   : > { %v1940_v53 = vadd.f32 %v1939_v51, %v1865_v26  ;;  %v1743_v36 = vadd.f32 %v1742_v4, %v3333_v56  ;;  %v1681_v0 = vadd.f32 %v1680_v52, %v3344_v16  ;;  %v3736_v16 = vld [vmem:[#allocation16_spill] sm:$0xff]  ;;  %v1878_v4 = vmul.f32 %v3416_v35, %v3416_v35 }
 0x188   : > { %v2002_v37 = vadd.f32 %v2001_v22, %v1864_v60  ;;  %v1871_v56 = vmul.f32 %v3736_v16, %v3736_v16  ;;  %v1880_v60 = vmul.f32 %v3427_v59, %v3427_v59 }
 0x189   : > { %v1941_v29 = vadd.f32 %v1940_v53, %v1867_v44  ;;  %v1744_v5 = vadd.f32 %v1743_v36, %v3733_v1  ;;  %v1682_v24 = vadd.f32 %v1681_v0, %v3734_v47  ;;  %v1882_v44 = vmul.f32 %v3445_v11, %v3445_v11 }
 0x18a   : > { %v2003_v42 = vadd.f32 %v2002_v37, %v1866_v57  ;;  %v1884_v1 = vmul.f32 %v3464_v54, %v3464_v54 }
 0x18b   : > { %v1942_v46 = vadd.f32 %v1941_v29, %v1869_v58  ;;  %v1745_v50 = vadd.f32 %v1744_v5, %v3735_v62  ;;  %v1683_v39 = vadd.f32 %v1682_v24, %v3736_v16  ;;  %v1886_v58 = vmul.f32 %v3483_v3, %v3483_v3 }
 0x18c   : > { %v2004_v20 = vadd.f32 %v2003_v42, %v1868_v63  ;;  %v1888_v63 = vmul.f32 %v3502_v17, %v3502_v17 }
 0x18d   : > { %v1943_v7 = vadd.f32 %v1942_v46, %v1871_v56  ;;  %v1746_v18 = vadd.f32 %v1745_v50, %v3737_v15  ;;  %v1684_v6 = vadd.f32 %v1683_v39, %v3397_v30 }
 0x18e   : > { %v2005_v48 = vadd.f32 %v2004_v20, %v1870_v10 }
 0x18f   : > { %v1944_v32 = vadd.f32 %v1943_v7, %v1873_v34  ;;  %v1747_v8 = vadd.f32 %v1746_v18, %v3400_v43  ;;  %v1685_v45 = vadd.f32 %v1684_v6, %v3405_v31  ;;  %v1879_v43 = vmul.f32 %v3421_v2, %v3421_v2 }
 0x190   : > { %v2006_v38 = vadd.f32 %v2005_v48, %v1872_v61 }
 0x191   : > { %v1945_v40 = vadd.f32 %v1944_v32, %v1875_v19  ;;  %v1748_v12 = vadd.f32 %v1747_v8, %v3408_v55  ;;  %v1686_v30 = vadd.f32 %v1685_v45, %v3413_v9  ;;  %v1881_v55 = vmul.f32 %v3436_v33, %v3436_v33 }
 0x192   : > { %v2007_v27 = vadd.f32 %v2006_v38, %v1874_v14 }
 0x193   : > { %v1946_v21 = vadd.f32 %v1945_v40, %v1877_v13  ;;  %v1749_v31 = vadd.f32 %v1748_v12, %v3416_v35  ;;  %v1687_v51 = vadd.f32 %v1686_v30, %v3421_v2  ;;  %v1883_v35 = vmul.f32 %v3455_v28, %v3455_v28 }
 0x194   : > { %v2008_v41 = vadd.f32 %v2007_v27, %v1876_v49 }
 0x195   : > { %v1947_v52 = vadd.f32 %v1946_v21, %v1879_v43  ;;  %v1750_v9 = vadd.f32 %v1749_v31, %v3427_v59  ;;  %v1688_v26 = vadd.f32 %v1687_v51, %v3436_v33  ;;  %v1885_v59 = vmul.f32 %v3474_v23, %v3474_v23 }
 0x196   : > { %v2009_v22 = vadd.f32 %v2008_v41, %v1878_v4 }
 0x197   : > { %v1948_v53 = vadd.f32 %v1947_v52, %v1881_v55  ;;  %v1751_v2 = vadd.f32 %v1750_v9, %v3445_v11  ;;  %v1689_v36 = vadd.f32 %v1688_v26, %v3455_v28  ;;  %v1887_v11 = vmul.f32 %v3493_v25, %v3493_v25 }
 0x198   : > { %v2010_v0 = vadd.f32 %v2009_v22, %v1880_v60 }
 0x199   : > { %v1949_v37 = vadd.f32 %v1948_v53, %v1883_v35  ;;  %v1752_v33 = vadd.f32 %v1751_v2, %v3464_v54  ;;  %v1690_v57 = vadd.f32 %v1689_v36, %v3474_v23 }
 0x19a   : > { %v2011_v29 = vadd.f32 %v2010_v0, %v1882_v44 }
 0x19b   : > { %v1950_v5 = vadd.f32 %v1949_v37, %v1885_v59  ;;  %v1753_v28 = vadd.f32 %v1752_v33, %v3483_v3  ;;  %v1691_v47 = vadd.f32 %v1690_v57, %v3493_v25 }
 0x19c   : > { %v2012_v24 = vadd.f32 %v2011_v29, %v1884_v1 }
 0x19d   : > { %v1951_v23 = vadd.f32 %v1950_v5, %v1887_v11  ;;  %v1754_v42 = vadd.f32 %v1753_v28, %v3502_v17  ;;  %1757 = vst [vmem:[%s300_s21] sm:$0xff] %v1691_v47 }
 0x19e   : > { %v2013_v54 = vadd.f32 %v2012_v24, %v1886_v58 }
 0x19f   : > { %2017 = vst [vmem:[%s305_s15] sm:$0xff] %v1951_v23  ;;  %1758 = vst [vmem:[%s300_s21 + $0x8] sm:$0xff] %v1754_v42 }
 0x1a0   : > { %v2014_v25 = vadd.f32 %v2013_v54, %v1888_v63 }
 0x1a2   : > { %2018 = vst [vmem:[%s305_s15 + $0x8] sm:$0xff] %v2014_v25 }
 0x1a3 PF: > { %s17_s23 = sadd.s32 1, %s2571_s23   ;;  %s3738_s21 = smov %s2567_s22 }
 0x1a4   : > { %p14_p6 = scmp.ge.s32.totalorder %s17_s23, 4   ;;  %s3739_s22 = smov %s3741_s24 }
 0x1a6   :  { %16 = sbr.rel (!%p14_p6) target bundleno = 2 (0x2), region = 94 }

</bundles_post_ra>
